<compile_context>
chip_gen: v7x
topology: tpu7x:2x2x1
jax: 0.10.0
libtpu: 0.0.40
codegen_flags: <defaults>
</compile_context>

<pallas_src>
from functools import partial

import jax
import jax.numpy as jnp
from jax.experimental import pallas as pl
from jax.experimental.pallas import tpu as pltpu


def _resblock_kernel(x_ref, w_ref, b_ref, o_ref, pad_ref, *,
                     Bt, H, W, C, K, scale):
    # x_ref  : (Bt, H, W, C)   f32   NHWC input block (C on the 128-lane axis)
    # w_ref  : (K*K, C, C)     bf16  per-tap weights, tap j = ky*K + kx,
    #                                w_ref[j][ci, co]
    # b_ref  : (1, C)          f32   conv bias (shared by both convs)
    # o_ref  : (Bt, H, W, C)   f32   output block
    # pad_ref: (Bt, Hp, Wp, C) bf16  zero-halo padded scratch (persistent)
    p = (K - 1) // 2
    Hp, Wp = H + 2 * p, W + 2 * p
    M = Bt * H * W

    # Re-zero only the thin halo border each step; the interior is fully
    # overwritten below.  (A pl.when(pid == 0)-only init is unsafe when the
    # "parallel" grid axis is split across TensorCores.)
    if p > 0:
        z_row = jnp.zeros((Bt, p, Wp, C), jnp.bfloat16)
        z_col = jnp.zeros((Bt, H, p, C), jnp.bfloat16)
        pad_ref[:, 0:p, :, :] = z_row
        pad_ref[:, p + H:Hp, :, :] = z_row
        pad_ref[:, p:p + H, 0:p, :] = z_col
        pad_ref[:, p:p + H, p + W:Wp, :] = z_col

    def conv():
        # K*K accumulating MXU matmuls with bf16 inputs and f32 accumulation,
        # taken directly from the padded scratch (no im2col round trip).
        acc = jnp.zeros((M, C), jnp.float32)
        for ky in range(K):
            for kx in range(K):
                win = pad_ref[:, ky:ky + H, kx:kx + W, :].reshape(M, C)
                acc = acc + jnp.dot(win, w_ref[ky * K + kx],
                                    preferred_element_type=jnp.float32)
        return acc + b_ref[...]

    # conv1 + relu  (bf16 cast happens only at the matmul input, i.e. when
    # writing into the bf16 pad scratch; elementwise math stays f32)
    pad_ref[:, p:p + H, p:p + W, :] = x_ref[...].astype(jnp.bfloat16)
    t1 = jnp.maximum(conv(), 0.0)                               # (M, C) f32

    # conv2 (same weights & bias, exactly as the PyTorch module reuses
    # self.conv3), then scale and residual add; full-lane store.
    pad_ref[:, p:p + H, p:p + W, :] = (
        t1.reshape(Bt, H, W, C).astype(jnp.bfloat16))
    t2 = conv()                                                 # (M, C) f32
    o_ref[...] = t2.reshape(Bt, H, W, C) * scale + x_ref[...]


def _tensorcores_per_chip():
    # v5e / v6e expose a single TensorCore per chip; v4 / v5p / v7x expose 2
    # (megacore / dual-TC). Unknown -> assume 2 (only costs a few extra,
    # cheap grid steps on a 1-TC chip).
    try:
        kind = jax.devices()[0].device_kind.lower()
    except Exception:
        return 2
    if any(t in kind for t in ("v5 lite", "v5e", "v5litepod", "v6 lite", "v6e")):
        return 1
    return 2


def _vmem_bytes(Bt, H, W, Hp, Wp, C, K):
    blk_in = Bt * H * W * C * 4          # f32 input block
    blk_out = Bt * H * W * C * 4         # f32 output block
    wgt = K * K * C * C * 2              # bf16 weights
    bias = C * 4
    pad = Bt * Hp * (-(-Wp // 16) * 16) * C * 2   # bf16 pad scratch (sublane-padded)
    # in / out / weights are double-buffered by the BlockSpec pipeline.
    return 2 * (blk_in + blk_out + wgt + bias) + pad


def _pick_batch_tile(B, H, W, C, K, target_steps, budget_bytes):
    p = (K - 1) // 2
    Hp, Wp = H + 2 * p, W + 2 * p
    divisors = [d for d in range(B, 0, -1) if B % d == 0]
    for d in divisors:                       # largest tile giving enough steps
        if B // d >= target_steps and _vmem_bytes(d, H, W, Hp, Wp, C, K) <= budget_bytes:
            return d
    for d in divisors:                       # fallback: just fit the budget
        if _vmem_bytes(d, H, W, Hp, Wp, C, K) <= budget_bytes:
            return d
    return 1


def resblock_forward_nhwc(x_nhwc, w_oihw, bias, scale=0.1):
    B, H, W, C = x_nhwc.shape
    K = w_oihw.shape[2]
    p = (K - 1) // 2
    Hp, Wp = H + 2 * p, W + 2 * p
    assert C % 128 == 0, "channels must be lane-dense (module default is 128)"

    # Batch tile: >=2 grid steps per TensorCore on dual-TC chips so DMA/compute
    # overlap; keep Bt as large as the VMEM budget allows on single-TC chips.
    n_tc = _tensorcores_per_chip()
    target_steps = 2 * n_tc if n_tc > 1 else 2
    budget = 24 * 1024 * 1024
    Bt = _pick_batch_tile(B, H, W, C, K, target_steps, budget)

    # Glue (layout only): OIHW -> (ky, kx, ci, co) -> (K*K, C_in, C_out) bf16.
    x32 = x_nhwc.astype(jnp.float32)
    w_taps = jnp.transpose(w_oihw, (2, 3, 1, 0)).reshape(K * K, C, C)
    w_taps = w_taps.astype(jnp.bfloat16)
    b2 = bias.reshape(1, C).astype(jnp.float32)

    kernel = partial(_resblock_kernel, Bt=Bt, H=H, W=W, C=C, K=K,
                     scale=float(scale))

    params = dict(dimension_semantics=("parallel",))
    need = _vmem_bytes(Bt, H, W, Hp, Wp, C, K)
    if need > 12 * 1024 * 1024:
        # Raise the scoped-VMEM cap (v5e default is 16 MiB) but stay well under
        # v7x's 64 MiB physical VMEM.
        params["vmem_limit_bytes"] = min(2 * need, 48 * 1024 * 1024)

    out_nhwc = pl.pallas_call(
        kernel,
        out_shape=jax.ShapeDtypeStruct((B, H, W, C), jnp.float32),
        grid_spec=pltpu.PrefetchScalarGridSpec(
            num_scalar_prefetch=0,
            grid=(B // Bt,),
            in_specs=[
                pl.BlockSpec((Bt, H, W, C), lambda b: (b, 0, 0, 0)),
                pl.BlockSpec((K * K, C, C), lambda b: (0, 0, 0)),
                pl.BlockSpec((1, C), lambda b: (0, 0)),
            ],
            out_specs=pl.BlockSpec((Bt, H, W, C), lambda b: (b, 0, 0, 0)),
            scratch_shapes=[
                pltpu.VMEM((Bt, Hp, Wp, C), jnp.bfloat16),   # zero-halo pad
            ],
        ),
        compiler_params=pltpu.CompilerParams(**params),
    )(x32, w_taps, b2)
    return out_nhwc


def resblock_forward(x_nchw, w_oihw, bias, scale=0.1):
    # Layout glue only (module API is NCHW / OIHW).  If the surrounding model
    # carries NHWC, call resblock_forward_nhwc directly and skip both
    # transposes (they cost an extra HBM round trip of x / out).
    x_nhwc = jnp.transpose(x_nchw, (0, 2, 3, 1))
    out_nhwc = resblock_forward_nhwc(x_nhwc, w_oihw, bias, scale=scale)
    return jnp.transpose(out_nhwc, (0, 3, 1, 2))


def _reference_forward(x_nchw, w_oihw, bias, scale=0.1):
    # Pure-JAX reference matching PyTorch semantics (NCHW, OIHW, "same" pad),
    # forced to true-f32 matmul passes so the comparison is well defined.
    p = (w_oihw.shape[2] - 1) // 2

    def conv(z):
        y = jax.lax.conv_general_dilated(
            z, w_oihw, window_strides=(1, 1), padding=((p, p), (p, p)),
            dimension_numbers=("NCHW", "OIHW", "NCHW"),
            precision=jax.lax.Precision.HIGHEST)
        return y + bias.reshape(1, -1, 1, 1)

    t = jax.nn.relu(conv(x_nchw))
    t = conv(t)
    return t * scale + x_nchw


if __name__ == "__main__":
    # Module defaults: feature_size=128 channels, 3x3 conv, pad 1.
    B, C, H, W, K = 4, 128, 16, 16, 3
    scale = 0.1

    key = jax.random.PRNGKey(0)
    k_x, k_w, k_b = jax.random.split(key, 3)
    x = jax.random.normal(k_x, (B, C, H, W), dtype=jnp.float32)
    # deterministic synthetic conv3 parameters (PyTorch-like fan-in scaling)
    fan_in = C * K * K
    w = jax.random.normal(k_w, (C, C, K, K), dtype=jnp.float32) / jnp.sqrt(fan_in)
    b = jax.random.normal(k_b, (C,), dtype=jnp.float32) * 0.01

    out = jax.block_until_ready(resblock_forward(x, w, b, scale=scale))
    ref = jax.block_until_ready(_reference_forward(x, w, b, scale=scale))

    assert out.shape == (B, C, H, W)
    max_err = float(jnp.max(jnp.abs(out - ref)))
    # bf16 MXU inputs with f32 accumulation over a 1152-deep contraction:
    # tolerance relaxed vs the pure-f32 variant (observed error ~1e-3).
    assert jnp.allclose(out, ref, atol=1e-2, rtol=1e-2), max_err
    print("KERNEL_OK")
</pallas_src>

<mosaic_0001>
module attributes {stable_mosaic.version = 11 : i64} {
  func.func @_resblock_kernel(%arg0: i32, %arg1: memref<1x16x16x128xf32, #tpu.memory_space<vmem>>, %arg2: memref<9x128x128xbf16, #tpu.memory_space<vmem>>, %arg3: memref<1x128xf32, #tpu.memory_space<vmem>>, %arg4: memref<1x16x16x128xf32, #tpu.memory_space<vmem>>, %arg5: memref<1x18x18x128xbf16, #tpu.memory_space<vmem>>) attributes {dimension_semantics = [#tpu.dimension_semantics<parallel>], iteration_bounds = array<i64: 4>, scalar_prefetch = 0 : i64, scratch_operands = 1 : i64, tpu.core_type = #tpu.core_type<tc>, window_params = [{transform_indices = @transform_0, window_bounds = array<i64: 1, 16, 16, 128>}, {pipeline_mode = #tpu.pipeline_mode<synchronous>, transform_indices = @transform_1, window_bounds = array<i64: 9, 128, 128>}, {pipeline_mode = #tpu.pipeline_mode<synchronous>, transform_indices = @transform_2, window_bounds = array<i64: 1, 128>}, {transform_indices = @transform_3, window_bounds = array<i64: 1, 16, 16, 128>}]} {
    %cst = arith.constant 0.000000e+00 : bf16
    %0 = vector.broadcast %cst : bf16 to vector<1x1x18x128xbf16>
    %cst_0 = arith.constant 0.000000e+00 : bf16
    %1 = vector.broadcast %cst_0 : bf16 to vector<1x16x1x128xbf16>
    %c0 = arith.constant 0 : index
    %c0_1 = arith.constant 0 : index
    %c0_2 = arith.constant 0 : index
    %c0_3 = arith.constant 0 : index
    %2 = vector.load %arg5[%c0, %c0_1, %c0_2, %c0_3] : memref<1x18x18x128xbf16, #tpu.memory_space<vmem>>, vector<1x1x18x128xbf16>
    tpu.vector_store %arg5[%c0, %c0_1, %c0_2, %c0_3], %0 {strides = array<i32>} : memref<1x18x18x128xbf16, #tpu.memory_space<vmem>>, vector<1x1x18x128xbf16>,
    %c0_4 = arith.constant 0 : index
    %c17 = arith.constant 17 : index
    %c0_5 = arith.constant 0 : index
    %c0_6 = arith.constant 0 : index
    %3 = vector.load %arg5[%c0_4, %c17, %c0_5, %c0_6] : memref<1x18x18x128xbf16, #tpu.memory_space<vmem>>, vector<1x1x18x128xbf16>
    tpu.vector_store %arg5[%c0_4, %c17, %c0_5, %c0_6], %0 {strides = array<i32>} : memref<1x18x18x128xbf16, #tpu.memory_space<vmem>>, vector<1x1x18x128xbf16>,
    %c0_7 = arith.constant 0 : index
    %c1 = arith.constant 1 : index
    %c0_8 = arith.constant 0 : index
    %c0_9 = arith.constant 0 : index
    %4 = vector.load %arg5[%c0_7, %c1, %c0_8, %c0_9] : memref<1x18x18x128xbf16, #tpu.memory_space<vmem>>, vector<1x16x1x128xbf16>
    tpu.vector_store %arg5[%c0_7, %c1, %c0_8, %c0_9], %1 {strides = array<i32>} : memref<1x18x18x128xbf16, #tpu.memory_space<vmem>>, vector<1x16x1x128xbf16>,
    %c0_10 = arith.constant 0 : index
    %c1_11 = arith.constant 1 : index
    %c17_12 = arith.constant 17 : index
    %c0_13 = arith.constant 0 : index
    %5 = vector.load %arg5[%c0_10, %c1_11, %c17_12, %c0_13] : memref<1x18x18x128xbf16, #tpu.memory_space<vmem>>, vector<1x16x1x128xbf16>
    tpu.vector_store %arg5[%c0_10, %c1_11, %c17_12, %c0_13], %1 {strides = array<i32>} : memref<1x18x18x128xbf16, #tpu.memory_space<vmem>>, vector<1x16x1x128xbf16>,
    %c0_14 = arith.constant 0 : index
    %c0_15 = arith.constant 0 : index
    %c0_16 = arith.constant 0 : index
    %c0_17 = arith.constant 0 : index
    %6 = vector.load %arg1[%c0_14, %c0_15, %c0_16, %c0_17] : memref<1x16x16x128xf32, #tpu.memory_space<vmem>>, vector<1x16x16x128xf32>
    %7 = arith.truncf %6 : vector<1x16x16x128xf32> to vector<1x16x16x128xbf16>
    %c0_18 = arith.constant 0 : index
    %c1_19 = arith.constant 1 : index
    %c1_20 = arith.constant 1 : index
    %c0_21 = arith.constant 0 : index
    %8 = vector.load %arg5[%c0_18, %c1_19, %c1_20, %c0_21] : memref<1x18x18x128xbf16, #tpu.memory_space<vmem>>, vector<1x16x16x128xbf16>
    tpu.vector_store %arg5[%c0_18, %c1_19, %c1_20, %c0_21], %7 {strides = array<i32>} : memref<1x18x18x128xbf16, #tpu.memory_space<vmem>>, vector<1x16x16x128xbf16>,
    %cst_22 = arith.constant 0.000000e+00 : f32
    %9 = vector.broadcast %cst_22 : f32 to vector<256x128xf32>
    %c0_23 = arith.constant 0 : index
    %c0_24 = arith.constant 0 : index
    %c0_25 = arith.constant 0 : index
    %c0_26 = arith.constant 0 : index
    %10 = vector.load %arg5[%c0_23, %c0_24, %c0_25, %c0_26] : memref<1x18x18x128xbf16, #tpu.memory_space<vmem>>, vector<1x16x16x128xbf16>
    %11 = vector.shape_cast %10 : vector<1x16x16x128xbf16> to vector<256x128xbf16>
    %c0_27 = arith.constant 0 : index
    %c0_28 = arith.constant 0 : index
    %c0_29 = arith.constant 0 : index
    %12 = vector.load %arg2[%c0_27, %c0_28, %c0_29] : memref<9x128x128xbf16, #tpu.memory_space<vmem>>, vector<1x128x128xbf16>
    %13 = vector.shape_cast %12 : vector<1x128x128xbf16> to vector<128x128xbf16>
    %cst_30 = arith.constant dense<0.000000e+00> : vector<256x128xf32>
    %14 = tpu.matmul %11, %13, %cst_30 {dimension_numbers = #tpu.dot_dimension_numbers<[1], [0], [0], [1], [0, 0, 1, 1], [], []>} : vector<256x128xbf16>, vector<128x128xbf16>, vector<256x128xf32> -> vector<256x128xf32>
    %15 = arith.addf %9, %14 : vector<256x128xf32>
    %c0_31 = arith.constant 0 : index
    %c0_32 = arith.constant 0 : index
    %c1_33 = arith.constant 1 : index
    %c0_34 = arith.constant 0 : index
    %16 = vector.load %arg5[%c0_31, %c0_32, %c1_33, %c0_34] : memref<1x18x18x128xbf16, #tpu.memory_space<vmem>>, vector<1x16x16x128xbf16>
    %17 = vector.shape_cast %16 : vector<1x16x16x128xbf16> to vector<256x128xbf16>
    %c1_35 = arith.constant 1 : index
    %c0_36 = arith.constant 0 : index
    %c0_37 = arith.constant 0 : index
    %18 = vector.load %arg2[%c1_35, %c0_36, %c0_37] : memref<9x128x128xbf16, #tpu.memory_space<vmem>>, vector<1x128x128xbf16>
    %19 = vector.shape_cast %18 : vector<1x128x128xbf16> to vector<128x128xbf16>
    %cst_38 = arith.constant dense<0.000000e+00> : vector<256x128xf32>
    %20 = tpu.matmul %17, %19, %cst_38 {dimension_numbers = #tpu.dot_dimension_numbers<[1], [0], [0], [1], [0, 0, 1, 1], [], []>} : vector<256x128xbf16>, vector<128x128xbf16>, vector<256x128xf32> -> vector<256x128xf32>
    %21 = arith.addf %15, %20 : vector<256x128xf32>
    %c0_39 = arith.constant 0 : index
    %c0_40 = arith.constant 0 : index
    %c2 = arith.constant 2 : index
    %c0_41 = arith.constant 0 : index
    %22 = vector.load %arg5[%c0_39, %c0_40, %c2, %c0_41] : memref<1x18x18x128xbf16, #tpu.memory_space<vmem>>, vector<1x16x16x128xbf16>
    %23 = vector.shape_cast %22 : vector<1x16x16x128xbf16> to vector<256x128xbf16>
    %c2_42 = arith.constant 2 : index
    %c0_43 = arith.constant 0 : index
    %c0_44 = arith.constant 0 : index
    %24 = vector.load %arg2[%c2_42, %c0_43, %c0_44] : memref<9x128x128xbf16, #tpu.memory_space<vmem>>, vector<1x128x128xbf16>
    %25 = vector.shape_cast %24 : vector<1x128x128xbf16> to vector<128x128xbf16>
    %cst_45 = arith.constant dense<0.000000e+00> : vector<256x128xf32>
    %26 = tpu.matmul %23, %25, %cst_45 {dimension_numbers = #tpu.dot_dimension_numbers<[1], [0], [0], [1], [0, 0, 1, 1], [], []>} : vector<256x128xbf16>, vector<128x128xbf16>, vector<256x128xf32> -> vector<256x128xf32>
    %27 = arith.addf %21, %26 : vector<256x128xf32>
    %c0_46 = arith.constant 0 : index
    %c1_47 = arith.constant 1 : index
    %c0_48 = arith.constant 0 : index
    %c0_49 = arith.constant 0 : index
    %28 = vector.load %arg5[%c0_46, %c1_47, %c0_48, %c0_49] : memref<1x18x18x128xbf16, #tpu.memory_space<vmem>>, vector<1x16x16x128xbf16>
    %29 = vector.shape_cast %28 : vector<1x16x16x128xbf16> to vector<256x128xbf16>
    %c3 = arith.constant 3 : index
    %c0_50 = arith.constant 0 : index
    %c0_51 = arith.constant 0 : index
    %30 = vector.load %arg2[%c3, %c0_50, %c0_51] : memref<9x128x128xbf16, #tpu.memory_space<vmem>>, vector<1x128x128xbf16>
    %31 = vector.shape_cast %30 : vector<1x128x128xbf16> to vector<128x128xbf16>
    %cst_52 = arith.constant dense<0.000000e+00> : vector<256x128xf32>
    %32 = tpu.matmul %29, %31, %cst_52 {dimension_numbers = #tpu.dot_dimension_numbers<[1], [0], [0], [1], [0, 0, 1, 1], [], []>} : vector<256x128xbf16>, vector<128x128xbf16>, vector<256x128xf32> -> vector<256x128xf32>
    %33 = arith.addf %27, %32 : vector<256x128xf32>
    %c0_53 = arith.constant 0 : index
    %c1_54 = arith.constant 1 : index
    %c1_55 = arith.constant 1 : index
    %c0_56 = arith.constant 0 : index
    %34 = vector.load %arg5[%c0_53, %c1_54, %c1_55, %c0_56] : memref<1x18x18x128xbf16, #tpu.memory_space<vmem>>, vector<1x16x16x128xbf16>
    %35 = vector.shape_cast %34 : vector<1x16x16x128xbf16> to vector<256x128xbf16>
    %c4 = arith.constant 4 : index
    %c0_57 = arith.constant 0 : index
    %c0_58 = arith.constant 0 : index
    %36 = vector.load %arg2[%c4, %c0_57, %c0_58] : memref<9x128x128xbf16, #tpu.memory_space<vmem>>, vector<1x128x128xbf16>
    %37 = vector.shape_cast %36 : vector<1x128x128xbf16> to vector<128x128xbf16>
    %cst_59 = arith.constant dense<0.000000e+00> : vector<256x128xf32>
    %38 = tpu.matmul %35, %37, %cst_59 {dimension_numbers = #tpu.dot_dimension_numbers<[1], [0], [0], [1], [0, 0, 1, 1], [], []>} : vector<256x128xbf16>, vector<128x128xbf16>, vector<256x128xf32> -> vector<256x128xf32>
    %39 = arith.addf %33, %38 : vector<256x128xf32>
    %c0_60 = arith.constant 0 : index
    %c1_61 = arith.constant 1 : index
    %c2_62 = arith.constant 2 : index
    %c0_63 = arith.constant 0 : index
    %40 = vector.load %arg5[%c0_60, %c1_61, %c2_62, %c0_63] : memref<1x18x18x128xbf16, #tpu.memory_space<vmem>>, vector<1x16x16x128xbf16>
    %41 = vector.shape_cast %40 : vector<1x16x16x128xbf16> to vector<256x128xbf16>
    %c5 = arith.constant 5 : index
    %c0_64 = arith.constant 0 : index
    %c0_65 = arith.constant 0 : index
    %42 = vector.load %arg2[%c5, %c0_64, %c0_65] : memref<9x128x128xbf16, #tpu.memory_space<vmem>>, vector<1x128x128xbf16>
    %43 = vector.shape_cast %42 : vector<1x128x128xbf16> to vector<128x128xbf16>
    %cst_66 = arith.constant dense<0.000000e+00> : vector<256x128xf32>
    %44 = tpu.matmul %41, %43, %cst_66 {dimension_numbers = #tpu.dot_dimension_numbers<[1], [0], [0], [1], [0, 0, 1, 1], [], []>} : vector<256x128xbf16>, vector<128x128xbf16>, vector<256x128xf32> -> vector<256x128xf32>
    %45 = arith.addf %39, %44 : vector<256x128xf32>
    %c0_67 = arith.constant 0 : index
    %c2_68 = arith.constant 2 : index
    %c0_69 = arith.constant 0 : index
    %c0_70 = arith.constant 0 : index
    %46 = vector.load %arg5[%c0_67, %c2_68, %c0_69, %c0_70] : memref<1x18x18x128xbf16, #tpu.memory_space<vmem>>, vector<1x16x16x128xbf16>
    %47 = vector.shape_cast %46 : vector<1x16x16x128xbf16> to vector<256x128xbf16>
    %c6 = arith.constant 6 : index
    %c0_71 = arith.constant 0 : index
    %c0_72 = arith.constant 0 : index
    %48 = vector.load %arg2[%c6, %c0_71, %c0_72] : memref<9x128x128xbf16, #tpu.memory_space<vmem>>, vector<1x128x128xbf16>
    %49 = vector.shape_cast %48 : vector<1x128x128xbf16> to vector<128x128xbf16>
    %cst_73 = arith.constant dense<0.000000e+00> : vector<256x128xf32>
    %50 = tpu.matmul %47, %49, %cst_73 {dimension_numbers = #tpu.dot_dimension_numbers<[1], [0], [0], [1], [0, 0, 1, 1], [], []>} : vector<256x128xbf16>, vector<128x128xbf16>, vector<256x128xf32> -> vector<256x128xf32>
    %51 = arith.addf %45, %50 : vector<256x128xf32>
    %c0_74 = arith.constant 0 : index
    %c2_75 = arith.constant 2 : index
    %c1_76 = arith.constant 1 : index
    %c0_77 = arith.constant 0 : index
    %52 = vector.load %arg5[%c0_74, %c2_75, %c1_76, %c0_77] : memref<1x18x18x128xbf16, #tpu.memory_space<vmem>>, vector<1x16x16x128xbf16>
    %53 = vector.shape_cast %52 : vector<1x16x16x128xbf16> to vector<256x128xbf16>
    %c7 = arith.constant 7 : index
    %c0_78 = arith.constant 0 : index
    %c0_79 = arith.constant 0 : index
    %54 = vector.load %arg2[%c7, %c0_78, %c0_79] : memref<9x128x128xbf16, #tpu.memory_space<vmem>>, vector<1x128x128xbf16>
    %55 = vector.shape_cast %54 : vector<1x128x128xbf16> to vector<128x128xbf16>
    %cst_80 = arith.constant dense<0.000000e+00> : vector<256x128xf32>
    %56 = tpu.matmul %53, %55, %cst_80 {dimension_numbers = #tpu.dot_dimension_numbers<[1], [0], [0], [1], [0, 0, 1, 1], [], []>} : vector<256x128xbf16>, vector<128x128xbf16>, vector<256x128xf32> -> vector<256x128xf32>
    %57 = arith.addf %51, %56 : vector<256x128xf32>
    %c0_81 = arith.constant 0 : index
    %c2_82 = arith.constant 2 : index
    %c2_83 = arith.constant 2 : index
    %c0_84 = arith.constant 0 : index
    %58 = vector.load %arg5[%c0_81, %c2_82, %c2_83, %c0_84] : memref<1x18x18x128xbf16, #tpu.memory_space<vmem>>, vector<1x16x16x128xbf16>
    %59 = vector.shape_cast %58 : vector<1x16x16x128xbf16> to vector<256x128xbf16>
    %c8 = arith.constant 8 : index
    %c0_85 = arith.constant 0 : index
    %c0_86 = arith.constant 0 : index
    %60 = vector.load %arg2[%c8, %c0_85, %c0_86] : memref<9x128x128xbf16, #tpu.memory_space<vmem>>, vector<1x128x128xbf16>
    %61 = vector.shape_cast %60 : vector<1x128x128xbf16> to vector<128x128xbf16>
    %cst_87 = arith.constant dense<0.000000e+00> : vector<256x128xf32>
    %62 = tpu.matmul %59, %61, %cst_87 {dimension_numbers = #tpu.dot_dimension_numbers<[1], [0], [0], [1], [0, 0, 1, 1], [], []>} : vector<256x128xbf16>, vector<128x128xbf16>, vector<256x128xf32> -> vector<256x128xf32>
    %63 = arith.addf %57, %62 : vector<256x128xf32>
    %c0_88 = arith.constant 0 : index
    %c0_89 = arith.constant 0 : index
    %64 = vector.load %arg3[%c0_88, %c0_89] : memref<1x128xf32, #tpu.memory_space<vmem>>, vector<1x128xf32>
    %65 = vector.broadcast %64 : vector<1x128xf32> to vector<256x128xf32>
    %66 = arith.addf %63, %65 : vector<256x128xf32>
    %cst_90 = arith.constant 0.000000e+00 : f32
    %67 = vector.broadcast %cst_90 : f32 to vector<256x128xf32>
    %68 = arith.maximumf %66, %67 : vector<256x128xf32>
    %69 = vector.shape_cast %68 : vector<256x128xf32> to vector<1x16x16x128xf32>
    %70 = arith.truncf %69 : vector<1x16x16x128xf32> to vector<1x16x16x128xbf16>
    %c0_91 = arith.constant 0 : index
    %c1_92 = arith.constant 1 : index
    %c1_93 = arith.constant 1 : index
    %c0_94 = arith.constant 0 : index
    %71 = vector.load %arg5[%c0_91, %c1_92, %c1_93, %c0_94] : memref<1x18x18x128xbf16, #tpu.memory_space<vmem>>, vector<1x16x16x128xbf16>
    tpu.vector_store %arg5[%c0_91, %c1_92, %c1_93, %c0_94], %70 {strides = array<i32>} : memref<1x18x18x128xbf16, #tpu.memory_space<vmem>>, vector<1x16x16x128xbf16>,
    %cst_95 = arith.constant 0.000000e+00 : f32
    %72 = vector.broadcast %cst_95 : f32 to vector<256x128xf32>
    %c0_96 = arith.constant 0 : index
    %c0_97 = arith.constant 0 : index
    %c0_98 = arith.constant 0 : index
    %c0_99 = arith.constant 0 : index
    %73 = vector.load %arg5[%c0_96, %c0_97, %c0_98, %c0_99] : memref<1x18x18x128xbf16, #tpu.memory_space<vmem>>, vector<1x16x16x128xbf16>
    %74 = vector.shape_cast %73 : vector<1x16x16x128xbf16> to vector<256x128xbf16>
    %c0_100 = arith.constant 0 : index
    %c0_101 = arith.constant 0 : index
    %c0_102 = arith.constant 0 : index
    %75 = vector.load %arg2[%c0_100, %c0_101, %c0_102] : memref<9x128x128xbf16, #tpu.memory_space<vmem>>, vector<1x128x128xbf16>
    %76 = vector.shape_cast %75 : vector<1x128x128xbf16> to vector<128x128xbf16>
    %cst_103 = arith.constant dense<0.000000e+00> : vector<256x128xf32>
    %77 = tpu.matmul %74, %76, %cst_103 {dimension_numbers = #tpu.dot_dimension_numbers<[1], [0], [0], [1], [0, 0, 1, 1], [], []>} : vector<256x128xbf16>, vector<128x128xbf16>, vector<256x128xf32> -> vector<256x128xf32>
    %78 = arith.addf %72, %77 : vector<256x128xf32>
    %c0_104 = arith.constant 0 : index
    %c0_105 = arith.constant 0 : index
    %c1_106 = arith.constant 1 : index
    %c0_107 = arith.constant 0 : index
    %79 = vector.load %arg5[%c0_104, %c0_105, %c1_106, %c0_107] : memref<1x18x18x128xbf16, #tpu.memory_space<vmem>>, vector<1x16x16x128xbf16>
    %80 = vector.shape_cast %79 : vector<1x16x16x128xbf16> to vector<256x128xbf16>
    %c1_108 = arith.constant 1 : index
    %c0_109 = arith.constant 0 : index
    %c0_110 = arith.constant 0 : index
    %81 = vector.load %arg2[%c1_108, %c0_109, %c0_110] : memref<9x128x128xbf16, #tpu.memory_space<vmem>>, vector<1x128x128xbf16>
    %82 = vector.shape_cast %81 : vector<1x128x128xbf16> to vector<128x128xbf16>
    %cst_111 = arith.constant dense<0.000000e+00> : vector<256x128xf32>
    %83 = tpu.matmul %80, %82, %cst_111 {dimension_numbers = #tpu.dot_dimension_numbers<[1], [0], [0], [1], [0, 0, 1, 1], [], []>} : vector<256x128xbf16>, vector<128x128xbf16>, vector<256x128xf32> -> vector<256x128xf32>
    %84 = arith.addf %78, %83 : vector<256x128xf32>
    %c0_112 = arith.constant 0 : index
    %c0_113 = arith.constant 0 : index
    %c2_114 = arith.constant 2 : index
    %c0_115 = arith.constant 0 : index
    %85 = vector.load %arg5[%c0_112, %c0_113, %c2_114, %c0_115] : memref<1x18x18x128xbf16, #tpu.memory_space<vmem>>, vector<1x16x16x128xbf16>
    %86 = vector.shape_cast %85 : vector<1x16x16x128xbf16> to vector<256x128xbf16>
    %c2_116 = arith.constant 2 : index
    %c0_117 = arith.constant 0 : index
    %c0_118 = arith.constant 0 : index
    %87 = vector.load %arg2[%c2_116, %c0_117, %c0_118] : memref<9x128x128xbf16, #tpu.memory_space<vmem>>, vector<1x128x128xbf16>
    %88 = vector.shape_cast %87 : vector<1x128x128xbf16> to vector<128x128xbf16>
    %cst_119 = arith.constant dense<0.000000e+00> : vector<256x128xf32>
    %89 = tpu.matmul %86, %88, %cst_119 {dimension_numbers = #tpu.dot_dimension_numbers<[1], [0], [0], [1], [0, 0, 1, 1], [], []>} : vector<256x128xbf16>, vector<128x128xbf16>, vector<256x128xf32> -> vector<256x128xf32>
    %90 = arith.addf %84, %89 : vector<256x128xf32>
    %c0_120 = arith.constant 0 : index
    %c1_121 = arith.constant 1 : index
    %c0_122 = arith.constant 0 : index
    %c0_123 = arith.constant 0 : index
    %91 = vector.load %arg5[%c0_120, %c1_121, %c0_122, %c0_123] : memref<1x18x18x128xbf16, #tpu.memory_space<vmem>>, vector<1x16x16x128xbf16>
    %92 = vector.shape_cast %91 : vector<1x16x16x128xbf16> to vector<256x128xbf16>
    %c3_124 = arith.constant 3 : index
    %c0_125 = arith.constant 0 : index
    %c0_126 = arith.constant 0 : index
    %93 = vector.load %arg2[%c3_124, %c0_125, %c0_126] : memref<9x128x128xbf16, #tpu.memory_space<vmem>>, vector<1x128x128xbf16>
    %94 = vector.shape_cast %93 : vector<1x128x128xbf16> to vector<128x128xbf16>
    %cst_127 = arith.constant dense<0.000000e+00> : vector<256x128xf32>
    %95 = tpu.matmul %92, %94, %cst_127 {dimension_numbers = #tpu.dot_dimension_numbers<[1], [0], [0], [1], [0, 0, 1, 1], [], []>} : vector<256x128xbf16>, vector<128x128xbf16>, vector<256x128xf32> -> vector<256x128xf32>
    %96 = arith.addf %90, %95 : vector<256x128xf32>
    %c0_128 = arith.constant 0 : index
    %c1_129 = arith.constant 1 : index
    %c1_130 = arith.constant 1 : index
    %c0_131 = arith.constant 0 : index
    %97 = vector.load %arg5[%c0_128, %c1_129, %c1_130, %c0_131] : memref<1x18x18x128xbf16, #tpu.memory_space<vmem>>, vector<1x16x16x128xbf16>
    %98 = vector.shape_cast %97 : vector<1x16x16x128xbf16> to vector<256x128xbf16>
    %c4_132 = arith.constant 4 : index
    %c0_133 = arith.constant 0 : index
    %c0_134 = arith.constant 0 : index
    %99 = vector.load %arg2[%c4_132, %c0_133, %c0_134] : memref<9x128x128xbf16, #tpu.memory_space<vmem>>, vector<1x128x128xbf16>
    %100 = vector.shape_cast %99 : vector<1x128x128xbf16> to vector<128x128xbf16>
    %cst_135 = arith.constant dense<0.000000e+00> : vector<256x128xf32>
    %101 = tpu.matmul %98, %100, %cst_135 {dimension_numbers = #tpu.dot_dimension_numbers<[1], [0], [0], [1], [0, 0, 1, 1], [], []>} : vector<256x128xbf16>, vector<128x128xbf16>, vector<256x128xf32> -> vector<256x128xf32>
    %102 = arith.addf %96, %101 : vector<256x128xf32>
    %c0_136 = arith.constant 0 : index
    %c1_137 = arith.constant 1 : index
    %c2_138 = arith.constant 2 : index
    %c0_139 = arith.constant 0 : index
    %103 = vector.load %arg5[%c0_136, %c1_137, %c2_138, %c0_139] : memref<1x18x18x128xbf16, #tpu.memory_space<vmem>>, vector<1x16x16x128xbf16>
    %104 = vector.shape_cast %103 : vector<1x16x16x128xbf16> to vector<256x128xbf16>
    %c5_140 = arith.constant 5 : index
    %c0_141 = arith.constant 0 : index
    %c0_142 = arith.constant 0 : index
    %105 = vector.load %arg2[%c5_140, %c0_141, %c0_142] : memref<9x128x128xbf16, #tpu.memory_space<vmem>>, vector<1x128x128xbf16>
    %106 = vector.shape_cast %105 : vector<1x128x128xbf16> to vector<128x128xbf16>
    %cst_143 = arith.constant dense<0.000000e+00> : vector<256x128xf32>
    %107 = tpu.matmul %104, %106, %cst_143 {dimension_numbers = #tpu.dot_dimension_numbers<[1], [0], [0], [1], [0, 0, 1, 1], [], []>} : vector<256x128xbf16>, vector<128x128xbf16>, vector<256x128xf32> -> vector<256x128xf32>
    %108 = arith.addf %102, %107 : vector<256x128xf32>
    %c0_144 = arith.constant 0 : index
    %c2_145 = arith.constant 2 : index
    %c0_146 = arith.constant 0 : index
    %c0_147 = arith.constant 0 : index
    %109 = vector.load %arg5[%c0_144, %c2_145, %c0_146, %c0_147] : memref<1x18x18x128xbf16, #tpu.memory_space<vmem>>, vector<1x16x16x128xbf16>
    %110 = vector.shape_cast %109 : vector<1x16x16x128xbf16> to vector<256x128xbf16>
    %c6_148 = arith.constant 6 : index
    %c0_149 = arith.constant 0 : index
    %c0_150 = arith.constant 0 : index
    %111 = vector.load %arg2[%c6_148, %c0_149, %c0_150] : memref<9x128x128xbf16, #tpu.memory_space<vmem>>, vector<1x128x128xbf16>
    %112 = vector.shape_cast %111 : vector<1x128x128xbf16> to vector<128x128xbf16>
    %cst_151 = arith.constant dense<0.000000e+00> : vector<256x128xf32>
    %113 = tpu.matmul %110, %112, %cst_151 {dimension_numbers = #tpu.dot_dimension_numbers<[1], [0], [0], [1], [0, 0, 1, 1], [], []>} : vector<256x128xbf16>, vector<128x128xbf16>, vector<256x128xf32> -> vector<256x128xf32>
    %114 = arith.addf %108, %113 : vector<256x128xf32>
    %c0_152 = arith.constant 0 : index
    %c2_153 = arith.constant 2 : index
    %c1_154 = arith.constant 1 : index
    %c0_155 = arith.constant 0 : index
    %115 = vector.load %arg5[%c0_152, %c2_153, %c1_154, %c0_155] : memref<1x18x18x128xbf16, #tpu.memory_space<vmem>>, vector<1x16x16x128xbf16>
    %116 = vector.shape_cast %115 : vector<1x16x16x128xbf16> to vector<256x128xbf16>
    %c7_156 = arith.constant 7 : index
    %c0_157 = arith.constant 0 : index
    %c0_158 = arith.constant 0 : index
    %117 = vector.load %arg2[%c7_156, %c0_157, %c0_158] : memref<9x128x128xbf16, #tpu.memory_space<vmem>>, vector<1x128x128xbf16>
    %118 = vector.shape_cast %117 : vector<1x128x128xbf16> to vector<128x128xbf16>
    %cst_159 = arith.constant dense<0.000000e+00> : vector<256x128xf32>
    %119 = tpu.matmul %116, %118, %cst_159 {dimension_numbers = #tpu.dot_dimension_numbers<[1], [0], [0], [1], [0, 0, 1, 1], [], []>} : vector<256x128xbf16>, vector<128x128xbf16>, vector<256x128xf32> -> vector<256x128xf32>
    %120 = arith.addf %114, %119 : vector<256x128xf32>
    %c0_160 = arith.constant 0 : index
    %c2_161 = arith.constant 2 : index
    %c2_162 = arith.constant 2 : index
    %c0_163 = arith.constant 0 : index
    %121 = vector.load %arg5[%c0_160, %c2_161, %c2_162, %c0_163] : memref<1x18x18x128xbf16, #tpu.memory_space<vmem>>, vector<1x16x16x128xbf16>
    %122 = vector.shape_cast %121 : vector<1x16x16x128xbf16> to vector<256x128xbf16>
    %c8_164 = arith.constant 8 : index
    %c0_165 = arith.constant 0 : index
    %c0_166 = arith.constant 0 : index
    %123 = vector.load %arg2[%c8_164, %c0_165, %c0_166] : memref<9x128x128xbf16, #tpu.memory_space<vmem>>, vector<1x128x128xbf16>
    %124 = vector.shape_cast %123 : vector<1x128x128xbf16> to vector<128x128xbf16>
    %cst_167 = arith.constant dense<0.000000e+00> : vector<256x128xf32>
    %125 = tpu.matmul %122, %124, %cst_167 {dimension_numbers = #tpu.dot_dimension_numbers<[1], [0], [0], [1], [0, 0, 1, 1], [], []>} : vector<256x128xbf16>, vector<128x128xbf16>, vector<256x128xf32> -> vector<256x128xf32>
    %126 = arith.addf %120, %125 : vector<256x128xf32>
    %c0_168 = arith.constant 0 : index
    %c0_169 = arith.constant 0 : index
    %127 = vector.load %arg3[%c0_168, %c0_169] : memref<1x128xf32, #tpu.memory_space<vmem>>, vector<1x128xf32>
    %128 = vector.broadcast %127 : vector<1x128xf32> to vector<256x128xf32>
    %129 = arith.addf %126, %128 : vector<256x128xf32>
    %130 = vector.shape_cast %129 : vector<256x128xf32> to vector<1x16x16x128xf32>
    %cst_170 = arith.constant 1.000000e-01 : f32
    %131 = vector.broadcast %cst_170 : f32 to vector<1x16x16x128xf32>
    %132 = arith.mulf %130, %131 : vector<1x16x16x128xf32>
    %c0_171 = arith.constant 0 : index
    %c0_172 = arith.constant 0 : index
    %c0_173 = arith.constant 0 : index
    %c0_174 = arith.constant 0 : index
    %133 = vector.load %arg1[%c0_171, %c0_172, %c0_173, %c0_174] : memref<1x16x16x128xf32, #tpu.memory_space<vmem>>, vector<1x16x16x128xf32>
    %134 = arith.addf %132, %133 : vector<1x16x16x128xf32>
    %c0_175 = arith.constant 0 : index
    %c0_176 = arith.constant 0 : index
    %c0_177 = arith.constant 0 : index
    %c0_178 = arith.constant 0 : index
    %135 = vector.load %arg4[%c0_175, %c0_176, %c0_177, %c0_178] : memref<1x16x16x128xf32, #tpu.memory_space<vmem>>, vector<1x16x16x128xf32>
    tpu.vector_store %arg4[%c0_175, %c0_176, %c0_177, %c0_178], %134 {strides = array<i32>} : memref<1x16x16x128xf32, #tpu.memory_space<vmem>>, vector<1x16x16x128xf32>,
    return
  }
  func.func @transform_0(%arg0: i32) -> (i32, i32, i32, i32) {
    %c0_i32 = arith.constant 0 : i32
    %c0_i32_0 = arith.constant 0 : i32
    %c0_i32_1 = arith.constant 0 : i32
    %c0_i32_2 = arith.constant 0 : i32
    return %arg0, %c0_i32, %c0_i32_0, %c0_i32_1 : i32, i32, i32, i32
  }
  func.func @transform_1(%arg0: i32) -> (i32, i32, i32) {
    %c0_i32 = arith.constant 0 : i32
    %c0_i32_0 = arith.constant 0 : i32
    %c0_i32_1 = arith.constant 0 : i32
    %c0_i32_2 = arith.constant 0 : i32
    return %c0_i32, %c0_i32_0, %c0_i32_1 : i32, i32, i32
  }
  func.func @transform_2(%arg0: i32) -> (i32, i32) {
    %c0_i32 = arith.constant 0 : i32
    %c0_i32_0 = arith.constant 0 : i32
    %c0_i32_1 = arith.constant 0 : i32
    return %c0_i32, %c0_i32_0 : i32, i32
  }
  func.func @transform_3(%arg0: i32) -> (i32, i32, i32, i32) {
    %c0_i32 = arith.constant 0 : i32
    %c0_i32_0 = arith.constant 0 : i32
    %c0_i32_1 = arith.constant 0 : i32
    %c0_i32_2 = arith.constant 0 : i32
    return %arg0, %c0_i32, %c0_i32_0, %c0_i32_1 : i32, i32, i32, i32
  }
}

</mosaic_0001>

<bundles_post_ra>
// kernel: tpu_custom_call.1
= control target key start
LH: loop header
LB: loop body
LE: loop exit
PB: predicated region body
PF: predicated region fallthrough
CT: control target
= control target key end

     0   :  { %8 = vsyncpa [#allocation4], 0  ;;  %s17433_s0 = inlined_call_operand.hbm [shape: f32[4,16,16,128], index: 0, kind: input, shape index: {}]   ;;  %s17434_s1 = inlined_call_operand.hbm [shape: bf16[9,128,128], index: 1, kind: input, shape index: {}]   ;;  %s17435_s2 = inlined_call_operand.vmem [shape: f32[1,128], index: 2, kind: input, shape index: {}]   ;;  %s17436_s3 = inlined_call_operand.hbm [shape: f32[4,16,16,128], index: 3, kind: output, shape index: {}]  }
   0x1   :  { %10 = vsyncpa [#allocation4 + $0x1], 0 }
   0x2   :  { %11 = vsyncpa [#allocation7], 0 }
   0x3   :  { %12 = vsyncpa [#allocation5], 0 }
   0x4   :  { %14 = vsyncpa [#allocation5 + $0x1], 0  ;;  %s14366_s12 = smov 0   ;;  %s14368_s13 = smov 0  }
   0x5   :  { %s14370_s14 = smov 0   ;;  %s14372_s15 = smov 0  }
   0x6 LB: > { %s14387_s16 = sadd.s32 4294967295, %s14334_s15   ;;  %s11341_s17 = sadd.s32 4294967294, %s14334_s15   ;;  %s14334_s15 = sphi %s14372_s15, %s17715_s15   ;;  %s14330_s14 = sphi %s14370_s14, %s17714_s14   ;;  %s14326_s13 = sphi %s14368_s13, %s17713_s13   ;;  %s14322_s12 = sphi %s14366_s12, %s17712_s12  }
   0x7   : > { %p40_p0 = scmp.ne.s32.totalorder %s14326_s13, %s14322_s12  ;;  %p17437_p1 = scmp.eq.s32.totalorder %s14387_s16, 0 }
   0x8   : > { %p112_p3 = scmp.eq.s32.totalorder %s11341_s17, 3  ;;  %p11342_p5 = scmp.ge.s32.totalorder %s14334_s15, 1 }
   0x9   : > { %p14396_p4 = por %p17437_p1, %p40_p0  ;;  %p119_p7 = scmp.lt.s32.totalorder %s14334_s15, 5 }
   0xa   : > { %p14401_p6 = por %p112_p3, %p40_p0  ;;  %s14336_s21 = smov [#allocation6]  }
   0xb   : > { %s17514_s18 = scalar_select %p14396_p4, 1, 0 }
   0xc   : > { %s17515_s19 = scalar_select %p14401_p6, 1, 0 }
   0xd   : > { %p14406_p8 = pnand %p11342_p5, %p119_p7  ;;  %s131_s22 = sshll.u32 %s14336_s21, 4  ;;  %s132_s22 = int_to_ptr.vmem [resolvable:$true] %s131_s22 }
   0xe   : > { %s14419_s24 = sadd.s32 1, %s14334_s15   ;;  %s27_s25 = sadd.s32 1, %s14330_s14 }
   0xf   : > { %s17516_s20 = scalar_select %p14406_p8, 1, 0 }
  0x10   : > { %p13833_p9 = pneg %p14406_p8  ;;  %s24_s26 = ssub.s32 %s14334_s15, %s14419_s24 }
  0x11   : > { %s14206_s29 = scalar_lea.hbm %s17434_s1, 9216 }
  0x12   : > { %p14414_p10 = pnand %p13833_p9, %p17437_p1  ;;  %p14207_p11 = scmp.ne.s32.totalorder %s17434_s1, %s14206_s29 }
  0x13   : > { %p14213_p3 = scmp.lt.u32.totalorder %s14206_s29, %s17434_s1 }
  0x14   : > { %p14208_p12 = pneg %p14414_p10 }
  0x16   : > { %p14209_p13 = pnand %p14208_p12, %p14207_p11 }
  0x18   : > { %p14210_p0 = pneg %p14209_p13 }
  0x1a   : > { %p14215_p5 = pnand %p14213_p3, %p14210_p0 }
  0x1c   : > { %14218 = shalt.err (!%p14215_p5)
}
  0x1d   : > { %s14219_s7 = scalar_lea.vmem %s132_s22, 9216  ;;  %p14227_p2 = scmp.lt.s32.totalorder %s132_s22, %s132_s22 }
  0x1e   : > { %p14220_p7 = scmp.ne.s32.totalorder %s132_s22, %s14219_s7  ;;  %p14228_p6 = scmp.lt.s32.totalorder %s14219_s7, %s14219_s7 }
  0x20   : > { %p14222_p9 = pnand %p14220_p7, %p14208_p12  ;;  %p14229_p4 = por %p14228_p6, %p14227_p2 }
  0x22   : > { %p14223_p1 = pneg %p14222_p9 }
  0x24   : > { %p14230_p8 = pnand %p14229_p4, %p14223_p1 }
  0x26   : > { %14233 = shalt.err (!%p14230_p8)
}
  0x27   : > { %s14337_s8 = smov 64   ;;  %s14338_s9 = smov 4  }
  0x28   : > { %13836 = dma.hbm_to_vmem [thread:$0]  (!%p14414_p10), %s17434_s1, 9216, %s132_s22, [#allocation7], %s14337_s8, %s14337_s8, %s14338_s9  }
  0x29   : > { %p25_p11 = scmp.eq.s32.totalorder %s24_s26, 0  ;;  %p34_p2 = scmp.ne.s32.totalorder %s14330_s14, %s14326_s13 }
  0x2a   : > { %p35_p1 = scmp.eq.s32.totalorder %s14334_s15, 0  ;;  %p13846_p4 = scmp.lt.s32.totalorder %s14334_s15, 4 }
  0x2b   : > { %s14445_s17 = scalar_select %p25_p11, %s14330_s14, %s27_s25  }
  0x2c   : > { %p36_p6 = por %p35_p1, %p34_p2  ;;  %p17518_p8 = scmp.eq.s32.totalorder %s14387_s16, 3 }
  0x2d   : > { %s148_s27 = sand.u32 1, %s14330_s14   ;;  %s11951_s28 = sshll.u32 %s14334_s15, 12 }
  0x2e   : > { %p14449_p12 = por %p17518_p8, %p34_p2  ;;  %s11345_s29 = sshll.u32 %s148_s27, 8 }
  0x2f   : > { %s14458_s4 = scalar_lea.hbm %s17433_s0, %s11951_s28  ;;  %s152_s22 = scalar_lea.vmem [#allocation3], %s11345_s29 }
  0x30   : > { %s159_s25 = sshll.u32 %s152_s22, 4  ;;  %p14460_p10 = pnand %p13846_p4, %p36_p6  ;;  %s14464_s25 = int_to_ptr.vmem [resolvable:$true] %s159_s25 }
  0x31   : > { %s14466_s5 = scalar_lea.sflag [#allocation4], %s148_s27  ;;  %s14234_s6 = scalar_lea.hbm %s14458_s4, 4096 }
  0x32   : > { %p14235_p13 = scmp.ne.s32.totalorder %s14458_s4, %s14234_s6  ;;  %p14236_p0 = pneg %p14460_p10 }
  0x33   : > { %s14239_s9 = scalar_lea.hbm %s17433_s0, 16384  ;;  %p14240_p7 = scmp.lt.u32.totalorder %s14458_s4, %s17433_s0 }
  0x34   : > { %p14237_p3 = pnand %p14236_p0, %p14235_p13  ;;  %p14241_p9 = scmp.lt.u32.totalorder %s14239_s9, %s14234_s6 }
  0x35   : > { %p14243_p2 = scmp.lt.u32.totalorder %s14234_s6, %s14458_s4 }
  0x36   : > { %p14238_p5 = pneg %p14237_p3  ;;  %p14242_p11 = por %p14241_p9, %p14240_p7 }
  0x38   : > { %p14244_p1 = por %p14243_p2, %p14242_p11 }
  0x3a   : > { %p14245_p4 = pnand %p14244_p1, %p14238_p5 }
  0x3c   : > { %14248 = shalt.err (!%p14245_p4)
}
  0x3d   : > { %s14249_s27 = scalar_lea.vmem %s14464_s25, 4096  ;;  %s14339_s28 = smov [#allocation3]  }
  0x3e   : > { %p14250_p6 = scmp.ne.s32.totalorder %s14464_s25, %s14249_s27  ;;  %s14254_s29 = sshll.u32 %s14339_s28, 4  ;;  %s14255_s29 = int_to_ptr.vmem [resolvable:$false] %s14254_s29 }
  0x3f   : > { %s14256_s23 = scalar_lea.vmem %s14255_s29, 8192  ;;  %p14257_p3 = scmp.lt.s32.totalorder %s14464_s25, %s14255_s29 }
  0x40   : > { %p14252_p8 = pnand %p14250_p6, %p14236_p0  ;;  %p14258_p7 = scmp.lt.s32.totalorder %s14256_s23, %s14249_s27 }
  0x42   : > { %p14253_p13 = pneg %p14252_p8  ;;  %p14259_p9 = por %p14258_p7, %p14257_p3 }
  0x44   : > { %p14260_p11 = pnand %p14259_p9, %p14253_p13 }
  0x46   : > { %14263 = shalt.err (!%p14260_p11)
}
  0x47   : > { %s14340_s30 = smov 128   ;;  %s14341_s22 = smov 8  }
  0x48   : > { %13840 = dma.hbm_to_vmem [thread:$0]  (!%p14460_p10), %s14458_s4, 4096, %s14464_s25, %s14466_s5, %s14340_s30, %s14340_s30, %s14341_s22  }
  0x49   : > { %p17521_p0 = scmp.ne.s32.totalorder %s17516_s20, 0 }
  0x4b   : > { %171 = sbr.rel (%p17521_p0) target bundleno = 1811 (0x713), region = 32 }
  0x52   : > { %s14497_s6 = sand.u32 1, %s14326_s13   ;;  %p17522_p5 = scmp.ne.s32.totalorder %s17514_s18, 0 }
  0x53   : > { %s11349_s7 = sshll.u32 %s14497_s6, 8  ;;  %s174_s8 = scalar_lea.sflag [#allocation4], %s14497_s6 }
  0x54   : > { %s14503_s9 = scalar_lea.vmem [#allocation3], %s11349_s7 }
  0x55   : > { %14309 = dma.done.wait (%p17522_p5), %s174_s8, 4096  }
  0x56   : > { %14311 = vsyncadd (%p17522_p5), %s174_s8, 4294963200  ;;  %p17523_p10 = scmp.eq.s32.totalorder %s14387_s16, 0 }
  0x58   : > { %14313 = dma.done.wait (%p17523_p10), [#allocation7], 9216   ;;  %p17524_p2 = pmov %p17523_p10 }
  0x59   : > { %v14342_v0 = vmov 0   ;;  %v13889_v1 = vld [vmem:[#allocation6 + $0x40] sm:$0xff]   ;;  %v13890_v2 = vld [vmem:[#allocation6 + $0x48] sm:$0xff]   ;;  %vm213_vm0 = vcmask 1040384   ;;  %vm942_vm1 = vsmask.f32 3328 }
  0x5a   : > { %14315 = vsyncadd (%p17524_p2), [#allocation7], 4294958080  ;;  %205 = vst [vmem:[#allocation2] sm:$0xf] %v14342_v0  ;;  %12449 = vmatprep.subr.bf16.mxu0 %v13889_v1  ;;  %vm943_vm2 = vsmask.f32 7440 }
  0x5b   : > { %206 = vst [vmem:[#allocation2 + $0x4] sm:$0xf] %v14342_v0  ;;  %207 = vst [vmem:[#allocation2 + $0x8] sm:$0x1] %v14342_v0  ;;  %12450 = vmatpush3.bf16.msra.mxu0 %v13889_v1  ;;  %vm214_vm3 = vsmask.f32 256 }
  0x5c   : > { %209 = vst [vmem:[#allocation2 + $0xcc] sm:$0xf] %v14342_v0  ;;  %210 = vst [vmem:[#allocation2 + $0xd0] sm:$0xf] %v14342_v0  ;;  %12451 = vmatprep.subr.bf16.mxu0 %v13890_v2  ;;  %v13891_v3 = vld [vmem:[#allocation6 + $0x50] sm:$0xff]   ;;  %v17525_v4 = vmov 0 }
  0x5d   : > { %211 = vst [vmem:[#allocation2 + $0xd4] sm:$0x1] %v14342_v0  ;;  %vm264_vm4 = vsmask.f32 7938  ;;  %vm14515_vm5 = vmand %vm213_vm0, %vm214_vm3  ;;  %vm442_vm6 = vsmask.f32 4368 }
  0x5e   : > { %v17526_v4 = vsel %vm14515_vm5, 4294967295, %v17525_v4  ;;  %v13892_v5 = vld [vmem:[#allocation6 + $0x58] sm:$0xff]   ;;  %v216_v13 = vld [vmem:[#allocation2 + $0xc] sm:$0x1]  ;;  %vm14521_vm7 = vmand %vm213_vm0, %vm264_vm4  ;;  %vm764_vm8 = vcmask 1043456   ;;  %v17532_v42 = vmov 0 }
  0x5f   : > { %17527 = vst [vmem:[#allocation12_spill] sm:$0xff] %v17526_v4  ;;  %12452 = vmatpush3.bf16.msra.mxu0 %v13890_v2  ;;  %v217_v16 = vsel %vm14515_vm5, 0, %v216_v13  ;;  %v266_v17 = vld [vmem:[#allocation2 + $0x14] sm:$0x1]  ;;  %v314_v18 = vld [vmem:[%s14503_s9] sm:$0xff]  ;;  %v315_v23 = vld [vmem:[%s14503_s9 + $0x8] sm:$0xff] }
  0x60   : > { %12453 = vmatprep.subr.bf16.mxu0 %v13891_v3  ;;  %218 = vst [vmem:[#allocation2 + $0xc] sm:$0x1] %v217_v16  ;;  %v13893_v24 = vld [vmem:[#allocation6 + $0x60] sm:$0xff]   ;;  %v267_v25 = vsel %vm14521_vm7, 0, %v266_v17  ;;  %v11952_v26 = vpack.c.bf16 %v314_v18, %v314_v18  ;;  %v11953_v27 = vpack.c.bf16 %v315_v23, %v315_v23  ;;  %v269_v32 = vld [vmem:[#allocation2 + $0x20] sm:$0x1]  ;;  %vm14534_vm9 = vmor %vm942_vm1, %vm943_vm2 }
  0x61   : > { %v878_v6 = vld [vmem:[#allocation2] sm:$0xf]  ;;  %268 = vst [vmem:[#allocation2 + $0x14] sm:$0x1] %v267_v25  ;;  %v219_v31 = vld [vmem:[#allocation2 + $0x18] sm:$0x1]  ;;  %vm14541_vm10 = vmor %vm214_vm3, %vm442_vm6 }
  0x62   : > { %v879_v7 = vld [vmem:[#allocation2 + $0x4] sm:$0xf]  ;;  %v926_v8 = vld [vmem:[#allocation2 + $0x8] sm:$0x1]  ;;  %v946_v9 = vshrl.u32 %v878_v6, 16  ;;  %v949_v10 = vshll.u32 %v878_v6, 16  ;;  %vm14556_vm11 = vmand %vm764_vm8, %vm264_vm4 }
  0x63   : > { %v955_v11 = vshll.u32 %v879_v7, 16  ;;  %v959_v12 = vshrl.u32 %v879_v7, 16  ;;  %v965_v15 = vshll.u32 %v926_v8, 16  ;;  %12454 = vmatpush3.bf16.msra.mxu0 %v13891_v3  ;;  %v316_v33 = vld [vmem:[%s14503_s9 + $0x10] sm:$0xff]  ;;  %v445_v35 = vshrl.u32 %v11952_v26, 16  ;;  %v317_v39 = vld [vmem:[%s14503_s9 + $0x18] sm:$0xff] }
  0x64   : > { %v948_v19 = vrot.slane %v946_v9, 4  ;;  %v951_v20 = vrot.slane %v949_v10, 5  ;;  %12455 = vmatprep.subr.bf16.mxu0 %v13892_v5  ;;  %v448_v36 = vshll.u32 %v11952_v26, 16  ;;  %v453_v37 = vshrl.u32 %v11953_v27, 16  ;;  %v222_v45 = vld [vmem:[#allocation2 + $0x24] sm:$0x1] }
  0x65   : > { %v957_v21 = vrot.slane %v955_v11, 5  ;;  %v961_v22 = vrot.slane %v959_v12, 4  ;;  %v967_v30 = vrot.slane %v965_v15, 5  ;;  %v456_v38 = vshll.u32 %v11953_v27, 16  ;;  %v13894_v46 = vld [vmem:[#allocation6 + $0x68] sm:$0xff]   ;;  %v318_v52 = vld [vmem:[%s14503_s9 + $0x20] sm:$0xff] }
  0x66   : > { %v952_v28 = vor.u32 %v951_v20, %v948_v19  ;;  %v17533_v42 = vsel %vm14541_vm10, 4294967295, %v17532_v42  ;;  %v220_v43 = vsel %vm14515_vm5, 0, %v219_v31  ;;  %v270_v44 = vsel %vm14521_vm7, 0, %v269_v32  ;;  %v272_v51 = vld [vmem:[#allocation2 + $0x2c] sm:$0x1]  ;;  %v319_v63 = vld [vmem:[%s14503_s9 + $0x28] sm:$0xff] }
  0x67   : > { %v962_v29 = vor.u32 %v961_v22, %v957_v21  ;;  %12456 = vmatpush3.bf16.msra.mxu0 %v13892_v5  ;;  %17534 = vst [vmem:[#allocation13_spill] sm:$0xff] %v17533_v42  ;;  %v447_v47 = vrot.slane %v445_v35, 7  ;;  %v455_v48 = vrot.slane %v453_v37, 7  ;;  %221 = vst [vmem:[#allocation2 + $0x18] sm:$0x1] %v220_v43  ;;  %v11954_v49 = vpack.c.bf16 %v316_v33, %v316_v33  ;;  %v13895_v7 = vld [vmem:[#allocation6 + $0x70] sm:$0xff]  }
  0x68   : > { %v953_v40 = vrot.slane %v952_v28, 4  ;;  %12457 = vmatprep.subr.bf16.mxu0 %v13893_v24  ;;  %271 = vst [vmem:[#allocation2 + $0x20] sm:$0x1] %v270_v44  ;;  %v11955_v50 = vpack.c.bf16 %v317_v39, %v317_v39  ;;  %v17535_v55 = vmov 0  ;;  %v223_v56 = vsel %vm14515_vm5, 0, %v222_v45  ;;  %v320_v18 = vld [vmem:[%s14503_s9 + $0x30] sm:$0xff] }
  0x69   : > { %v963_v41 = vrot.slane %v962_v29, 4  ;;  %v17536_v55 = vsel %vm14556_vm11, 4294967295, %v17535_v55  ;;  %v273_v57 = vsel %vm14521_vm7, 0, %v272_v51  ;;  %v450_v59 = vor.u32 %v448_v36, %v447_v47  ;;  %v766_v62 = vld [vmem:[#allocation2 + $0xc] sm:$0xf]  ;;  %v321_v19 = vld [vmem:[%s14503_s9 + $0x38] sm:$0xff] }
  0x6a   : > { %v958_v53 = vsel %vm14534_vm9, %v953_v40, %v957_v21  ;;  %17537 = vst [vmem:[#allocation14_spill] sm:$0xff] %v17536_v55  ;;  %v451_v60 = vrot.slane %v447_v47, 4  ;;  %v458_v61 = vor.u32 %v456_v38, %v455_v48  ;;  %224 = vst [vmem:[#allocation2 + $0x24] sm:$0x1] %v223_v56  ;;  %v225_v0 = vld [vmem:[#allocation2 + $0x30] sm:$0x1]  ;;  %v11956_v12 = vpack.c.bf16 %v318_v52, %v318_v52 }
  0x6b   : > { %v968_v54 = vsel %vm14534_vm9, %v963_v41, %v967_v30  ;;  %274 = vst [vmem:[#allocation2 + $0x2c] sm:$0x1] %v273_v57  ;;  %12458 = vmatpush3.bf16.msra.mxu0 %v13893_v24  ;;  %v460_v1 = vrot.slane %v455_v48, 4  ;;  %v462_v2 = vshrl.u32 %v11954_v49, 16  ;;  %v465_v3 = vshll.u32 %v11954_v49, 16  ;;  %v13896_v31 = vld [vmem:[#allocation6 + $0x78] sm:$0xff]  }
  0x6c   : > { %v11384_v58 = vcombine.low %v958_v53, %v968_v54  ;;  %v470_v5 = vshrl.u32 %v11955_v50, 16  ;;  %v275_v6 = vld [vmem:[#allocation2 + $0x38] sm:$0x1]  ;;  %12459 = vmatprep.subr.bf16.mxu0 %v13894_v46  ;;  %v459_v8 = vsel %vm14541_vm10, %v451_v60, %v458_v61  ;;  %v767_v9 = vsel %vm14556_vm11, %v450_v59, %v766_v62  ;;  %v770_v10 = vld [vmem:[#allocation2 + $0x14] sm:$0x1]  ;;  %v13945_v14 = vld [vmem:[#allocation6 + $0x110] sm:$0xff]  }
  0x6d   : > { %v473_v11 = vshll.u32 %v11955_v50, 16  ;;  %768 = vst [vmem:[#allocation2 + $0xc] sm:$0xf] %v767_v9  ;;  %769 = vst [vmem:[#allocation2 + $0x10] sm:$0xf] %v459_v8  ;;  %v771_v13 = vsel %vm14515_vm5, %v460_v1, %v770_v10  ;;  %v464_v15 = vrot.slane %v462_v2, 7  ;;  %v11957_v17 = vpack.c.bf16 %v319_v63, %v319_v63 }
  0x6e   : > { %12465 = vmatprep.mubr.bf16.mxu0 %v11384_v58  ;;  %v472_v16 = vrot.slane %v470_v5, 7  ;;  %772 = vst [vmem:[#allocation2 + $0x14] sm:$0x1] %v771_v13  ;;  %v479_v20 = vshrl.u32 %v11956_v12, 16  ;;  %v482_v21 = vshll.u32 %v11956_v12, 16  ;;  %v226_v22 = vsel %vm14515_vm5, 0, %v225_v0 }
  0x6f   : > { %v276_v23 = vsel %vm14521_vm7, 0, %v275_v6  ;;  %v228_v24 = vld [vmem:[#allocation2 + $0x3c] sm:$0x1]  ;;  %12460 = vmatpush3.bf16.msra.mxu0 %v13894_v46  ;;  %v467_v25 = vor.u32 %v465_v3, %v464_v15  ;;  %v468_v26 = vrot.slane %v464_v15, 4  ;;  %v773_v29 = vld [vmem:[#allocation2 + $0x18] sm:$0xf]  ;;  %v11958_v36 = vpack.c.bf16 %v320_v18, %v320_v18 }
  0x70   : > { %v475_v27 = vor.u32 %v473_v11, %v472_v16  ;;  %v477_v28 = vrot.slane %v472_v16, 4  ;;  %v777_v30 = vld [vmem:[#allocation2 + $0x20] sm:$0x1]  ;;  %227 = vst [vmem:[#allocation2 + $0x30] sm:$0x1] %v226_v22  ;;  %12461 = vmatprep.subr.bf16.mxu0 %v13895_v7  ;;  %v481_v32 = vrot.slane %v479_v20, 7  ;;  %v11959_v41 = vpack.c.bf16 %v321_v19, %v321_v19 }
  0x71   : > { %277 = vst [vmem:[#allocation2 + $0x38] sm:$0x1] %v276_v23  ;;  %v487_v33 = vshrl.u32 %v11957_v17, 16  ;;  %v490_v35 = vshll.u32 %v11957_v17, 16  ;;  %v774_v38 = vsel %vm14556_vm11, %v467_v25, %v773_v29  ;;  %v780_v40 = vld [vmem:[#allocation2 + $0x24] sm:$0xf] }
  0x72   : > { %v476_v37 = vsel %vm14541_vm10, %v468_v26, %v475_v27  ;;  %v778_v39 = vsel %vm14515_vm5, %v477_v28, %v777_v30  ;;  %775 = vst [vmem:[#allocation2 + $0x18] sm:$0xf] %v774_v38  ;;  %v484_v43 = vor.u32 %v482_v21, %v481_v32  ;;  %v485_v44 = vrot.slane %v481_v32, 4  ;;  %v14583_v47 = vld [vmem:[#allocation6] sm:$0xff]   ;;  %v784_v48 = vld [vmem:[#allocation2 + $0x2c] sm:$0x1] }
  0x73   : > { %776 = vst [vmem:[#allocation2 + $0x1c] sm:$0xf] %v476_v37  ;;  %779 = vst [vmem:[#allocation2 + $0x20] sm:$0x1] %v778_v39  ;;  %v489_v45 = vrot.slane %v487_v33, 7  ;;  %v496_v46 = vshrl.u32 %v11958_v36, 16  ;;  %12462 = vmatpush3.bf16.msra.mxu0 %v13895_v7 }
  0x74   : > { %v499_v49 = vshll.u32 %v11958_v36, 16  ;;  %v504_v50 = vshrl.u32 %v11959_v41, 16  ;;  %v229_v51 = vsel %vm14515_vm5, 0, %v228_v24  ;;  %12463 = vmatprep.subr.bf16.mxu0 %v13896_v31  ;;  %v880_v52 = vld [vmem:[#allocation2 + $0xc] sm:$0xf]  ;;  %v781_v57 = vsel %vm14556_vm11, %v484_v43, %v780_v40  ;;  %v322_v5 = vld [vmem:[%s14503_s9 + $0x40] sm:$0xff] }
  0x75   : > { %v881_v53 = vld [vmem:[#allocation2 + $0x10] sm:$0xf]  ;;  %v492_v54 = vor.u32 %v490_v35, %v489_v45  ;;  %v494_v56 = vrot.slane %v489_v45, 4  ;;  %v14589_v58 = vrot.slane %v496_v46, 7  ;;  %230 = vst [vmem:[#allocation2 + $0x3c] sm:$0x1] %v229_v51  ;;  %v14604_v21 = vpack.c.bf16 %v322_v5, %v322_v5 }
  0x76   : > { %v927_v59 = vld [vmem:[#allocation2 + $0x14] sm:$0x1]  ;;  %v970_v60 = vshrl.u32 %v880_v52, 16  ;;  %v973_v61 = vshll.u32 %v880_v52, 16  ;;  %v979_v62 = vshll.u32 %v881_v53, 16  ;;  %v983_v63 = vshrl.u32 %v881_v53, 16 }
  0x77   : > { %782 = vst [vmem:[#allocation2 + $0x24] sm:$0xf] %v781_v57  ;;  %v989_v0 = vshll.u32 %v927_v59, 16  ;;  %v493_v1 = vsel %vm14541_vm10, %v485_v44, %v492_v54  ;;  %v785_v2 = vsel %vm14515_vm5, %v494_v56, %v784_v48  ;;  %v507_v3 = vshll.u32 %v11959_v41, 16  ;;  %v323_v6 = vld [vmem:[%s14503_s9 + $0x48] sm:$0xff]  ;;  %12464 = vmatpush3.bf16.msra.mxu0 %v13896_v31  ;;  %s17293_s10 = scalar_lea.vmem [#allocation8], %s11349_s7 }
  0x78   : > { %v972_v7 = vrot.slane %v970_v60, 4  ;;  %v975_v8 = vrot.slane %v973_v61, 5  ;;  %v981_v9 = vrot.slane %v979_v62, 5  ;;  %v985_v10 = vrot.slane %v983_v63, 4  ;;  %783 = vst [vmem:[#allocation2 + $0x28] sm:$0xf] %v493_v1  ;;  %12497 = vmatprep.subr.bf16.mxu0 %v14583_v47 }
  0x79   : > { %786 = vst [vmem:[#allocation2 + $0x2c] sm:$0x1] %v785_v2  ;;  %v991_v11 = vrot.slane %v989_v0, 5  ;;  %v14599_v12 = vor.u32 %v499_v49, %v14589_v58  ;;  %v502_v13 = vrot.slane %v14589_v58, 4  ;;  %v14602_v15 = vrot.slane %v504_v50, 7  ;;  %v13898_v49 = vld [vmem:[#allocation6 + $0x8] sm:$0xff]  }
  0x7a   : > { %v976_v16 = vor.u32 %v975_v8, %v972_v7  ;;  %v986_v17 = vor.u32 %v985_v10, %v981_v9  ;;  %v882_v18 = vld [vmem:[#allocation2 + $0x18] sm:$0xf]  ;;  %v883_v19 = vld [vmem:[#allocation2 + $0x1c] sm:$0xf]  ;;  %v928_v20 = vld [vmem:[#allocation2 + $0x20] sm:$0x1]  ;;  %v14606_v22 = vpack.c.bf16 %v323_v6, %v323_v6 }
  0x7b   : > { %v994_v23 = vshrl.u32 %v882_v18, 16  ;;  %v997_v24 = vshll.u32 %v882_v18, 16  ;;  %v1003_v25 = vshll.u32 %v883_v19, 16  ;;  %v1007_v26 = vshrl.u32 %v883_v19, 16  ;;  %v278_v50 = vld [vmem:[#allocation2 + $0x44] sm:$0x1] }
  0x7c   : > { %v977_v27 = vrot.slane %v976_v16, 4  ;;  %v987_v28 = vrot.slane %v986_v17, 4  ;;  %v1013_v29 = vshll.u32 %v928_v20, 16  ;;  %v509_v30 = vor.u32 %v507_v3, %v14602_v15  ;;  %v787_v56 = vld [vmem:[#allocation2 + $0x30] sm:$0xf]  ;;  %v13899_v62 = vld [vmem:[#allocation6 + $0x10] sm:$0xff]  }
  0x7d   : > { %v996_v31 = vrot.slane %v994_v23, 4  ;;  %v999_v32 = vrot.slane %v997_v24, 5  ;;  %v1005_v33 = vrot.slane %v1003_v25, 5  ;;  %v1009_v35 = vrot.slane %v1007_v26, 4  ;;  %v791_v61 = vld [vmem:[#allocation2 + $0x38] sm:$0x1] }
  0x7e   : > { %v884_v36 = vld [vmem:[#allocation2 + $0x24] sm:$0xf]  ;;  %v982_v37 = vsel %vm14534_vm9, %v977_v27, %v981_v9  ;;  %v992_v38 = vsel %vm14534_vm9, %v987_v28, %v991_v11  ;;  %v1015_v39 = vrot.slane %v1013_v29, 5  ;;  %v510_v60 = vsel %vm14541_vm10, %v502_v13, %v509_v30  ;;  %v231_v3 = vld [vmem:[#allocation2 + $0x48] sm:$0x1]  ;;  %v325_v16 = vld [vmem:[%s14503_s9 + $0x58] sm:$0xff] }
  0x7f   : > { %v1018_v40 = vshrl.u32 %v884_v36, 16  ;;  %v11385_v41 = vcombine.low %v982_v37, %v992_v38  ;;  %v1000_v43 = vor.u32 %v999_v32, %v996_v31  ;;  %v1010_v44 = vor.u32 %v1009_v35, %v1005_v33  ;;  %v885_v45 = vld [vmem:[#allocation2 + $0x28] sm:$0xf]  ;;  %790 = vst [vmem:[#allocation2 + $0x34] sm:$0xf] %v510_v60  ;;  %v13900_v31 = vld [vmem:[#allocation6 + $0x18] sm:$0xff]  }
  0x80   : > { %v929_v46 = vld [vmem:[#allocation2 + $0x2c] sm:$0x1]  ;;  %v1021_v48 = vshll.u32 %v884_v36, 16  ;;  %v1027_v52 = vshll.u32 %v885_v45, 16  ;;  %v1031_v53 = vshrl.u32 %v885_v45, 16  ;;  %v511_v2 = vrot.slane %v14602_v15, 4 }
  0x81   : > { %v1020_v51 = vrot.slane %v1018_v40, 4  ;;  %v1037_v54 = vshll.u32 %v929_v46, 16  ;;  %12466 = vmatmul.mubr.bf16.vlgmr.msra.gmra.mrb[0].mxu0 %v11385_v41  ;;  %v1001_v57 = vrot.slane %v1000_v43, 4  ;;  %v1011_v58 = vrot.slane %v1010_v44, 4  ;;  %v281_v8 = vld [vmem:[#allocation2 + $0x50] sm:$0x1] }
  0x82   : > { %v1023_v59 = vrot.slane %v1021_v48, 5  ;;  %12498 = vmatpush3.bf16.msra.mxu0 %v14583_v47  ;;  %v1029_v63 = vrot.slane %v1027_v52, 5  ;;  %v1033_v0 = vrot.slane %v1031_v53, 4  ;;  %v788_v47 = vsel %vm14556_vm11, %v14599_v12, %v787_v56  ;;  %v324_v9 = vld [vmem:[%s14503_s9 + $0x50] sm:$0xff]  ;;  %v234_v17 = vld [vmem:[#allocation2 + $0x54] sm:$0x1] }
  0x83   : > { %v1039_v1 = vrot.slane %v1037_v54, 5  ;;  %v1006_v5 = vsel %vm14534_vm9, %v1001_v57, %v1005_v33  ;;  %v1016_v6 = vsel %vm14534_vm9, %v1011_v58, %v1015_v39  ;;  %12499 = vmatprep.subr.bf16.mxu0 %v13898_v49  ;;  %789 = vst [vmem:[#allocation2 + $0x30] sm:$0xf] %v788_v47  ;;  %v792_v13 = vsel %vm14515_vm5, %v511_v2, %v791_v61  ;;  %v284_v23 = vld [vmem:[#allocation2 + $0x5c] sm:$0x1]  ;;  %v327_v61 = vld [vmem:[%s14503_s9 + $0x68] sm:$0xff] }
  0x84   : > { %v1024_v7 = vor.u32 %v1023_v59, %v1020_v51  ;;  %v11386_v10 = vcombine.low %v1006_v5, %v1016_v6  ;;  %v1034_v11 = vor.u32 %v1033_v0, %v1029_v63  ;;  %v279_v15 = vsel %vm14521_vm7, 0, %v278_v50  ;;  %793 = vst [vmem:[#allocation2 + $0x38] sm:$0x1] %v792_v13  ;;  %v326_v53 = vld [vmem:[%s14503_s9 + $0x60] sm:$0xff]  ;;  %s12016_s11 = sshll.u32 %s14387_s16, 12  ;;  %s11258_s27 = sshll.u32 %s17293_s10, 4  ;;  %s17387_s27 = int_to_ptr.vmem [resolvable:$true] %s11258_s27 }
  0x85   : > { %280 = vst [vmem:[#allocation2 + $0x44] sm:$0x1] %v279_v15  ;;  %v513_v19 = vshrl.u32 %v14604_v21, 16  ;;  %v516_v12 = vshll.u32 %v14604_v21, 16  ;;  %v521_v20 = vshrl.u32 %v14606_v22, 16  ;;  %v524_v25 = vshll.u32 %v14606_v22, 16  ;;  %s17385_s23 = scalar_lea.hbm %s17436_s3, %s12016_s11 }
  0x86   : > { %v1025_v18 = vrot.slane %v1024_v7, 4  ;;  %12469 = vmatprep.mubr.bf16.mxu0 %v11386_v10  ;;  %v1035_v24 = vrot.slane %v1034_v11, 4  ;;  %12500 = vmatpush3.bf16.msra.mxu0 %v13898_v49  ;;  %v232_v26 = vsel %vm14515_vm5, 0, %v231_v3  ;;  %v282_v27 = vsel %vm14521_vm7, 0, %v281_v8  ;;  %v794_v22 = vld [vmem:[#allocation2 + $0x3c] sm:$0xf] }
  0x87   : > { %v515_v29 = vrot.slane %v513_v19, 7  ;;  %v523_v30 = vrot.slane %v521_v20, 7  ;;  %12501 = vmatprep.subr.bf16.mxu0 %v13899_v62  ;;  %233 = vst [vmem:[#allocation2 + $0x48] sm:$0x1] %v232_v26  ;;  %283 = vst [vmem:[#allocation2 + $0x50] sm:$0x1] %v282_v27  ;;  %v11962_v21 = vpack.c.bf16 %v324_v9, %v324_v9  ;;  %v11963_v33 = vpack.c.bf16 %v325_v16, %v325_v16 }
  0x88   : > { %v1030_v28 = vsel %vm14534_vm9, %v1025_v18, %v1029_v63  ;;  %v1040_v32 = vsel %vm14534_vm9, %v1035_v24, %v1039_v1  ;;  %v235_v35 = vsel %vm14515_vm5, 0, %v234_v17  ;;  %v285_v36 = vsel %vm14521_vm7, 0, %v284_v23  ;;  %v887_v38 = vld [vmem:[#allocation2 + $0x34] sm:$0xf]  ;;  %v13901_v54 = vld [vmem:[#allocation6 + $0x20] sm:$0xff]   ;;  %v13902_v16 = vld [vmem:[#allocation6 + $0x28] sm:$0xff]  }
  0x89   : > { %v11387_v37 = vcombine.low %v1030_v28, %v1040_v32  ;;  %v518_v39 = vor.u32 %v516_v12, %v515_v29  ;;  %v519_v40 = vrot.slane %v515_v29, 4  ;;  %v526_v41 = vor.u32 %v524_v25, %v523_v30  ;;  %236 = vst [vmem:[#allocation2 + $0x54] sm:$0x1] %v235_v35  ;;  %286 = vst [vmem:[#allocation2 + $0x5c] sm:$0x1] %v285_v36  ;;  %v328_v20 = vld [vmem:[%s14503_s9 + $0x70] sm:$0xff] }
  0x8a   : > { %v1051_v43 = vshll.u32 %v887_v38, 16  ;;  %v1055_v44 = vshrl.u32 %v887_v38, 16  ;;  %v528_v45 = vrot.slane %v523_v30, 4  ;;  %12502 = vmatpush3.bf16.msra.mxu0 %v13899_v62  ;;  %v530_v46 = vshrl.u32 %v11962_v21, 16  ;;  %v886_v48 = vld [vmem:[#allocation2 + $0x30] sm:$0xf] }
  0x8b   : > { %12470 = vmatmul.mubr.bf16.gmra.mrb[4].mxu0 %v11387_v37  ;;  %v527_v49 = vsel %vm14541_vm10, %v519_v40, %v526_v41  ;;  %v795_v50 = vsel %vm14556_vm11, %v518_v39, %v794_v22  ;;  %v533_v51 = vshll.u32 %v11962_v21, 16  ;;  %v538_v52 = vshrl.u32 %v11963_v33, 16  ;;  %12503 = vmatprep.subr.bf16.mxu0 %v13900_v31  ;;  %v930_v56 = vld [vmem:[#allocation2 + $0x38] sm:$0x1]  ;;  %v237_v8 = vld [vmem:[#allocation2 + $0x60] sm:$0x1] }
  0x8c   : > { %v1042_v57 = vshrl.u32 %v886_v48, 16  ;;  %v1045_v58 = vshll.u32 %v886_v48, 16  ;;  %v1053_v59 = vrot.slane %v1051_v43, 5  ;;  %v1057_v60 = vrot.slane %v1055_v44, 4  ;;  %796 = vst [vmem:[#allocation2 + $0x3c] sm:$0xf] %v795_v50 }
  0x8d   : > { %797 = vst [vmem:[#allocation2 + $0x40] sm:$0xf] %v527_v49  ;;  %v1061_v62 = vshll.u32 %v930_v56, 16  ;;  %v798_v63 = vld [vmem:[#allocation2 + $0x44] sm:$0x1]  ;;  %v532_v0 = vrot.slane %v530_v46, 7  ;;  %v11964_v12 = vpack.c.bf16 %v326_v53, %v326_v53  ;;  %v11965_v26 = vpack.c.bf16 %v327_v61, %v327_v61 }
  0x8e   : > { %v540_v1 = vrot.slane %v538_v52, 7  ;;  %v541_v2 = vshll.u32 %v11963_v33, 16  ;;  %v1044_v3 = vrot.slane %v1042_v57, 4  ;;  %v1047_v5 = vrot.slane %v1045_v58, 5  ;;  %v801_v47 = vld [vmem:[#allocation2 + $0x48] sm:$0xf]  ;;  %12504 = vmatpush3.bf16.msra.mxu0 %v13900_v31 }
  0x8f   : > { %v1058_v6 = vor.u32 %v1057_v60, %v1053_v59  ;;  %v799_v7 = vsel %vm14515_vm5, %v528_v45, %v798_v63  ;;  %v1063_v9 = vrot.slane %v1061_v62, 5  ;;  %v535_v10 = vor.u32 %v533_v51, %v532_v0  ;;  %v805_v15 = vld [vmem:[#allocation2 + $0x50] sm:$0x1]  ;;  %12505 = vmatprep.subr.bf16.mxu0 %v13901_v54  ;;  %v287_v41 = vld [vmem:[#allocation2 + $0x68] sm:$0x1]  ;;  %s11245_s16 = scalar_lea.sflag [#allocation5], %s14497_s6 }
  0x90   : > { %800 = vst [vmem:[#allocation2 + $0x44] sm:$0x1] %v799_v7  ;;  %v536_v11 = vrot.slane %v532_v0, 4  ;;  %v543_v13 = vor.u32 %v541_v2, %v540_v1  ;;  %v1048_v17 = vor.u32 %v1047_v5, %v1044_v3  ;;  %v545_v19 = vrot.slane %v540_v1, 4  ;;  %v329_v23 = vld [vmem:[%s14503_s9 + $0x78] sm:$0xff]  ;;  %v13903_v43 = vld [vmem:[#allocation6 + $0x30] sm:$0xff]  }
  0x91   : > { %v1059_v18 = vrot.slane %v1058_v6, 4  ;;  %v802_v25 = vsel %vm14556_vm11, %v535_v10, %v801_v47  ;;  %v238_v27 = vsel %vm14515_vm5, 0, %v237_v8  ;;  %v547_v21 = vshrl.u32 %v11964_v12, 16  ;;  %v808_v49 = vld [vmem:[#allocation2 + $0x54] sm:$0xf]  ;;  %s14264_s30 = scalar_lea.vmem %s17387_s27, 4096 }
  0x92   : > { %v544_v24 = vsel %vm14541_vm10, %v536_v11, %v543_v13  ;;  %v1049_v28 = vrot.slane %v1048_v17, 4  ;;  %803 = vst [vmem:[#allocation2 + $0x48] sm:$0xf] %v802_v25  ;;  %v806_v30 = vsel %vm14515_vm5, %v545_v19, %v805_v15  ;;  %239 = vst [vmem:[#allocation2 + $0x60] sm:$0x1] %v238_v27  ;;  %12506 = vmatpush3.bf16.msra.mxu0 %v13901_v54  ;;  %v550_v22 = vshll.u32 %v11964_v12, 16  ;;  %p14265_p1 = scmp.ne.s32.totalorder %s17387_s27, %s14264_s30 }
  0x93   : > { %v1064_v29 = vsel %vm14534_vm9, %v1059_v18, %v1063_v9  ;;  %804 = vst [vmem:[#allocation2 + $0x4c] sm:$0xf] %v544_v24  ;;  %v888_v31 = vld [vmem:[#allocation2 + $0x3c] sm:$0xf]  ;;  %807 = vst [vmem:[#allocation2 + $0x50] sm:$0x1] %v806_v30  ;;  %v14666_v35 = vpack.c.bf16 %v328_v20, %v328_v20  ;;  %v14668_v36 = vpack.c.bf16 %v329_v23, %v329_v23  ;;  %12507 = vmatprep.subr.bf16.mxu0 %v13902_v16 }
  0x94   : > { %v889_v32 = vld [vmem:[#allocation2 + $0x40] sm:$0xf]  ;;  %v555_v33 = vshrl.u32 %v11965_v26, 16  ;;  %v1054_v37 = vsel %vm14534_vm9, %v1049_v28, %v1053_v59  ;;  %v1066_v38 = vshrl.u32 %v888_v31, 16  ;;  %v1069_v39 = vshll.u32 %v888_v31, 16  ;;  %v13904_v12 = vld [vmem:[#allocation6 + $0x38] sm:$0xff]   ;;  %p14266_p4 = pnand %p14265_p1, %p14449_p12 }
  0x95   : > { %v1075_v40 = vshll.u32 %v889_v32, 16  ;;  %v11388_v44 = vcombine.low %v1054_v37, %v1064_v29  ;;  %v1079_v45 = vshrl.u32 %v889_v32, 16  ;;  %v549_v46 = vrot.slane %v547_v21, 7  ;;  %v812_v63 = vld [vmem:[#allocation2 + $0x5c] sm:$0x1]  ;;  %v331_v27 = vld [vmem:[%s14503_s9 + $0x88] sm:$0xff] }
  0x96   : > { %v557_v48 = vrot.slane %v555_v33, 7  ;;  %v1068_v51 = vrot.slane %v1066_v38, 4  ;;  %v1071_v52 = vrot.slane %v1069_v39, 5  ;;  %v558_v54 = vshll.u32 %v11965_v26, 16  ;;  %12508 = vmatpush3.bf16.msra.mxu0 %v13902_v16  ;;  %v240_v13 = vld [vmem:[#allocation2 + $0x6c] sm:$0x1]  ;;  %p14267_p6 = pneg %p14266_p4 }
  0x97   : > { %v931_v50 = vld [vmem:[#allocation2 + $0x44] sm:$0x1]  ;;  %v1077_v53 = vrot.slane %v1075_v40, 5  ;;  %12473 = vmatprep.mubr.bf16.mxu0 %v11388_v44  ;;  %v1081_v56 = vrot.slane %v1079_v45, 4  ;;  %v552_v58 = vor.u32 %v550_v22, %v549_v46  ;;  %v553_v59 = vrot.slane %v549_v46, 4  ;;  %12509 = vmatprep.subr.bf16.mxu0 %v13903_v43  ;;  %v330_v26 = vld [vmem:[%s14503_s9 + $0x80] sm:$0xff] }
  0x98   : > { %v1085_v57 = vshll.u32 %v931_v50, 16  ;;  %v1072_v60 = vor.u32 %v1071_v52, %v1068_v51  ;;  %v560_v61 = vor.u32 %v558_v54, %v557_v48  ;;  %v562_v62 = vrot.slane %v557_v48, 4  ;;  %v290_v19 = vld [vmem:[#allocation2 + $0x74] sm:$0x1]  ;;  %v14683_v28 = vld [vmem:[#allocation6 + $0x80] sm:$0xff]   ;;  %s14343_s22 = smov [#allocation8]  }
  0x99   : > { %v288_v0 = vsel %vm14521_vm7, 0, %v287_v41  ;;  %v1082_v1 = vor.u32 %v1081_v56, %v1077_v53  ;;  %v890_v3 = vld [vmem:[#allocation2 + $0x48] sm:$0xf]  ;;  %v809_v6 = vsel %vm14556_vm11, %v552_v58, %v808_v49  ;;  %v564_v7 = vshrl.u32 %v14666_v35, 16  ;;  %v815_v32 = vld [vmem:[#allocation2 + $0x60] sm:$0xf] }
  0x9a   : > { %v1087_v2 = vrot.slane %v1085_v57, 5  ;;  %v891_v5 = vld [vmem:[#allocation2 + $0x4c] sm:$0xf]  ;;  %289 = vst [vmem:[#allocation2 + $0x68] sm:$0x1] %v288_v0  ;;  %v1073_v47 = vrot.slane %v1072_v60, 4  ;;  %12510 = vmatpush3.bf16.msra.mxu0 %v13903_v43  ;;  %v561_v18 = vsel %vm14541_vm10, %v553_v59, %v560_v61  ;;  %v813_v31 = vsel %vm14515_vm5, %v562_v62, %v812_v63 }
  0x9b   : > { %v932_v8 = vld [vmem:[#allocation2 + $0x50] sm:$0x1]  ;;  %v1090_v9 = vshrl.u32 %v890_v3, 16  ;;  %v1093_v10 = vshll.u32 %v890_v3, 16  ;;  %v1099_v11 = vshll.u32 %v891_v5, 16  ;;  %v1083_v15 = vrot.slane %v1082_v1, 4  ;;  %12511 = vmatprep.subr.bf16.mxu0 %v13904_v12 }
  0x9c   : > { %810 = vst [vmem:[#allocation2 + $0x54] sm:$0xf] %v809_v6  ;;  %v1103_v16 = vshrl.u32 %v891_v5, 16  ;;  %v1109_v17 = vshll.u32 %v932_v8, 16  ;;  %v1078_v20 = vsel %vm14534_vm9, %v1073_v47, %v1077_v53  ;;  %811 = vst [vmem:[#allocation2 + $0x58] sm:$0xf] %v561_v18  ;;  %v11968_v52 = vpack.c.bf16 %v330_v26, %v330_v26 }
  0x9d   : > { %v1092_v23 = vrot.slane %v1090_v9, 4  ;;  %v1095_v24 = vrot.slane %v1093_v10, 5  ;;  %v1101_v25 = vrot.slane %v1099_v11, 5  ;;  %v1088_v29 = vsel %vm14534_vm9, %v1083_v15, %v1087_v2  ;;  %814 = vst [vmem:[#allocation2 + $0x5c] sm:$0x1] %v813_v31  ;;  %v332_v6 = vld [vmem:[%s14503_s9 + $0x90] sm:$0xff] }
  0x9e   : > { %v1105_v30 = vrot.slane %v1103_v16, 4  ;;  %v1111_v21 = vrot.slane %v1109_v17, 5  ;;  %v11389_v22 = vcombine.low %v1078_v20, %v1088_v29  ;;  %v566_v37 = vrot.slane %v564_v7, 7  ;;  %12512 = vmatpush3.bf16.msra.mxu0 %v13904_v12  ;;  %v243_v63 = vld [vmem:[#allocation2 + $0x78] sm:$0x1]  ;;  %v333_v18 = vld [vmem:[%s14503_s9 + $0x98] sm:$0xff] }
  0x9f   : > { %v1096_v33 = vor.u32 %v1095_v24, %v1092_v23  ;;  %v567_v38 = vshll.u32 %v14666_v35, 16  ;;  %v572_v40 = vshrl.u32 %v14668_v36, 16  ;;  %v575_v41 = vshll.u32 %v14668_v36, 16  ;;  %12545 = vmatprep.subr.bf16.mxu0 %v14683_v28  ;;  %v293_v5 = vld [vmem:[#allocation2 + $0x80] sm:$0x1]  ;;  %s14268_s7 = sshll.u32 %s14343_s22, 4  ;;  %s14269_s7 = int_to_ptr.vmem [resolvable:$false] %s14268_s7 }
  0xa0   : > { %v1106_v39 = vor.u32 %v1105_v30, %v1101_v25  ;;  %v241_v43 = vsel %vm14515_vm5, 0, %v240_v13  ;;  %12474 = vmatmul.mubr.bf16.gmra.mrb[8].mxu0 %v11389_v22  ;;  %v570_v46 = vrot.slane %v566_v37, 4  ;;  %v291_v35 = vsel %vm14521_vm7, 0, %v290_v19  ;;  %v246_v11 = vld [vmem:[#allocation2 + $0x84] sm:$0x1]  ;;  %s14270_s8 = scalar_lea.vmem %s14269_s7, 8192  ;;  %p14271_p8 = scmp.lt.s32.totalorder %s17387_s27, %s14269_s7 }
  0xa1   : > { %v1097_v44 = vrot.slane %v1096_v33, 4  ;;  %v569_v45 = vor.u32 %v567_v38, %v566_v37  ;;  %v819_v48 = vld [vmem:[#allocation2 + $0x68] sm:$0x1]  ;;  %242 = vst [vmem:[#allocation2 + $0x6c] sm:$0x1] %v241_v43  ;;  %v574_v51 = vrot.slane %v572_v40, 7  ;;  %v11969_v36 = vpack.c.bf16 %v331_v27, %v331_v27  ;;  %p14272_p13 = scmp.lt.s32.totalorder %s14270_s8, %s14264_s30 }
  0xa2   : > { %v1107_v49 = vrot.slane %v1106_v39, 4  ;;  %292 = vst [vmem:[#allocation2 + $0x74] sm:$0x1] %v291_v35  ;;  %v581_v62 = vshrl.u32 %v11968_v52, 16  ;;  %v584_v17 = vshll.u32 %v11968_v52, 16  ;;  %v244_v29 = vsel %vm14515_vm5, 0, %v243_v63 }
  0xa3   : > { %v892_v50 = vld [vmem:[#allocation2 + $0x54] sm:$0xf]  ;;  %v1102_v53 = vsel %vm14534_vm9, %v1097_v44, %v1101_v25  ;;  %v816_v57 = vsel %vm14556_vm11, %v569_v45, %v815_v32  ;;  %v893_v59 = vld [vmem:[#allocation2 + $0x58] sm:$0xf]  ;;  %v577_v60 = vor.u32 %v575_v41, %v574_v51  ;;  %v579_v61 = vrot.slane %v574_v51, 4  ;;  %p14273_p3 = por %p14272_p13, %p14271_p8 }
  0xa4   : > { %v1114_v54 = vshrl.u32 %v892_v50, 16  ;;  %v1117_v56 = vshll.u32 %v892_v50, 16  ;;  %v1112_v58 = vsel %vm14534_vm9, %v1107_v49, %v1111_v21  ;;  %817 = vst [vmem:[#allocation2 + $0x60] sm:$0xf] %v816_v57  ;;  %v1123_v3 = vshll.u32 %v893_v59, 16 }
  0xa5   : > { %v11390_v0 = vcombine.low %v1102_v53, %v1112_v58  ;;  %v933_v7 = vld [vmem:[#allocation2 + $0x5c] sm:$0x1]  ;;  %v1127_v47 = vshrl.u32 %v893_v59, 16  ;;  %v578_v8 = vsel %vm14541_vm10, %v570_v46, %v577_v60  ;;  %v820_v9 = vsel %vm14515_vm5, %v579_v61, %v819_v48  ;;  %245 = vst [vmem:[#allocation2 + $0x78] sm:$0x1] %v244_v29  ;;  %p14274_p7 = pnand %p14273_p3, %p14267_p6 }
  0xa6   : > { %v1116_v1 = vrot.slane %v1114_v54, 4  ;;  %v1119_v2 = vrot.slane %v1117_v56, 5  ;;  %v583_v10 = vrot.slane %v581_v62, 7  ;;  %v1125_v15 = vrot.slane %v1123_v3, 5  ;;  %818 = vst [vmem:[#allocation2 + $0x64] sm:$0xf] %v578_v8 }
  0xa7   : > { %12477 = vmatprep.mubr.bf16.mxu0 %v11390_v0  ;;  %v1133_v16 = vshll.u32 %v933_v7, 16  ;;  %821 = vst [vmem:[#allocation2 + $0x68] sm:$0x1] %v820_v9  ;;  %v1129_v19 = vrot.slane %v1127_v47, 4  ;;  %v589_v20 = vshrl.u32 %v11969_v36, 16  ;;  %v592_v23 = vshll.u32 %v11969_v36, 16 }
  0xa8   : > { %v1120_v13 = vor.u32 %v1119_v2, %v1116_v1  ;;  %v587_v12 = vrot.slane %v583_v10, 4  ;;  %v822_v24 = vld [vmem:[#allocation2 + $0x6c] sm:$0xf]  ;;  %v586_v27 = vor.u32 %v584_v17, %v583_v10  ;;  %v294_v31 = vsel %vm14521_vm7, 0, %v293_v5  ;;  %v334_v61 = vld [vmem:[%s14503_s9 + $0xa0] sm:$0xff] }
  0xa9   : > { %v1135_v26 = vrot.slane %v1133_v16, 5  ;;  %v1130_v30 = vor.u32 %v1129_v19, %v1125_v15  ;;  %v591_v21 = vrot.slane %v589_v20, 7  ;;  %v11970_v32 = vpack.c.bf16 %v332_v6, %v332_v6  ;;  %v826_v38 = vld [vmem:[#allocation2 + $0x74] sm:$0x1]  ;;  %295 = vst [vmem:[#allocation2 + $0x80] sm:$0x1] %v294_v31 }
  0xaa   : > { %v1121_v25 = vrot.slane %v1120_v13, 4  ;;  %v823_v37 = vsel %vm14556_vm11, %v586_v27, %v822_v24  ;;  %v11971_v39 = vpack.c.bf16 %v333_v18, %v333_v18  ;;  %v247_v40 = vsel %vm14515_vm5, 0, %v246_v11  ;;  %v296_v56 = vld [vmem:[#allocation2 + $0x8c] sm:$0x1]  ;;  %v335_v13 = vld [vmem:[%s14503_s9 + $0xa8] sm:$0xff] }
  0xab   : > { %v14715_v33 = vld [vmem:[#allocation2 + $0x60] sm:$0xf]  ;;  %v1131_v41 = vrot.slane %v1130_v30, 4  ;;  %v594_v45 = vor.u32 %v592_v23, %v591_v21  ;;  %824 = vst [vmem:[#allocation2 + $0x6c] sm:$0xf] %v823_v37  ;;  %v596_v46 = vrot.slane %v591_v21, 4  ;;  %v11972_v19 = vpack.c.bf16 %v334_v61, %v334_v61 }
  0xac   : > { %v1126_v22 = vsel %vm14534_vm9, %v1121_v25, %v1125_v15  ;;  %v1138_v43 = vshrl.u32 %v14715_v33, 16  ;;  %v1141_v44 = vshll.u32 %v14715_v33, 16  ;;  %248 = vst [vmem:[#allocation2 + $0x84] sm:$0x1] %v247_v40  ;;  %v598_v48 = vshrl.u32 %v11970_v32, 16 }
  0xad   : > { %v601_v35 = vshll.u32 %v11970_v32, 16  ;;  %v606_v49 = vshrl.u32 %v11971_v39, 16  ;;  %v1136_v50 = vsel %vm14534_vm9, %v1131_v41, %v1135_v26  ;;  %v14725_v51 = vld [vmem:[#allocation2 + $0x64] sm:$0xf]  ;;  %v595_v54 = vsel %vm14541_vm10, %v587_v12, %v594_v45  ;;  %v829_v7 = vld [vmem:[#allocation2 + $0x78] sm:$0xf] }
  0xae   : > { %v934_v52 = vld [vmem:[#allocation2 + $0x68] sm:$0x1]  ;;  %v1140_v36 = vrot.slane %v1138_v43, 4  ;;  %v1143_v53 = vrot.slane %v1141_v44, 5  ;;  %v11391_v57 = vcombine.low %v1126_v22, %v1136_v50  ;;  %v1147_v58 = vshll.u32 %v14725_v51, 16 }
  0xaf   : > { %v1151_v59 = vshrl.u32 %v14725_v51, 16  ;;  %v1157_v60 = vshll.u32 %v934_v52, 16  ;;  %825 = vst [vmem:[#allocation2 + $0x70] sm:$0xf] %v595_v54  ;;  %v827_v63 = vsel %vm14515_vm5, %v596_v46, %v826_v38  ;;  %v600_v0 = vrot.slane %v598_v48, 7  ;;  %v336_v45 = vld [vmem:[%s14503_s9 + $0xb0] sm:$0xff] }
  0xb0   : > { %v1144_v62 = vor.u32 %v1143_v53, %v1140_v36  ;;  %v608_v1 = vrot.slane %v606_v49, 7  ;;  %12478 = vmatmul.mubr.bf16.gmra.mrb[12].mxu0 %v11391_v57  ;;  %v1149_v2 = vrot.slane %v1147_v58, 5  ;;  %828 = vst [vmem:[#allocation2 + $0x74] sm:$0x1] %v827_v63  ;;  %v609_v6 = vshll.u32 %v11971_v39, 16 }
  0xb1   : > { %v1153_v3 = vrot.slane %v1151_v59, 4  ;;  %v1159_v5 = vrot.slane %v1157_v60, 5  ;;  %v603_v8 = vor.u32 %v601_v35, %v600_v0  ;;  %v604_v9 = vrot.slane %v600_v0, 4  ;;  %v833_v11 = vld [vmem:[#allocation2 + $0x80] sm:$0x1] }
  0xb2   : > { %v1145_v47 = vrot.slane %v1144_v62, 4  ;;  %v613_v10 = vrot.slane %v608_v1, 4  ;;  %v14735_v16 = vld [vmem:[#allocation2 + $0x6c] sm:$0xf]  ;;  %v611_v17 = vor.u32 %v609_v6, %v608_v1  ;;  %v297_v18 = vsel %vm14521_vm7, 0, %v296_v56  ;;  %v337_v6 = vld [vmem:[%s14503_s9 + $0xb8] sm:$0xff] }
  0xb3   : > { %v1154_v15 = vor.u32 %v1153_v3, %v1149_v2  ;;  %v1162_v20 = vshrl.u32 %v14735_v16, 16  ;;  %v1165_v23 = vshll.u32 %v14735_v16, 16  ;;  %v830_v24 = vsel %vm14556_vm11, %v603_v8, %v829_v7  ;;  %298 = vst [vmem:[#allocation2 + $0x8c] sm:$0x1] %v297_v18  ;;  %v249_v30 = vld [vmem:[#allocation2 + $0x90] sm:$0x1] }
  0xb4   : > { %v1150_v12 = vsel %vm14534_vm9, %v1145_v47, %v1149_v2  ;;  %v612_v26 = vsel %vm14541_vm10, %v604_v9, %v611_v17  ;;  %831 = vst [vmem:[#allocation2 + $0x78] sm:$0xf] %v830_v24  ;;  %v834_v27 = vsel %vm14515_vm5, %v613_v10, %v833_v11  ;;  %v11973_v29 = vpack.c.bf16 %v335_v13, %v335_v13  ;;  %v836_v43 = vld [vmem:[#allocation2 + $0x84] sm:$0xf]  ;;  %v299_v44 = vld [vmem:[#allocation2 + $0x98] sm:$0x1] }
  0xb5   : > { %v1155_v25 = vrot.slane %v1154_v15, 4  ;;  %v1164_v31 = vrot.slane %v1162_v20, 4  ;;  %v1167_v32 = vrot.slane %v1165_v23, 5  ;;  %832 = vst [vmem:[#allocation2 + $0x7c] sm:$0xf] %v612_v26  ;;  %v615_v22 = vshrl.u32 %v11972_v19, 16 }
  0xb6   : > { %v14749_v21 = vld [vmem:[#allocation2 + $0x70] sm:$0xf]  ;;  %835 = vst [vmem:[#allocation2 + $0x80] sm:$0x1] %v834_v27  ;;  %v618_v37 = vshll.u32 %v11972_v19, 16  ;;  %v623_v41 = vshrl.u32 %v11973_v29, 16  ;;  %v11974_v7 = vpack.c.bf16 %v336_v45, %v336_v45 }
  0xb7   : > { %v1160_v38 = vsel %vm14534_vm9, %v1155_v25, %v1159_v5  ;;  %v1171_v39 = vshll.u32 %v14749_v21, 16  ;;  %v1175_v40 = vshrl.u32 %v14749_v21, 16  ;;  %v935_v48 = vld [vmem:[#allocation2 + $0x74] sm:$0x1]  ;;  %v1168_v35 = vor.u32 %v1167_v32, %v1164_v31  ;;  %v252_v15 = vld [vmem:[#allocation2 + $0x9c] sm:$0x1] }
  0xb8   : > { %v11392_v46 = vcombine.low %v1150_v12, %v1160_v38  ;;  %v617_v49 = vrot.slane %v615_v22, 7  ;;  %v626_v50 = vshll.u32 %v11973_v29, 16  ;;  %v1181_v53 = vshll.u32 %v935_v48, 16  ;;  %v302_v20 = vld [vmem:[#allocation2 + $0xa4] sm:$0x1]  ;;  %v338_v27 = vld [vmem:[%s14503_s9 + $0xc0] sm:$0xff] }
  0xb9   : > { %v1173_v52 = vrot.slane %v1171_v39, 5  ;;  %v1177_v36 = vrot.slane %v1175_v40, 4  ;;  %v625_v54 = vrot.slane %v623_v41, 7  ;;  %v1169_v56 = vrot.slane %v1168_v35, 4  ;;  %v339_v22 = vld [vmem:[%s14503_s9 + $0xc8] sm:$0xff] }
  0xba   : > { %12481 = vmatprep.mubr.bf16.mxu0 %v11392_v46  ;;  %v620_v57 = vor.u32 %v618_v37, %v617_v49  ;;  %v621_v58 = vrot.slane %v617_v49, 4  ;;  %v250_v59 = vsel %vm14515_vm5, 0, %v249_v30  ;;  %v1183_v61 = vrot.slane %v1181_v53, 5  ;;  %v840_v0 = vld [vmem:[#allocation2 + $0x8c] sm:$0x1] }
  0xbb   : > { %v1178_v60 = vor.u32 %v1177_v36, %v1173_v52  ;;  %v628_v62 = vor.u32 %v626_v50, %v625_v54  ;;  %v630_v63 = vrot.slane %v625_v54, 4  ;;  %251 = vst [vmem:[#allocation2 + $0x90] sm:$0x1] %v250_v59  ;;  %v1174_v1 = vsel %vm14534_vm9, %v1169_v56, %v1173_v52  ;;  %v14760_v2 = vld [vmem:[#allocation2 + $0x78] sm:$0xf] }
  0xbc   : > { %v837_v3 = vsel %vm14556_vm11, %v620_v57, %v836_v43  ;;  %v300_v5 = vsel %vm14521_vm7, 0, %v299_v44  ;;  %v14767_v8 = vld [vmem:[#allocation2 + $0x7c] sm:$0xf]  ;;  %v1186_v10 = vshrl.u32 %v14760_v2, 16  ;;  %v1189_v17 = vshll.u32 %v14760_v2, 16 }
  0xbd   : > { %v1179_v47 = vrot.slane %v1178_v60, 4  ;;  %v936_v9 = vld [vmem:[#allocation2 + $0x80] sm:$0x1]  ;;  %v629_v11 = vsel %vm14541_vm10, %v621_v58, %v628_v62  ;;  %838 = vst [vmem:[#allocation2 + $0x84] sm:$0xf] %v837_v3  ;;  %v841_v13 = vsel %vm14515_vm5, %v630_v63, %v840_v0  ;;  %v1195_v18 = vshll.u32 %v14767_v8, 16 }
  0xbe   : > { %301 = vst [vmem:[#allocation2 + $0x98] sm:$0x1] %v300_v5  ;;  %v1199_v19 = vshrl.u32 %v14767_v8, 16  ;;  %v1205_v12 = vshll.u32 %v936_v9, 16  ;;  %839 = vst [vmem:[#allocation2 + $0x88] sm:$0xf] %v629_v11  ;;  %v11975_v25 = vpack.c.bf16 %v337_v6, %v337_v6  ;;  %v11976_v54 = vpack.c.bf16 %v338_v27, %v338_v27 }
  0xbf   : > { %842 = vst [vmem:[#allocation2 + $0x8c] sm:$0x1] %v841_v13  ;;  %v1184_v23 = vsel %vm14534_vm9, %v1179_v47, %v1183_v61  ;;  %v1188_v24 = vrot.slane %v1186_v10, 4  ;;  %v632_v26 = vshrl.u32 %v11974_v7, 16  ;;  %v1191_v30 = vrot.slane %v1189_v17, 5 }
  0xc0   : > { %v11393_v29 = vcombine.low %v1174_v1, %v1184_v23  ;;  %v1197_v31 = vrot.slane %v1195_v18, 5  ;;  %v1201_v32 = vrot.slane %v1199_v19, 4  ;;  %v1207_v37 = vrot.slane %v1205_v12, 5  ;;  %v255_v5 = vld [vmem:[#allocation2 + $0xa8] sm:$0x1] }
  0xc1   : > { %v634_v38 = vrot.slane %v632_v26, 7  ;;  %v635_v39 = vshll.u32 %v11974_v7, 16  ;;  %v640_v40 = vshrl.u32 %v11975_v25, 16  ;;  %v1192_v41 = vor.u32 %v1191_v30, %v1188_v24  ;;  %v305_v6 = vld [vmem:[#allocation2 + $0xb0] sm:$0x1]  ;;  %v340_v19 = vld [vmem:[%s14503_s9 + $0xd0] sm:$0xff] }
  0xc2   : > { %12482 = vmatmul.mubr.bf16.gmra.mrb[16].mxu0 %v11393_v29  ;;  %v1202_v43 = vor.u32 %v1201_v32, %v1197_v31  ;;  %v643_v44 = vshll.u32 %v11975_v25, 16  ;;  %v843_v45 = vld [vmem:[#allocation2 + $0x90] sm:$0xf]  ;;  %v253_v46 = vsel %vm14515_vm5, 0, %v252_v15  ;;  %v303_v50 = vsel %vm14521_vm7, 0, %v302_v20 }
  0xc3   : > { %v637_v48 = vor.u32 %v635_v39, %v634_v38  ;;  %v638_v35 = vrot.slane %v634_v38, 4  ;;  %v642_v49 = vrot.slane %v640_v40, 7  ;;  %254 = vst [vmem:[#allocation2 + $0x9c] sm:$0x1] %v253_v46  ;;  %v1193_v52 = vrot.slane %v1192_v41, 4  ;;  %v341_v25 = vld [vmem:[%s14503_s9 + $0xd8] sm:$0xff] }
  0xc4   : > { %v1203_v36 = vrot.slane %v1202_v43, 4  ;;  %v14785_v53 = vld [vmem:[#allocation2 + $0x84] sm:$0xf]  ;;  %304 = vst [vmem:[#allocation2 + $0xa4] sm:$0x1] %v303_v50  ;;  %v11977_v56 = vpack.c.bf16 %v339_v22, %v339_v22  ;;  %v649_v23 = vshrl.u32 %v11976_v54, 16  ;;  %v11978_v43 = vpack.c.bf16 %v340_v19, %v340_v19 }
  0xc5   : > { %v14787_v57 = vld [vmem:[#allocation2 + $0x88] sm:$0xf]  ;;  %v1210_v59 = vshrl.u32 %v14785_v53, 16  ;;  %v1213_v60 = vshll.u32 %v14785_v53, 16  ;;  %v645_v61 = vor.u32 %v643_v44, %v642_v49  ;;  %v844_v62 = vsel %vm14556_vm11, %v637_v48, %v843_v45  ;;  %v847_v11 = vld [vmem:[#allocation2 + $0x98] sm:$0x1] }
  0xc6   : > { %v937_v58 = vld [vmem:[#allocation2 + $0x8c] sm:$0x1]  ;;  %v1198_v63 = vsel %vm14534_vm9, %v1193_v52, %v1197_v31  ;;  %v1208_v0 = vsel %vm14534_vm9, %v1203_v36, %v1207_v37  ;;  %v1219_v1 = vshll.u32 %v14787_v57, 16  ;;  %v1223_v3 = vshrl.u32 %v14787_v57, 16  ;;  %845 = vst [vmem:[#allocation2 + $0x90] sm:$0xf] %v844_v62 }
  0xc7   : > { %v11394_v7 = vcombine.low %v1198_v63, %v1208_v0  ;;  %v1212_v47 = vrot.slane %v1210_v59, 4  ;;  %v1215_v9 = vrot.slane %v1213_v60, 5  ;;  %v1229_v10 = vshll.u32 %v937_v58, 16  ;;  %v258_v31 = vld [vmem:[#allocation2 + $0xb4] sm:$0x1]  ;;  %v343_v19 = vld [vmem:[%s14503_s9 + $0xe8] sm:$0xff] }
  0xc8   : > { %v1221_v13 = vrot.slane %v1219_v1, 5  ;;  %v1225_v15 = vrot.slane %v1223_v3, 4  ;;  %v646_v17 = vsel %vm14541_vm10, %v638_v35, %v645_v61  ;;  %v647_v18 = vrot.slane %v642_v49, 4  ;;  %v308_v52 = vld [vmem:[#allocation2 + $0xbc] sm:$0x1] }
  0xc9   : > { %12485 = vmatprep.mubr.bf16.mxu0 %v11394_v7  ;;  %v1216_v12 = vor.u32 %v1215_v9, %v1212_v47  ;;  %v1231_v20 = vrot.slane %v1229_v10, 5  ;;  %846 = vst [vmem:[#allocation2 + $0x94] sm:$0xf] %v646_v17  ;;  %v652_v24 = vshll.u32 %v11976_v54, 16  ;;  %v657_v29 = vshrl.u32 %v11977_v56, 16  ;;  %v342_v10 = vld [vmem:[%s14503_s9 + $0xe0] sm:$0xff] }
  0xca   : > { %v1226_v26 = vor.u32 %v1225_v15, %v1221_v13  ;;  %v848_v27 = vsel %vm14515_vm5, %v647_v18, %v847_v11  ;;  %v660_v30 = vshll.u32 %v11977_v56, 16  ;;  %v651_v22 = vrot.slane %v649_v23, 7  ;;  %v850_v41 = vld [vmem:[#allocation2 + $0x9c] sm:$0xf] }
  0xcb   : > { %v1217_v32 = vrot.slane %v1216_v12, 4  ;;  %849 = vst [vmem:[#allocation2 + $0x98] sm:$0x1] %v848_v27  ;;  %v256_v37 = vsel %vm14515_vm5, 0, %v255_v5  ;;  %v306_v38 = vsel %vm14521_vm7, 0, %v305_v6  ;;  %v659_v40 = vrot.slane %v657_v29, 7 }
  0xcc   : > { %v1227_v39 = vrot.slane %v1226_v26, 4  ;;  %257 = vst [vmem:[#allocation2 + $0xa8] sm:$0x1] %v256_v37  ;;  %307 = vst [vmem:[#allocation2 + $0xb0] sm:$0x1] %v306_v38  ;;  %v11979_v44 = vpack.c.bf16 %v341_v25, %v341_v25  ;;  %v654_v48 = vor.u32 %v652_v24, %v651_v22  ;;  %v655_v35 = vrot.slane %v651_v22, 4 }
  0xcd   : > { %v1222_v45 = vsel %vm14534_vm9, %v1217_v32, %v1221_v13  ;;  %v14811_v46 = vld [vmem:[#allocation2 + $0x90] sm:$0xf]  ;;  %v854_v49 = vld [vmem:[#allocation2 + $0xa4] sm:$0x1]  ;;  %v259_v50 = vsel %vm14515_vm5, 0, %v258_v31  ;;  %v662_v58 = vor.u32 %v660_v30, %v659_v40  ;;  %v664_v60 = vrot.slane %v659_v40, 4 }
  0xce   : > { %v1232_v36 = vsel %vm14534_vm9, %v1227_v39, %v1231_v20  ;;  %v1234_v54 = vshrl.u32 %v14811_v46, 16  ;;  %v1237_v56 = vshll.u32 %v14811_v46, 16  ;;  %260 = vst [vmem:[#allocation2 + $0xb4] sm:$0x1] %v259_v50  ;;  %v851_v61 = vsel %vm14556_vm11, %v654_v48, %v850_v41 }
  0xcf   : > { %v11395_v59 = vcombine.low %v1222_v45, %v1232_v36  ;;  %v666_v62 = vshrl.u32 %v11978_v43, 16  ;;  %v663_v3 = vsel %vm14541_vm10, %v655_v35, %v662_v58  ;;  %852 = vst [vmem:[#allocation2 + $0x9c] sm:$0xf] %v851_v61  ;;  %v669_v5 = vshll.u32 %v11978_v43, 16 }
  0xd0   : > { %v14821_v63 = vld [vmem:[#allocation2 + $0x94] sm:$0xf]  ;;  %v1236_v0 = vrot.slane %v1234_v54, 4  ;;  %v1239_v1 = vrot.slane %v1237_v56, 5  ;;  %853 = vst [vmem:[#allocation2 + $0xa0] sm:$0xf] %v663_v3  ;;  %v855_v47 = vsel %vm14515_vm5, %v664_v60, %v854_v49  ;;  %v11980_v30 = vpack.c.bf16 %v342_v10, %v342_v10 }
  0xd1   : > { %12486 = vmatmul.mubr.bf16.gmra.mrb[20].mxu0 %v11395_v59  ;;  %v1243_v6 = vshll.u32 %v14821_v63, 16  ;;  %v1247_v7 = vshrl.u32 %v14821_v63, 16  ;;  %v668_v9 = vrot.slane %v666_v62, 7  ;;  %856 = vst [vmem:[#allocation2 + $0xa4] sm:$0x1] %v855_v47  ;;  %v674_v15 = vshrl.u32 %v11979_v44, 16 }
  0xd2   : > { %v14830_v11 = vld [vmem:[#allocation2 + $0x98] sm:$0x1]  ;;  %v1240_v13 = vor.u32 %v1239_v1, %v1236_v0  ;;  %v677_v17 = vshll.u32 %v11979_v44, 16  ;;  %v309_v18 = vsel %vm14521_vm7, 0, %v308_v52  ;;  %v11981_v38 = vpack.c.bf16 %v343_v19, %v343_v19 }
  0xd3   : > { %v1245_v12 = vrot.slane %v1243_v6, 5  ;;  %v1249_v20 = vrot.slane %v1247_v7, 4  ;;  %v1253_v23 = vshll.u32 %v14830_v11, 16  ;;  %v671_v24 = vor.u32 %v669_v5, %v668_v9  ;;  %v857_v25 = vld [vmem:[#allocation2 + $0xa8] sm:$0xf] }
  0xd4   : > { %310 = vst [vmem:[#allocation2 + $0xbc] sm:$0x1] %v309_v18  ;;  %v1241_v26 = vrot.slane %v1240_v13, 4  ;;  %v672_v27 = vrot.slane %v668_v9, 4  ;;  %v676_v29 = vrot.slane %v674_v15, 7  ;;  %v683_v43 = vshrl.u32 %v11980_v30, 16 }
  0xd5   : > { %v1250_v31 = vor.u32 %v1249_v20, %v1245_v12  ;;  %v1255_v32 = vrot.slane %v1253_v23, 5  ;;  %v858_v22 = vsel %vm14556_vm11, %v671_v24, %v857_v25  ;;  %v861_v37 = vld [vmem:[#allocation2 + $0xb0] sm:$0x1]  ;;  %v686_v48 = vshll.u32 %v11980_v30, 16  ;;  %v864_v6 = vld [vmem:[#allocation2 + $0xb4] sm:$0xf] }
  0xd6   : > { %v1246_v39 = vsel %vm14534_vm9, %v1241_v26, %v1245_v12  ;;  %v679_v40 = vor.u32 %v677_v17, %v676_v29  ;;  %v681_v41 = vrot.slane %v676_v29, 4  ;;  %859 = vst [vmem:[#allocation2 + $0xa8] sm:$0xf] %v858_v22  ;;  %v14840_v45 = vld [vmem:[#allocation2 + $0x9c] sm:$0xf]  ;;  %v691_v35 = vshrl.u32 %v11981_v38, 16 }
  0xd7   : > { %v1251_v44 = vrot.slane %v1250_v31, 4  ;;  %v694_v49 = vshll.u32 %v11981_v38, 16  ;;  %v14842_v50 = vld [vmem:[#allocation2 + $0xa0] sm:$0xf]  ;;  %v1258_v52 = vshrl.u32 %v14840_v45, 16  ;;  %v1261_v36 = vshll.u32 %v14840_v45, 16 }
  0xd8   : > { %v680_v54 = vsel %vm14541_vm10, %v672_v27, %v679_v40  ;;  %v862_v56 = vsel %vm14515_vm5, %v681_v41, %v861_v37  ;;  %v14852_v59 = vld [vmem:[#allocation2 + $0xa4] sm:$0x1]  ;;  %v1267_v60 = vshll.u32 %v14842_v50, 16  ;;  %v1271_v61 = vshrl.u32 %v14842_v50, 16 }
  0xd9   : > { %v1256_v58 = vsel %vm14534_vm9, %v1251_v44, %v1255_v32  ;;  %860 = vst [vmem:[#allocation2 + $0xac] sm:$0xf] %v680_v54  ;;  %863 = vst [vmem:[#allocation2 + $0xb0] sm:$0x1] %v862_v56  ;;  %v685_v62 = vrot.slane %v683_v43, 7  ;;  %v1260_v1 = vrot.slane %v1258_v52, 4 }
  0xda   : > { %v11396_v0 = vcombine.low %v1246_v39, %v1256_v58  ;;  %v1263_v3 = vrot.slane %v1261_v36, 5  ;;  %v1277_v5 = vshll.u32 %v14852_v59, 16  ;;  %v1269_v7 = vrot.slane %v1267_v60, 5 }
  0xdb   : > { %v1273_v47 = vrot.slane %v1271_v61, 4  ;;  %v688_v9 = vor.u32 %v686_v48, %v685_v62  ;;  %v689_v13 = vrot.slane %v685_v62, 4  ;;  %v693_v15 = vrot.slane %v691_v35, 7  ;;  %v868_v20 = vld [vmem:[#allocation2 + $0xbc] sm:$0x1] }
  0xdc   : > { %12489 = vmatprep.mubr.bf16.mxu0 %v11396_v0  ;;  %v1264_v10 = vor.u32 %v1263_v3, %v1260_v1  ;;  %v1279_v18 = vrot.slane %v1277_v5, 5  ;;  %vm1972_vm12 = vcmask 1042432   ;;  %vm1973_vm13 = vcmask 1046532  }
  0xdd   : > { %v1274_v17 = vor.u32 %v1273_v47, %v1269_v7  ;;  %v14857_v19 = vld [vmem:[#allocation2 + $0xa8] sm:$0xf]  ;;  %v865_v12 = vsel %vm14556_vm11, %v688_v9, %v864_v6  ;;  %v696_v26 = vor.u32 %v694_v49, %v693_v15  ;;  %v698_v29 = vrot.slane %v693_v15, 4  ;;  %vm14944_vm14 = vmor %vm1972_vm12, %vm1973_vm13 }
  0xde   : > { %v1265_v23 = vrot.slane %v1264_v10, 4  ;;  %v1282_v24 = vshrl.u32 %v14857_v19, 16  ;;  %v1285_v25 = vshll.u32 %v14857_v19, 16  ;;  %866 = vst [vmem:[#allocation2 + $0xb4] sm:$0xf] %v865_v12 }
  0xdf   : > { %v1275_v27 = vrot.slane %v1274_v17, 4  ;;  %v697_v38 = vsel %vm14541_vm10, %v689_v13, %v696_v26  ;;  %v869_v35 = vsel %vm14515_vm5, %v698_v29, %v868_v20  ;;  %v14897_v29 = vld [vmem:[#allocation2 + $0x4] sm:$0xf] }
  0xe0   : > { %v1270_v30 = vsel %vm14534_vm9, %v1265_v23, %v1269_v7  ;;  %v14865_v31 = vld [vmem:[#allocation2 + $0xac] sm:$0xf]  ;;  %v14867_v32 = vld [vmem:[#allocation2 + $0xb0] sm:$0x1]  ;;  %v1284_v22 = vrot.slane %v1282_v24, 4  ;;  %v1287_v37 = vrot.slane %v1285_v25, 5 }
  0xe1   : > { %v1280_v39 = vsel %vm14534_vm9, %v1275_v27, %v1279_v18  ;;  %v1291_v40 = vshll.u32 %v14865_v31, 16  ;;  %v1295_v41 = vshrl.u32 %v14865_v31, 16  ;;  %v1301_v43 = vshll.u32 %v14867_v32, 16  ;;  %867 = vst [vmem:[#allocation2 + $0xb8] sm:$0xf] %v697_v38 }
  0xe2   : > { %v11397_v44 = vcombine.low %v1270_v30, %v1280_v39  ;;  %v1288_v48 = vor.u32 %v1287_v37, %v1284_v22  ;;  %870 = vst [vmem:[#allocation2 + $0xbc] sm:$0x1] %v869_v35  ;;  %v14129_v27 = vld [vmem:[#allocation2] sm:$0xf]  ;;  %v14131_v37 = vld [vmem:[#allocation2 + $0xc] sm:$0xf] }
  0xe3   : > { %v1293_v49 = vrot.slane %v1291_v40, 5  ;;  %v1297_v52 = vrot.slane %v1295_v41, 4  ;;  %v1303_v56 = vrot.slane %v1301_v43, 5  ;;  %v11408_v30 = vcombine.low %v14129_v27, %v14897_v29  ;;  %v14900_v38 = vld [vmem:[#allocation2 + $0x10] sm:$0xf] }
  0xe4   : > { %12490 = vmatmul.mubr.bf16.gmra.mrb[24].mxu0 %v11397_v44  ;;  %v1289_v36 = vrot.slane %v1288_v48, 4  ;;  %v11409_v39 = vcombine.low %v14131_v37, %v14900_v38  ;;  %v14133_v40 = vld [vmem:[#allocation2 + $0x18] sm:$0xf]  ;;  %v14903_v41 = vld [vmem:[#allocation2 + $0x1c] sm:$0xf]  ;;  %v13910_v44 = vld [vmem:[#allocation6 + $0x88] sm:$0xff]   ;;  %v11420_v27 = vcombine.low %v14811_v46, %v14821_v63 }
  0xe5   : > { %v1298_v54 = vor.u32 %v1297_v52, %v1293_v49  ;;  %v14878_v58 = vld [vmem:[#allocation2 + $0xb4] sm:$0xf]  ;;  %v11410_v43 = vcombine.low %v14133_v40, %v14903_v41  ;;  %v13913_v48 = vld [vmem:[#allocation6 + $0x90] sm:$0xff]   ;;  %v14135_v35 = vld [vmem:[#allocation2 + $0x24] sm:$0xf] }
  0xe6   : > { %v1306_v60 = vshrl.u32 %v14878_v58, 16  ;;  %v1309_v61 = vshll.u32 %v14878_v58, 16  ;;  %v1294_v62 = vsel %vm14534_vm9, %v1289_v36, %v1293_v49  ;;  %v14907_v49 = vld [vmem:[#allocation2 + $0x28] sm:$0xf]  ;;  %v14910_v36 = vld [vmem:[#allocation2 + $0x34] sm:$0xf] }
  0xe7   : > { %v1299_v0 = vrot.slane %v1298_v54, 4  ;;  %v11411_v52 = vcombine.low %v14135_v35, %v14907_v49  ;;  %v14138_v54 = vld [vmem:[#allocation2 + $0x30] sm:$0xf]  ;;  %v15241_v4 = vld [vmem:[#allocation2 + $0xac] sm:$0xf] }
  0xe8   : > { %v14884_v1 = vld [vmem:[#allocation2 + $0xb8] sm:$0xf]  ;;  %v1308_v3 = vrot.slane %v1306_v60, 4  ;;  %v1311_v5 = vrot.slane %v1309_v61, 5  ;;  %v13916_v60 = vld [vmem:[#allocation6 + $0x98] sm:$0xff]   ;;  %17541 = vst [vmem:[#allocation16_spill] sm:$0xff] %v15241_v4 }
  0xe9   : > { %v1304_v6 = vsel %vm14534_vm9, %v1299_v0, %v1303_v56  ;;  %v1315_v7 = vshll.u32 %v14884_v1, 16  ;;  %v1319_v47 = vshrl.u32 %v14884_v1, 16  ;;  %v14890_v10 = vld [vmem:[#allocation2 + $0xbc] sm:$0x1]  ;;  %v11412_v56 = vcombine.low %v14138_v54, %v14910_v36 }
  0xea   : > { %v11398_v9 = vcombine.low %v1294_v62, %v1304_v6  ;;  %v1312_v13 = vor.u32 %v1311_v5, %v1308_v3  ;;  %v1325_v18 = vshll.u32 %v14890_v10, 16  ;;  %v14139_v61 = vld [vmem:[#allocation2 + $0x3c] sm:$0xf]  ;;  %v14913_v62 = vld [vmem:[#allocation2 + $0x40] sm:$0xf] }
  0xeb   : > { %v1317_v15 = vrot.slane %v1315_v7, 5  ;;  %v1321_v17 = vrot.slane %v1319_v47, 4  ;;  %v11413_v0 = vcombine.low %v14139_v61, %v14913_v62  ;;  %v13922_v3 = vld [vmem:[#allocation6 + $0xa8] sm:$0xff]   ;;  %v14141_v5 = vld [vmem:[#allocation2 + $0x48] sm:$0xf] }
  0xec   : > { %12493 = vmatprep.mubr.bf16.mxu0 %v11398_v9  ;;  %v1313_v12 = vrot.slane %v1312_v13, 4  ;;  %v1327_v23 = vrot.slane %v1325_v18, 5  ;;  %v14916_v6 = vld [vmem:[#allocation2 + $0x4c] sm:$0xf]  ;;  %v14143_v9 = vld [vmem:[#allocation2 + $0x54] sm:$0xf]  ;;  %v11416_v18 = vcombine.low %v14715_v33, %v14725_v51  ;;  %v11419_v33 = vcombine.low %v14785_v53, %v14787_v57 }
  0xed   : > { %v1322_v20 = vor.u32 %v1321_v17, %v1317_v15  ;;  %v11414_v7 = vcombine.low %v14141_v5, %v14916_v6  ;;  %v13925_v47 = vld [vmem:[#allocation6 + $0xb0] sm:$0xff]   ;;  %v14919_v13 = vld [vmem:[#allocation2 + $0x58] sm:$0xf]  ;;  %v13928_v17 = vld [vmem:[#allocation6 + $0xb8] sm:$0xff]   ;;  %v1991_v5 = vrot.slane %v14903_v41, 5 }
  0xee   : > { %v1318_v24 = vsel %vm14534_vm9, %v1313_v12, %v1317_v15  ;;  %v11415_v15 = vcombine.low %v14143_v9, %v14919_v13  ;;  %v14924_v12 = vld [vmem:[#allocation6 + $0xc0] sm:$0xff]   ;;  %v1924_v51 = vld [vmem:[#allocation2] sm:$0xe]  ;;  %v1927_v41 = vld [vmem:[#allocation2 + $0x24] sm:$0xe] }
  0xef   : > { %v1323_v25 = vrot.slane %v1322_v20, 4  ;;  %v11417_v20 = vcombine.low %v14735_v16, %v14749_v21  ;;  %v344_v21 = vld [vmem:[%s14503_s9 + $0xf0] sm:$0xff]  ;;  %v11432_v37 = vrot.slane %v1924_v51, 9  ;;  %v14147_v51 = vld [vmem:[#allocation2 + $0x20] sm:$0x1] }
  0xf1   : > { %v1328_v26 = vsel %vm14534_vm9, %v1323_v25, %v1327_v23  ;;  %v11418_v23 = vcombine.low %v14760_v2, %v14767_v8  ;;  %v14145_v25 = vld [vmem:[#allocation2 + $0x8] sm:$0x1]  ;;  %v345_v2 = vld [vmem:[%s14503_s9 + $0xf8] sm:$0xff]  ;;  %v11982_v8 = vpack.c.bf16 %v344_v21, %v344_v21  ;;  %v2005_v21 = vrot.slane %v14910_v36, 5 }
  0xf2   : > { %v11399_v22 = vcombine.low %v1318_v24, %v1328_v26  ;;  %v261_v24 = vld [vmem:[#allocation2 + $0xc0] sm:$0x1]  ;;  %v1980_v26 = vrot.slane %v14145_v25, 5 }
  0xf3   : > { %v262_v16 = vsel %vm14515_vm5, 0, %v261_v24  ;;  %v700_v53 = vshrl.u32 %v11982_v8, 16  ;;  %v703_v40 = vshll.u32 %v11982_v8, 16  ;;  %v1928_v24 = vld [vmem:[#allocation2 + $0x30] sm:$0xe]  ;;  %v11435_v8 = vrot.slane %v1927_v41, 9 }
  0xf4   : > { %12494 = vmatmul.mubr.bf16.gmra.mrb[28].mxu0 %v11399_v22  ;;  %263 = vst [vmem:[#allocation2 + $0xc0] sm:$0x1] %v262_v16  ;;  %v1977_v22 = vrot.slane %v14897_v29, 5  ;;  %v1932_v41 = vld [vmem:[#allocation2 + $0x60] sm:$0xe] }
  0xf5   : > { %12513 = vmatprep.mubr.bf16.mxu0 %v11408_v30  ;;  %v11983_v30 = vpack.c.bf16 %v345_v2, %v345_v2 }
  0xf6   : > { %v1979_v35 = vrot.slane %v1977_v22, 4 }
  0xf7   : > { %v708_v57 = vshrl.u32 %v11983_v30, 16 }
  0xf9   : > { %v14940_v46 = vrot.slane %v708_v57, 7 }
  0xfc   : > { %12514 = vmatmul.mubr.bf16.vlgmr.msra.gmra.mrb[0].mxu0 %v11409_v39  ;;  %v702_v39 = vrot.slane %v700_v53, 7  ;;  %v14148_v53 = vld [vmem:[#allocation2 + $0x2c] sm:$0x1] }
  0xfd   : > { %12546 = vmatpush3.bf16.msra.mxu0 %v14683_v28  ;;  %12517 = vmatprep.mubr.bf16.mxu0 %v11410_v43  ;;  %v13919_v28 = vld [vmem:[#allocation6 + $0xa0] sm:$0xff]   ;;  %v711_v43 = vshll.u32 %v11983_v30, 16  ;;  %v2001_v57 = vrot.slane %v14148_v53, 5 }
  0xfe   : > { %12547 = vmatprep.subr.bf16.mxu0 %v13910_v44  ;;  %v706_v29 = vrot.slane %v702_v39, 4 }
  0xff   : > { %v713_v54 = vor.u32 %v711_v43, %v14940_v46  ;;  %v14149_v43 = vld [vmem:[#allocation2 + $0x38] sm:$0x1] }
 0x101   : > { %12548 = vmatpush3.bf16.msra.mxu0 %v13910_v44  ;;  %v11421_v44 = vcombine.low %v14840_v45, %v14842_v50  ;;  %v1925_v45 = vld [vmem:[#allocation2 + $0xc] sm:$0xe] }
 0x102   : > { %12549 = vmatprep.subr.bf16.mxu0 %v13913_v48 }
 0x104   : > { %12518 = vmatmul.mubr.bf16.gmra.mrb[4].mxu0 %v11411_v52  ;;  %v705_v52 = vor.u32 %v703_v40, %v702_v39  ;;  %v11436_v39 = vrot.slane %v1928_v24, 9  ;;  %v2007_v40 = vrot.slane %v2005_v21, 4 }
 0x105   : > { %12521 = vmatprep.mubr.bf16.mxu0 %v11412_v56  ;;  %12550 = vmatpush3.bf16.msra.mxu0 %v13913_v48  ;;  %v11422_v56 = vcombine.low %v14857_v19, %v14865_v31  ;;  %v1978_v19 = vsel %vm14944_vm14, %v11432_v37, %v1977_v22  ;;  %v13930_v37 = vld [vmem:[#allocation6 + $0xc8] sm:$0xff]  }
 0x106   : > { %12551 = vmatprep.subr.bf16.mxu0 %v13916_v60 }
 0x109   : > { %12552 = vmatpush3.bf16.msra.mxu0 %v13916_v60  ;;  %v871_v60 = vld [vmem:[#allocation2 + $0xc0] sm:$0xf] }
 0x10a   : > { %12553 = vmatprep.subr.bf16.mxu0 %v13919_v28  ;;  %v872_v61 = vsel %vm14556_vm11, %v705_v52, %v871_v60  ;;  %v2006_v52 = vsel %vm14944_vm14, %v11436_v39, %v2005_v21  ;;  %v1930_v60 = vld [vmem:[#allocation2 + $0x48] sm:$0xe]  ;;  %v11440_v21 = vrot.slane %v1932_v41, 9 }
 0x10b   : > { %873 = vst [vmem:[#allocation2 + $0xc0] sm:$0xf] %v872_v61 }
 0x10c   : > { %12522 = vmatmul.mubr.bf16.gmra.mrb[8].mxu0 %v11413_v0  ;;  %v1926_v0 = vld [vmem:[#allocation2 + $0x18] sm:$0xe] }
 0x10d   : > { %12525 = vmatprep.mubr.bf16.mxu0 %v11414_v7  ;;  %12554 = vmatpush3.bf16.msra.mxu0 %v13919_v28  ;;  %v714_v28 = vsel %vm14541_vm10, %v706_v29, %v713_v54  ;;  %v1981_v7 = vsel %vm14944_vm14, %v1979_v35, %v1980_v26  ;;  %v2012_v35 = vrot.slane %v14913_v62, 5  ;;  %v1929_v54 = vld [vmem:[#allocation2 + $0x3c] sm:$0xe]  ;;  %v11438_v62 = vrot.slane %v1930_v60, 9 }
 0x10e   : > { %12555 = vmatprep.subr.bf16.mxu0 %v13922_v3  ;;  %874 = vst [vmem:[#allocation2 + $0xc4] sm:$0xf] %v714_v28 }
 0x111   : > { %12556 = vmatpush3.bf16.msra.mxu0 %v13922_v3  ;;  %v1984_v3 = vrot.slane %v14900_v38, 5  ;;  %v1994_v38 = vrot.slane %v14147_v51, 5 }
 0x112   : > { %12557 = vmatprep.subr.bf16.mxu0 %v13925_v47 }
 0x114   : > { %12526 = vmatmul.mubr.bf16.gmra.mrb[12].mxu0 %v11415_v15  ;;  %v11423_v15 = vcombine.low %v14878_v58, %v14884_v1 }
 0x115   : > { %12529 = vmatprep.mubr.bf16.mxu0 %v11416_v18  ;;  %12558 = vmatpush3.bf16.msra.mxu0 %v13925_v47  ;;  %v14146_v47 = vld [vmem:[#allocation2 + $0x14] sm:$0x1]  ;;  %v11433_v18 = vrot.slane %v1925_v45, 9  ;;  %v11437_v45 = vrot.slane %v1929_v54, 9 }
 0x116   : > { %12559 = vmatprep.subr.bf16.mxu0 %v13928_v17  ;;  %v1987_v9 = vrot.slane %v14146_v47, 5 }
 0x117   : > { %v1985_v25 = vsel %vm14944_vm14, %v11433_v18, %v1984_v3  ;;  %v2026_v18 = vrot.slane %v14919_v13, 5 }
 0x119   : > { %12560 = vmatpush3.bf16.msra.mxu0 %v13928_v17  ;;  %v11448_v17 = vcombine.low %v1978_v19, %v1981_v7  ;;  %v14151_v7 = vld [vmem:[#allocation2 + $0x50] sm:$0x1] }
 0x11a   : > { %12593 = vmatprep.subr.bf16.mxu0 %v14924_v12  ;;  %v2022_v47 = vrot.slane %v14151_v7, 5  ;;  %v14159_v7 = vld [vmem:[#allocation2 + $0x88] sm:$0xf] }
 0x11c   : > { %12530 = vmatmul.mubr.bf16.gmra.mrb[16].mxu0 %v11417_v20  ;;  %v1986_v20 = vrot.slane %v1984_v3, 4  ;;  %v14150_v3 = vld [vmem:[#allocation2 + $0x44] sm:$0x1] }
 0x11d   : > { %12533 = vmatprep.mubr.bf16.mxu0 %v11418_v23  ;;  %v11434_v23 = vrot.slane %v1926_v0, 9  ;;  %v2014_v0 = vrot.slane %v2012_v35, 4 }
 0x11e   : > { %v1988_v26 = vsel %vm14944_vm14, %v1986_v20, %v1987_v9  ;;  %v13932_v9 = vld [vmem:[#allocation6 + $0xd8] sm:$0xff]  }
 0x11f   : > { %v1992_v58 = vsel %vm14944_vm14, %v11434_v23, %v1991_v5  ;;  %v11449_v2 = vcombine.low %v1985_v25, %v1988_v26 }
 0x124   : > { %12534 = vmatmul.mubr.bf16.gmra.mrb[20].mxu0 %v11419_v33  ;;  %v1993_v33 = vrot.slane %v1991_v5, 4  ;;  %v2015_v5 = vrot.slane %v14150_v3, 5  ;;  %v13936_v3 = vld [vmem:[#allocation6 + $0xf8] sm:$0xff]  }
 0x125   : > { %12537 = vmatprep.mubr.bf16.mxu0 %v11420_v27  ;;  %v1998_v27 = vrot.slane %v14907_v49, 5 }
 0x126   : > { %v1995_v16 = vsel %vm14944_vm14, %v1993_v33, %v1994_v38  ;;  %v14152_v33 = vld [vmem:[#allocation2 + $0x64] sm:$0xf]  ;;  %v13933_v38 = vld [vmem:[#allocation6 + $0xe0] sm:$0xff]  }
 0x127   : > { %v11450_v30 = vcombine.low %v1992_v58, %v1995_v16  ;;  %v2000_v22 = vrot.slane %v1998_v27, 4  ;;  %v1999_v49 = vsel %vm14944_vm14, %v11435_v8, %v1998_v27  ;;  %v2033_v51 = vrot.slane %v14152_v33, 5  ;;  %v14153_v58 = vld [vmem:[#allocation2 + $0x5c] sm:$0x1] }
 0x128   : > { %v2028_v27 = vrot.slane %v2026_v18, 4  ;;  %v2029_v16 = vrot.slane %v14153_v58, 5  ;;  %v2068_v58 = vrot.slane %v14842_v50, 5  ;;  %v2078_v50 = vrot.slane %v14867_v32, 5 }
 0x129   : > { %v2002_v36 = vsel %vm14944_vm14, %v2000_v22, %v2001_v57  ;;  %v2035_v13 = vrot.slane %v2033_v51, 4  ;;  %v14155_v57 = vld [vmem:[#allocation2 + $0x70] sm:$0xf]  ;;  %v2034_v39 = vsel %vm14944_vm14, %v11440_v21, %v2033_v51 }
 0x12a   : > { %v11451_v28 = vcombine.low %v1999_v49, %v2002_v36  ;;  %v2030_v53 = vsel %vm14944_vm14, %v2028_v27, %v2029_v16  ;;  %v13935_v36 = vld [vmem:[#allocation6 + $0xf0] sm:$0xff]  }
 0x12c   : > { %12538 = vmatmul.mubr.bf16.gmra.mrb[24].mxu0 %v11421_v44  ;;  %v2008_v44 = vrot.slane %v14149_v43, 5  ;;  %v1933_v43 = vld [vmem:[#allocation2 + $0x6c] sm:$0xe] }
 0x12d   : > { %12541 = vmatprep.mubr.bf16.mxu0 %v11422_v56  ;;  %v13931_v56 = vld [vmem:[#allocation6 + $0xd0] sm:$0xff]   ;;  %v11441_v54 = vrot.slane %v1933_v43, 9 }
 0x12e   : > { %v2009_v29 = vsel %vm14944_vm14, %v2007_v40, %v2008_v44  ;;  %v14156_v44 = vld [vmem:[#allocation2 + $0x7c] sm:$0xf] }
 0x12f   : > { %v11452_v61 = vcombine.low %v2006_v52, %v2009_v29  ;;  %v2047_v49 = vrot.slane %v14156_v44, 5 }
 0x134   : > { %12542 = vmatmul.mubr.bf16.gmra.mrb[28].mxu0 %v11423_v15  ;;  %v2013_v15 = vsel %vm14944_vm14, %v11437_v45, %v2012_v35  ;;  %v1934_v35 = vld [vmem:[#allocation2 + $0x78] sm:$0xe]  ;;  %v14158_v45 = vld [vmem:[#allocation2 + $0x80] sm:$0x1] }
 0x135   : > { %12561 = vmatprep.mubr.bf16.mxu0 %v11448_v17  ;;  %v1931_v17 = vld [vmem:[#allocation2 + $0x54] sm:$0xe] }
 0x136   : > { %v11439_v26 = vrot.slane %v1931_v17, 9  ;;  %v13939_v17 = vld [vmem:[#allocation6 + $0x100] sm:$0xff]  }
 0x138   : > { %v2027_v22 = vsel %vm14944_vm14, %v11439_v26, %v2026_v18  ;;  %v1936_v18 = vld [vmem:[#allocation2 + $0x90] sm:$0xe]  ;;  %v2064_v26 = vrot.slane %v14830_v11, 5  ;;  %v2075_v11 = vrot.slane %v14865_v31, 5  ;;  %v2082_v31 = vrot.slane %v14884_v1, 5 }
 0x139   : > { %v11455_v52 = vcombine.low %v2027_v22, %v2030_v53  ;;  %v2070_v53 = vrot.slane %v2068_v58, 4 }
 0x13c   : > { %12562 = vmatmul.mubr.bf16.vlgmr.msra.gmra.mrb[0].mxu0 %v11449_v2  ;;  %v14154_v2 = vld [vmem:[#allocation2 + $0x68] sm:$0x1] }
 0x13d   : > { %12594 = vmatpush3.bf16.msra.mxu0 %v14924_v12  ;;  %12565 = vmatprep.mubr.bf16.mxu0 %v11450_v30  ;;  %v2019_v12 = vrot.slane %v14916_v6, 5  ;;  %v2016_v6 = vsel %vm14944_vm14, %v2014_v0, %v2015_v5  ;;  %v2036_v8 = vrot.slane %v14154_v2, 5  ;;  %v13934_v30 = vld [vmem:[#allocation6 + $0xe8] sm:$0xff]   ;;  %v2050_v0 = vrot.slane %v14158_v45, 5  ;;  %v1938_v2 = vld [vmem:[#allocation2 + $0xa8] sm:$0xe] }
 0x13e   : > { %12595 = vmatprep.subr.bf16.mxu0 %v13930_v37  ;;  %v11453_v24 = vcombine.low %v2013_v15, %v2016_v6  ;;  %v2061_v6 = vrot.slane %v14821_v63, 5 }
 0x13f   : > { %v2021_v19 = vrot.slane %v2019_v12, 4  ;;  %v2020_v20 = vsel %vm14944_vm14, %v11438_v62, %v2019_v12  ;;  %v2037_v40 = vsel %vm14944_vm14, %v2035_v13, %v2036_v8  ;;  %v14157_v12 = vld [vmem:[#allocation2 + $0x74] sm:$0x1]  ;;  %v1937_v13 = vld [vmem:[#allocation2 + $0x9c] sm:$0xe] }
 0x140   : > { %v11456_v29 = vcombine.low %v2034_v39, %v2037_v40  ;;  %v2043_v60 = vrot.slane %v14157_v12, 5  ;;  %v11445_v22 = vrot.slane %v1937_v13, 9  ;;  %v2077_v39 = vrot.slane %v2075_v11, 4 }
 0x141   : > { %12596 = vmatpush3.bf16.msra.mxu0 %v13930_v37  ;;  %v2023_v23 = vsel %vm14944_vm14, %v2021_v19, %v2022_v47  ;;  %v2040_v37 = vrot.slane %v14155_v57, 5  ;;  %v1935_v19 = vld [vmem:[#allocation2 + $0x84] sm:$0xe]  ;;  %v2054_v47 = vrot.slane %v14159_v7, 5  ;;  %v2071_v57 = vrot.slane %v14852_v59, 5  ;;  %v13944_v7 = vld [vmem:[#allocation2 + $0x48] sm:$0xff]  }
 0x142   : > { %12597 = vmatprep.subr.bf16.mxu0 %v13931_v56  ;;  %v11454_v25 = vcombine.low %v2020_v20, %v2023_v23  ;;  %v11443_v33 = vrot.slane %v1935_v19, 9  ;;  %v2069_v40 = vsel %vm14944_vm14, %v11445_v22, %v2068_v58  ;;  %v2079_v59 = vsel %vm14944_vm14, %v2077_v39, %v2078_v50  ;;  %v13943_v19 = vld [vmem:[#allocation2 + $0x3c] sm:$0xff]   ;;  %v15057_v39 = vld [vmem:[#allocation2 + $0x28] sm:$0xf]  ;;  %v13953_v50 = vld [vmem:[#allocation2 + $0x90] sm:$0xff]  }
 0x143   : > { %v2041_v5 = vsel %vm14944_vm14, %v11441_v54, %v2040_v37  ;;  %v2056_v51 = vrot.slane %v2054_v47, 4  ;;  %v2072_v43 = vsel %vm14944_vm14, %v2070_v53, %v2071_v57  ;;  %v311_v54 = vld [vmem:[#allocation2 + $0xc8] sm:$0x1] }
 0x144   : > { %12566 = vmatmul.mubr.bf16.gmra.mrb[4].mxu0 %v11451_v28  ;;  %v11442_v28 = vrot.slane %v1934_v35, 9  ;;  %v2055_v63 = vsel %vm14944_vm14, %v11443_v33, %v2054_v47  ;;  %v312_v12 = vsel %vm14521_vm7, 0, %v311_v54  ;;  %v13951_v47 = vld [vmem:[#allocation6 + $0x120] sm:$0xff]   ;;  %v15042_v33 = vld [vmem:[#allocation2 + $0x10] sm:$0xf] }
 0x145   : > { %12569 = vmatprep.mubr.bf16.mxu0 %v11452_v61  ;;  %12598 = vmatpush3.bf16.msra.mxu0 %v13931_v56  ;;  %v2042_v56 = vrot.slane %v2040_v37, 4  ;;  %v2049_v61 = vrot.slane %v2047_v49, 4  ;;  %v11446_v37 = vrot.slane %v1938_v2, 9  ;;  %313 = vst [vmem:[#allocation2 + $0xc8] sm:$0x1] %v312_v12 }
 0x146   : > { %12599 = vmatprep.subr.bf16.mxu0 %v13932_v9 }
 0x147   : > { %v2044_v62 = vsel %vm14944_vm14, %v2042_v56, %v2043_v60  ;;  %v2051_v15 = vsel %vm14944_vm14, %v2049_v61, %v2050_v0  ;;  %v2076_v44 = vsel %vm14944_vm14, %v11446_v37, %v2075_v11  ;;  %v715_v61 = vrot.slane %v14940_v46, 4  ;;  %v13940_v0 = vld [vmem:[#allocation2 + $0x24] sm:$0xff]   ;;  %v13948_v46 = vld [vmem:[#allocation6 + $0x118] sm:$0xff]  }
 0x148   : > { %v11457_v20 = vcombine.low %v2041_v5, %v2044_v62  ;;  %v11462_v35 = vcombine.low %v2076_v44, %v2079_v59  ;;  %v13942_v5 = vld [vmem:[#allocation6 + $0x108] sm:$0xff]   ;;  %v13941_v62 = vld [vmem:[#allocation2 + $0x30] sm:$0xff]   ;;  %v2901_v59 = vshll.u32 %v15057_v39, 16 }
 0x149   : > { %12600 = vmatpush3.bf16.msra.mxu0 %v13932_v9  ;;  %v2048_v9 = vsel %vm14944_vm14, %v11442_v28, %v2047_v49  ;;  %v1939_v49 = vld [vmem:[#allocation2 + $0xb4] sm:$0xe]  ;;  %v13937_v28 = vld [vmem:[#allocation2 + $0xc] sm:$0xff]  }
 0x14a   : > { %12601 = vmatprep.subr.bf16.mxu0 %v13933_v38  ;;  %v11458_v23 = vcombine.low %v2048_v9, %v2051_v15  ;;  %v11447_v32 = vrot.slane %v1939_v49, 9  ;;  %v13946_v9 = vld [vmem:[#allocation2 + $0x54] sm:$0xff]   ;;  %v13954_v15 = vld [vmem:[#allocation6 + $0x128] sm:$0xff]   ;;  %v2804_v44 = vld [vmem:[#allocation2 + $0x30] sm:$0xf]  ;;  %v2905_v49 = vshrl.u32 %v15057_v39, 16 }
 0x14b   : > { %v2916_v54 = vshrl.u32 %v2804_v44, 16 }
 0x14c   : > { %12570 = vmatmul.mubr.bf16.gmra.mrb[8].mxu0 %v11453_v24  ;;  %v11444_v24 = vrot.slane %v1936_v18, 9  ;;  %v2083_v56 = vsel %vm14944_vm14, %v11447_v32, %v2082_v31  ;;  %v875_v45 = vld [vmem:[#allocation2 + $0xc8] sm:$0x1]  ;;  %v13949_v18 = vld [vmem:[#allocation2 + $0x6c] sm:$0xff]  }
 0x14d   : > { %12573 = vmatprep.mubr.bf16.mxu0 %v11454_v25  ;;  %12602 = vmatpush3.bf16.msra.mxu0 %v13933_v38  ;;  %v14160_v38 = vld [vmem:[#allocation2 + $0x8c] sm:$0x1]  ;;  %v2063_v25 = vrot.slane %v2061_v6, 4 }
 0x14e   : > { %12603 = vmatprep.subr.bf16.mxu0 %v13934_v30  ;;  %v2057_v41 = vrot.slane %v14160_v38, 5  ;;  %v2062_v16 = vsel %vm14944_vm14, %v11444_v24, %v2061_v6  ;;  %v13947_v6 = vld [vmem:[#allocation2 + $0x60] sm:$0xff]   ;;  %v13950_v24 = vld [vmem:[#allocation2 + $0x78] sm:$0xff]  }
 0x14f   : > { %v2065_v21 = vsel %vm14944_vm14, %v2063_v25, %v2064_v26  ;;  %v2853_v25 = vshll.u32 %v15042_v33, 16  ;;  %v15045_v26 = vld [vmem:[#allocation6 + $0x140] sm:$0xff]  }
 0x150   : > { %v2058_v27 = vsel %vm14944_vm14, %v2056_v51, %v2057_v41  ;;  %v2798_v51 = vld [vmem:[#allocation2 + $0x18] sm:$0xf] }
 0x151   : > { %12604 = vmatpush3.bf16.msra.mxu0 %v13934_v30  ;;  %v11459_v8 = vcombine.low %v2055_v63, %v2058_v27  ;;  %v11460_v30 = vcombine.low %v2062_v16, %v2065_v21  ;;  %v13952_v63 = vld [vmem:[#allocation2 + $0x84] sm:$0xff]   ;;  %v2857_v27 = vshrl.u32 %v15042_v33, 16  ;;  %v2868_v58 = vshrl.u32 %v2798_v51, 16  ;;  %v15048_v16 = vld [vmem:[#allocation2 + $0x1c] sm:$0xf] }
 0x152   : > { %12605 = vmatprep.subr.bf16.mxu0 %v13935_v36  ;;  %v2801_v21 = vld [vmem:[#allocation2 + $0x24] sm:$0xf]  ;;  %v15051_v2 = vrot.slane %v2853_v25, 5  ;;  %v2877_v57 = vshll.u32 %v15048_v16, 16  ;;  %v2881_v37 = vshrl.u32 %v15048_v16, 16 }
 0x153   : > { %v2859_v22 = vrot.slane %v2857_v27, 4  ;;  %v2870_v53 = vrot.slane %v2868_v58, 4 }
 0x154   : > { %12574 = vmatmul.mubr.bf16.gmra.mrb[12].mxu0 %v11455_v52  ;;  %v2084_v52 = vrot.slane %v2082_v31, 4  ;;  %v13955_v31 = vld [vmem:[#allocation2 + $0x9c] sm:$0xff]   ;;  %v15067_v12 = vrot.slane %v2877_v57, 5  ;;  %v2810_v57 = vld [vmem:[#allocation2 + $0x48] sm:$0xf] }
 0x155   : > { %12577 = vmatprep.mubr.bf16.mxu0 %v11456_v29  ;;  %12606 = vmatpush3.bf16.msra.mxu0 %v13935_v36  ;;  %v11461_v36 = vcombine.low %v2069_v40, %v2072_v43  ;;  %v2085_v29 = vrot.slane %v14890_v10, 5  ;;  %v13938_v10 = vld [vmem:[#allocation2 + $0x18] sm:$0xff]   ;;  %v2892_v40 = vshrl.u32 %v2801_v21, 16  ;;  %v2895_v43 = vshll.u32 %v2801_v21, 16 }
 0x156   : > { %12607 = vmatprep.subr.bf16.mxu0 %v13936_v3  ;;  %v2860_v32 = vor.u32 %v2859_v22, %v15051_v2 }
 0x157   : > { %v2086_v1 = vsel %vm14944_vm14, %v2084_v52, %v2085_v29 }
 0x158   : > { %v11463_v60 = vcombine.low %v2083_v56, %v2086_v1  ;;  %v2919_v56 = vshll.u32 %v2804_v44, 16  ;;  %v15065_v1 = vld [vmem:[#allocation2 + $0x20] sm:$0x1] }
 0x159   : > { %12608 = vmatpush3.bf16.msra.mxu0 %v13936_v3  ;;  %v876_v3 = vsel %vm14515_vm5, %v715_v61, %v875_v45  ;;  %v2897_v45 = vrot.slane %v2895_v43, 5 }
 0x15a   : > { %12641 = vmatprep.subr.bf16.mxu0 %v13939_v17  ;;  %877 = vst [vmem:[#allocation2 + $0xc8] sm:$0x1] %v876_v3  ;;  %v2907_v3 = vrot.slane %v2905_v49, 4  ;;  %v15096_v49 = vld [vmem:[#allocation2 + $0x4c] sm:$0xf] }
 0x15c   : > { %12578 = vmatmul.mubr.bf16.gmra.mrb[16].mxu0 %v11457_v20  ;;  %v13960_v20 = vld [vmem:[#allocation6 + $0x138] sm:$0xff]  }
 0x15d   : > { %12581 = vmatprep.mubr.bf16.mxu0 %v11458_v23  ;;  %v2795_v23 = vld [vmem:[#allocation2 + $0xc] sm:$0xf] }
 0x15e   : > { %v2844_v38 = vshrl.u32 %v2795_v23, 16  ;;  %v2847_v41 = vshll.u32 %v2795_v23, 16  ;;  %v15080_v23 = vld [vmem:[#allocation2 + $0x40] sm:$0xf] }
 0x15f   : > { %v2949_v22 = vshll.u32 %v15080_v23, 16 }
 0x160   : > { %v2846_v13 = vrot.slane %v2844_v38, 4  ;;  %v2849_v11 = vrot.slane %v2847_v41, 5  ;;  %v13958_v41 = vld [vmem:[#allocation2 + $0xb4] sm:$0xff]  }
 0x164   : > { %12582 = vmatmul.mubr.bf16.gmra.mrb[20].mxu0 %v11459_v8  ;;  %v2871_v8 = vshll.u32 %v2798_v51, 16 }
 0x165   : > { %12585 = vmatprep.mubr.bf16.mxu0 %v11460_v30  ;;  %v15053_v30 = vld [vmem:[#allocation2 + $0x14] sm:$0x1] }
 0x166   : > { %v2863_v52 = vshll.u32 %v15053_v30, 16  ;;  %v2873_v29 = vrot.slane %v2871_v8, 5 }
 0x16c   : > { %12586 = vmatmul.mubr.bf16.gmra.mrb[24].mxu0 %v11461_v36  ;;  %v15061_v36 = vld [vmem:[#allocation2 + $0x34] sm:$0xf] }
 0x16d   : > { %12589 = vmatprep.mubr.bf16.mxu0 %v11462_v35  ;;  %v2850_v35 = vor.u32 %v2849_v11, %v2846_v13  ;;  %v2929_v61 = vshrl.u32 %v15061_v36, 16 }
 0x174   : > { %12590 = vmatmul.mubr.bf16.gmra.mrb[28].mxu0 %v11463_v60  ;;  %v2883_v60 = vrot.slane %v2881_v37, 4 }
 0x175   : > { %12609 = vmatprep.mubr.bf16.mxu0 %v13937_v28  ;;  %v2925_v28 = vshll.u32 %v15061_v36, 16 }
 0x17c   : > { %12610 = vmatmul.mubr.bf16.vlgmr.msra.gmra.mrb[0].mxu0 %v13938_v10  ;;  %v2894_v10 = vrot.slane %v2892_v40, 4 }
 0x17d   : > { %12642 = vmatpush3.bf16.msra.mxu0 %v13939_v17  ;;  %12613 = vmatprep.mubr.bf16.mxu0 %v13940_v0  ;;  %v13957_v17 = vld [vmem:[#allocation6 + $0x130] sm:$0xff]   ;;  %v15071_v0 = vrot.slane %v2901_v59, 5 }
 0x17e   : > { %12643 = vmatprep.subr.bf16.mxu0 %v13942_v5  ;;  %v2898_v25 = vor.u32 %v2897_v45, %v2894_v10  ;;  %v13959_v45 = vld [vmem:[#allocation2 + $0xc0] sm:$0xff]  }
 0x181   : > { %12644 = vmatpush3.bf16.msra.mxu0 %v13942_v5  ;;  %v2807_v5 = vld [vmem:[#allocation2 + $0x3c] sm:$0xf] }
 0x182   : > { %12645 = vmatprep.subr.bf16.mxu0 %v13945_v14  ;;  %v2940_v51 = vshrl.u32 %v2807_v5, 16  ;;  %v2943_v38 = vshll.u32 %v2807_v5, 16  ;;  %v15106_v5 = vld [vmem:[#allocation2 + $0x44] sm:$0x1] }
 0x184   : > { %12614 = vmatmul.mubr.bf16.gmra.mrb[4].mxu0 %v13941_v62  ;;  %v2861_v62 = vrot.slane %v2860_v32, 4  ;;  %v2942_v40 = vrot.slane %v2940_v51, 4  ;;  %v2945_v43 = vrot.slane %v2943_v38, 5 }
 0x185   : > { %12617 = vmatprep.mubr.bf16.mxu0 %v13943_v19  ;;  %12646 = vmatpush3.bf16.msra.mxu0 %v13945_v14  ;;  %v2851_v14 = vrot.slane %v2850_v35, 4  ;;  %v2865_v19 = vrot.slane %v2863_v52, 5  ;;  %v2964_v52 = vshrl.u32 %v2810_v57, 16 }
 0x186   : > { %12647 = vmatprep.subr.bf16.mxu0 %v13948_v46 }
 0x187   : > { %v2856_v58 = vsel %vm14534_vm9, %v2851_v14, %v15051_v2  ;;  %v2866_v21 = vsel %vm14534_vm9, %v2861_v62, %v2865_v19  ;;  %v2946_v14 = vor.u32 %v2945_v43, %v2942_v40  ;;  %v2973_v62 = vshll.u32 %v15096_v49, 16 }
 0x188   : > { %v11496_v35 = vcombine.low %v2856_v58, %v2866_v21  ;;  %v2977_v19 = vshrl.u32 %v15096_v49, 16 }
 0x189   : > { %12648 = vmatpush3.bf16.msra.mxu0 %v13948_v46  ;;  %v2874_v46 = vor.u32 %v2873_v29, %v2870_v53  ;;  %v2953_v53 = vshrl.u32 %v15080_v23, 16  ;;  %v2967_v29 = vshll.u32 %v2810_v57, 16  ;;  %v2947_v58 = vrot.slane %v2946_v14, 4  ;;  %v13962_v14 = vld [vmem:[#allocation6 + $0x148] sm:$0xff]  }
 0x18a   : > { %12649 = vmatprep.subr.bf16.mxu0 %v13951_v47  ;;  %v15128_v21 = vrot.slane %v2973_v62, 5 }
 0x18b   : > { %v15090_v13 = vrot.slane %v2874_v46, 4  ;;  %v2955_v10 = vrot.slane %v2953_v53, 4  ;;  %v2969_v51 = vrot.slane %v2967_v29, 5 }
 0x18c   : > { %12618 = vmatmul.mubr.bf16.gmra.mrb[8].mxu0 %v13944_v7  ;;  %v15073_v7 = vld [vmem:[#allocation2 + $0x2c] sm:$0x1] }
 0x18d   : > { %12621 = vmatprep.mubr.bf16.mxu0 %v13946_v9  ;;  %12650 = vmatpush3.bf16.msra.mxu0 %v13951_v47  ;;  %v13956_v47 = vld [vmem:[#allocation2 + $0xa8] sm:$0xff]   ;;  %v2887_v9 = vshll.u32 %v15065_v1, 16  ;;  %v2911_v27 = vshll.u32 %v15073_v7, 16  ;;  %v2880_v32 = vsel %vm14534_vm9, %v15090_v13, %v15067_v12  ;;  %v2979_v13 = vrot.slane %v2977_v19, 4 }
 0x18e   : > { %12651 = vmatprep.subr.bf16.mxu0 %v13954_v15 }
 0x18f   : > { %v2889_v37 = vrot.slane %v2887_v9, 5  ;;  %v2913_v59 = vrot.slane %v2911_v27, 5  ;;  %v2816_v27 = vld [vmem:[#allocation2 + $0x60] sm:$0xf] }
 0x190   : > { %v3012_v40 = vshrl.u32 %v2816_v27, 16  ;;  %v3015_v43 = vshll.u32 %v2816_v27, 16 }
 0x191   : > { %12652 = vmatpush3.bf16.msra.mxu0 %v13954_v15  ;;  %v15076_v15 = vld [vmem:[#allocation2 + $0x38] sm:$0x1] }
 0x192   : > { %12653 = vmatprep.subr.bf16.mxu0 %v13957_v17  ;;  %v2935_v8 = vshll.u32 %v15076_v15, 16 }
 0x194   : > { %12622 = vmatmul.mubr.bf16.gmra.mrb[12].mxu0 %v13947_v6  ;;  %v2918_v6 = vrot.slane %v2916_v54, 4  ;;  %v2813_v54 = vld [vmem:[#allocation2 + $0x54] sm:$0xf] }
 0x195   : > { %12625 = vmatprep.mubr.bf16.mxu0 %v13949_v18  ;;  %12654 = vmatpush3.bf16.msra.mxu0 %v13957_v17  ;;  %v2921_v17 = vrot.slane %v2919_v56, 5  ;;  %v15078_v18 = vrot.slane %v2925_v28, 5  ;;  %v15102_v56 = vld [vmem:[#allocation2 + $0x58] sm:$0xf]  ;;  %v2937_v28 = vrot.slane %v2935_v8, 5  ;;  %v2991_v46 = vshll.u32 %v2813_v54, 16 }
 0x196   : > { %12655 = vmatprep.subr.bf16.mxu0 %v13960_v20  ;;  %v3001_v9 = vshrl.u32 %v15102_v56, 16 }
 0x197   : > { %v2922_v11 = vor.u32 %v2921_v17, %v2918_v6 }
 0x198   : > { %v3003_v53 = vrot.slane %v3001_v9, 4 }
 0x199   : > { %12656 = vmatpush3.bf16.msra.mxu0 %v13960_v20  ;;  %v2931_v20 = vrot.slane %v2929_v61, 4  ;;  %v15104_v61 = vrot.slane %v2949_v22, 5 }
 0x19a   : > { %12689 = vmatprep.subr.bf16.mxu0 %v15045_v26 }
 0x19c   : > { %12626 = vmatmul.mubr.bf16.gmra.mrb[16].mxu0 %v13950_v24  ;;  %v2884_v24 = vor.u32 %v2883_v60, %v15067_v12  ;;  %v2923_v60 = vrot.slane %v2922_v11, 4  ;;  %v2988_v12 = vshrl.u32 %v2813_v54, 16  ;;  %v15130_v11 = vld [vmem:[#allocation2 + $0x64] sm:$0xf]  ;;  %v2980_v54 = vor.u32 %v2979_v13, %v15128_v21  ;;  %v13963_v13 = vld [vmem:[#allocation6 + $0x150] sm:$0xff]  }
 0x19d   : > { %12629 = vmatprep.mubr.bf16.mxu0 %v13952_v63  ;;  %v2908_v63 = vor.u32 %v2907_v3, %v15071_v0 }
 0x19e   : > { %v2885_v2 = vrot.slane %v2884_v24, 4  ;;  %v2956_v24 = vor.u32 %v2955_v10, %v15104_v61  ;;  %v2990_v8 = vrot.slane %v2988_v12, 4  ;;  %v3014_v12 = vrot.slane %v3012_v40, 4 }
 0x19f   : > { %v2909_v44 = vrot.slane %v2908_v63, 4  ;;  %v15124_v63 = vld [vmem:[#allocation2 + $0x50] sm:$0x1] }
 0x1a0   : > { %v2890_v6 = vsel %vm14534_vm9, %v2885_v2, %v2889_v37  ;;  %v2983_v37 = vshll.u32 %v15124_v63, 16  ;;  %v2957_v2 = vrot.slane %v2956_v24, 4 }
 0x1a1   : > { %v2914_v38 = vsel %vm14534_vm9, %v2909_v44, %v2913_v59  ;;  %v3021_v44 = vshll.u32 %v15130_v11, 16  ;;  %v3025_v59 = vshrl.u32 %v15130_v11, 16 }
 0x1a2   : > { %v15146_v19 = vrot.slane %v2983_v37, 5 }
 0x1a3   : > { %v15153_v9 = vrot.slane %v3021_v44, 5 }
 0x1a4   : > { %12630 = vmatmul.mubr.bf16.gmra.mrb[20].mxu0 %v13953_v50  ;;  %v2932_v50 = vor.u32 %v2931_v20, %v15078_v18  ;;  %v2966_v20 = vrot.slane %v2964_v52, 4  ;;  %v11497_v52 = vcombine.low %v2880_v32, %v2890_v6  ;;  %v2952_v32 = vsel %vm14534_vm9, %v2947_v58, %v15104_v61 }
 0x1a5   : > { %12633 = vmatprep.mubr.bf16.mxu0 %v13955_v31  ;;  %v2899_v31 = vrot.slane %v2898_v25, 4  ;;  %v2959_v25 = vshll.u32 %v15106_v5, 16  ;;  %v3027_v6 = vrot.slane %v3025_v59, 4  ;;  %v2981_v61 = vrot.slane %v2980_v54, 4 }
 0x1a6   : > { %v2933_v3 = vrot.slane %v2932_v50, 4  ;;  %v2970_v57 = vor.u32 %v2969_v51, %v2966_v20  ;;  %v15135_v50 = vld [vmem:[#allocation2 + $0x5c] sm:$0x1]  ;;  %v15157_v51 = vld [vmem:[#allocation2 + $0x68] sm:$0x1] }
 0x1a7   : > { %v2904_v17 = vsel %vm14534_vm9, %v2899_v31, %v15071_v0  ;;  %v2961_v31 = vrot.slane %v2959_v25, 5  ;;  %v3007_v10 = vshll.u32 %v15135_v50, 16  ;;  %v15155_v20 = vld [vmem:[#allocation2 + $0x7c] sm:$0xf]  ;;  %v2986_v54 = vsel %vm14534_vm9, %v2981_v61, %v15146_v19 }
 0x1a8   : > { %v2938_v0 = vsel %vm14534_vm9, %v2933_v3, %v2937_v28  ;;  %v15142_v3 = vld [vmem:[#allocation2 + $0x70] sm:$0xf]  ;;  %v15144_v62 = vrot.slane %v2970_v57, 4  ;;  %v3073_v57 = vshrl.u32 %v15155_v20, 16 }
 0x1a9   : > { %v3045_v24 = vshll.u32 %v15142_v3, 16  ;;  %v3049_v25 = vshrl.u32 %v15142_v3, 16  ;;  %v3009_v58 = vrot.slane %v3007_v10, 5  ;;  %v13964_v10 = vld [vmem:[#allocation6 + $0x158] sm:$0xff]  }
 0x1ab   : > { %v15168_v59 = vrot.slane %v3045_v24, 5 }
 0x1ac   : > { %12634 = vmatmul.mubr.bf16.gmra.mrb[24].mxu0 %v13956_v47  ;;  %v2997_v47 = vshll.u32 %v15102_v56, 16 }
 0x1ad   : > { %12637 = vmatprep.mubr.bf16.mxu0 %v13958_v41  ;;  %v2928_v41 = vsel %vm14534_vm9, %v2923_v60, %v15078_v18  ;;  %v2993_v18 = vrot.slane %v2991_v46, 5  ;;  %v3017_v46 = vrot.slane %v3015_v43, 5  ;;  %v3028_v43 = vor.u32 %v3027_v6, %v15153_v9  ;;  %v15193_v6 = vld [vmem:[#allocation2 + $0x80] sm:$0x1] }
 0x1ae   : > { %v15132_v22 = vrot.slane %v2997_v47, 5  ;;  %v11499_v29 = vcombine.low %v2928_v41, %v2938_v0  ;;  %v2962_v47 = vsel %vm14534_vm9, %v2957_v2, %v2961_v31  ;;  %v3031_v2 = vshll.u32 %v15157_v51, 16 }
 0x1af   : > { %v2994_v60 = vor.u32 %v2993_v18, %v2990_v8  ;;  %v11500_v37 = vcombine.low %v2952_v32, %v2962_v47  ;;  %v3018_v40 = vor.u32 %v3017_v46, %v3014_v12  ;;  %v3075_v32 = vrot.slane %v3073_v57, 4 }
 0x1b0   : > { %v3004_v28 = vor.u32 %v3003_v53, %v15132_v22  ;;  %v3069_v53 = vshll.u32 %v15155_v20, 16  ;;  %v15188_v19 = vrot.slane %v3028_v43, 4  ;;  %v15190_v47 = vrot.slane %v3031_v2, 5  ;;  %v15210_v43 = vld [vmem:[#allocation2 + $0x94] sm:$0xf] }
 0x1b1   : > { %v2995_v27 = vrot.slane %v2994_v60, 4 }
 0x1b2   : > { %v3005_v0 = vrot.slane %v3004_v28, 4  ;;  %v15182_v46 = vrot.slane %v3069_v53, 5 }
 0x1b3   : > { %v3000_v60 = vsel %vm14534_vm9, %v2995_v27, %v15132_v22 }
 0x1b4   : > { %12638 = vmatmul.mubr.bf16.gmra.mrb[28].mxu0 %v13959_v45  ;;  %v2819_v45 = vld [vmem:[#allocation2 + $0x6c] sm:$0xf]  ;;  %v3010_v28 = vsel %vm14534_vm9, %v3005_v0, %v3009_v58  ;;  %v3076_v58 = vor.u32 %v3075_v32, %v15182_v46 }
 0x1b5   : > { %12657 = vmatprep.mubr.bf16.mxu0 %v11496_v35  ;;  %v11498_v35 = vcombine.low %v2904_v17, %v2914_v38  ;;  %v2822_v17 = vld [vmem:[#allocation2 + $0x78] sm:$0xf]  ;;  %v3036_v38 = vshrl.u32 %v2819_v45, 16  ;;  %v3039_v41 = vshll.u32 %v2819_v45, 16  ;;  %v2825_v45 = vld [vmem:[#allocation2 + $0x84] sm:$0xf]  ;;  %v11502_v53 = vcombine.low %v3000_v60, %v3010_v28 }
 0x1b6   : > { %v3060_v8 = vshrl.u32 %v2822_v17, 16  ;;  %v3063_v18 = vshll.u32 %v2822_v17, 16  ;;  %v3087_v24 = vshll.u32 %v2825_v45, 16 }
 0x1b7   : > { %v3038_v31 = vrot.slane %v3036_v38, 4  ;;  %v3041_v44 = vrot.slane %v3039_v41, 5  ;;  %v3084_v41 = vshrl.u32 %v2825_v45, 16  ;;  %v15214_v45 = vld [vmem:[#allocation2 + $0xa0] sm:$0xf] }
 0x1b8   : > { %v3065_v12 = vrot.slane %v3063_v18, 5  ;;  %v13965_v18 = vld [vmem:[#allocation6 + $0x160] sm:$0xff]  }
 0x1b9   : > { %v3042_v17 = vor.u32 %v3041_v44, %v3038_v31  ;;  %v3086_v44 = vrot.slane %v3084_v41, 4 }
 0x1bb   : > { %v3043_v2 = vrot.slane %v3042_v17, 4 }
 0x1bc   : > { %12658 = vmatmul.mubr.bf16.vlgmr.msra.gmra.mrb[0].mxu0 %v11497_v52  ;;  %v3051_v52 = vrot.slane %v3049_v25, 4 }
 0x1bd   : > { %12690 = vmatpush3.bf16.msra.mxu0 %v15045_v26  ;;  %12661 = vmatprep.mubr.bf16.mxu0 %v11498_v35  ;;  %v15166_v26 = vld [vmem:[#allocation2 + $0x74] sm:$0x1]  ;;  %v2976_v35 = vsel %vm14534_vm9, %v15144_v62, %v15128_v21  ;;  %v15184_v21 = vld [vmem:[#allocation2 + $0x88] sm:$0xf]  ;;  %v15186_v62 = vrot.slane %v3018_v40, 4 }
 0x1be   : > { %12691 = vmatprep.subr.bf16.mxu0 %v13962_v14  ;;  %v3055_v22 = vshll.u32 %v15166_v26, 16  ;;  %v3052_v38 = vor.u32 %v3051_v52, %v15168_v59  ;;  %v3093_v25 = vshll.u32 %v15184_v21, 16  ;;  %v3097_v61 = vshrl.u32 %v15184_v21, 16  ;;  %v15208_v40 = vld [vmem:[#allocation2 + $0x8c] sm:$0x1] }
 0x1bf   : > { %v11501_v27 = vcombine.low %v2976_v35, %v2986_v54  ;;  %v3024_v57 = vsel %vm14534_vm9, %v15186_v62, %v15153_v9  ;;  %v3089_v52 = vrot.slane %v3087_v24, 5  ;;  %v2831_v35 = vld [vmem:[#allocation2 + $0x9c] sm:$0xf]  ;;  %v3103_v62 = vshll.u32 %v15208_v40, 16 }
 0x1c0   : > { %v3053_v31 = vrot.slane %v3052_v38, 4  ;;  %v15212_v54 = vrot.slane %v3093_v25, 5  ;;  %v3099_v60 = vrot.slane %v3097_v61, 4  ;;  %v3132_v17 = vshrl.u32 %v2831_v35, 16 }
 0x1c1   : > { %12692 = vmatpush3.bf16.msra.mxu0 %v13962_v14  ;;  %v3062_v14 = vrot.slane %v3060_v8, 4  ;;  %v3079_v8 = vshll.u32 %v15193_v6, 16  ;;  %v3048_v38 = vsel %vm14534_vm9, %v3043_v2, %v15168_v59  ;;  %v3141_v24 = vshll.u32 %v15214_v45, 16  ;;  %v13967_v2 = vld [vmem:[#allocation6 + $0x170] sm:$0xff]  }
 0x1c2   : > { %12693 = vmatprep.subr.bf16.mxu0 %v13963_v13  ;;  %v3145_v25 = vshrl.u32 %v15214_v45, 16  ;;  %v3090_v61 = vor.u32 %v3089_v52, %v3086_v44 }
 0x1c3   : > { %v3066_v0 = vor.u32 %v3065_v12, %v3062_v14  ;;  %v3077_v12 = vrot.slane %v3076_v58, 4  ;;  %v3081_v32 = vrot.slane %v3079_v8, 5 }
 0x1c4   : > { %12662 = vmatmul.mubr.bf16.gmra.mrb[4].mxu0 %v11499_v29  ;;  %v2828_v29 = vld [vmem:[#allocation2 + $0x90] sm:$0xf] }
 0x1c5   : > { %12665 = vmatprep.mubr.bf16.mxu0 %v11500_v37  ;;  %12694 = vmatpush3.bf16.msra.mxu0 %v13963_v13  ;;  %v3034_v13 = vsel %vm14534_vm9, %v15188_v19, %v15190_v47  ;;  %v3057_v37 = vrot.slane %v3055_v22, 5  ;;  %v3108_v9 = vshrl.u32 %v2828_v29, 16  ;;  %v3111_v28 = vshll.u32 %v2828_v29, 16  ;;  %v13966_v19 = vld [vmem:[#allocation6 + $0x168] sm:$0xff]  }
 0x1c6   : > { %12695 = vmatprep.subr.bf16.mxu0 %v13964_v10  ;;  %v3067_v14 = vrot.slane %v3066_v0, 4  ;;  %v3117_v47 = vshll.u32 %v15210_v43, 16  ;;  %v3121_v22 = vshrl.u32 %v15210_v43, 16  ;;  %v3100_v0 = vor.u32 %v3099_v60, %v15212_v54  ;;  %v15236_v60 = vld [vmem:[#allocation2 + $0xa4] sm:$0x1] }
 0x1c7   : > { %v3058_v41 = vsel %vm14534_vm9, %v3053_v31, %v3057_v37  ;;  %v3110_v58 = vrot.slane %v3108_v9, 4  ;;  %v3113_v8 = vrot.slane %v3111_v28, 5  ;;  %v3082_v59 = vsel %vm14534_vm9, %v3077_v12, %v3081_v32  ;;  %v15232_v37 = vld [vmem:[#allocation2 + $0x98] sm:$0x1]  ;;  %17540 = vst [vmem:[#allocation15_spill] sm:$0xff] %v15236_v60 }
 0x1c8   : > { %v3105_v29 = vrot.slane %v3103_v62, 5  ;;  %v15234_v31 = vrot.slane %v3117_v47, 5  ;;  %v11503_v52 = vcombine.low %v3024_v57, %v3034_v13  ;;  %v15238_v9 = vrot.slane %v3141_v24, 5  ;;  %v2834_v28 = vld [vmem:[#allocation2 + $0xa8] sm:$0xf] }
 0x1c9   : > { %12696 = vmatpush3.bf16.msra.mxu0 %v13964_v10  ;;  %v3135_v10 = vshll.u32 %v2831_v35, 16  ;;  %v11504_v35 = vcombine.low %v3048_v38, %v3058_v41  ;;  %v3101_v12 = vrot.slane %v3100_v0, 4  ;;  %v3114_v32 = vor.u32 %v3113_v8, %v3110_v58  ;;  %v2837_v38 = vld [vmem:[#allocation2 + $0xb4] sm:$0xf]  ;;  %v15245_v41 = vld [vmem:[#allocation2 + $0xb8] sm:$0xf] }
 0x1ca   : > { %12697 = vmatprep.subr.bf16.mxu0 %v13965_v18  ;;  %v3127_v62 = vshll.u32 %v15232_v37, 16  ;;  %17542 = vst [vmem:[#allocation17_spill] sm:$0xff] %v15245_v41 }
 0x1cb   : > { %v3137_v44 = vrot.slane %v3135_v10, 5  ;;  %v3156_v10 = vshrl.u32 %v2834_v28, 16  ;;  %v3106_v58 = vsel %vm14534_vm9, %v3101_v12, %v3105_v29  ;;  %v3115_v8 = vrot.slane %v3114_v32, 4 }
 0x1cc   : > { %12666 = vmatmul.mubr.bf16.gmra.mrb[8].mxu0 %v11501_v27  ;;  %v3072_v27 = vsel %vm14534_vm9, %v3067_v14, %v15182_v46  ;;  %v3147_v46 = vrot.slane %v3145_v25, 4  ;;  %v3091_v14 = vrot.slane %v3090_v61, 4  ;;  %v3159_v25 = vshll.u32 %v2834_v28, 16 }
 0x1cd   : > { %12669 = vmatprep.mubr.bf16.mxu0 %v11502_v53  ;;  %12698 = vmatpush3.bf16.msra.mxu0 %v13965_v18  ;;  %v3123_v18 = vrot.slane %v3121_v22, 4  ;;  %v3134_v53 = vrot.slane %v3132_v17, 4  ;;  %v11505_v47 = vcombine.low %v3072_v27, %v3082_v59  ;;  %v13968_v22 = vld [vmem:[#allocation6 + $0x178] sm:$0xff]   ;;  %v3151_v17 = vshll.u32 %v15236_v60, 16  ;;  %v15261_v60 = vld [vmem:[#allocation2 + $0xc4] sm:$0xf] }
 0x1ce   : > { %12699 = vmatprep.subr.bf16.mxu0 %v13966_v19  ;;  %v3148_v24 = vor.u32 %v3147_v46, %v15238_v9  ;;  %v3169_v61 = vshrl.u32 %v15241_v4, 16  ;;  %v3096_v0 = vsel %vm14534_vm9, %v3091_v14, %v15212_v54  ;;  %v3129_v27 = vrot.slane %v3127_v62, 5  ;;  %v15259_v14 = vld [vmem:[#allocation2 + $0xb0] sm:$0x1]  ;;  %v2840_v62 = vld [vmem:[#allocation2 + $0xc0] sm:$0xf] }
 0x1cf   : > { %v3124_v57 = vor.u32 %v3123_v18, %v15234_v31  ;;  %v3138_v13 = vor.u32 %v3137_v44, %v3134_v53  ;;  %v3180_v59 = vshrl.u32 %v2837_v38, 16  ;;  %v3183_v18 = vshll.u32 %v2837_v38, 16 }
 0x1d0   : > { %v3189_v53 = vshll.u32 %v15245_v41, 16  ;;  %v3193_v44 = vshrl.u32 %v15245_v41, 16  ;;  %v3153_v28 = vrot.slane %v3151_v17, 5  ;;  %v3158_v42 = vrot.slane %v3156_v10, 4  ;;  %v15270_v10 = vld [vmem:[#allocation2 + $0xbc] sm:$0x1] }
 0x1d1   : > { %12700 = vmatpush3.bf16.msra.mxu0 %v13966_v19  ;;  %v3165_v19 = vshll.u32 %v15241_v4, 16  ;;  %v3139_v46 = vrot.slane %v3138_v13, 4  ;;  %v3149_v54 = vrot.slane %v3148_v24, 4  ;;  %v3161_v29 = vrot.slane %v3159_v25, 5 }
 0x1d2   : > { %12701 = vmatprep.subr.bf16.mxu0 %v13967_v2  ;;  %v3171_v32 = vrot.slane %v3169_v61, 4  ;;  %v3182_v38 = vrot.slane %v3180_v59, 4  ;;  %v3185_v55 = vrot.slane %v3183_v18, 5  ;;  %v3191_v4 = vrot.slane %v3189_v53, 5 }
 0x1d3   : > { %v3167_v12 = vrot.slane %v3165_v19, 5  ;;  %v3195_v41 = vrot.slane %v3193_v44, 4  ;;  %v3175_v17 = vshll.u32 %v15259_v14, 16  ;;  %v3154_v24 = vsel %vm14534_vm9, %v3149_v54, %v3153_v28 }
 0x1d4   : > { %12670 = vmatmul.mubr.bf16.gmra.mrb[12].mxu0 %v11503_v52  ;;  %v15257_v52 = vld [vmem:[#allocation6 + $0x180] sm:$0xff]   ;;  %v3162_v25 = vor.u32 %v3161_v29, %v3158_v42  ;;  %v3204_v61 = vshrl.u32 %v2840_v62, 16 }
 0x1d5   : > { %12673 = vmatprep.mubr.bf16.mxu0 %v11504_v35  ;;  %12702 = vmatpush3.bf16.msra.mxu0 %v13967_v2  ;;  %v3125_v35 = vrot.slane %v3124_v57, 4  ;;  %v11506_v2 = vcombine.low %v3096_v0, %v3106_v58  ;;  %v3120_v57 = vsel %vm14534_vm9, %v3115_v8, %v15234_v31  ;;  %v3172_v19 = vor.u32 %v3171_v32, %v3167_v12 }
 0x1d6   : > { %12703 = vmatprep.subr.bf16.mxu0 %v13968_v22  ;;  %v3207_v31 = vshll.u32 %v2840_v62, 16  ;;  %v3213_v0 = vshll.u32 %v15261_v60, 16  ;;  %v3217_v58 = vshrl.u32 %v15261_v60, 16  ;;  %v3186_v8 = vor.u32 %v3185_v55, %v3182_v38 }
 0x1d7   : > { %v3130_v13 = vsel %vm14534_vm9, %v3125_v35, %v3129_v27  ;;  %v3196_v27 = vor.u32 %v3195_v41, %v3191_v4  ;;  %v3163_v53 = vrot.slane %v3162_v25, 4  ;;  %v3177_v44 = vrot.slane %v3175_v17, 5 }
 0x1d8   : > { %v11507_v59 = vcombine.low %v3120_v57, %v3130_v13  ;;  %v3206_v35 = vrot.slane %v3204_v61, 4  ;;  %v3215_v42 = vrot.slane %v3213_v0, 5  ;;  %v3219_v28 = vrot.slane %v3217_v58, 4 }
 0x1d9   : > { %12704 = vmatpush3.bf16.msra.mxu0 %v13968_v22  ;;  %v3144_v22 = vsel %vm14534_vm9, %v3139_v46, %v15238_v9  ;;  %v3173_v9 = vrot.slane %v3172_v19, 4  ;;  %v3209_v46 = vrot.slane %v3207_v31, 5  ;;  %v3187_v54 = vrot.slane %v3186_v8, 4 }
 0x1da   : > { %12737 = vmatprep.subr.bf16.mxu0 %v15257_v52  ;;  %v11508_v18 = vcombine.low %v3144_v22, %v3154_v24  ;;  %v3197_v29 = vrot.slane %v3196_v27, 4  ;;  %v3168_v55 = vsel %vm14534_vm9, %v3163_v53, %v3167_v12  ;;  %v3220_v38 = vor.u32 %v3219_v28, %v3215_v42  ;;  %v3549_v24 = vld [vmem:[#allocation2 + $0xc] sm:$0xe] }
 0x1db   : > { %v3178_v41 = vsel %vm14534_vm9, %v3173_v9, %v3177_v44  ;;  %v3210_v62 = vor.u32 %v3209_v46, %v3206_v35  ;;  %v3192_v13 = vsel %vm14534_vm9, %v3187_v54, %v3191_v4  ;;  %v3615_v22 = vrot.slane %v15042_v33, 5 }
 0x1dc   : > { %12674 = vmatmul.mubr.bf16.gmra.mrb[16].mxu0 %v11505_v47  ;;  %v3199_v47 = vshll.u32 %v15270_v10, 16  ;;  %v11509_v25 = vcombine.low %v3168_v55, %v3178_v41  ;;  %v3221_v61 = vrot.slane %v3220_v38, 4  ;;  %v11520_v0 = vrot.slane %v3549_v24, 9  ;;  %v3552_v41 = vld [vmem:[#allocation2 + $0x30] sm:$0xe]  ;;  %v13970_v24 = vld [vmem:[#allocation6 + $0x188] sm:$0xff]  }
 0x1dd   : > { %12677 = vmatprep.mubr.bf16.mxu0 %v11506_v2  ;;  %v15280_v2 = vld [vmem:[#allocation2 + $0xc8] sm:$0x1]  ;;  %v3211_v12 = vrot.slane %v3210_v62, 4  ;;  %v3617_v58 = vrot.slane %v3615_v22, 4  ;;  %v3618_v8 = vrot.slane %v15053_v30, 5  ;;  %v3622_v33 = vrot.slane %v15048_v16, 5 }
 0x1de   : > { %v3201_v32 = vrot.slane %v3199_v47, 5  ;;  %v3223_v57 = vshll.u32 %v15280_v2, 16  ;;  %v3616_v47 = vsel %vm14944_vm14, %v11520_v0, %v3615_v22  ;;  %v3629_v53 = vrot.slane %v15057_v39, 5  ;;  %v3551_v30 = vld [vmem:[#allocation2 + $0x24] sm:$0xe]  ;;  %v13971_v0 = vld [vmem:[#allocation6 + $0x190] sm:$0xff]  }
 0x1df   : > { %v3216_v4 = vsel %vm14534_vm9, %v3211_v12, %v3215_v42  ;;  %v3624_v46 = vrot.slane %v3622_v33, 4  ;;  %v3625_v42 = vrot.slane %v15065_v1, 5  ;;  %v11522_v28 = vrot.slane %v3551_v30, 9 }
 0x1e0   : > { %v3202_v17 = vsel %vm14534_vm9, %v3197_v29, %v3201_v32  ;;  %v3225_v31 = vrot.slane %v3223_v57, 5  ;;  %v3631_v54 = vrot.slane %v3629_v53, 4  ;;  %v3632_v16 = vrot.slane %v15073_v7, 5  ;;  %v3553_v7 = vld [vmem:[#allocation2 + $0x3c] sm:$0xe] }
 0x1e1   : > { %v11510_v19 = vcombine.low %v3192_v13, %v3202_v17  ;;  %v3626_v32 = vsel %vm14944_vm14, %v3624_v46, %v3625_v42  ;;  %v3636_v39 = vrot.slane %v15061_v36, 5  ;;  %v3630_v55 = vsel %vm14944_vm14, %v11522_v28, %v3629_v53  ;;  %v13972_v53 = vld [vmem:[#allocation6 + $0x198] sm:$0xff]   ;;  %v13973_v46 = vld [vmem:[#allocation6 + $0x1a0] sm:$0xff]   ;;  %v3557_v42 = vld [vmem:[#allocation2 + $0x6c] sm:$0xe] }
 0x1e2   : > { %v3226_v27 = vsel %vm14534_vm9, %v3221_v61, %v3225_v31  ;;  %v3633_v1 = vsel %vm14944_vm14, %v3631_v54, %v3632_v16  ;;  %v3643_v62 = vrot.slane %v15080_v23, 5  ;;  %v11523_v13 = vrot.slane %v3552_v41, 9 }
 0x1e3   : > { %v11511_v9 = vcombine.low %v3216_v4, %v3226_v27  ;;  %v11538_v57 = vcombine.low %v3630_v55, %v3633_v1  ;;  %v3638_v17 = vrot.slane %v3636_v39, 4  ;;  %v3639_v22 = vrot.slane %v15076_v15, 5  ;;  %v13974_v1 = vld [vmem:[#allocation6 + $0x1a8] sm:$0xff]  }
 0x1e4   : > { %12678 = vmatmul.mubr.bf16.gmra.mrb[20].mxu0 %v11507_v59  ;;  %v3619_v59 = vsel %vm14944_vm14, %v3617_v58, %v3618_v8  ;;  %v3646_v36 = vrot.slane %v15106_v5, 5  ;;  %v3637_v12 = vsel %vm14944_vm14, %v11523_v13, %v3636_v39  ;;  %v3650_v61 = vrot.slane %v15096_v49, 5  ;;  %v3554_v5 = vld [vmem:[#allocation2 + $0x48] sm:$0xe]  ;;  %v3555_v58 = vld [vmem:[#allocation2 + $0x54] sm:$0xe] }
 0x1e5   : > { %12681 = vmatprep.mubr.bf16.mxu0 %v11508_v18  ;;  %v3550_v18 = vld [vmem:[#allocation2 + $0x18] sm:$0xe]  ;;  %v11536_v44 = vcombine.low %v3616_v47, %v3619_v59  ;;  %v3640_v23 = vsel %vm14944_vm14, %v3638_v17, %v3639_v22  ;;  %v11525_v27 = vrot.slane %v3554_v5, 9  ;;  %v3653_v47 = vrot.slane %v15124_v63, 5  ;;  %v3559_v13 = vld [vmem:[#allocation2 + $0x84] sm:$0xe] }
 0x1e6   : > { %v11521_v35 = vrot.slane %v3550_v18, 9  ;;  %v11539_v8 = vcombine.low %v3637_v12, %v3640_v23  ;;  %v11526_v49 = vrot.slane %v3555_v58, 9  ;;  %v3660_v18 = vrot.slane %v15135_v50, 5  ;;  %v13976_v23 = vld [vmem:[#allocation6 + $0x1b8] sm:$0xff]  }
 0x1e7   : > { %v3651_v30 = vsel %vm14944_vm14, %v11525_v27, %v3650_v61  ;;  %v3671_v50 = vrot.slane %v15142_v3, 5  ;;  %v3674_v55 = vrot.slane %v15166_v26, 5  ;;  %v3558_v26 = vld [vmem:[#allocation2 + $0x78] sm:$0xe]  ;;  %v3688_v12 = vrot.slane %v15208_v40, 5 }
 0x1e8   : > { %v3623_v29 = vsel %vm14944_vm14, %v11521_v35, %v3622_v33  ;;  %v3652_v33 = vrot.slane %v3650_v61, 4  ;;  %v3556_v35 = vld [vmem:[#allocation2 + $0x60] sm:$0xe]  ;;  %v3560_v40 = vld [vmem:[#allocation2 + $0x90] sm:$0xe]  ;;  %v3699_v5 = vrot.slane %v15214_v45, 5 }
 0x1e9   : > { %v11537_v38 = vcombine.low %v3623_v29, %v3626_v32  ;;  %v11527_v16 = vrot.slane %v3556_v35, 9  ;;  %v3667_v32 = vrot.slane %v15157_v51, 5  ;;  %v3673_v39 = vrot.slane %v3671_v50, 4  ;;  %v3563_v35 = vld [vmem:[#allocation2 + $0xb4] sm:$0xe] }
 0x1ec   : > { %12682 = vmatmul.mubr.bf16.gmra.mrb[24].mxu0 %v11509_v25  ;;  %v11524_v25 = vrot.slane %v3553_v7, 9  ;;  %v3675_v7 = vsel %vm14944_vm14, %v3673_v39, %v3674_v55  ;;  %v3720_v55 = vrot.slane %v15261_v60, 5 }
 0x1ed   : > { %12685 = vmatprep.mubr.bf16.mxu0 %v11510_v19  ;;  %v3645_v19 = vrot.slane %v3643_v62, 4 }
 0x1ee   : > { %v3644_v15 = vsel %vm14944_vm14, %v11524_v25, %v3643_v62  ;;  %v3678_v62 = vrot.slane %v15155_v20, 5  ;;  %v11530_v20 = vrot.slane %v3559_v13, 9  ;;  %v13978_v13 = vld [vmem:[#allocation2 + $0x24] sm:$0xff]  }
 0x1ef   : > { %v3647_v31 = vsel %vm14944_vm14, %v3645_v19, %v3646_v36  ;;  %v3681_v19 = vrot.slane %v15193_v6, 5 }
 0x1f0   : > { %v11540_v4 = vcombine.low %v3644_v15, %v3647_v31  ;;  %v3680_v25 = vrot.slane %v3678_v62, 4  ;;  %v3692_v15 = vrot.slane %v15210_v43, 5 }
 0x1f2   : > { %v3682_v61 = vsel %vm14944_vm14, %v3680_v25, %v3681_v19  ;;  %v3694_v27 = vrot.slane %v3692_v15, 4  ;;  %v13983_v25 = vld [vmem:[#allocation2 + $0x48] sm:$0xff]   ;;  %v13988_v19 = vld [vmem:[#allocation6 + $0x1d8] sm:$0xff]  }
 0x1f4   : > { %12686 = vmatmul.mubr.bf16.gmra.mrb[28].mxu0 %v11511_v9  ;;  %v3664_v9 = vrot.slane %v15130_v11, 5  ;;  %v11528_v11 = vrot.slane %v3557_v42, 9 }
 0x1f5   : > { %12705 = vmatprep.mubr.bf16.mxu0 %v11536_v44 }
 0x1f6   : > { %v3666_v29 = vrot.slane %v3664_v9, 4  ;;  %v3665_v3 = vsel %vm14944_vm14, %v11527_v16, %v3664_v9  ;;  %v3672_v51 = vsel %vm14944_vm14, %v11528_v11, %v3671_v50  ;;  %v3562_v9 = vld [vmem:[#allocation2 + $0xa8] sm:$0xe]  ;;  %v11534_v16 = vrot.slane %v3563_v35, 9 }
 0x1f7   : > { %v11544_v22 = vcombine.low %v3672_v51, %v3675_v7  ;;  %v11533_v42 = vrot.slane %v3562_v9, 9  ;;  %v3722_v51 = vrot.slane %v3720_v55, 4  ;;  %v3723_v7 = vrot.slane %v15280_v2, 5  ;;  %v13985_v2 = vld [vmem:[#allocation6 + $0x1d0] sm:$0xff]  }
 0x1f8   : > { %v3668_v41 = vsel %vm14944_vm14, %v3666_v29, %v3667_v32  ;;  %v3716_v32 = vrot.slane %v15270_v10, 5 }
 0x1f9   : > { %v11543_v17 = vcombine.low %v3665_v3, %v3668_v41  ;;  %v3564_v3 = vld [vmem:[#allocation2 + $0xc0] sm:$0xe]  ;;  %v3724_v60 = vsel %vm14944_vm14, %v3722_v51, %v3723_v7  ;;  %v15420_v7 = vld [vmem:[#allocation2 + $0x38] sm:$0x1] }
 0x1fa   : > { %v11535_v10 = vrot.slane %v3564_v3, 9 }
 0x1fc   : > { %12706 = vmatmul.mubr.bf16.vlgmr.msra.gmra.mrb[0].mxu0 %v11537_v38  ;;  %v3685_v38 = vrot.slane %v15184_v21, 5 }
 0x1fd   : > { %12738 = vmatpush3.bf16.msra.mxu0 %v15257_v52  ;;  %12709 = vmatprep.mubr.bf16.mxu0 %v11538_v57  ;;  %v3657_v52 = vrot.slane %v15102_v56, 5  ;;  %v3654_v56 = vsel %vm14944_vm14, %v3652_v33, %v3653_v47  ;;  %v13975_v57 = vld [vmem:[#allocation6 + $0x1b0] sm:$0xff]   ;;  %v3695_v33 = vrot.slane %v15232_v37, 5  ;;  %v3701_v47 = vrot.slane %v3699_v5, 4 }
 0x1fe   : > { %12739 = vmatprep.subr.bf16.mxu0 %v13970_v24  ;;  %v11541_v28 = vcombine.low %v3651_v30, %v3654_v56  ;;  %v3687_v36 = vrot.slane %v3685_v38, 4  ;;  %v3686_v6 = vsel %vm14944_vm14, %v11530_v20, %v3685_v38  ;;  %v13991_v20 = vld [vmem:[#allocation6 + $0x1e0] sm:$0xff]  }
 0x1ff   : > { %v3659_v59 = vrot.slane %v3657_v52, 4  ;;  %v3658_v63 = vsel %vm14944_vm14, %v11526_v49, %v3657_v52  ;;  %v3561_v52 = vld [vmem:[#allocation2 + $0x9c] sm:$0xe]  ;;  %v17543_v49 = vld [vmem:[#allocation15_spill] sm:$0xff] }
 0x200   : > { %v3689_v31 = vsel %vm14944_vm14, %v3687_v36, %v3688_v12  ;;  %v11532_v43 = vrot.slane %v3561_v52, 9  ;;  %v13984_v36 = vld [vmem:[#allocation2 + $0x54] sm:$0xff]   ;;  %v13986_v12 = vld [vmem:[#allocation2 + $0x60] sm:$0xff]  }
 0x201   : > { %12740 = vmatpush3.bf16.msra.mxu0 %v13970_v24  ;;  %v3661_v44 = vsel %vm14944_vm14, %v3659_v59, %v3660_v18  ;;  %v11529_v24 = vrot.slane %v3558_v26, 9  ;;  %v3702_v59 = vrot.slane %v17543_v49, 5  ;;  %v3696_v18 = vsel %vm14944_vm14, %v3694_v27, %v3695_v33  ;;  %v13990_v52 = vld [vmem:[#allocation2 + $0x84] sm:$0xff]   ;;  %v13992_v33 = vld [vmem:[#allocation2 + $0x90] sm:$0xff]  }
 0x202   : > { %12741 = vmatprep.subr.bf16.mxu0 %v13971_v0  ;;  %v11542_v54 = vcombine.low %v3658_v63, %v3661_v44  ;;  %v3700_v56 = vsel %vm14944_vm14, %v11532_v43, %v3699_v5  ;;  %v17545_v63 = vld [vmem:[#allocation17_spill] sm:$0xff]  ;;  %v3721_v26 = vsel %vm14944_vm14, %v11535_v10, %v3720_v55  ;;  %v15394_v5 = vld [vmem:[#allocation6 + $0x200] sm:$0xff]   ;;  %v15398_v43 = vld [vmem:[#allocation2 + $0x28] sm:$0xf] }
 0x203   : > { %v3679_v21 = vsel %vm14944_vm14, %v11529_v24, %v3678_v62  ;;  %v3703_v37 = vsel %vm14944_vm14, %v3701_v47, %v3702_v59  ;;  %v3713_v44 = vrot.slane %v17545_v63, 5  ;;  %v11551_v38 = vcombine.low %v3721_v26, %v3724_v60  ;;  %v13981_v24 = vld [vmem:[#allocation2 + $0x3c] sm:$0xff]   ;;  %v4440_v59 = vld [vmem:[#allocation2 + $0x30] sm:$0xf] }
 0x204   : > { %12710 = vmatmul.mubr.bf16.gmra.mrb[4].mxu0 %v11539_v8  ;;  %v11545_v58 = vcombine.low %v3679_v21, %v3682_v61  ;;  %v11546_v8 = vcombine.low %v3686_v6, %v3689_v31  ;;  %v13997_v21 = vld [vmem:[#allocation6 + $0x1f0] sm:$0xff]   ;;  %v14000_v6 = vld [vmem:[#allocation6 + $0x1f8] sm:$0xff]   ;;  %v4434_v31 = vld [vmem:[#allocation2 + $0x18] sm:$0xf]  ;;  %v4516_v9 = vshll.u32 %v15398_v43, 16  ;;  %v4520_v63 = vshrl.u32 %v15398_v43, 16 }
 0x205   : > { %12713 = vmatprep.mubr.bf16.mxu0 %v11540_v4  ;;  %12742 = vmatpush3.bf16.msra.mxu0 %v13971_v0  ;;  %v13979_v0 = vld [vmem:[#allocation6 + $0x1c0] sm:$0xff]   ;;  %v11531_v4 = vrot.slane %v3560_v40, 9  ;;  %v3715_v29 = vrot.slane %v3713_v44, 4  ;;  %v13987_v61 = vld [vmem:[#allocation2 + $0x6c] sm:$0xff]   ;;  %v15417_v10 = vld [vmem:[#allocation2 + $0x40] sm:$0xf] }
 0x206   : > { %12743 = vmatprep.subr.bf16.mxu0 %v13972_v53  ;;  %v15392_v40 = vld [vmem:[#allocation2 + $0x1c] sm:$0xf]  ;;  %v15415_v55 = vrot.slane %v4516_v9, 5 }
 0x207   : > { %v3693_v45 = vsel %vm14944_vm14, %v11531_v4, %v3692_v15  ;;  %v13989_v15 = vld [vmem:[#allocation2 + $0x78] sm:$0xff]   ;;  %v4492_v4 = vshll.u32 %v15392_v40, 16  ;;  %v4496_v27 = vshrl.u32 %v15392_v40, 16 }
 0x208   : > { %v11547_v50 = vcombine.low %v3693_v45, %v3696_v18 }
 0x209   : > { %12744 = vmatpush3.bf16.msra.mxu0 %v13972_v53  ;;  %v17544_v53 = vld [vmem:[#allocation16_spill] sm:$0xff] }
 0x20a   : > { %12745 = vmatprep.subr.bf16.mxu0 %v13973_v46  ;;  %v3706_v30 = vrot.slane %v17544_v53, 5  ;;  %v15401_v53 = vrot.slane %v4492_v4, 5 }
 0x20c   : > { %12714 = vmatmul.mubr.bf16.gmra.mrb[8].mxu0 %v11541_v28  ;;  %v3708_v28 = vrot.slane %v3706_v30, 4  ;;  %v3707_v11 = vsel %vm14944_vm14, %v11533_v42, %v3706_v30  ;;  %v4498_v30 = vrot.slane %v4496_v27, 4  ;;  %v4449_v27 = vld [vmem:[#allocation2 + $0x54] sm:$0xf] }
 0x20d   : > { %12717 = vmatprep.mubr.bf16.mxu0 %v11542_v54  ;;  %12746 = vmatpush3.bf16.msra.mxu0 %v13973_v46  ;;  %v11548_v46 = vcombine.low %v3700_v56, %v3703_v37  ;;  %v3709_v54 = vrot.slane %v15259_v14, 5  ;;  %v3717_v14 = vsel %vm14944_vm14, %v3715_v29, %v3716_v32  ;;  %v15403_v56 = vld [vmem:[#allocation2 + $0x34] sm:$0xf]  ;;  %v15405_v37 = vld [vmem:[#allocation2 + $0x20] sm:$0x1] }
 0x20e   : > { %12747 = vmatprep.subr.bf16.mxu0 %v13974_v1  ;;  %v4540_v42 = vshll.u32 %v15403_v56, 16  ;;  %v4499_v29 = vor.u32 %v4498_v30, %v15401_v53  ;;  %v4502_v32 = vshll.u32 %v15405_v37, 16 }
 0x20f   : > { %v3710_v39 = vsel %vm14944_vm14, %v3708_v28, %v3709_v54  ;;  %v4544_v28 = vshrl.u32 %v15403_v56, 16  ;;  %v13993_v54 = vld [vmem:[#allocation2 + $0x9c] sm:$0xff]  }
 0x210   : > { %v11549_v41 = vcombine.low %v3707_v11, %v3710_v39  ;;  %v15413_v11 = vld [vmem:[#allocation2 + $0x2c] sm:$0x1]  ;;  %v15422_v26 = vrot.slane %v4540_v42, 5  ;;  %v4603_v42 = vshrl.u32 %v4449_v27, 16 }
 0x211   : > { %12748 = vmatpush3.bf16.msra.mxu0 %v13974_v1  ;;  %v3714_v1 = vsel %vm14944_vm14, %v11534_v16, %v3713_v44  ;;  %v13995_v39 = vld [vmem:[#allocation2 + $0xa8] sm:$0xff]   ;;  %v4526_v51 = vshll.u32 %v15413_v11, 16  ;;  %v4546_v60 = vrot.slane %v4544_v28, 4 }
 0x212   : > { %12749 = vmatprep.subr.bf16.mxu0 %v13975_v57  ;;  %v11550_v62 = vcombine.low %v3714_v1, %v3717_v14  ;;  %v4522_v1 = vrot.slane %v4520_v63, 4  ;;  %v15453_v63 = vld [vmem:[#allocation2 + $0x58] sm:$0xf] }
 0x214   : > { %12718 = vmatmul.mubr.bf16.gmra.mrb[12].mxu0 %v11543_v17  ;;  %v13980_v17 = vld [vmem:[#allocation2 + $0x30] sm:$0xff]  }
 0x215   : > { %12721 = vmatprep.mubr.bf16.mxu0 %v11544_v22  ;;  %12750 = vmatpush3.bf16.msra.mxu0 %v13975_v57  ;;  %v13977_v57 = vld [vmem:[#allocation2 + $0x18] sm:$0xff]   ;;  %v13982_v22 = vld [vmem:[#allocation6 + $0x1c8] sm:$0xff]  }
 0x216   : > { %12751 = vmatprep.subr.bf16.mxu0 %v13976_v23 }
 0x219   : > { %12752 = vmatpush3.bf16.msra.mxu0 %v13976_v23  ;;  %v13994_v23 = vld [vmem:[#allocation6 + $0x1e8] sm:$0xff]  }
 0x21a   : > { %12785 = vmatprep.subr.bf16.mxu0 %v13979_v0 }
 0x21c   : > { %12722 = vmatmul.mubr.bf16.gmra.mrb[16].mxu0 %v11545_v58  ;;  %v4483_v58 = vshrl.u32 %v4434_v31, 16 }
 0x21d   : > { %12725 = vmatprep.mubr.bf16.mxu0 %v11546_v8  ;;  %v4486_v8 = vshll.u32 %v4434_v31, 16 }
 0x21e   : > { %v4485_v45 = vrot.slane %v4483_v58, 4 }
 0x21f   : > { %v4488_v18 = vrot.slane %v4486_v8, 5 }
 0x221   : > { %v4489_v16 = vor.u32 %v4488_v18, %v4485_v45 }
 0x224   : > { %12726 = vmatmul.mubr.bf16.gmra.mrb[20].mxu0 %v11547_v50  ;;  %v4531_v50 = vshrl.u32 %v4440_v59, 16 }
 0x225   : > { %12729 = vmatprep.mubr.bf16.mxu0 %v11548_v46  ;;  %v4534_v46 = vshll.u32 %v4440_v59, 16 }
 0x226   : > { %v4533_v3 = vrot.slane %v4531_v50, 4 }
 0x22c   : > { %12730 = vmatmul.mubr.bf16.gmra.mrb[24].mxu0 %v11549_v41  ;;  %v4536_v41 = vrot.slane %v4534_v46, 5 }
 0x22d   : > { %12733 = vmatprep.mubr.bf16.mxu0 %v11550_v62  ;;  %v4443_v62 = vld [vmem:[#allocation2 + $0x3c] sm:$0xf] }
 0x234   : > { %12734 = vmatmul.mubr.bf16.gmra.mrb[28].mxu0 %v11551_v38  ;;  %v4490_v38 = vrot.slane %v4489_v16, 4 }
 0x235   : > { %12753 = vmatprep.mubr.bf16.mxu0 %v13977_v57  ;;  %v4500_v57 = vrot.slane %v4499_v29, 4  ;;  %v15461_v29 = vld [vmem:[#allocation2 + $0xd0] sm:$0xf] }
 0x23c   : > { %12754 = vmatmul.mubr.bf16.vlgmr.msra.gmra.mrb[0].mxu0 %v13978_v13  ;;  %v4504_v13 = vrot.slane %v4502_v32, 5  ;;  %v15463_v32 = vld [vmem:[#allocation2 + $0xd4] sm:$0x1] }
 0x23d   : > { %12786 = vmatpush3.bf16.msra.mxu0 %v13979_v0  ;;  %12757 = vmatprep.mubr.bf16.mxu0 %v13980_v17  ;;  %v4437_v0 = vld [vmem:[#allocation2 + $0x24] sm:$0xf]  ;;  %v4446_v17 = vld [vmem:[#allocation2 + $0x48] sm:$0xf] }
 0x23e   : > { %12787 = vmatprep.subr.bf16.mxu0 %v13982_v22  ;;  %v4507_v47 = vshrl.u32 %v4437_v0, 16  ;;  %v4510_v49 = vshll.u32 %v4437_v0, 16  ;;  %v4582_v31 = vshll.u32 %v4446_v17, 16  ;;  %v13996_v0 = vld [vmem:[#allocation2 + $0xb4] sm:$0xff]   ;;  %v4505_v58 = vsel %vm14534_vm9, %v4500_v57, %v4504_v13  ;;  %v15473_v57 = vld [vmem:[#allocation2 + $0x64] sm:$0xf] }
 0x240   : > { %v4509_v44 = vrot.slane %v4507_v47, 4  ;;  %v4512_v35 = vrot.slane %v4510_v49, 5  ;;  %v4584_v46 = vrot.slane %v4582_v31, 5  ;;  %v4640_v31 = vshrl.u32 %v15473_v57, 16 }
 0x241   : > { %12788 = vmatpush3.bf16.msra.mxu0 %v13982_v22  ;;  %v4523_v22 = vor.u32 %v4522_v1, %v15415_v55 }
 0x242   : > { %12789 = vmatprep.subr.bf16.mxu0 %v13985_v2  ;;  %v4513_v14 = vor.u32 %v4512_v35, %v4509_v44  ;;  %v15457_v35 = vld [vmem:[#allocation2 + $0x50] sm:$0x1] }
 0x243   : > { %v15444_v47 = vrot.slane %v4523_v22, 4 }
 0x244   : > { %12758 = vmatmul.mubr.bf16.gmra.mrb[4].mxu0 %v13981_v24  ;;  %v4558_v24 = vshll.u32 %v4443_v62, 16 }
 0x245   : > { %12761 = vmatprep.mubr.bf16.mxu0 %v13983_v25  ;;  %12790 = vmatpush3.bf16.msra.mxu0 %v13985_v2  ;;  %v4555_v2 = vshrl.u32 %v4443_v62, 16  ;;  %v4564_v25 = vshll.u32 %v15417_v10, 16  ;;  %v5362_v62 = vrot.slane %v15463_v32, 5 }
 0x246   : > { %12791 = vmatprep.subr.bf16.mxu0 %v13988_v19  ;;  %v4560_v59 = vrot.slane %v4558_v24, 5  ;;  %v13999_v24 = vld [vmem:[#allocation2 + $0xcc] sm:$0xff]  }
 0x247   : > { %v4557_v49 = vrot.slane %v4555_v2, 4  ;;  %v15446_v45 = vrot.slane %v4564_v25, 5 }
 0x249   : > { %12792 = vmatpush3.bf16.msra.mxu0 %v13988_v19  ;;  %v15426_v19 = vld [vmem:[#allocation2 + $0x4c] sm:$0xf]  ;;  %v4561_v1 = vor.u32 %v4560_v59, %v4557_v49 }
 0x24a   : > { %12793 = vmatprep.subr.bf16.mxu0 %v13991_v20  ;;  %v4588_v8 = vshll.u32 %v15426_v19, 16  ;;  %v4592_v4 = vshrl.u32 %v15426_v19, 16 }
 0x24b   : > { %v15502_v49 = vrot.slane %v4561_v1, 4 }
 0x24c   : > { %12762 = vmatmul.mubr.bf16.gmra.mrb[8].mxu0 %v13984_v36  ;;  %v4537_v36 = vor.u32 %v4536_v41, %v4533_v3  ;;  %v4594_v16 = vrot.slane %v4592_v4, 4  ;;  %v5203_v3 = vld [vmem:[#allocation2 + $0xcc] sm:$0xe]  ;;  %v5359_v41 = vrot.slane %v15461_v29, 5 }
 0x24d   : > { %12765 = vmatprep.mubr.bf16.mxu0 %v13986_v12  ;;  %12794 = vmatpush3.bf16.msra.mxu0 %v13991_v20  ;;  %v15428_v20 = vrot.slane %v4513_v14, 4  ;;  %v4550_v12 = vshll.u32 %v15420_v7, 16  ;;  %v4452_v14 = vld [vmem:[#allocation2 + $0x60] sm:$0xf]  ;;  %v11623_v13 = vrot.slane %v5203_v3, 9 }
 0x24e   : > { %12795 = vmatprep.subr.bf16.mxu0 %v13994_v23  ;;  %v15448_v18 = vrot.slane %v4537_v36, 4  ;;  %v5361_v2 = vrot.slane %v5359_v41, 4  ;;  %v4627_v36 = vshrl.u32 %v4452_v14, 16 }
 0x24f   : > { %v15450_v30 = vrot.slane %v4550_v12, 5  ;;  %v15480_v12 = vsel %vm14944_vm14, %v11623_v13, %v5359_v41 }
 0x250   : > { %17546 = vst [vmem:[#allocation15_spill] sm:$0xff] %v15480_v12  ;;  %v15634_v12 = vld [vmem:[#allocation2 + $0xb8] sm:$0xf] }
 0x251   : > { %12796 = vmatpush3.bf16.msra.mxu0 %v13994_v23  ;;  %v4568_v23 = vshrl.u32 %v15417_v10, 16  ;;  %17550 = vst [vmem:[#allocation19_spill] sm:$0xff] %v15634_v12 }
 0x252   : > { %12797 = vmatprep.subr.bf16.mxu0 %v13997_v21 }
 0x254   : > { %12766 = vmatmul.mubr.bf16.gmra.mrb[12].mxu0 %v13987_v61  ;;  %v4547_v61 = vor.u32 %v4546_v60, %v15422_v26  ;;  %v4612_v60 = vshll.u32 %v15453_v63, 16 }
 0x255   : > { %12769 = vmatprep.mubr.bf16.mxu0 %v13989_v15  ;;  %12798 = vmatpush3.bf16.msra.mxu0 %v13997_v21  ;;  %v15432_v21 = vrot.slane %v4526_v51, 5  ;;  %v15435_v15 = vld [vmem:[#allocation2 + $0x44] sm:$0x1]  ;;  %v4606_v51 = vshll.u32 %v4449_v27, 16 }
 0x256   : > { %12799 = vmatprep.subr.bf16.mxu0 %v14000_v6  ;;  %v4574_v9 = vshll.u32 %v15435_v15, 16  ;;  %v15455_v44 = vrot.slane %v4547_v61, 4  ;;  %v4630_v61 = vshll.u32 %v4452_v14, 16 }
 0x257   : > { %v4529_v27 = vsel %vm14534_vm9, %v15444_v47, %v15432_v21  ;;  %v4455_v47 = vld [vmem:[#allocation2 + $0x6c] sm:$0xf] }
 0x258   : > { %v15504_v59 = vrot.slane %v4574_v9, 5  ;;  %v4642_v9 = vrot.slane %v4640_v31, 4  ;;  %v15546_v31 = vld [vmem:[#allocation2 + $0x74] sm:$0x1] }
 0x259   : > { %12800 = vmatpush3.bf16.msra.mxu0 %v14000_v6  ;;  %v4579_v6 = vshrl.u32 %v4446_v17, 16 }
 0x25a   : > { %12833 = vmatprep.subr.bf16.mxu0 %v15394_v5 }
 0x25b   : > { %v4581_v50 = vrot.slane %v4579_v6, 4  ;;  %v4636_v6 = vshll.u32 %v15473_v57, 16 }
 0x25c   : > { %12770 = vmatmul.mubr.bf16.gmra.mrb[16].mxu0 %v13990_v52  ;;  %v4495_v52 = vsel %vm14534_vm9, %v4490_v38, %v15401_v53  ;;  %v4570_v53 = vrot.slane %v4568_v23, 4  ;;  %v4616_v38 = vshrl.u32 %v15453_v63, 16  ;;  %v15482_v23 = vld [vmem:[#allocation2 + $0x5c] sm:$0x1] }
 0x25d   : > { %12773 = vmatprep.mubr.bf16.mxu0 %v13992_v33  ;;  %v13998_v33 = vld [vmem:[#allocation2 + $0xc0] sm:$0xff]   ;;  %v11584_v28 = vcombine.low %v4495_v52, %v4505_v58  ;;  %v4585_v22 = vor.u32 %v4584_v46, %v4581_v50  ;;  %v4608_v52 = vrot.slane %v4606_v51, 5  ;;  %v15490_v58 = vrot.slane %v4612_v60, 5 }
 0x25e   : > { %v4571_v17 = vor.u32 %v4570_v53, %v15446_v45  ;;  %v4553_v53 = vsel %vm14534_vm9, %v15455_v44, %v15450_v30  ;;  %v4622_v21 = vshll.u32 %v15482_v23, 16  ;;  %v15520_v44 = vld [vmem:[#allocation2 + $0x68] sm:$0x1]  ;;  %v4651_v51 = vshrl.u32 %v4455_v47, 16 }
 0x25f   : > { %v4586_v1 = vrot.slane %v4585_v22, 4  ;;  %v4654_v60 = vshll.u32 %v4455_v47, 16  ;;  %v4458_v22 = vld [vmem:[#allocation2 + $0x78] sm:$0xf] }
 0x260   : > { %v15510_v50 = vrot.slane %v4571_v17, 4 }
 0x264   : > { %12774 = vmatmul.mubr.bf16.gmra.mrb[20].mxu0 %v13993_v54  ;;  %v15459_v54 = vrot.slane %v4588_v8, 5  ;;  %v4618_v8 = vrot.slane %v4616_v38, 4  ;;  %v4577_v38 = vsel %vm14534_vm9, %v15510_v50, %v15504_v59  ;;  %v15550_v59 = vld [vmem:[#allocation2 + $0x88] sm:$0xf] }
 0x265   : > { %12777 = vmatprep.mubr.bf16.mxu0 %v13995_v39  ;;  %v4519_v39 = vsel %vm14534_vm9, %v15428_v20, %v15415_v55  ;;  %v4598_v55 = vshll.u32 %v15457_v35, 16  ;;  %v4605_v20 = vrot.slane %v4603_v42, 4  ;;  %v4629_v42 = vrot.slane %v4627_v36, 4 }
 0x266   : > { %v4595_v25 = vor.u32 %v4594_v16, %v15459_v54  ;;  %v15517_v16 = vld [vmem:[#allocation2 + $0x70] sm:$0xf]  ;;  %v4619_v30 = vor.u32 %v4618_v8, %v15490_v58  ;;  %v11585_v41 = vcombine.low %v4519_v39, %v4529_v27  ;;  %v14002_v39 = vld [vmem:[#allocation6 + $0x208] sm:$0xff]   ;;  %v4675_v8 = vshrl.u32 %v4458_v22, 16 }
 0x267   : > { %v15512_v46 = vrot.slane %v4598_v55, 5  ;;  %v4609_v3 = vor.u32 %v4608_v52, %v4605_v20  ;;  %v4660_v13 = vshll.u32 %v15517_v16, 16  ;;  %v4664_v17 = vshrl.u32 %v15517_v16, 16  ;;  %v15532_v55 = vld [vmem:[#allocation2 + $0x7c] sm:$0xf] }
 0x268   : > { %v4596_v14 = vrot.slane %v4595_v25, 4  ;;  %v4591_v20 = vsel %vm14534_vm9, %v4586_v1, %v15459_v54  ;;  %v4461_v52 = vld [vmem:[#allocation2 + $0x84] sm:$0xf]  ;;  %v4678_v27 = vshll.u32 %v4458_v22, 16  ;;  %v4653_v54 = vrot.slane %v4651_v51, 4 }
 0x269   : > { %v15552_v50 = vrot.slane %v4660_v13, 5  ;;  %v4699_v1 = vshrl.u32 %v4461_v52, 16 }
 0x26a   : > { %v4601_v36 = vsel %vm14534_vm9, %v4596_v14, %v15512_v46  ;;  %v4666_v46 = vrot.slane %v4664_v17, 4  ;;  %v4702_v14 = vshll.u32 %v4461_v52, 16  ;;  %v4680_v51 = vrot.slane %v4678_v27, 5 }
 0x26b   : > { %v4701_v52 = vrot.slane %v4699_v1, 4 }
 0x26c   : > { %12778 = vmatmul.mubr.bf16.gmra.mrb[24].mxu0 %v13996_v0  ;;  %v15488_v0 = vsel %vm14944_vm14, %v5361_v2, %v5362_v62  ;;  %v15534_v2 = vrot.slane %v4622_v21, 5  ;;  %v4667_v22 = vor.u32 %v4666_v46, %v15552_v50 }
 0x26d   : > { %12781 = vmatprep.mubr.bf16.mxu0 %v13998_v33  ;;  %17547 = vst [vmem:[#allocation16_spill] sm:$0xff] %v15488_v0  ;;  %v4543_v33 = vsel %vm14534_vm9, %v15448_v18, %v15422_v26  ;;  %v4632_v26 = vrot.slane %v4630_v61, 5  ;;  %v15515_v18 = vrot.slane %v4636_v6, 5  ;;  %v15544_v61 = vrot.slane %v4609_v3, 4 }
 0x26e   : > { %v11586_v62 = vcombine.low %v4543_v33, %v4553_v53  ;;  %v4620_v6 = vrot.slane %v4619_v30, 4  ;;  %v4684_v33 = vshll.u32 %v15532_v55, 16  ;;  %v4656_v53 = vrot.slane %v4654_v60, 5 }
 0x26f   : > { %v4643_v25 = vor.u32 %v4642_v9, %v15515_v18  ;;  %v14003_v9 = vld [vmem:[#allocation6 + $0x210] sm:$0xff]   ;;  %v4708_v3 = vshll.u32 %v15550_v59, 16  ;;  %v4712_v30 = vshrl.u32 %v15550_v59, 16 }
 0x270   : > { %v15558_v60 = vrot.slane %v4684_v33, 5  ;;  %v4657_v17 = vor.u32 %v4656_v53, %v4653_v54  ;;  %v15577_v33 = vld [vmem:[#allocation2 + $0x94] sm:$0xf]  ;;  %v15587_v54 = vrot.slane %v4667_v22, 4 }
 0x271   : > { %v4644_v47 = vrot.slane %v4643_v25, 4  ;;  %v4615_v25 = vsel %vm14534_vm9, %v15544_v61, %v15490_v58  ;;  %v4714_v27 = vrot.slane %v4712_v30, 4  ;;  %v4467_v30 = vld [vmem:[#allocation2 + $0x9c] sm:$0xf] }
 0x274   : > { %12782 = vmatmul.mubr.bf16.gmra.mrb[28].mxu0 %v13999_v24  ;;  %v4633_v24 = vor.u32 %v4632_v26, %v4629_v42  ;;  %v4670_v26 = vshll.u32 %v15546_v31, 16 }
 0x275   : > { %12801 = vmatprep.mubr.bf16.mxu0 %v11584_v28  ;;  %v4567_v28 = vsel %vm14534_vm9, %v15502_v49, %v15446_v45  ;;  %v4646_v45 = vshll.u32 %v15520_v44, 16  ;;  %v4688_v49 = vshrl.u32 %v15532_v55, 16 }
 0x276   : > { %v4634_v21 = vrot.slane %v4633_v24, 4  ;;  %v15561_v24 = vld [vmem:[#allocation2 + $0x80] sm:$0x1] }
 0x277   : > { %v4648_v42 = vrot.slane %v4646_v45, 5  ;;  %v4690_v13 = vrot.slane %v4688_v49, 4  ;;  %v4625_v45 = vsel %vm14534_vm9, %v4620_v6, %v15534_v2  ;;  %v15583_v6 = vld [vmem:[#allocation2 + $0x8c] sm:$0x1]  ;;  %v15585_v49 = vrot.slane %v4657_v17, 4 }
 0x278   : > { %v15593_v17 = vld [vmem:[#allocation2 + $0x98] sm:$0x1] }
 0x279   : > { %v4649_v58 = vsel %vm14534_vm9, %v4644_v47, %v4648_v42  ;;  %v4691_v61 = vor.u32 %v4690_v13, %v15558_v60  ;;  %v4736_v47 = vshrl.u32 %v15577_v33, 16  ;;  %v11589_v42 = vcombine.low %v4615_v25, %v4625_v45  ;;  %v15603_v45 = vld [vmem:[#allocation2 + $0xa0] sm:$0xf] }
 0x27b   : > { %v4692_v13 = vrot.slane %v4691_v61, 4 }
 0x27c   : > { %12802 = vmatmul.mubr.bf16.vlgmr.msra.gmra.mrb[0].mxu0 %v11585_v41  ;;  %v4677_v41 = vrot.slane %v4675_v8, 4  ;;  %v15575_v8 = vrot.slane %v4708_v3, 5  ;;  %v14005_v3 = vld [vmem:[#allocation6 + $0x220] sm:$0xff]  }
 0x27d   : > { %12834 = vmatpush3.bf16.msra.mxu0 %v15394_v5  ;;  %12805 = vmatprep.mubr.bf16.mxu0 %v11586_v62  ;;  %v11587_v5 = vcombine.low %v4567_v28, %v4577_v38  ;;  %v11588_v62 = vcombine.low %v4591_v20, %v4601_v36  ;;  %v4639_v28 = vsel %vm14534_vm9, %v4634_v21, %v15515_v18  ;;  %v15573_v38 = vrot.slane %v4670_v26, 5  ;;  %v14004_v20 = vld [vmem:[#allocation6 + $0x218] sm:$0xff]  }
 0x27e   : > { %12835 = vmatprep.subr.bf16.mxu0 %v14002_v39  ;;  %v4464_v36 = vld [vmem:[#allocation2 + $0x90] sm:$0xf]  ;;  %v4681_v2 = vor.u32 %v4680_v51, %v4677_v41  ;;  %v4694_v18 = vshll.u32 %v15561_v24, 16  ;;  %v4732_v21 = vshll.u32 %v15577_v33, 16  ;;  %v4715_v1 = vor.u32 %v4714_v27, %v15575_v8 }
 0x27f   : > { %v4723_v53 = vshrl.u32 %v4464_v36, 16  ;;  %v4726_v46 = vshll.u32 %v4464_v36, 16  ;;  %v11590_v41 = vcombine.low %v4639_v28, %v4649_v58  ;;  %v4470_v28 = vld [vmem:[#allocation2 + $0xa8] sm:$0xf]  ;;  %v4750_v27 = vshll.u32 %v4467_v30, 16 }
 0x280   : > { %v4682_v51 = vrot.slane %v4681_v2, 4  ;;  %v15605_v36 = vrot.slane %v4732_v21, 5  ;;  %v15607_v58 = vld [vmem:[#allocation2 + $0xac] sm:$0xf] }
 0x281   : > { %12836 = vmatpush3.bf16.msra.mxu0 %v14002_v39  ;;  %v4704_v39 = vrot.slane %v4702_v14, 5  ;;  %v4718_v14 = vshll.u32 %v15583_v6, 16  ;;  %v4725_v22 = vrot.slane %v4723_v53, 4  ;;  %v4728_v25 = vrot.slane %v4726_v46, 5 }
 0x282   : > { %12837 = vmatprep.subr.bf16.mxu0 %v14003_v9  ;;  %v4771_v53 = vshrl.u32 %v4470_v28, 16  ;;  %v4687_v46 = vsel %vm14534_vm9, %v4682_v51, %v15558_v60  ;;  %v4752_v4 = vrot.slane %v4750_v27, 5 }
 0x283   : > { %v4705_v26 = vor.u32 %v4704_v39, %v4701_v52  ;;  %v4738_v52 = vrot.slane %v4736_v47, 4  ;;  %v4747_v39 = vshrl.u32 %v4467_v30, 16  ;;  %v4720_v61 = vrot.slane %v4718_v14, 5 }
 0x284   : > { %12806 = vmatmul.mubr.bf16.gmra.mrb[4].mxu0 %v11587_v5  ;;  %v4696_v5 = vrot.slane %v4694_v18, 5  ;;  %v4742_v18 = vshll.u32 %v15593_v17, 16  ;;  %v4780_v47 = vshll.u32 %v15607_v58, 16 }
 0x285   : > { %12809 = vmatprep.mubr.bf16.mxu0 %v11588_v62  ;;  %12838 = vmatpush3.bf16.msra.mxu0 %v14003_v9  ;;  %v4663_v9 = vsel %vm14534_vm9, %v15585_v49, %v15552_v50  ;;  %v4673_v62 = vsel %vm14534_vm9, %v15587_v54, %v15573_v38  ;;  %v4706_v2 = vrot.slane %v4705_v26, 4  ;;  %v4716_v50 = vrot.slane %v4715_v1, 4  ;;  %v14006_v38 = vld [vmem:[#allocation6 + $0x228] sm:$0xff]  }
 0x286   : > { %12839 = vmatprep.subr.bf16.mxu0 %v14004_v20  ;;  %v4756_v49 = vshll.u32 %v15603_v45, 16  ;;  %v4760_v54 = vshrl.u32 %v15603_v45, 16  ;;  %v4697_v21 = vsel %vm14534_vm9, %v4692_v13, %v4696_v5  ;;  %v4784_v26 = vshrl.u32 %v15607_v58, 16  ;;  %v15625_v13 = vld [vmem:[#allocation2 + $0xa4] sm:$0x1]  ;;  %v14007_v5 = vld [vmem:[#allocation6 + $0x230] sm:$0xff]  }
 0x287   : > { %v4729_v1 = vor.u32 %v4728_v25, %v4725_v22  ;;  %v4739_v14 = vor.u32 %v4738_v52, %v15605_v36  ;;  %v4749_v30 = vrot.slane %v4747_v39, 4  ;;  %v4721_v60 = vsel %vm14534_vm9, %v4716_v50, %v4720_v61  ;;  %17548 = vst [vmem:[#allocation17_spill] sm:$0xff] %v15625_v13  ;;  %v15629_v39 = vld [vmem:[#allocation2 + $0xb0] sm:$0x1] }
 0x288   : > { %v4744_v51 = vrot.slane %v4742_v18, 5  ;;  %v11591_v25 = vcombine.low %v4663_v9, %v4673_v62  ;;  %v11592_v52 = vcombine.low %v4687_v46, %v4697_v21  ;;  %17549 = vst [vmem:[#allocation18_spill] sm:$0xff] %v15629_v39  ;;  %v15631_v27 = vrot.slane %v4780_v47, 5  ;;  %v4476_v46 = vld [vmem:[#allocation2 + $0xc0] sm:$0xf] }
 0x289   : > { %12840 = vmatpush3.bf16.msra.mxu0 %v14004_v20  ;;  %v4774_v20 = vshll.u32 %v4470_v28, 16  ;;  %v15627_v28 = vrot.slane %v4756_v49, 5  ;;  %v4730_v0 = vrot.slane %v4729_v1, 4  ;;  %v4740_v50 = vrot.slane %v4739_v14, 4  ;;  %v15638_v21 = vld [vmem:[#allocation2 + $0xc4] sm:$0xf] }
 0x28a   : > { %12841 = vmatprep.subr.bf16.mxu0 %v14005_v3  ;;  %v4753_v61 = vor.u32 %v4752_v4, %v4749_v30  ;;  %v4766_v18 = vshll.u32 %v15625_v13, 16  ;;  %v4479_v13 = vld [vmem:[#allocation2 + $0xcc] sm:$0xf] }
 0x28b   : > { %v4776_v22 = vrot.slane %v4774_v20, 5  ;;  %v4735_v1 = vsel %vm14534_vm9, %v4730_v0, %v15605_v36  ;;  %v4745_v14 = vsel %vm14534_vm9, %v4740_v50, %v4744_v51 }
 0x28c   : > { %12810 = vmatmul.mubr.bf16.gmra.mrb[8].mxu0 %v11589_v42  ;;  %v4711_v42 = vsel %vm14534_vm9, %v4706_v2, %v15575_v8  ;;  %v4786_v8 = vrot.slane %v4784_v26, 4  ;;  %v4473_v2 = vld [vmem:[#allocation2 + $0xb4] sm:$0xf]  ;;  %v4808_v26 = vshrl.u32 %v15634_v12, 16  ;;  %v4754_v30 = vrot.slane %v4753_v61, 4 }
 0x28d   : > { %12813 = vmatprep.mubr.bf16.mxu0 %v11590_v41  ;;  %12842 = vmatpush3.bf16.msra.mxu0 %v14005_v3  ;;  %v4762_v3 = vrot.slane %v4760_v54, 4  ;;  %v4773_v41 = vrot.slane %v4771_v53, 4  ;;  %v11593_v49 = vcombine.low %v4711_v42, %v4721_v60  ;;  %v14008_v54 = vld [vmem:[#allocation6 + $0x238] sm:$0xff]   ;;  %v4790_v53 = vshll.u32 %v15629_v39, 16  ;;  %v15650_v39 = vld [vmem:[#allocation2 + $0xbc] sm:$0x1] }
 0x28e   : > { %12843 = vmatprep.subr.bf16.mxu0 %v14006_v38  ;;  %v4795_v20 = vshrl.u32 %v4473_v2, 16  ;;  %v4787_v4 = vor.u32 %v4786_v8, %v15631_v27  ;;  %v4798_v47 = vshll.u32 %v4473_v2, 16  ;;  %v4768_v42 = vrot.slane %v4766_v18, 5 }
 0x28f   : > { %v4763_v9 = vor.u32 %v4762_v3, %v15627_v28  ;;  %v4777_v62 = vor.u32 %v4776_v22, %v4773_v41  ;;  %v4819_v60 = vshrl.u32 %v4476_v46, 16  ;;  %v4822_v3 = vshll.u32 %v4476_v46, 16 }
 0x290   : > { %v4828_v41 = vshll.u32 %v15638_v21, 16  ;;  %v4832_v22 = vshrl.u32 %v15638_v21, 16  ;;  %v4797_v2 = vrot.slane %v4795_v20, 4  ;;  %v4800_v0 = vrot.slane %v4798_v47, 5  ;;  %v15658_v20 = vld [vmem:[#allocation2 + $0xc8] sm:$0x1] }
 0x291   : > { %12844 = vmatpush3.bf16.msra.mxu0 %v14006_v38  ;;  %v4804_v38 = vshll.u32 %v15634_v12, 16  ;;  %v4778_v8 = vrot.slane %v4777_v62, 4  ;;  %v4788_v12 = vrot.slane %v4787_v4, 4  ;;  %v4810_v51 = vrot.slane %v4808_v26, 4 }
 0x292   : > { %12845 = vmatprep.subr.bf16.mxu0 %v14007_v5  ;;  %v11594_v50 = vcombine.low %v4735_v1, %v4745_v14  ;;  %v4824_v61 = vrot.slane %v4822_v3, 5  ;;  %v4830_v18 = vrot.slane %v4828_v41, 5  ;;  %v4834_v46 = vrot.slane %v4832_v22, 4 }
 0x293   : > { %v4806_v36 = vrot.slane %v4804_v38, 5  ;;  %v4801_v47 = vor.u32 %v4800_v0, %v4797_v2  ;;  %v4843_v26 = vshrl.u32 %v4479_v13, 16  ;;  %v4852_v1 = vshll.u32 %v15461_v29, 16 }
 0x294   : > { %12814 = vmatmul.mubr.bf16.gmra.mrb[12].mxu0 %v11591_v25  ;;  %v4764_v25 = vrot.slane %v4763_v9, 4  ;;  %v4759_v9 = vsel %vm14534_vm9, %v4754_v30, %v15627_v28  ;;  %v4846_v28 = vshll.u32 %v4479_v13, 16  ;;  %v4856_v14 = vshrl.u32 %v15461_v29, 16 }
 0x295   : > { %12817 = vmatprep.mubr.bf16.mxu0 %v11592_v52  ;;  %12846 = vmatpush3.bf16.msra.mxu0 %v14007_v5  ;;  %v4792_v52 = vrot.slane %v4790_v53, 5  ;;  %v4821_v5 = vrot.slane %v4819_v60, 4  ;;  %v4814_v53 = vshll.u32 %v15650_v39, 16  ;;  %v4811_v38 = vor.u32 %v4810_v51, %v4806_v36 }
 0x296   : > { %12847 = vmatprep.subr.bf16.mxu0 %v14008_v54  ;;  %v4769_v62 = vsel %vm14534_vm9, %v4764_v25, %v4768_v42  ;;  %v4835_v42 = vor.u32 %v4834_v46, %v4830_v18  ;;  %v4802_v41 = vrot.slane %v4801_v47, 4  ;;  %v4845_v25 = vrot.slane %v4843_v26, 4 }
 0x297   : > { %v4793_v4 = vsel %vm14534_vm9, %v4788_v12, %v4792_v52  ;;  %v4825_v30 = vor.u32 %v4824_v61, %v4821_v5  ;;  %v11595_v60 = vcombine.low %v4759_v9, %v4769_v62  ;;  %v4816_v22 = vrot.slane %v4814_v53, 5  ;;  %v5188_v53 = vld [vmem:[#allocation2 + $0x18] sm:$0xe] }
 0x298   : > { %v4848_v12 = vrot.slane %v4846_v28, 5  ;;  %v4858_v52 = vrot.slane %v4856_v14, 4  ;;  %v4836_v0 = vrot.slane %v4835_v42, 4  ;;  %v4807_v29 = vsel %vm14534_vm9, %v4802_v41, %v4806_v36  ;;  %v5189_v42 = vld [vmem:[#allocation2 + $0x24] sm:$0xe] }
 0x299   : > { %12848 = vmatpush3.bf16.msra.mxu0 %v14008_v54  ;;  %v4783_v54 = vsel %vm14534_vm9, %v4778_v8, %v15631_v27  ;;  %v4812_v27 = vrot.slane %v4811_v38, 4  ;;  %v4854_v8 = vrot.slane %v4852_v1, 5  ;;  %v4826_v2 = vrot.slane %v4825_v30, 4 }
 0x29a   : > { %v11596_v3 = vcombine.low %v4783_v54, %v4793_v4  ;;  %v4862_v61 = vshll.u32 %v15463_v32, 16  ;;  %v5254_v62 = vrot.slane %v15392_v40, 5  ;;  %v11608_v26 = vrot.slane %v5188_v53, 9 }
 0x29b   : > { %v4817_v51 = vsel %vm14534_vm9, %v4812_v27, %v4816_v22  ;;  %v4859_v5 = vor.u32 %v4858_v52, %v4854_v8  ;;  %v4831_v46 = vsel %vm14534_vm9, %v4826_v2, %v4830_v18  ;;  %v5257_v1 = vrot.slane %v15405_v37, 5  ;;  %v5190_v37 = vld [vmem:[#allocation2 + $0x30] sm:$0xe] }
 0x29c   : > { %12818 = vmatmul.mubr.bf16.gmra.mrb[16].mxu0 %v11593_v49  ;;  %v4838_v49 = vshll.u32 %v15658_v20, 16  ;;  %v11597_v54 = vcombine.low %v4807_v29, %v4817_v51  ;;  %v4864_v38 = vrot.slane %v4862_v61, 5  ;;  %v5256_v28 = vrot.slane %v5254_v62, 4 }
 0x29d   : > { %12821 = vmatprep.mubr.bf16.mxu0 %v11594_v50  ;;  %v4849_v50 = vor.u32 %v4848_v12, %v4845_v25  ;;  %v4860_v47 = vrot.slane %v4859_v5, 4  ;;  %v5261_v40 = vrot.slane %v15398_v43, 5  ;;  %v5255_v14 = vsel %vm14944_vm14, %v11608_v26, %v5254_v62 }
 0x29e   : > { %v4840_v13 = vrot.slane %v4838_v49, 5  ;;  %v5258_v30 = vsel %vm14944_vm14, %v5256_v28, %v5257_v1  ;;  %v5268_v49 = vrot.slane %v15403_v56, 5  ;;  %v11609_v41 = vrot.slane %v5189_v42, 9  ;;  %v5195_v42 = vld [vmem:[#allocation2 + $0x6c] sm:$0xe] }
 0x29f   : > { %v4850_v36 = vrot.slane %v4849_v50, 4  ;;  %v4865_v18 = vsel %vm14534_vm9, %v4860_v47, %v4864_v38  ;;  %v5263_v27 = vrot.slane %v5261_v40, 4  ;;  %v5264_v22 = vrot.slane %v15413_v11, 5 }
 0x2a0   : > { %v4841_v9 = vsel %vm14534_vm9, %v4836_v0, %v4840_v13  ;;  %v11610_v25 = vrot.slane %v5190_v37, 9  ;;  %v5270_v12 = vrot.slane %v5268_v49, 4  ;;  %v5271_v43 = vrot.slane %v15420_v7, 5  ;;  %v5191_v0 = vld [vmem:[#allocation2 + $0x3c] sm:$0xe] }
 0x2a1   : > { %v11598_v4 = vcombine.low %v4831_v46, %v4841_v9  ;;  %v4855_v32 = vsel %vm14534_vm9, %v4850_v36, %v4854_v8  ;;  %v5262_v8 = vsel %vm14944_vm14, %v11609_v41, %v5261_v40  ;;  %v5265_v52 = vsel %vm14944_vm14, %v5263_v27, %v5264_v22  ;;  %v5192_v7 = vld [vmem:[#allocation2 + $0x48] sm:$0xe] }
 0x2a2   : > { %v5275_v56 = vrot.slane %v15417_v10, 5  ;;  %v5269_v2 = vsel %vm14944_vm14, %v11610_v25, %v5268_v49  ;;  %v5272_v11 = vsel %vm14944_vm14, %v5270_v12, %v5271_v43  ;;  %v5282_v13 = vrot.slane %v15426_v19, 5 }
 0x2a3   : > { %v11625_v29 = vcombine.low %v5262_v8, %v5265_v52  ;;  %v11626_v51 = vcombine.low %v5269_v2, %v5272_v11  ;;  %v11611_v50 = vrot.slane %v5191_v0, 9  ;;  %v5278_v61 = vrot.slane %v15435_v15, 5  ;;  %v5197_v52 = vld [vmem:[#allocation2 + $0x84] sm:$0xe] }
 0x2a4   : > { %12822 = vmatmul.mubr.bf16.gmra.mrb[20].mxu0 %v11595_v60  ;;  %v11599_v60 = vcombine.low %v4855_v32, %v4865_v18  ;;  %v5277_v5 = vrot.slane %v5275_v56, 4  ;;  %v11612_v46 = vrot.slane %v5192_v7, 9  ;;  %v5284_v9 = vrot.slane %v5282_v13, 4 }
 0x2a5   : > { %12825 = vmatprep.mubr.bf16.mxu0 %v11596_v3  ;;  %v11624_v3 = vcombine.low %v5255_v14, %v5258_v30  ;;  %v5285_v10 = vrot.slane %v15457_v35, 5  ;;  %v5276_v62 = vsel %vm14944_vm14, %v11611_v50, %v5275_v56  ;;  %v5289_v19 = vrot.slane %v15453_v63, 5  ;;  %v5194_v35 = vld [vmem:[#allocation2 + $0x60] sm:$0xe] }
 0x2a6   : > { %v5279_v53 = vsel %vm14944_vm14, %v5277_v5, %v5278_v61  ;;  %v5296_v36 = vrot.slane %v15473_v57, 5  ;;  %v5292_v1 = vrot.slane %v15482_v23, 5  ;;  %v11614_v32 = vrot.slane %v5194_v35, 9  ;;  %v17552_v35 = vld [vmem:[#allocation18_spill] sm:$0xff] }
 0x2a7   : > { %v5286_v15 = vsel %vm14944_vm14, %v5284_v9, %v5285_v10  ;;  %v11627_v47 = vcombine.low %v5276_v62, %v5279_v53  ;;  %v5291_v28 = vrot.slane %v5289_v19, 4  ;;  %v5299_v63 = vrot.slane %v15520_v44, 5  ;;  %v5196_v44 = vld [vmem:[#allocation2 + $0x78] sm:$0xe] }
 0x2a8   : > { %v5298_v18 = vrot.slane %v5296_v36, 4  ;;  %v5303_v57 = vrot.slane %v15517_v16, 5  ;;  %v5297_v30 = vsel %vm14944_vm14, %v11614_v32, %v5296_v36  ;;  %v5310_v49 = vrot.slane %v15532_v55, 5  ;;  %v5201_v32 = vld [vmem:[#allocation2 + $0xb4] sm:$0xe] }
 0x2a9   : > { %v5293_v14 = vsel %vm14944_vm14, %v5291_v28, %v5292_v1  ;;  %v5306_v27 = vrot.slane %v15546_v31, 5  ;;  %v11616_v22 = vrot.slane %v5196_v44, 9  ;;  %v5313_v16 = vrot.slane %v15561_v24, 5  ;;  %v5198_v24 = vld [vmem:[#allocation2 + $0x90] sm:$0xe] }
 0x2aa   : > { %v5300_v23 = vsel %vm14944_vm14, %v5298_v18, %v5299_v63  ;;  %v5305_v41 = vrot.slane %v5303_v57, 4  ;;  %v5312_v25 = vrot.slane %v5310_v49, 4  ;;  %v5317_v55 = vrot.slane %v15550_v59, 5  ;;  %v5202_v63 = vld [vmem:[#allocation2 + $0xc0] sm:$0xe] }
 0x2ab   : > { %v5311_v8 = vsel %vm14944_vm14, %v11616_v22, %v5310_v49  ;;  %v5324_v56 = vrot.slane %v15577_v33, 5  ;;  %v11617_v0 = vrot.slane %v5197_v52, 9  ;;  %v5320_v7 = vrot.slane %v15583_v6, 5  ;;  %v6284_v52 = vld [vmem:[#allocation2] sm:$0xf] }
 0x2ac   : > { %12826 = vmatmul.mubr.bf16.gmra.mrb[24].mxu0 %v11597_v54  ;;  %v5283_v54 = vsel %vm14944_vm14, %v11612_v46, %v5282_v13  ;;  %v5307_v43 = vsel %vm14944_vm14, %v5305_v41, %v5306_v27  ;;  %v5314_v31 = vsel %vm14944_vm14, %v5312_v25, %v5313_v16  ;;  %v5319_v13 = vrot.slane %v5317_v55, 4  ;;  %v5199_v46 = vld [vmem:[#allocation2 + $0x9c] sm:$0xe]  ;;  %v17554_v27 = vld [vmem:[#allocation15_spill] sm:$0xff]  ;;  %v14010_v16 = vld [vmem:[#allocation6 + $0x48] sm:$0xff]  }
 0x2ad   : > { %12829 = vmatprep.mubr.bf16.mxu0 %v11598_v4  ;;  %v5193_v4 = vld [vmem:[#allocation2 + $0x54] sm:$0xe]  ;;  %v11628_v38 = vcombine.low %v5283_v54, %v5286_v15  ;;  %v11632_v11 = vcombine.low %v5311_v8, %v5314_v31  ;;  %v5327_v59 = vrot.slane %v15593_v17, 5  ;;  %v5318_v50 = vsel %vm14944_vm14, %v11617_v0, %v5317_v55  ;;  %v5200_v17 = vld [vmem:[#allocation2 + $0xa8] sm:$0xe]  ;;  %v17551_v54 = vld [vmem:[#allocation17_spill] sm:$0xff] }
 0x2ae   : > { %v11613_v26 = vrot.slane %v5193_v4, 9  ;;  %v5321_v5 = vsel %vm14944_vm14, %v5319_v13, %v5320_v7  ;;  %v5331_v33 = vrot.slane %v15603_v45, 5  ;;  %v5338_v9 = vrot.slane %v15607_v58, 5  ;;  %v17553_v58 = vld [vmem:[#allocation19_spill] sm:$0xff]  ;;  %v14009_v25 = vld [vmem:[#allocation6 + $0x40] sm:$0xff]   ;;  %v14014_v8 = vld [vmem:[#allocation6 + $0x68] sm:$0xff]  }
 0x2af   : > { %v11633_v10 = vcombine.low %v5318_v50, %v5321_v5  ;;  %v11619_v53 = vrot.slane %v5199_v46, 9  ;;  %v5334_v15 = vrot.slane %v17551_v54, 5  ;;  %v11620_v4 = vrot.slane %v5200_v17, 9  ;;  %12881 = vmatprep.subr.bf16.mxu1 %v14009_v25  ;;  %v14013_v55 = vld [vmem:[#allocation6 + $0x60] sm:$0xff]   ;;  %v14015_v31 = vld [vmem:[#allocation6 + $0x70] sm:$0xff]   ;;  %v14016_v13 = vld [vmem:[#allocation6 + $0x78] sm:$0xff]  }
 0x2b0   : > { %v5290_v40 = vsel %vm14944_vm14, %v11613_v26, %v5289_v19  ;;  %v5333_v19 = vrot.slane %v5331_v33, 4  ;;  %v5340_v36 = vrot.slane %v5338_v9, 4  ;;  %v5341_v45 = vrot.slane %v17552_v35, 5  ;;  %12882 = vmatpush3.bf16.msra.mxu1 %v14009_v25 }
 0x2b1   : > { %v11629_v37 = vcombine.low %v5290_v40, %v5293_v14  ;;  %v5345_v26 = vrot.slane %v17553_v58, 5  ;;  %v5339_v28 = vsel %vm14944_vm14, %v11620_v4, %v5338_v9  ;;  %v5352_v18 = vrot.slane %v15638_v21, 5  ;;  %12883 = vmatprep.subr.bf16.mxu1 %v14010_v16 }
 0x2b2   : > { %v5342_v1 = vsel %vm14944_vm14, %v5340_v36, %v5341_v45  ;;  %v5355_v44 = vrot.slane %v15658_v20, 5  ;;  %v17555_v20 = vld [vmem:[#allocation16_spill] sm:$0xff] }
 0x2b3   : > { %v11636_v14 = vcombine.low %v5339_v28, %v5342_v1  ;;  %v5354_v49 = vrot.slane %v5352_v18, 4  ;;  %v17556_v22 = vcombine.low %v17554_v27, %v17555_v20 }
 0x2b4   : > { %12830 = vmatmul.mubr.bf16.gmra.mrb[28].mxu0 %v11599_v60  ;;  %v11630_v60 = vcombine.low %v5297_v30, %v5300_v23  ;;  %v5347_v30 = vrot.slane %v5345_v26, 4  ;;  %v5348_v23 = vrot.slane %v15650_v39, 5  ;;  %12884 = vmatpush3.bf16.msra.mxu1 %v14010_v16 }
 0x2b5   : > { %12849 = vmatprep.mubr.bf16.mxu0 %v11624_v3  ;;  %v11615_v3 = vrot.slane %v5195_v42, 9  ;;  %v11622_v42 = vrot.slane %v5202_v63, 9 }
 0x2b7   : > { %v5304_v12 = vsel %vm14944_vm14, %v11615_v3, %v5303_v57  ;;  %v11621_v57 = vrot.slane %v5201_v32, 9  ;;  %v5353_v21 = vsel %vm14944_vm14, %v11622_v42, %v5352_v18  ;;  %v5356_v3 = vsel %vm14944_vm14, %v5354_v49, %v5355_v44 }
 0x2b8   : > { %v11631_v2 = vcombine.low %v5304_v12, %v5307_v43  ;;  %v11638_v39 = vcombine.low %v5353_v21, %v5356_v3  ;;  %v14011_v12 = vld [vmem:[#allocation6 + $0x50] sm:$0xff]   ;;  %v14012_v43 = vld [vmem:[#allocation6 + $0x58] sm:$0xff]   ;;  %v6179_v3 = vld [vmem:[#allocation2 + $0x18] sm:$0xf] }
 0x2b9   : > { %12885 = vmatprep.subr.bf16.mxu1 %v14011_v12 }
 0x2ba   : > { %12886 = vmatpush3.bf16.msra.mxu1 %v14011_v12 }
 0x2bb   : > { %12887 = vmatprep.subr.bf16.mxu1 %v14012_v43 }
 0x2bc   : > { %12850 = vmatmul.mubr.bf16.vlgmr.msra.gmra.mrb[0].mxu0 %v11625_v29  ;;  %v11618_v29 = vrot.slane %v5198_v24, 9  ;;  %v6349_v24 = vshrl.u32 %v6284_v52, 16 }
 0x2bd   : > { %12853 = vmatprep.mubr.bf16.mxu0 %v11626_v51  ;;  %v5326_v51 = vrot.slane %v5324_v56, 4 }
 0x2be   : > { %v5325_v61 = vsel %vm14944_vm14, %v11618_v29, %v5324_v56  ;;  %12888 = vmatpush3.bf16.msra.mxu1 %v14012_v43  ;;  %v6285_v56 = vld [vmem:[#allocation2 + $0x4] sm:$0xf]  ;;  %v6351_v7 = vrot.slane %v6349_v24, 4 }
 0x2bf   : > { %v5328_v6 = vsel %vm14944_vm14, %v5326_v51, %v5327_v59  ;;  %12889 = vmatprep.subr.bf16.mxu1 %v14013_v55  ;;  %v6362_v0 = vshrl.u32 %v6285_v56, 16  ;;  %v6332_v59 = vld [vmem:[#allocation2 + $0x8] sm:$0x1] }
 0x2c0   : > { %v11634_v62 = vcombine.low %v5325_v61, %v5328_v6 }
 0x2c1   : > { %v6364_v50 = vrot.slane %v6362_v0, 4 }
 0x2c2   : > { %12890 = vmatpush3.bf16.msra.mxu1 %v14013_v55 }
 0x2c3   : > { %12891 = vmatprep.subr.bf16.mxu1 %v14014_v8 }
 0x2c4   : > { %12854 = vmatmul.mubr.bf16.gmra.mrb[4].mxu0 %v11627_v47  ;;  %v5332_v47 = vsel %vm14944_vm14, %v11619_v53, %v5331_v33  ;;  %v6368_v33 = vshll.u32 %v6332_v59, 16  ;;  %v15778_v53 = vld [vmem:[#allocation6] sm:$0xff]  }
 0x2c5   : > { %12857 = vmatprep.mubr.bf16.mxu0 %v11628_v38  ;;  %v5335_v38 = vsel %vm14944_vm14, %v5333_v19, %v5334_v15  ;;  %v15784_v19 = vld [vmem:[%s17435_s2] ss:$0 sm:$0xff] }
 0x2c6   : > { %v11635_v40 = vcombine.low %v5332_v47, %v5335_v38  ;;  %12892 = vmatpush3.bf16.msra.mxu1 %v14014_v8  ;;  %v6370_v46 = vrot.slane %v6368_v33, 5 }
 0x2c7   : > { %12893 = vmatprep.subr.bf16.mxu1 %v14015_v31 }
 0x2ca   : > { %12894 = vmatpush3.bf16.msra.mxu1 %v14015_v31 }
 0x2cb   : > { %12895 = vmatprep.subr.bf16.mxu1 %v14016_v13 }
 0x2cc   : > { %12858 = vmatmul.mubr.bf16.gmra.mrb[8].mxu0 %v11629_v37  ;;  %v5346_v37 = vsel %vm14944_vm14, %v11621_v57, %v5345_v26 }
 0x2cd   : > { %12861 = vmatprep.mubr.bf16.mxu0 %v11630_v60  ;;  %v5349_v60 = vsel %vm14944_vm14, %v5347_v30, %v5348_v23 }
 0x2ce   : > { %v11637_v41 = vcombine.low %v5346_v37, %v5349_v60  ;;  %12896 = vmatpush3.bf16.msra.mxu1 %v14016_v13 }
 0x2cf   : > { %12929 = vmatprep.subr.bf16.mxu1 %v15778_v53 }
 0x2d4   : > { %12862 = vmatmul.mubr.bf16.gmra.mrb[12].mxu0 %v11631_v2  ;;  %v6352_v2 = vshll.u32 %v6284_v52, 16  ;;  %v6183_v52 = vld [vmem:[#allocation2 + $0x20] sm:$0x1] }
 0x2d5   : > { %12865 = vmatprep.mubr.bf16.mxu0 %v11632_v11  ;;  %v6358_v11 = vshll.u32 %v6285_v56, 16 }
 0x2d6   : > { %v6354_v29 = vrot.slane %v6352_v2, 5 }
 0x2d7   : > { %v6360_v51 = vrot.slane %v6358_v11, 5 }
 0x2d8   : > { %v6355_v5 = vor.u32 %v6354_v29, %v6351_v7  ;;  %v6176_v7 = vld [vmem:[#allocation2 + $0x14] sm:$0x1] }
 0x2d9   : > { %v6365_v61 = vor.u32 %v6364_v50, %v6360_v51 }
 0x2da   : > { %v6356_v6 = vrot.slane %v6355_v5, 4 }
 0x2db   : > { %v6366_v9 = vrot.slane %v6365_v61, 4 }
 0x2dc   : > { %12866 = vmatmul.mubr.bf16.gmra.mrb[16].mxu0 %v11633_v10  ;;  %v6361_v17 = vsel %vm14534_vm9, %v6356_v6, %v6360_v51  ;;  %v14161_v51 = vld [vmem:[#allocation2 + $0xc] sm:$0xf] }
 0x2dd   : > { %12869 = vmatprep.mubr.bf16.mxu0 %v11634_v62  ;;  %v6371_v10 = vsel %vm14534_vm9, %v6366_v9, %v6370_v46 }
 0x2de   : > { %v11681_v62 = vcombine.low %v6361_v17, %v6371_v10 }
 0x2e0   : > { %12897 = vmatprep.mubr.bf16.mxu1 %v11681_v62 }
 0x2e4   : > { %12870 = vmatmul.mubr.bf16.gmra.mrb[20].mxu0 %v11635_v40 }
 0x2e5   : > { %12873 = vmatprep.mubr.bf16.mxu0 %v11636_v14 }
 0x2ec   : > { %12874 = vmatmul.mubr.bf16.gmra.mrb[24].mxu0 %v11637_v41 }
 0x2ed   : > { %12877 = vmatprep.mubr.bf16.mxu0 %v11638_v39 }
 0x2f4   : > { %12878 = vmatmul.mubr.bf16.gmra.mrb[28].mxu0 %v17556_v22 }
 0x38f   : > { %v12851_v54 = vpop.f32.mrb[0].mxu0 }
 0x390   : > { %v5695_v15 = vadd.f32 %v12851_v54, %v15784_v19  ;;  %v5527_v4 = vpop.f32.mrb[1].mxu0 }
 0x391   : > { %v5693_v36 = vadd.f32 %v15784_v19, %v5527_v4  ;;  %v12852_v35 = vpop.f32.mrb[2].mxu0 }
 0x392   : > { %v5727_v45 = vmax.f32 %v5695_v15, 0.0  ;;  %v5696_v47 = vadd.f32 %v12852_v35, %v15784_v19  ;;  %v5530_v38 = vpop.f32.mrb[3].mxu0 }
 0x393   : > { %v5725_v58 = vmax.f32 %v5693_v36, 0.0  ;;  %v5694_v26 = vadd.f32 %v15784_v19, %v5530_v38 }
 0x394   : > { %v11986_v28 = vpack.c.bf16 %v5727_v45, %v5727_v45  ;;  %v5728_v1 = vmax.f32 %v5696_v47, 0.0 }
 0x395   : > { %v11984_v32 = vpack.c.bf16 %v5725_v58, %v5725_v58  ;;  %v5726_v18 = vmax.f32 %v5694_v26, 0.0  ;;  %v6193_v58 = vld [vmem:[#allocation2 + $0x30] sm:$0xf] }
 0x396   : > { %v5871_v63 = vshrl.u32 %v11986_v28, 16  ;;  %v11987_v40 = vpack.c.bf16 %v5728_v1, %v5728_v1  ;;  %v5874_v14 = vshll.u32 %v11986_v28, 16 }
 0x397   : > { %v5854_v57 = vshrl.u32 %v11984_v32, 16  ;;  %v5857_v30 = vshll.u32 %v11984_v32, 16  ;;  %v11985_v23 = vpack.c.bf16 %v5726_v18, %v5726_v18  ;;  %v12855_v42 = vpop.f32.mrb[4].mxu0 }
 0x398   : > { %v5873_v49 = vrot.slane %v5871_v63, 7  ;;  %v5879_v44 = vshrl.u32 %v11987_v40, 16  ;;  %v5882_v37 = vshll.u32 %v11987_v40, 16  ;;  %v5699_v60 = vadd.f32 %v12855_v42, %v15784_v19  ;;  %v5543_v21 = vpop.f32.mrb[5].mxu0  ;;  %v6186_v40 = vld [vmem:[#allocation2 + $0x24] sm:$0xf] }
 0x399   : > { %v5856_v41 = vrot.slane %v5854_v57, 7  ;;  %v5862_v39 = vshrl.u32 %v11985_v23, 16  ;;  %v5865_v27 = vshll.u32 %v11985_v23, 16  ;;  %v5697_v20 = vadd.f32 %v15784_v19, %v5543_v21  ;;  %v12856_v22 = vpop.f32.mrb[6].mxu0 }
 0x39a   : > { %v5876_v25 = vor.u32 %v5874_v14, %v5873_v49  ;;  %v5877_v16 = vrot.slane %v5873_v49, 4  ;;  %v5881_v12 = vrot.slane %v5879_v44, 7  ;;  %v5731_v43 = vmax.f32 %v5699_v60, 0.0  ;;  %v5546_v55 = vpop.f32.mrb[7].mxu0 }
 0x39b   : > { %v5859_v8 = vor.u32 %v5857_v30, %v5856_v41  ;;  %v5860_v31 = vrot.slane %v5856_v41, 4  ;;  %v5864_v56 = vrot.slane %v5862_v39, 7  ;;  %v5729_v24 = vmax.f32 %v5697_v20, 0.0 }
 0x39c   : > { %v6180_v11 = vsel %vm14556_vm11, %v5876_v25, %v6179_v3  ;;  %v5884_v0 = vor.u32 %v5882_v37, %v5881_v12  ;;  %v5886_v13 = vrot.slane %v5881_v12, 4  ;;  %v11990_v29 = vpack.c.bf16 %v5731_v43, %v5731_v43  ;;  %v6197_v43 = vld [vmem:[#allocation2 + $0x38] sm:$0x1] }
 0x39d   : > { %6181 = vst [vmem:[#allocation2 + $0x18] sm:$0xf] %v6180_v11  ;;  %v6173_v59 = vsel %vm14556_vm11, %v5859_v8, %v14161_v51  ;;  %v5867_v50 = vor.u32 %v5865_v27, %v5864_v56  ;;  %v5869_v5 = vrot.slane %v5864_v56, 4  ;;  %v11988_v33 = vpack.c.bf16 %v5729_v24, %v5729_v24 }
 0x39e   : > { %6174 = vst [vmem:[#allocation2 + $0xc] sm:$0xf] %v6173_v59  ;;  %v5885_v6 = vsel %vm14541_vm10, %v5877_v16, %v5884_v0  ;;  %v6184_v9 = vsel %vm14515_vm5, %v5886_v13, %v6183_v52  ;;  %v5905_v17 = vshrl.u32 %v11990_v29, 16  ;;  %v5908_v54 = vshll.u32 %v11990_v29, 16  ;;  %v6207_v59 = vld [vmem:[#allocation2 + $0x48] sm:$0xf] }
 0x39f   : > { %6182 = vst [vmem:[#allocation2 + $0x1c] sm:$0xf] %v5885_v6  ;;  %6185 = vst [vmem:[#allocation2 + $0x20] sm:$0x1] %v6184_v9  ;;  %v5868_v10 = vsel %vm14541_vm10, %v5860_v31, %v5867_v50  ;;  %v6177_v62 = vsel %vm14515_vm5, %v5869_v5, %v6176_v7  ;;  %v5888_v15 = vshrl.u32 %v11988_v33, 16  ;;  %v12859_v4 = vpop.f32.mrb[8].mxu0  ;;  %v5700_v35 = vadd.f32 %v12856_v22, %v15784_v19 }
 0x3a0   : > { %6175 = vst [vmem:[#allocation2 + $0x10] sm:$0xf] %v5868_v10  ;;  %6178 = vst [vmem:[#allocation2 + $0x14] sm:$0x1] %v6177_v62  ;;  %v15804_v36 = vrot.slane %v5905_v17, 7  ;;  %v5698_v45 = vadd.f32 %v15784_v19, %v5546_v55  ;;  %v5703_v47 = vadd.f32 %v12859_v4, %v15784_v19  ;;  %v5559_v38 = vpop.f32.mrb[9].mxu0 }
 0x3a1   : > { %v5890_v26 = vrot.slane %v5888_v15, 7  ;;  %v5891_v28 = vshll.u32 %v11988_v33, 16  ;;  %v5701_v1 = vadd.f32 %v15784_v19, %v5559_v38  ;;  %v12860_v32 = vpop.f32.mrb[10].mxu0  ;;  %v5732_v14 = vmax.f32 %v5700_v35, 0.0  ;;  %v6190_v55 = vld [vmem:[#allocation2 + $0x2c] sm:$0x1] }
 0x3a2   : > { %v5910_v18 = vor.u32 %v5908_v54, %v15804_v36  ;;  %v5911_v63 = vrot.slane %v15804_v36, 4  ;;  %v5730_v57 = vmax.f32 %v5698_v45, 0.0  ;;  %v5562_v30 = vpop.f32.mrb[11].mxu0  ;;  %v5735_v49 = vmax.f32 %v5703_v47, 0.0  ;;  %v6200_v54 = vld [vmem:[#allocation2 + $0x3c] sm:$0xf] }
 0x3a3   : > { %v5893_v23 = vor.u32 %v5891_v28, %v5890_v26  ;;  %v5894_v42 = vrot.slane %v5890_v26, 4  ;;  %v5733_v44 = vmax.f32 %v5701_v1, 0.0  ;;  %v11991_v60 = vpack.c.bf16 %v5732_v14, %v5732_v14 }
 0x3a4   : > { %v6194_v37 = vsel %vm14556_vm11, %v5910_v18, %v6193_v58  ;;  %v11989_v21 = vpack.c.bf16 %v5730_v57, %v5730_v57  ;;  %v5704_v3 = vadd.f32 %v12860_v32, %v15784_v19  ;;  %v11994_v39 = vpack.c.bf16 %v5735_v49, %v5735_v49 }
 0x3a5   : > { %6195 = vst [vmem:[#allocation2 + $0x30] sm:$0xf] %v6194_v37  ;;  %v6187_v41 = vsel %vm14556_vm11, %v5893_v23, %v6186_v40  ;;  %v11992_v27 = vpack.c.bf16 %v5733_v44, %v5733_v44  ;;  %v5702_v20 = vadd.f32 %v15784_v19, %v5562_v30  ;;  %v5913_v22 = vshrl.u32 %v11991_v60, 16  ;;  %v6211_v37 = vld [vmem:[#allocation2 + $0x50] sm:$0x1] }
 0x3a6   : > { %6188 = vst [vmem:[#allocation2 + $0x24] sm:$0xf] %v6187_v41  ;;  %v5916_v25 = vshll.u32 %v11991_v60, 16  ;;  %v5896_v16 = vshrl.u32 %v11989_v21, 16  ;;  %v5899_v12 = vshll.u32 %v11989_v21, 16  ;;  %v5939_v8 = vshrl.u32 %v11994_v39, 16 }
 0x3a7   : > { %v5942_v31 = vshll.u32 %v11994_v39, 16  ;;  %v5922_v52 = vshrl.u32 %v11992_v27, 16  ;;  %v5925_v56 = vshll.u32 %v11992_v27, 16  ;;  %v12863_v24 = vpop.f32.mrb[12].mxu0  ;;  %v5915_v11 = vrot.slane %v5913_v22, 7 }
 0x3a8   : > { %v5898_v0 = vrot.slane %v5896_v16, 7  ;;  %v5736_v13 = vmax.f32 %v5704_v3, 0.0  ;;  %v5734_v7 = vmax.f32 %v5702_v20, 0.0  ;;  %v5575_v29 = vpop.f32.mrb[13].mxu0  ;;  %v15818_v51 = vrot.slane %v5939_v8, 7 }
 0x3a9   : > { %v15820_v50 = vrot.slane %v5922_v52, 7  ;;  %v5707_v5 = vadd.f32 %v12863_v24, %v15784_v19  ;;  %v5705_v33 = vadd.f32 %v15784_v19, %v5575_v29  ;;  %v12864_v6 = vpop.f32.mrb[14].mxu0  ;;  %v5918_v9 = vor.u32 %v5916_v25, %v5915_v11  ;;  %v6204_v22 = vld [vmem:[#allocation2 + $0x44] sm:$0x1] }
 0x3aa   : > { %v5920_v17 = vrot.slane %v5915_v11, 4  ;;  %v5901_v10 = vor.u32 %v5899_v12, %v5898_v0  ;;  %v5903_v62 = vrot.slane %v5898_v0, 4  ;;  %v5578_v15 = vpop.f32.mrb[15].mxu0  ;;  %v5944_v4 = vor.u32 %v5942_v31, %v15818_v51 }
 0x3ab   : > { %v5945_v36 = vrot.slane %v15818_v51, 4  ;;  %v5927_v35 = vor.u32 %v5925_v56, %v15820_v50  ;;  %v5928_v45 = vrot.slane %v15820_v50, 4  ;;  %v5919_v47 = vsel %vm14541_vm10, %v5911_v63, %v5918_v9  ;;  %v6214_v9 = vld [vmem:[#allocation2 + $0x54] sm:$0xf] }
 0x3ac   : > { %v6198_v38 = vsel %vm14515_vm5, %v5920_v17, %v6197_v43  ;;  %v5902_v58 = vsel %vm14541_vm10, %v5894_v42, %v5901_v10  ;;  %v6191_v26 = vsel %vm14515_vm5, %v5903_v62, %v6190_v55  ;;  %6196 = vst [vmem:[#allocation2 + $0x34] sm:$0xf] %v5919_v47  ;;  %v6208_v28 = vsel %vm14556_vm11, %v5944_v4, %v6207_v59 }
 0x3ad   : > { %6199 = vst [vmem:[#allocation2 + $0x38] sm:$0x1] %v6198_v38  ;;  %6189 = vst [vmem:[#allocation2 + $0x28] sm:$0xf] %v5902_v58  ;;  %v6201_v1 = vsel %vm14556_vm11, %v5927_v35, %v6200_v54  ;;  %v11995_v32 = vpack.c.bf16 %v5736_v13, %v5736_v13  ;;  %v11993_v18 = vpack.c.bf16 %v5734_v7, %v5734_v7  ;;  %v5739_v63 = vmax.f32 %v5707_v5, 0.0 }
 0x3ae   : > { %6192 = vst [vmem:[#allocation2 + $0x2c] sm:$0x1] %v6191_v26  ;;  %6209 = vst [vmem:[#allocation2 + $0x48] sm:$0xf] %v6208_v28  ;;  %v5737_v40 = vmax.f32 %v5705_v33, 0.0  ;;  %v5708_v14 = vadd.f32 %v12864_v6, %v15784_v19  ;;  %v5706_v57 = vadd.f32 %v15784_v19, %v5578_v15 }
 0x3af   : > { %6202 = vst [vmem:[#allocation2 + $0x3c] sm:$0xf] %v6201_v1  ;;  %v5947_v30 = vshrl.u32 %v11995_v32, 16  ;;  %v5950_v23 = vshll.u32 %v11995_v32, 16  ;;  %v5930_v42 = vshrl.u32 %v11993_v18, 16  ;;  %v5933_v49 = vshll.u32 %v11993_v18, 16 }
 0x3b0   : > { %v12867_v44 = vpop.f32.mrb[16].mxu0  ;;  %v11998_v60 = vpack.c.bf16 %v5739_v63, %v5739_v63  ;;  %v11996_v21 = vpack.c.bf16 %v5737_v40, %v5737_v40  ;;  %v5740_v3 = vmax.f32 %v5708_v14, 0.0  ;;  %v5738_v41 = vmax.f32 %v5706_v57, 0.0  ;;  %v6221_v6 = vld [vmem:[#allocation2 + $0x60] sm:$0xf] }
 0x3b1   : > { %v5591_v39 = vpop.f32.mrb[17].mxu0  ;;  %v5949_v27 = vrot.slane %v5947_v30, 7  ;;  %v5932_v20 = vrot.slane %v5930_v42, 7  ;;  %v5711_v25 = vadd.f32 %v12867_v44, %v15784_v19  ;;  %v6286_v15 = vld [vmem:[#allocation2 + $0xc] sm:$0xf] }
 0x3b2   : > { %v5709_v16 = vadd.f32 %v15784_v19, %v5591_v39  ;;  %v12868_v12 = vpop.f32.mrb[18].mxu0  ;;  %v5973_v43 = vshrl.u32 %v11998_v60, 16  ;;  %v5976_v55 = vshll.u32 %v11998_v60, 16  ;;  %v5956_v8 = vshrl.u32 %v11996_v21, 16  ;;  %v6225_v26 = vld [vmem:[#allocation2 + $0x68] sm:$0x1] }
 0x3b3   : > { %v5959_v31 = vshll.u32 %v11996_v21, 16  ;;  %v5594_v52 = vpop.f32.mrb[19].mxu0  ;;  %v5952_v56 = vor.u32 %v5950_v23, %v5949_v27  ;;  %v5954_v24 = vrot.slane %v5949_v27, 4  ;;  %v5935_v11 = vor.u32 %v5933_v49, %v5932_v20  ;;  %v6218_v40 = vld [vmem:[#allocation2 + $0x5c] sm:$0x1] }
 0x3b4   : > { %v5937_v0 = vrot.slane %v5932_v20, 4  ;;  %v5975_v13 = vrot.slane %v5973_v43, 7  ;;  %v5958_v7 = vrot.slane %v5956_v8, 7  ;;  %v11999_v29 = vpack.c.bf16 %v5740_v3, %v5740_v3  ;;  %v6287_v49 = vld [vmem:[#allocation2 + $0x10] sm:$0xf] }
 0x3b5   : > { %v11997_v51 = vpack.c.bf16 %v5738_v41, %v5738_v41  ;;  %v5953_v59 = vsel %vm14541_vm10, %v5945_v36, %v5952_v56  ;;  %v6212_v50 = vsel %vm14515_vm5, %v5954_v24, %v6211_v37  ;;  %v5936_v5 = vsel %vm14541_vm10, %v5928_v45, %v5935_v11  ;;  %v6235_v8 = vld [vmem:[#allocation2 + $0x78] sm:$0xf] }
 0x3b6   : > { %v6205_v33 = vsel %vm14515_vm5, %v5937_v0, %v6204_v22  ;;  %6210 = vst [vmem:[#allocation2 + $0x4c] sm:$0xf] %v5953_v59  ;;  %6213 = vst [vmem:[#allocation2 + $0x50] sm:$0x1] %v6212_v50  ;;  %v5978_v17 = vor.u32 %v5976_v55, %v5975_v13  ;;  %v5979_v10 = vrot.slane %v5975_v13, 4  ;;  %v5961_v62 = vor.u32 %v5959_v31, %v5958_v7 }
 0x3b7   : > { %6203 = vst [vmem:[#allocation2 + $0x40] sm:$0xf] %v5936_v5  ;;  %6206 = vst [vmem:[#allocation2 + $0x44] sm:$0x1] %v6205_v33  ;;  %v5962_v54 = vrot.slane %v5958_v7, 4  ;;  %v5981_v4 = vshrl.u32 %v11999_v29, 16  ;;  %v5712_v14 = vadd.f32 %v12868_v12, %v15784_v19  ;;  %v5710_v57 = vadd.f32 %v15784_v19, %v5594_v52 }
 0x3b8   : > { %v5984_v36 = vshll.u32 %v11999_v29, 16  ;;  %v5964_v35 = vshrl.u32 %v11997_v51, 16  ;;  %v5967_v47 = vshll.u32 %v11997_v51, 16  ;;  %v15852_v38 = vpop.f32.mrb[20].mxu0  ;;  %v6222_v45 = vsel %vm14556_vm11, %v5978_v17, %v6221_v6  ;;  %v6228_v31 = vld [vmem:[#allocation2 + $0x6c] sm:$0xf] }
 0x3b9   : > { %v6215_v58 = vsel %vm14556_vm11, %v5961_v62, %v6214_v9  ;;  %v5743_v28 = vmax.f32 %v5711_v25, 0.0  ;;  %v5741_v1 = vmax.f32 %v5709_v16, 0.0  ;;  %v15858_v32 = vpop.f32.mrb[21].mxu0  ;;  %6223 = vst [vmem:[#allocation2 + $0x60] sm:$0xf] %v6222_v45  ;;  %v5983_v18 = vrot.slane %v5981_v4, 7 }
 0x3ba   : > { %6216 = vst [vmem:[#allocation2 + $0x54] sm:$0xf] %v6215_v58  ;;  %v5966_v63 = vrot.slane %v5964_v35, 7  ;;  %v15862_v30 = vpop.f32.mrb[22].mxu0  ;;  %v6373_v44 = vshrl.u32 %v6286_v15, 16  ;;  %v6376_v37 = vshll.u32 %v6286_v15, 16 }
 0x3bb   : > { %v12002_v23 = vpack.c.bf16 %v5743_v28, %v5743_v28  ;;  %v12000_v42 = vpack.c.bf16 %v5741_v1, %v5741_v1  ;;  %v15864_v60 = vpop.f32.mrb[23].mxu0  ;;  %v5986_v21 = vor.u32 %v5984_v36, %v5983_v18  ;;  %v5988_v3 = vrot.slane %v5983_v18, 4  ;;  %v6333_v0 = vld [vmem:[#allocation2 + $0x14] sm:$0x1]  ;;  %v6289_v45 = vld [vmem:[#allocation2 + $0x1c] sm:$0xf] }
 0x3bc   : > { %v5969_v41 = vor.u32 %v5967_v47, %v5966_v63  ;;  %v5971_v39 = vrot.slane %v5966_v63, 4  ;;  %v5744_v24 = vmax.f32 %v5712_v14, 0.0  ;;  %v5742_v11 = vmax.f32 %v5710_v57, 0.0 }
 0x3bd   : > { %v6007_v27 = vshrl.u32 %v12002_v23, 16  ;;  %v6010_v20 = vshll.u32 %v12002_v23, 16  ;;  %v5990_v22 = vshrl.u32 %v12000_v42, 16  ;;  %v5993_v25 = vshll.u32 %v12000_v42, 16  ;;  %v6239_v42 = vld [vmem:[#allocation2 + $0x80] sm:$0x1] }
 0x3be   : > { %v5987_v16 = vsel %vm14541_vm10, %v5979_v10, %v5986_v21  ;;  %v6226_v12 = vsel %vm14515_vm5, %v5988_v3, %v6225_v26  ;;  %v5970_v43 = vsel %vm14541_vm10, %v5962_v54, %v5969_v41  ;;  %v6219_v55 = vsel %vm14515_vm5, %v5971_v39, %v6218_v40  ;;  %v6288_v54 = vld [vmem:[#allocation2 + $0x18] sm:$0xf]  ;;  %v6232_v21 = vld [vmem:[#allocation2 + $0x74] sm:$0x1] }
 0x3bf   : > { %6224 = vst [vmem:[#allocation2 + $0x64] sm:$0xf] %v5987_v16  ;;  %6227 = vst [vmem:[#allocation2 + $0x68] sm:$0x1] %v6226_v12  ;;  %v6009_v52 = vrot.slane %v6007_v27, 7  ;;  %v5992_v56 = vrot.slane %v5990_v22, 7  ;;  %v12003_v9 = vpack.c.bf16 %v5744_v24, %v5744_v24  ;;  %v12001_v17 = vpack.c.bf16 %v5742_v11, %v5742_v11 }
 0x3c0   : > { %6217 = vst [vmem:[#allocation2 + $0x58] sm:$0xf] %v5970_v43  ;;  %6220 = vst [vmem:[#allocation2 + $0x5c] sm:$0x1] %v6219_v55  ;;  %v6375_v13 = vrot.slane %v6373_v44, 4  ;;  %v6378_v7 = vrot.slane %v6376_v37, 5 }
 0x3c1   : > { %v6382_v29 = vshll.u32 %v6287_v49, 16  ;;  %v6386_v51 = vshrl.u32 %v6287_v49, 16  ;;  %v15874_v59 = vpop.f32.mrb[24].mxu0  ;;  %v6012_v50 = vor.u32 %v6010_v20, %v6009_v52  ;;  %v6013_v5 = vrot.slane %v6009_v52, 4  ;;  %v6334_v12 = vld [vmem:[#allocation2 + $0x20] sm:$0x1] }
 0x3c2   : > { %v5995_v33 = vor.u32 %v5993_v25, %v5992_v56  ;;  %v15876_v6 = vpop.f32.mrb[25].mxu0  ;;  %v6379_v10 = vor.u32 %v6378_v7, %v6375_v13  ;;  %v6392_v47 = vshll.u32 %v6333_v0, 16  ;;  %v5996_v26 = vrot.slane %v5992_v56, 4  ;;  %v6290_v56 = vld [vmem:[#allocation2 + $0x24] sm:$0xf] }
 0x3c3   : > { %v6384_v62 = vrot.slane %v6382_v29, 5  ;;  %v15878_v15 = vpop.f32.mrb[26].mxu0  ;;  %v6236_v4 = vsel %vm14556_vm11, %v6012_v50, %v6235_v8  ;;  %v6388_v35 = vrot.slane %v6386_v51, 4  ;;  %v6015_v28 = vshrl.u32 %v12003_v9, 16 }
 0x3c4   : > { %v6229_v36 = vsel %vm14556_vm11, %v5995_v33, %v6228_v31  ;;  %v15884_v58 = vpop.f32.mrb[27].mxu0  ;;  %6237 = vst [vmem:[#allocation2 + $0x78] sm:$0xf] %v6236_v4  ;;  %v6018_v1 = vshll.u32 %v12003_v9, 16  ;;  %v5998_v18 = vshrl.u32 %v12001_v17, 16  ;;  %v6001_v63 = vshll.u32 %v12001_v17, 16 }
 0x3c5   : > { %6230 = vst [vmem:[#allocation2 + $0x6c] sm:$0xf] %v6229_v36  ;;  %v6380_v40 = vrot.slane %v6379_v10, 4  ;;  %v6389_v14 = vor.u32 %v6388_v35, %v6384_v62  ;;  %v6394_v57 = vrot.slane %v6392_v47, 5  ;;  %v6017_v23 = vrot.slane %v6015_v28, 7 }
 0x3c6   : > { %v6000_v49 = vrot.slane %v5998_v18, 7  ;;  %v6397_v44 = vshrl.u32 %v6288_v54, 16  ;;  %v6400_v37 = vshll.u32 %v6288_v54, 16  ;;  %v6406_v39 = vshll.u32 %v6289_v45, 16  ;;  %v6291_v36 = vld [vmem:[#allocation2 + $0x28] sm:$0xf] }
 0x3c7   : > { %v6385_v3 = vsel %vm14534_vm9, %v6380_v40, %v6384_v62  ;;  %v6390_v41 = vrot.slane %v6389_v14, 4  ;;  %v6410_v27 = vshrl.u32 %v6289_v45, 16  ;;  %v6020_v20 = vor.u32 %v6018_v1, %v6017_v23  ;;  %v15888_v43 = vpop.f32.mrb[28].mxu0 }
 0x3c8   : > { %v6022_v22 = vrot.slane %v6017_v23, 4  ;;  %v6003_v25 = vor.u32 %v6001_v63, %v6000_v49  ;;  %v6005_v16 = vrot.slane %v6000_v49, 4  ;;  %v6399_v8 = vrot.slane %v6397_v44, 4  ;;  %v15892_v24 = vpop.f32.mrb[29].mxu0 }
 0x3c9   : > { %v6395_v55 = vsel %vm14534_vm9, %v6390_v41, %v6394_v57  ;;  %v6402_v31 = vrot.slane %v6400_v37, 5  ;;  %v6408_v52 = vrot.slane %v6406_v39, 5  ;;  %v6021_v11 = vsel %vm14541_vm10, %v6013_v5, %v6020_v20  ;;  %v15902_v29 = vpop.f32.mrb[30].mxu0  ;;  %v14018_v5 = vld [vmem:[#allocation6 + $0x8] sm:$0xff]  }
 0x3ca   : > { %v6240_v0 = vsel %vm14515_vm5, %v6022_v22, %v6239_v42  ;;  %v6004_v13 = vsel %vm14541_vm10, %v5996_v26, %v6003_v25  ;;  %v6233_v7 = vsel %vm14515_vm5, %v6005_v16, %v6232_v21  ;;  %6238 = vst [vmem:[#allocation2 + $0x7c] sm:$0xf] %v6021_v11  ;;  %v11682_v51 = vcombine.low %v6385_v3, %v6395_v55  ;;  %v15904_v17 = vpop.f32.mrb[31].mxu0  ;;  %v6242_v22 = vld [vmem:[#allocation2 + $0x84] sm:$0xf]  ;;  %v14020_v55 = vld [vmem:[#allocation6 + $0x18] sm:$0xff]  }
 0x3cb   : > { %6241 = vst [vmem:[#allocation2 + $0x80] sm:$0x1] %v6240_v0  ;;  %6231 = vst [vmem:[#allocation2 + $0x70] sm:$0xf] %v6004_v13  ;;  %v6403_v50 = vor.u32 %v6402_v31, %v6399_v8  ;;  %v6412_v33 = vrot.slane %v6410_v27, 4  ;;  %v6416_v9 = vshll.u32 %v6334_v12, 16  ;;  %v5715_v10 = vadd.f32 %v15852_v38, %v15784_v19 }
 0x3cc   : > { %6234 = vst [vmem:[#allocation2 + $0x74] sm:$0x1] %v6233_v7  ;;  %v5713_v62 = vadd.f32 %v15784_v19, %v15858_v32  ;;  %v5716_v54 = vadd.f32 %v15862_v30, %v15784_v19  ;;  %v5714_v4 = vadd.f32 %v15784_v19, %v15864_v60  ;;  %12898 = vmatmul.mubr.bf16.vlgmr.msra.gmra.mrb[0].mxu1 %v11682_v51  ;;  %v6421_v26 = vshrl.u32 %v6290_v56, 16  ;;  %v14019_v60 = vld [vmem:[#allocation6 + $0x10] sm:$0xff]   ;;  %v6249_v27 = vld [vmem:[#allocation2 + $0x90] sm:$0xf] }
 0x3cd   : > { %v6404_v35 = vrot.slane %v6403_v50, 4  ;;  %v6413_v47 = vor.u32 %v6412_v33, %v6408_v52  ;;  %v6418_v45 = vrot.slane %v6416_v9, 5  ;;  %12930 = vmatpush3.bf16.msra.mxu1 %v15778_v53  ;;  %v5747_v28 = vmax.f32 %v5715_v10, 0.0  ;;  %v6246_v11 = vld [vmem:[#allocation2 + $0x8c] sm:$0x1]  ;;  %v14021_v33 = vld [vmem:[#allocation6 + $0x20] sm:$0xff]  }
 0x3ce   : > { %v5745_v1 = vmax.f32 %v5713_v62, 0.0  ;;  %v5748_v38 = vmax.f32 %v5716_v54, 0.0  ;;  %v5746_v18 = vmax.f32 %v5714_v4, 0.0  ;;  %v6423_v30 = vrot.slane %v6421_v26, 4  ;;  %12931 = vmatprep.subr.bf16.mxu1 %v14018_v5 }
 0x3cf   : > { %v6409_v32 = vsel %vm14534_vm9, %v6404_v35, %v6408_v52  ;;  %v6414_v63 = vrot.slane %v6413_v47, 4  ;;  %v6424_v40 = vshll.u32 %v6290_v56, 16  ;;  %v12006_v14 = vpack.c.bf16 %v5747_v28, %v5747_v28  ;;  %v6253_v52 = vld [vmem:[#allocation2 + $0x98] sm:$0x1]  ;;  %v6335_v47 = vld [vmem:[#allocation2 + $0x2c] sm:$0x1] }
 0x3d0   : > { %v12004_v57 = vpack.c.bf16 %v5745_v1, %v5745_v1  ;;  %v12007_v23 = vpack.c.bf16 %v5748_v38, %v5748_v38  ;;  %v12005_v42 = vpack.c.bf16 %v5746_v18, %v5746_v18  ;;  %v6430_v44 = vshll.u32 %v6291_v36, 16  ;;  %v15925_v18 = vld [vmem:[#allocation2 + $0x34] sm:$0xf] }
 0x3d1   : > { %v6419_v49 = vsel %vm14534_vm9, %v6414_v63, %v6418_v45  ;;  %v6426_v53 = vrot.slane %v6424_v40, 5  ;;  %v6434_v37 = vshrl.u32 %v6291_v36, 16  ;;  %v6041_v3 = vshrl.u32 %v12006_v14, 16  ;;  %12932 = vmatpush3.bf16.msra.mxu1 %v14018_v5  ;;  %v15919_v45 = vld [vmem:[#allocation2 + $0x30] sm:$0xf] }
 0x3d2   : > { %v11683_v21 = vcombine.low %v6409_v32, %v6419_v49  ;;  %v6044_v41 = vshll.u32 %v12006_v14, 16  ;;  %v6024_v39 = vshrl.u32 %v12004_v57, 16  ;;  %v6027_v20 = vshll.u32 %v12004_v57, 16  ;;  %12933 = vmatprep.subr.bf16.mxu1 %v14019_v60  ;;  %v6336_v32 = vld [vmem:[#allocation2 + $0x38] sm:$0x1] }
 0x3d3   : > { %v6049_v25 = vshrl.u32 %v12007_v23, 16  ;;  %v6052_v16 = vshll.u32 %v12007_v23, 16  ;;  %v6032_v12 = vshrl.u32 %v12005_v42, 16  ;;  %v6043_v8 = vrot.slane %v6041_v3, 7 }
 0x3d4   : > { %12901 = vmatprep.mubr.bf16.mxu1 %v11683_v21  ;;  %v6026_v31 = vrot.slane %v6024_v39, 7  ;;  %v6035_v56 = vshll.u32 %v12005_v42, 16  ;;  %v6427_v0 = vor.u32 %v6426_v53, %v6423_v30  ;;  %v6432_v51 = vrot.slane %v6430_v44, 5  ;;  %v14022_v21 = vld [vmem:[#allocation6 + $0x28] sm:$0xff]  }
 0x3d5   : > { %v6051_v13 = vrot.slane %v6049_v25, 7  ;;  %v6034_v7 = vrot.slane %v6032_v12, 7  ;;  %v6436_v50 = vrot.slane %v6434_v37, 4  ;;  %v6046_v9 = vor.u32 %v6044_v41, %v6043_v8  ;;  %12934 = vmatpush3.bf16.msra.mxu1 %v14019_v60  ;;  %v15945_v12 = vld [vmem:[#allocation2 + $0x3c] sm:$0xf] }
 0x3d6   : > { %v6047_v5 = vrot.slane %v6043_v8, 4  ;;  %v6029_v10 = vor.u32 %v6027_v20, %v6026_v31  ;;  %v6030_v62 = vrot.slane %v6026_v31, 4  ;;  %12935 = vmatprep.subr.bf16.mxu1 %v14020_v55  ;;  %v6428_v1 = vrot.slane %v6427_v0, 4  ;;  %v14023_v0 = vld [vmem:[#allocation6 + $0x30] sm:$0xff]  }
 0x3d7   : > { %v6054_v54 = vor.u32 %v6052_v16, %v6051_v13  ;;  %v6056_v4 = vrot.slane %v6051_v13, 4  ;;  %v6037_v36 = vor.u32 %v6035_v56, %v6034_v7  ;;  %v6039_v35 = vrot.slane %v6034_v7, 4 }
 0x3d8   : > { %v6250_v26 = vsel %vm14556_vm11, %v6046_v9, %v6249_v27  ;;  %v6243_v28 = vsel %vm14556_vm11, %v6029_v10, %v6242_v22  ;;  %v6437_v38 = vor.u32 %v6436_v50, %v6432_v51  ;;  %v6433_v14 = vsel %vm14534_vm9, %v6428_v1, %v6432_v51  ;;  %v14024_v1 = vld [vmem:[#allocation6 + $0x38] sm:$0xff]  }
 0x3d9   : > { %6251 = vst [vmem:[#allocation2 + $0x90] sm:$0xf] %v6250_v26  ;;  %6244 = vst [vmem:[#allocation2 + $0x84] sm:$0xf] %v6243_v28  ;;  %v6055_v63 = vsel %vm14541_vm10, %v6047_v5, %v6054_v54  ;;  %v6254_v30 = vsel %vm14515_vm5, %v6056_v4, %v6253_v52  ;;  %v6038_v40 = vsel %vm14541_vm10, %v6030_v62, %v6037_v36  ;;  %v6440_v23 = vshll.u32 %v6335_v47, 16 }
 0x3da   : > { %v6247_v60 = vsel %vm14515_vm5, %v6039_v35, %v6246_v11  ;;  %6252 = vst [vmem:[#allocation2 + $0x94] sm:$0xf] %v6055_v63  ;;  %6255 = vst [vmem:[#allocation2 + $0x98] sm:$0x1] %v6254_v30  ;;  %v6438_v57 = vrot.slane %v6437_v38, 4  ;;  %v6445_v42 = vshrl.u32 %v15919_v45, 16  ;;  %12936 = vmatpush3.bf16.msra.mxu1 %v14020_v55  ;;  %v5719_v39 = vadd.f32 %v15874_v59, %v15784_v19 }
 0x3db   : > { %6245 = vst [vmem:[#allocation2 + $0x88] sm:$0xf] %v6038_v40  ;;  %6248 = vst [vmem:[#allocation2 + $0x8c] sm:$0x1] %v6247_v60  ;;  %v6448_v49 = vshll.u32 %v15919_v45, 16  ;;  %v6454_v53 = vshll.u32 %v15925_v18, 16  ;;  %12937 = vmatprep.subr.bf16.mxu1 %v14021_v33  ;;  %v5717_v27 = vadd.f32 %v15784_v19, %v15876_v6  ;;  %v5720_v52 = vadd.f32 %v15878_v15, %v15784_v19 }
 0x3dc   : > { %v6458_v44 = vshrl.u32 %v15925_v18, 16  ;;  %v6464_v37 = vshll.u32 %v6336_v32, 16  ;;  %v6442_v3 = vrot.slane %v6440_v23, 5  ;;  %v6447_v41 = vrot.slane %v6445_v42, 4  ;;  %v6263_v36 = vld [vmem:[#allocation2 + $0xa8] sm:$0xf] }
 0x3dd   : > { %v6450_v20 = vrot.slane %v6448_v49, 5  ;;  %v6456_v22 = vrot.slane %v6454_v53, 5  ;;  %v5751_v8 = vmax.f32 %v5719_v39, 0.0  ;;  %v5749_v31 = vmax.f32 %v5717_v27, 0.0  ;;  %v6256_v35 = vld [vmem:[#allocation2 + $0x9c] sm:$0xf] }
 0x3de   : > { %v6460_v25 = vrot.slane %v6458_v44, 4  ;;  %v6466_v16 = vrot.slane %v6464_v37, 5  ;;  %v6443_v55 = vsel %vm14534_vm9, %v6438_v57, %v6442_v3  ;;  %12938 = vmatpush3.bf16.msra.mxu1 %v14021_v33  ;;  %v5718_v6 = vadd.f32 %v15784_v19, %v15884_v58  ;;  %v15959_v28 = vld [vmem:[#allocation2 + $0x40] sm:$0xf]  ;;  %v6337_v30 = vld [vmem:[#allocation2 + $0x44] sm:$0x1] }
 0x3df   : > { %v11684_v56 = vcombine.low %v6433_v14, %v6443_v55  ;;  %v6451_v59 = vor.u32 %v6450_v20, %v6447_v41  ;;  %12939 = vmatprep.subr.bf16.mxu1 %v14022_v21  ;;  %v12010_v13 = vpack.c.bf16 %v5751_v8, %v5751_v8  ;;  %v12008_v7 = vpack.c.bf16 %v5749_v31, %v5749_v31  ;;  %v6267_v37 = vld [vmem:[#allocation2 + $0xb0] sm:$0x1]  ;;  %v15962_v27 = vld [vmem:[#allocation6 + $0x80] sm:$0xff]  }
 0x3e0   : > { %v6461_v11 = vor.u32 %v6460_v25, %v6456_v22  ;;  %v5752_v51 = vmax.f32 %v5720_v52, 0.0  ;;  %v6469_v50 = vshrl.u32 %v15945_v12, 16  ;;  %v5750_v10 = vmax.f32 %v5718_v6, 0.0  ;;  %v6260_v25 = vld [vmem:[#allocation2 + $0xa4] sm:$0x1] }
 0x3e1   : > { %12902 = vmatmul.mubr.bf16.gmra.mrb[4].mxu1 %v11684_v56  ;;  %v6452_v9 = vrot.slane %v6451_v59, 4  ;;  %v6472_v15 = vshll.u32 %v15945_v12, 16  ;;  %v6075_v33 = vshrl.u32 %v12010_v13, 16  ;;  %v6078_v62 = vshll.u32 %v12010_v13, 16  ;;  %v15969_v59 = vld [vmem:[#allocation2 + $0x48] sm:$0xf] }
 0x3e2   : > { %v6462_v5 = vrot.slane %v6461_v11, 4  ;;  %v6058_v54 = vshrl.u32 %v12008_v7, 16  ;;  %v6061_v4 = vshll.u32 %v12008_v7, 16  ;;  %12940 = vmatpush3.bf16.msra.mxu1 %v14022_v21  ;;  %v12011_v47 = vpack.c.bf16 %v5752_v51, %v5752_v51  ;;  %v15971_v11 = vld [vmem:[#allocation2 + $0x4c] sm:$0xf] }
 0x3e3   : > { %v6457_v19 = vsel %vm14534_vm9, %v6452_v9, %v6456_v22  ;;  %v12009_v26 = vpack.c.bf16 %v5750_v10, %v5750_v10  ;;  %12941 = vmatprep.subr.bf16.mxu1 %v14023_v0  ;;  %v6077_v32 = vrot.slane %v6075_v33, 7  ;;  %v6471_v40 = vrot.slane %v6469_v50, 4  ;;  %v15973_v51 = vld [vmem:[#allocation2 + $0x50] sm:$0x1] }
 0x3e4   : > { %v6467_v58 = vsel %vm14534_vm9, %v6462_v5, %v6466_v16  ;;  %v6060_v63 = vrot.slane %v6058_v54, 7  ;;  %v6083_v60 = vshrl.u32 %v12011_v47, 16  ;;  %v6086_v14 = vshll.u32 %v12011_v47, 16 }
 0x3e5   : > { %v11685_v38 = vcombine.low %v6457_v19, %v6467_v58  ;;  %v6066_v57 = vshrl.u32 %v12009_v26, 16  ;;  %v6069_v23 = vshll.u32 %v12009_v26, 16  ;;  %v6080_v42 = vor.u32 %v6078_v62, %v6077_v32 }
 0x3e6   : > { %v6081_v49 = vrot.slane %v6077_v32, 4  ;;  %v6063_v53 = vor.u32 %v6061_v4, %v6060_v63  ;;  %v6064_v44 = vrot.slane %v6060_v63, 4  ;;  %12942 = vmatpush3.bf16.msra.mxu1 %v14023_v0  ;;  %v6085_v21 = vrot.slane %v6083_v60, 7  ;;  %v15995_v60 = vld [vmem:[#allocation2 + $0x54] sm:$0xf] }
 0x3e7   : > { %12905 = vmatprep.mubr.bf16.mxu1 %v11685_v38  ;;  %v6068_v3 = vrot.slane %v6066_v57, 7  ;;  %v6474_v41 = vrot.slane %v6472_v15, 5  ;;  %v6478_v39 = vshll.u32 %v15959_v28, 16  ;;  %12943 = vmatprep.subr.bf16.mxu1 %v14024_v1  ;;  %v6264_v20 = vsel %vm14556_vm11, %v6080_v42, %v6263_v36  ;;  %v14162_v36 = vld [vmem:[%s17435_s2] ss:$0 sm:$0xff] }
 0x3e8   : > { %v6257_v22 = vsel %vm14556_vm11, %v6063_v53, %v6256_v35  ;;  %v6482_v16 = vshrl.u32 %v15959_v28, 16  ;;  %v6488_v55 = vshll.u32 %v6337_v30, 16  ;;  %6265 = vst [vmem:[#allocation2 + $0xa8] sm:$0xf] %v6264_v20  ;;  %v6088_v8 = vor.u32 %v6086_v14, %v6085_v21 }
 0x3e9   : > { %6258 = vst [vmem:[#allocation2 + $0x9c] sm:$0xf] %v6257_v22  ;;  %v6090_v31 = vrot.slane %v6085_v21, 4  ;;  %v6071_v52 = vor.u32 %v6069_v23, %v6068_v3  ;;  %v6073_v56 = vrot.slane %v6068_v3, 4  ;;  %v6475_v6 = vor.u32 %v6474_v41, %v6471_v40 }
 0x3ea   : > { %v6480_v0 = vrot.slane %v6478_v39, 5  ;;  %v6484_v13 = vrot.slane %v6482_v16, 4  ;;  %v6490_v7 = vrot.slane %v6488_v55, 5  ;;  %12944 = vmatpush3.bf16.msra.mxu1 %v14024_v1  ;;  %v6089_v50 = vsel %vm14541_vm10, %v6081_v49, %v6088_v8  ;;  %v6277_v16 = vld [vmem:[#allocation2 + $0xc0] sm:$0xf] }
 0x3eb   : > { %v6268_v9 = vsel %vm14515_vm5, %v6090_v31, %v6267_v37  ;;  %v6072_v5 = vsel %vm14541_vm10, %v6064_v44, %v6071_v52  ;;  %v6261_v10 = vsel %vm14515_vm5, %v6073_v56, %v6260_v25  ;;  %12977 = vmatprep.subr.bf16.mxu1 %v15962_v27  ;;  %6266 = vst [vmem:[#allocation2 + $0xac] sm:$0xf] %v6089_v50  ;;  %v6476_v15 = vrot.slane %v6475_v6, 4  ;;  %v16007_v56 = vld [vmem:[#allocation2 + $0x58] sm:$0xf] }
 0x3ec   : > { %6269 = vst [vmem:[#allocation2 + $0xb0] sm:$0x1] %v6268_v9  ;;  %6259 = vst [vmem:[#allocation2 + $0xa0] sm:$0xf] %v6072_v5  ;;  %v6485_v33 = vor.u32 %v6484_v13, %v6480_v0  ;;  %v6493_v62 = vshrl.u32 %v15969_v59, 16  ;;  %v6496_v54 = vshll.u32 %v15969_v59, 16  ;;  %v5723_v35 = vadd.f32 %v14162_v36, %v15888_v43 }
 0x3ed   : > { %6262 = vst [vmem:[#allocation2 + $0xa4] sm:$0x1] %v6261_v10  ;;  %v6502_v4 = vshll.u32 %v15971_v11, 16  ;;  %v6506_v19 = vshrl.u32 %v15971_v11, 16  ;;  %v6512_v58 = vshll.u32 %v15973_v51, 16  ;;  %v6481_v47 = vsel %vm14534_vm9, %v6476_v15, %v6480_v0 }
 0x3ee   : > { %v6486_v26 = vrot.slane %v6485_v33, 4  ;;  %v6495_v1 = vrot.slane %v6493_v62, 4  ;;  %v6498_v38 = vrot.slane %v6496_v54, 5  ;;  %v5755_v40 = vmax.f32 %v5723_v35, 0.0  ;;  %v6270_v62 = vld [vmem:[#allocation2 + $0xb4] sm:$0xf] }
 0x3ef   : > { %v6504_v32 = vrot.slane %v6502_v4, 5  ;;  %v6508_v63 = vrot.slane %v6506_v19, 4  ;;  %v6514_v30 = vrot.slane %v6512_v58, 5  ;;  %v5721_v23 = vadd.f32 %v14162_v36, %v15892_v24 }
 0x3f0   : > { %v6491_v14 = vsel %vm14534_vm9, %v6486_v26, %v6490_v7  ;;  %v6499_v57 = vor.u32 %v6498_v38, %v6495_v1  ;;  %v5724_v43 = vadd.f32 %v14162_v36, %v15902_v29  ;;  %v12014_v53 = vpack.c.bf16 %v5755_v40, %v5755_v40  ;;  %v16014_v40 = vld [vmem:[#allocation2 + $0x5c] sm:$0x1] }
 0x3f1   : > { %v11686_v42 = vcombine.low %v6481_v47, %v6491_v14  ;;  %v6509_v49 = vor.u32 %v6508_v63, %v6504_v32  ;;  %v5722_v44 = vadd.f32 %v14162_v36, %v15904_v17  ;;  %v5753_v21 = vmax.f32 %v5721_v23, 0.0  ;;  %v6281_v36 = vld [vmem:[#allocation2 + $0xc8] sm:$0x1] }
 0x3f2   : > { %v6500_v37 = vrot.slane %v6499_v57, 4  ;;  %v5756_v3 = vmax.f32 %v5724_v43, 0.0  ;;  %v6517_v41 = vshrl.u32 %v15995_v60, 16  ;;  %v6109_v20 = vshrl.u32 %v12014_v53, 16 }
 0x3f3   : > { %12906 = vmatmul.mubr.bf16.gmra.mrb[8].mxu1 %v11686_v42  ;;  %v6510_v39 = vrot.slane %v6509_v49, 4  ;;  %v6112_v22 = vshll.u32 %v12014_v53, 16  ;;  %v5754_v25 = vmax.f32 %v5722_v44, 0.0  ;;  %v12012_v29 = vpack.c.bf16 %v5753_v21, %v5753_v21  ;;  %v16016_v42 = vld [vmem:[#allocation2 + $0x60] sm:$0xf] }
 0x3f4   : > { %v6505_v24 = vsel %vm14534_vm9, %v6500_v37, %v6504_v32  ;;  %v12015_v55 = vpack.c.bf16 %v5756_v3, %v5756_v3  ;;  %v6519_v8 = vrot.slane %v6517_v41, 4  ;;  %v6111_v31 = vrot.slane %v6109_v20, 7  ;;  %v16018_v49 = vld [vmem:[#allocation2 + $0x64] sm:$0xf]  ;;  %v16026_v3 = vld [vmem:[#allocation2 + $0x68] sm:$0x1] }
 0x3f5   : > { %v6515_v17 = vsel %vm14534_vm9, %v6510_v39, %v6514_v30  ;;  %v12013_v52 = vpack.c.bf16 %v5754_v25, %v5754_v25  ;;  %v6520_v6 = vshll.u32 %v15995_v60, 16  ;;  %v6092_v13 = vshrl.u32 %v12012_v29, 16  ;;  %v6274_v30 = vld [vmem:[#allocation2 + $0xbc] sm:$0x1] }
 0x3f6   : > { %v11687_v0 = vcombine.low %v6505_v24, %v6515_v17  ;;  %v6095_v7 = vshll.u32 %v12012_v29, 16  ;;  %v6117_v50 = vshrl.u32 %v12015_v55, 16  ;;  %v6114_v9 = vor.u32 %v6112_v22, %v6111_v31  ;;  %v16033_v22 = vld [vmem:[#allocation2 + $0x6c] sm:$0xf] }
 0x3f7   : > { %v6115_v5 = vrot.slane %v6111_v31, 4  ;;  %v6120_v10 = vshll.u32 %v12015_v55, 16  ;;  %v6100_v15 = vshrl.u32 %v12013_v52, 16  ;;  %v6094_v33 = vrot.slane %v6092_v13, 7  ;;  %v16038_v55 = vld [vmem:[#allocation2 + $0x70] sm:$0xf] }
 0x3f8   : > { %12909 = vmatprep.mubr.bf16.mxu1 %v11687_v0  ;;  %v6119_v54 = vrot.slane %v6117_v50, 7  ;;  %v6103_v4 = vshll.u32 %v12013_v52, 16  ;;  %v6522_v19 = vrot.slane %v6520_v6, 5  ;;  %v6278_v58 = vsel %vm14556_vm11, %v6114_v9, %v6277_v16  ;;  %v16044_v13 = vld [vmem:[#allocation2 + $0x74] sm:$0x1] }
 0x3f9   : > { %v6102_v35 = vrot.slane %v6100_v15, 7  ;;  %v6526_v47 = vshll.u32 %v16007_v56, 16  ;;  %v6530_v26 = vshrl.u32 %v16007_v56, 16  ;;  %6279 = vst [vmem:[#allocation2 + $0xc0] sm:$0xf] %v6278_v58  ;;  %v6097_v1 = vor.u32 %v6095_v7, %v6094_v33 }
 0x3fa   : > { %v6098_v38 = vrot.slane %v6094_v33, 4  ;;  %v6122_v32 = vor.u32 %v6120_v10, %v6119_v54  ;;  %v6124_v63 = vrot.slane %v6119_v54, 4  ;;  %v6523_v23 = vor.u32 %v6522_v19, %v6519_v8  ;;  %v16046_v7 = vld [vmem:[#allocation2 + $0x78] sm:$0xf] }
 0x3fb   : > { %v6105_v14 = vor.u32 %v6103_v4, %v6102_v35  ;;  %v6107_v57 = vrot.slane %v6102_v35, 4  ;;  %v6528_v43 = vrot.slane %v6526_v47, 5  ;;  %v6271_v53 = vsel %vm14556_vm11, %v6097_v1, %v6270_v62  ;;  %v16054_v4 = vld [vmem:[#allocation2 + $0x7c] sm:$0xf] }
 0x3fc   : > { %v6123_v44 = vsel %vm14541_vm10, %v6115_v5, %v6122_v32  ;;  %v6282_v37 = vsel %vm14515_vm5, %v6124_v63, %v6281_v36  ;;  %v6532_v21 = vrot.slane %v6530_v26, 4  ;;  %6272 = vst [vmem:[#allocation2 + $0xb4] sm:$0xf] %v6271_v53  ;;  %v6524_v2 = vrot.slane %v6523_v23, 4 }
 0x3fd   : > { %6280 = vst [vmem:[#allocation2 + $0xc4] sm:$0xf] %v6123_v44  ;;  %6283 = vst [vmem:[#allocation2 + $0xc8] sm:$0x1] %v6282_v37  ;;  %v6106_v41 = vsel %vm14541_vm10, %v6098_v38, %v6105_v14  ;;  %v6275_v39 = vsel %vm14515_vm5, %v6107_v57, %v6274_v30  ;;  %v6536_v20 = vshll.u32 %v16014_v40, 16  ;;  %v6541_v24 = vshrl.u32 %v16016_v42, 16 }
 0x3fe   : > { %6273 = vst [vmem:[#allocation2 + $0xb8] sm:$0xf] %v6106_v41  ;;  %6276 = vst [vmem:[#allocation2 + $0xbc] sm:$0x1] %v6275_v39  ;;  %v6533_v25 = vor.u32 %v6532_v21, %v6528_v43  ;;  %v6544_v16 = vshll.u32 %v16016_v42, 16  ;;  %v6550_v29 = vshll.u32 %v16018_v49, 16  ;;  %v6529_v61 = vsel %vm14534_vm9, %v6524_v2, %v6528_v43 }
 0x3ff   : > { %v6538_v46 = vrot.slane %v6536_v20, 5  ;;  %v6554_v8 = vshrl.u32 %v16018_v49, 16  ;;  %v6560_v17 = vshll.u32 %v16026_v3, 16  ;;  %v6543_v52 = vrot.slane %v6541_v24, 4  ;;  %v16057_v30 = vld [vmem:[#allocation2 + $0x80] sm:$0x1] }
 0x400   : > { %v6534_v31 = vrot.slane %v6533_v25, 4  ;;  %v6546_v6 = vrot.slane %v6544_v16, 5  ;;  %v6552_v0 = vrot.slane %v6550_v29, 5  ;;  %v6565_v5 = vshrl.u32 %v16033_v22, 16  ;;  %v16064_v37 = vld [vmem:[#allocation2 + $0x84] sm:$0xf] }
 0x401   : > { %v6556_v50 = vrot.slane %v6554_v8, 4  ;;  %v6562_v9 = vrot.slane %v6560_v17, 5  ;;  %v6568_v10 = vshll.u32 %v16033_v22, 16  ;;  %v6574_v62 = vshll.u32 %v16038_v55, 16  ;;  %v16066_v21 = vld [vmem:[#allocation2 + $0x88] sm:$0xf] }
 0x402   : > { %v6539_v15 = vsel %vm14534_vm9, %v6534_v31, %v6538_v46  ;;  %v6547_v33 = vor.u32 %v6546_v6, %v6543_v52  ;;  %v6578_v54 = vshrl.u32 %v16038_v55, 16  ;;  %v6567_v36 = vrot.slane %v6565_v5, 4  ;;  %v16075_v31 = vld [vmem:[#allocation2 + $0x90] sm:$0xf] }
 0x403   : > { %v11688_v19 = vcombine.low %v6529_v61, %v6539_v15  ;;  %v6557_v58 = vor.u32 %v6556_v50, %v6552_v0  ;;  %v6570_v35 = vrot.slane %v6568_v10, 5  ;;  %v6576_v26 = vrot.slane %v6574_v62, 5  ;;  %v16083_v62 = vld [vmem:[#allocation2 + $0x94] sm:$0xf] }
 0x404   : > { %v6548_v47 = vrot.slane %v6547_v33, 4  ;;  %v6580_v1 = vrot.slane %v6578_v54, 4  ;;  %v6584_v38 = vshll.u32 %v16044_v13, 16  ;;  %v6589_v14 = vshrl.u32 %v16046_v7, 16 }
 0x405   : > { %12910 = vmatmul.mubr.bf16.gmra.mrb[12].mxu1 %v11688_v19  ;;  %v6558_v32 = vrot.slane %v6557_v58, 4  ;;  %v6571_v63 = vor.u32 %v6570_v35, %v6567_v36  ;;  %v6592_v57 = vshll.u32 %v16046_v7, 16  ;;  %v6598_v44 = vshll.u32 %v16054_v4, 16 }
 0x406   : > { %v6553_v23 = vsel %vm14534_vm9, %v6548_v47, %v6552_v0  ;;  %v6581_v43 = vor.u32 %v6580_v1, %v6576_v26  ;;  %v6586_v53 = vrot.slane %v6584_v38, 5  ;;  %v6591_v2 = vrot.slane %v6589_v14, 4  ;;  %v16079_v0 = vld [vmem:[#allocation2 + $0x8c] sm:$0x1]  ;;  %v16091_v14 = vld [vmem:[#allocation2 + $0x98] sm:$0x1] }
 0x407   : > { %v6563_v41 = vsel %vm14534_vm9, %v6558_v32, %v6562_v9  ;;  %v6572_v39 = vrot.slane %v6571_v63, 4  ;;  %v6594_v20 = vrot.slane %v6592_v57, 5  ;;  %v6600_v16 = vrot.slane %v6598_v44, 5 }
 0x408   : > { %v11689_v25 = vcombine.low %v6553_v23, %v6563_v41  ;;  %v6582_v24 = vrot.slane %v6581_v43, 4  ;;  %v6602_v29 = vshrl.u32 %v16054_v4, 16  ;;  %v6608_v8 = vshll.u32 %v16057_v30, 16  ;;  %v16095_v41 = vld [vmem:[#allocation2 + $0x9c] sm:$0xf] }
 0x409   : > { %v6577_v61 = vsel %vm14534_vm9, %v6572_v39, %v6576_v26  ;;  %v6595_v46 = vor.u32 %v6594_v20, %v6591_v2  ;;  %v6613_v17 = vshrl.u32 %v16064_v37, 16  ;;  %v6616_v50 = vshll.u32 %v16064_v37, 16 }
 0x40a   : > { %12913 = vmatprep.mubr.bf16.mxu1 %v11689_v25  ;;  %v6587_v52 = vsel %vm14534_vm9, %v6582_v24, %v6586_v53  ;;  %v6604_v6 = vrot.slane %v6602_v29, 4  ;;  %v6622_v9 = vshll.u32 %v16066_v21, 16  ;;  %v6610_v15 = vrot.slane %v6608_v8, 5  ;;  %v16099_v24 = vld [vmem:[#allocation2 + $0xa0] sm:$0xf] }
 0x40b   : > { %v11690_v5 = vcombine.low %v6577_v61, %v6587_v52  ;;  %v6596_v10 = vrot.slane %v6595_v46, 4  ;;  %v6615_v33 = vrot.slane %v6613_v17, 4  ;;  %v6618_v19 = vrot.slane %v6616_v50, 5  ;;  %v16102_v8 = vld [vmem:[#allocation2 + $0xa8] sm:$0xf] }
 0x40c   : > { %v6605_v54 = vor.u32 %v6604_v6, %v6600_v16  ;;  %v6624_v58 = vrot.slane %v6622_v9, 5  ;;  %v6626_v36 = vshrl.u32 %v16066_v21, 16  ;;  %v6632_v47 = vshll.u32 %v16079_v0, 16 }
 0x40d   : > { %12914 = vmatmul.mubr.bf16.gmra.mrb[16].mxu1 %v11690_v5  ;;  %v6601_v35 = vsel %vm14534_vm9, %v6596_v10, %v6600_v16  ;;  %v6637_v26 = vshrl.u32 %v16075_v31, 16  ;;  %v6640_v1 = vshll.u32 %v16075_v31, 16  ;;  %v6619_v32 = vor.u32 %v6618_v19, %v6615_v33 }
 0x40e   : > { %v6606_v38 = vrot.slane %v6605_v54, 4  ;;  %v6628_v63 = vrot.slane %v6626_v36, 4  ;;  %v6646_v57 = vshll.u32 %v16083_v62, 16  ;;  %v6634_v23 = vrot.slane %v6632_v47, 5 }
 0x40f   : > { %v6639_v43 = vrot.slane %v6637_v26, 4  ;;  %v6642_v53 = vrot.slane %v6640_v1, 5  ;;  %v6650_v44 = vshrl.u32 %v16083_v62, 16  ;;  %v6620_v2 = vrot.slane %v6619_v32, 4  ;;  %v16118_v32 = vld [vmem:[#allocation2 + $0xb0] sm:$0x1] }
 0x410   : > { %v6611_v39 = vsel %vm14534_vm9, %v6606_v38, %v6610_v15  ;;  %v6629_v20 = vor.u32 %v6628_v63, %v6624_v58  ;;  %v6648_v25 = vrot.slane %v6646_v57, 5  ;;  %v6656_v46 = vshll.u32 %v16091_v14, 16  ;;  %v16108_v15 = vld [vmem:[#allocation2 + $0xa4] sm:$0x1]  ;;  %v16120_v63 = vld [vmem:[#allocation2 + $0xb4] sm:$0xf] }
 0x411   : > { %v11691_v16 = vcombine.low %v6601_v35, %v6611_v39  ;;  %v6643_v29 = vor.u32 %v6642_v53, %v6639_v43  ;;  %v6652_v61 = vrot.slane %v6650_v44, 4  ;;  %v6625_v17 = vsel %vm14534_vm9, %v6620_v2, %v6624_v58  ;;  %v16114_v35 = vld [vmem:[#allocation2 + $0xac] sm:$0xf]  ;;  %v16124_v44 = vld [vmem:[#allocation2 + $0xb8] sm:$0xf] }
 0x412   : > { %v6630_v52 = vrot.slane %v6629_v20, 4  ;;  %v6661_v6 = vshrl.u32 %v16095_v41, 16  ;;  %v6664_v50 = vshll.u32 %v16095_v41, 16  ;;  %v6658_v10 = vrot.slane %v6656_v46, 5 }
 0x413   : > { %12917 = vmatprep.mubr.bf16.mxu1 %v11691_v16  ;;  %v6644_v9 = vrot.slane %v6643_v29, 4  ;;  %v6653_v5 = vor.u32 %v6652_v61, %v6648_v25  ;;  %v6670_v33 = vshll.u32 %v16099_v24, 16  ;;  %v6674_v58 = vshrl.u32 %v16099_v24, 16 }
 0x414   : > { %v6635_v54 = vsel %vm14534_vm9, %v6630_v52, %v6634_v23  ;;  %v6663_v19 = vrot.slane %v6661_v6, 4  ;;  %v6666_v36 = vrot.slane %v6664_v50, 5  ;;  %v6680_v23 = vshll.u32 %v16108_v15, 16 }
 0x415   : > { %v11692_v47 = vcombine.low %v6625_v17, %v6635_v54  ;;  %v6649_v26 = vsel %vm14534_vm9, %v6644_v9, %v6648_v25  ;;  %v6654_v1 = vrot.slane %v6653_v5, 4  ;;  %v6672_v38 = vrot.slane %v6670_v33, 5 }
 0x416   : > { %v6667_v57 = vor.u32 %v6666_v36, %v6663_v19  ;;  %v6676_v43 = vrot.slane %v6674_v58, 4  ;;  %v6685_v53 = vshrl.u32 %v16102_v8, 16  ;;  %v6688_v2 = vshll.u32 %v16102_v8, 16  ;;  %v16135_v36 = vld [vmem:[#allocation2 + $0xbc] sm:$0x1] }
 0x417   : > { %12918 = vmatmul.mubr.bf16.gmra.mrb[20].mxu1 %v11692_v47  ;;  %v6659_v39 = vsel %vm14534_vm9, %v6654_v1, %v6658_v10  ;;  %v6694_v20 = vshll.u32 %v16114_v35, 16  ;;  %v6698_v25 = vshrl.u32 %v16114_v35, 16  ;;  %v6682_v46 = vrot.slane %v6680_v23, 5 }
 0x418   : > { %v11693_v16 = vcombine.low %v6649_v26, %v6659_v39  ;;  %v6668_v29 = vrot.slane %v6667_v57, 4  ;;  %v6677_v61 = vor.u32 %v6676_v43, %v6672_v38  ;;  %v6687_v17 = vrot.slane %v6685_v53, 4 }
 0x419   : > { %v6690_v52 = vrot.slane %v6688_v2, 5  ;;  %v6696_v6 = vrot.slane %v6694_v20, 5  ;;  %v6700_v50 = vrot.slane %v6698_v25, 4  ;;  %v6704_v10 = vshll.u32 %v16118_v32, 16 }
 0x41a   : > { %12921 = vmatprep.mubr.bf16.mxu1 %v11693_v16  ;;  %v6673_v9 = vsel %vm14534_vm9, %v6668_v29, %v6672_v38  ;;  %v6678_v5 = vrot.slane %v6677_v61, 4  ;;  %v6709_v33 = vshrl.u32 %v16120_v63, 16  ;;  %v6712_v58 = vshll.u32 %v16120_v63, 16 }
 0x41b   : > { %v6691_v54 = vor.u32 %v6690_v52, %v6687_v17  ;;  %v6701_v19 = vor.u32 %v6700_v50, %v6696_v6  ;;  %v6718_v47 = vshll.u32 %v16124_v44, 16  ;;  %v6706_v1 = vrot.slane %v6704_v10, 5  ;;  %v14163_v50 = vld [vmem:[#allocation2] sm:$0xf] }
 0x41c   : > { %v6683_v26 = vsel %vm14534_vm9, %v6678_v5, %v6682_v46  ;;  %v6711_v57 = vrot.slane %v6709_v33, 4  ;;  %v6722_v38 = vshrl.u32 %v16124_v44, 16  ;;  %v6714_v39 = vrot.slane %v6712_v58, 5 }
 0x41d   : > { %v11694_v43 = vcombine.low %v6673_v9, %v6683_v26  ;;  %v6692_v23 = vrot.slane %v6691_v54, 4  ;;  %v6702_v53 = vrot.slane %v6701_v19, 4  ;;  %v6720_v2 = vrot.slane %v6718_v47, 5  ;;  %v16147_v9 = vld [vmem:[#allocation2 + $0x4] sm:$0xf] }
 0x41e   : > { %v6724_v20 = vrot.slane %v6722_v38, 4  ;;  %v6728_v25 = vshll.u32 %v16135_v36, 16  ;;  %v6715_v61 = vor.u32 %v6714_v39, %v6711_v57  ;;  %v11705_v5 = vcombine.low %v14163_v50, %v16147_v9  ;;  %v14165_v39 = vld [vmem:[#allocation2 + $0xc] sm:$0xf] }
 0x41f   : > { %12922 = vmatmul.mubr.bf16.gmra.mrb[24].mxu1 %v11694_v43  ;;  %v6697_v16 = vsel %vm14534_vm9, %v6692_v23, %v6696_v6  ;;  %v6707_v29 = vsel %vm14534_vm9, %v6702_v53, %v6706_v1  ;;  %v11712_v54 = vcombine.low %v15995_v60, %v16007_v56  ;;  %v11713_v6 = vcombine.low %v16016_v42, %v16018_v49  ;;  %v14033_v50 = vld [vmem:[#allocation6 + $0x90] sm:$0xff]   ;;  %v7336_v43 = vld [vmem:[#allocation2 + $0x78] sm:$0xe]  ;;  %v7326_v42 = vld [vmem:[#allocation2] sm:$0xe] }
 0x420   : > { %v11695_v46 = vcombine.low %v6697_v16, %v6707_v29  ;;  %v6725_v17 = vor.u32 %v6724_v20, %v6720_v2  ;;  %v6716_v52 = vrot.slane %v6715_v61, 4  ;;  %v6730_v33 = vrot.slane %v6728_v25, 5  ;;  %v14030_v25 = vld [vmem:[#allocation6 + $0x88] sm:$0xff]   ;;  %v14167_v16 = vld [vmem:[#allocation2 + $0x18] sm:$0xf] }
 0x421   : > { %v11714_v58 = vcombine.low %v16033_v22, %v16038_v55  ;;  %v11715_v47 = vcombine.low %v16046_v7, %v16054_v4  ;;  %v11716_v26 = vcombine.low %v16064_v37, %v16066_v21  ;;  %v16175_v29 = vld [vmem:[#allocation2 + $0x1c] sm:$0xf]  ;;  %v7435_v53 = vrot.slane %v16026_v3, 5 }
 0x422   : > { %12925 = vmatprep.mubr.bf16.mxu1 %v11695_v46  ;;  %v6726_v10 = vrot.slane %v6725_v17, 4  ;;  %v6721_v19 = vsel %vm14534_vm9, %v6716_v52, %v6720_v2  ;;  %v16172_v2 = vld [vmem:[#allocation2 + $0x10] sm:$0xf]  ;;  %v11707_v61 = vcombine.low %v14167_v16, %v16175_v29  ;;  %v7333_v46 = vld [vmem:[#allocation2 + $0x54] sm:$0xe]  ;;  %v7425_v52 = vrot.slane %v16007_v56, 5 }
 0x423   : > { %v11706_v20 = vcombine.low %v14165_v39, %v16172_v2  ;;  %v7334_v17 = vld [vmem:[#allocation2 + $0x60] sm:$0xe]  ;;  %v17560_v60 = vcombine.low %v16075_v31, %v16083_v62  ;;  %v7376_v56 = vrot.slane %v16147_v9, 5  ;;  %v17562_v7 = vcombine.low %v16102_v8, %v16114_v35  ;;  %v14172_v8 = vld [vmem:[#allocation2 + $0x14] sm:$0x1] }
 0x424   : > { %v6731_v1 = vsel %vm14534_vm9, %v6726_v10, %v6730_v33  ;;  %v7432_v10 = vrot.slane %v16018_v49, 5  ;;  %v7335_v33 = vld [vmem:[#allocation2 + $0x6c] sm:$0xe]  ;;  %v7427_v39 = vrot.slane %v7425_v52, 4  ;;  %v11737_v16 = vrot.slane %v7334_v17, 9 }
 0x425   : > { %v11696_v23 = vcombine.low %v6721_v19, %v6731_v1  ;;  %v14169_v19 = vld [vmem:[#allocation2 + $0x24] sm:$0xf]  ;;  %v16181_v1 = vld [vmem:[#allocation2 + $0x28] sm:$0xf]  ;;  %v11738_v17 = vrot.slane %v7335_v33, 9  ;;  %v7378_v22 = vrot.slane %v7376_v56, 4 }
 0x426   : > { %v14171_v49 = vld [vmem:[#allocation2 + $0x8] sm:$0x1]  ;;  %v7390_v31 = vrot.slane %v16175_v29, 5  ;;  %v7397_v29 = vrot.slane %v16181_v1, 5 }
 0x427   : > { %12926 = vmatmul.mubr.bf16.gmra.mrb[28].mxu1 %v11696_v23  ;;  %v11708_v23 = vcombine.low %v14169_v19, %v16181_v1  ;;  %v7446_v19 = vrot.slane %v16054_v4, 5  ;;  %v14175_v1 = vld [vmem:[#allocation2 + $0x2c] sm:$0x1] }
 0x428   : > { %12945 = vmatprep.mubr.bf16.mxu1 %v11705_v5  ;;  %v11736_v5 = vrot.slane %v7333_v46, 9  ;;  %v7434_v46 = vrot.slane %v7432_v10, 4 }
 0x429   : > { %v7448_v57 = vrot.slane %v7446_v19, 4 }
 0x42a   : > { %v16205_v3 = vsel %vm14944_vm14, %v7434_v46, %v7435_v53  ;;  %v7453_v46 = vrot.slane %v16066_v21, 5  ;;  %v7383_v21 = vrot.slane %v16172_v2, 5 }
 0x42c   : > { %v7385_v9 = vrot.slane %v7383_v21, 4 }
 0x42f   : > { %12946 = vmatmul.mubr.bf16.vlgmr.msra.gmra.mrb[0].mxu1 %v11706_v20  ;;  %v7428_v20 = vrot.slane %v16014_v40, 5  ;;  %v16198_v40 = vsel %vm14944_vm14, %v11737_v16, %v7432_v10  ;;  %v7338_v16 = vld [vmem:[#allocation2 + $0x90] sm:$0xe]  ;;  %v7340_v10 = vld [vmem:[#allocation2 + $0xa8] sm:$0xe] }
 0x430   : > { %12949 = vmatprep.mubr.bf16.mxu1 %v11707_v61  ;;  %12978 = vmatpush3.bf16.msra.mxu1 %v15962_v27  ;;  %v11709_v27 = vcombine.low %v15919_v45, %v15925_v18  ;;  %v16189_v61 = vsel %vm14944_vm14, %v11736_v5, %v7425_v52  ;;  %v7439_v45 = vrot.slane %v16038_v55, 5  ;;  %v7337_v18 = vld [vmem:[#allocation2 + $0x84] sm:$0xe]  ;;  %v14036_v52 = vld [vmem:[#allocation6 + $0x98] sm:$0xff]   ;;  %v17561_v55 = vcombine.low %v16095_v41, %v16099_v24 }
 0x431   : > { %12979 = vmatprep.subr.bf16.mxu1 %v14030_v25  ;;  %v16194_v38 = vsel %vm14944_vm14, %v7427_v39, %v7428_v20  ;;  %v11739_v39 = vrot.slane %v7336_v43, 9  ;;  %v7449_v20 = vrot.slane %v16057_v30, 5  ;;  %v11740_v53 = vrot.slane %v7337_v18, 9 }
 0x432   : > { %v7441_v33 = vrot.slane %v7439_v45, 4  ;;  %v16214_v5 = vsel %vm14944_vm14, %v11738_v17, %v7439_v45  ;;  %v7456_v30 = vrot.slane %v16079_v0, 5  ;;  %v14039_v17 = vld [vmem:[#allocation6 + $0xa0] sm:$0xff]   ;;  %v11741_v18 = vrot.slane %v7338_v16, 9 }
 0x433   : > { %v16223_v43 = vsel %vm14944_vm14, %v11739_v39, %v7446_v19  ;;  %v11710_v19 = vcombine.low %v15945_v12, %v15959_v28  ;;  %v7463_v39 = vrot.slane %v16091_v14, 5  ;;  %v16240_v45 = vsel %vm14944_vm14, %v11740_v53, %v7453_v46 }
 0x434   : > { %12980 = vmatpush3.bf16.msra.mxu1 %v14030_v25  ;;  %v7442_v25 = vrot.slane %v16044_v13, 5  ;;  %v7467_v12 = vrot.slane %v16099_v24, 5  ;;  %v7474_v53 = vrot.slane %v16114_v35, 5  ;;  %v11711_v28 = vcombine.low %v15969_v59, %v15971_v11  ;;  %v7327_v24 = vld [vmem:[#allocation2 + $0xc] sm:$0xe] }
 0x435   : > { %12981 = vmatprep.subr.bf16.mxu1 %v14033_v50  ;;  %v17563_v41 = vcombine.low %v16120_v63, %v16124_v44  ;;  %v7386_v35 = vrot.slane %v14172_v8, 5  ;;  %v14174_v63 = vld [vmem:[#allocation2 + $0x34] sm:$0xf]  ;;  %v7331_v8 = vld [vmem:[#allocation2 + $0x3c] sm:$0xe] }
 0x436   : > { %v16219_v13 = vsel %vm14944_vm14, %v7441_v33, %v7442_v25  ;;  %v7339_v25 = vld [vmem:[#allocation2 + $0x9c] sm:$0xe]  ;;  %v7476_v0 = vrot.slane %v7474_v53, 4 }
 0x437   : > { %12950 = vmatmul.mubr.bf16.gmra.mrb[4].mxu1 %v11708_v23  ;;  %v7460_v23 = vrot.slane %v16083_v62, 5  ;;  %v11742_v16 = vrot.slane %v7339_v25, 9  ;;  %v7481_v25 = vrot.slane %v16124_v44, 5  ;;  %v7387_v2 = vsel %vm14944_vm14, %v7385_v9, %v7386_v35 }
 0x438   : > { %12953 = vmatprep.mubr.bf16.mxu1 %v11709_v27  ;;  %12982 = vmatpush3.bf16.msra.mxu1 %v14033_v50  ;;  %v16231_v50 = vsel %vm14944_vm14, %v7448_v57, %v7449_v20  ;;  %v7455_v27 = vrot.slane %v7453_v46, 4  ;;  %v7341_v46 = vld [vmem:[#allocation2 + $0xb4] sm:$0xe]  ;;  %v7404_v44 = vrot.slane %v14174_v63, 5 }
 0x439   : > { %12983 = vmatprep.subr.bf16.mxu1 %v14036_v52  ;;  %v7462_v33 = vrot.slane %v7460_v23, 4  ;;  %v16248_v20 = vsel %vm14944_vm14, %v11741_v18, %v7460_v23  ;;  %v7470_v18 = vrot.slane %v16108_v15, 5 }
 0x43a   : > { %v16244_v57 = vsel %vm14944_vm14, %v7455_v27, %v7456_v30  ;;  %v14042_v30 = vld [vmem:[#allocation6 + $0xa8] sm:$0xff]   ;;  %v7469_v27 = vrot.slane %v7467_v12, 4 }
 0x43b   : > { %v16255_v14 = vsel %vm14944_vm14, %v7462_v33, %v7463_v39  ;;  %v7477_v33 = vrot.slane %v16118_v32, 5  ;;  %v16267_v39 = vsel %vm14944_vm14, %v11742_v16, %v7467_v12  ;;  %v7484_v12 = vrot.slane %v16135_v36, 5  ;;  %v14045_v16 = vld [vmem:[#allocation6 + $0xb0] sm:$0xff]   ;;  %v14049_v36 = vld [vmem:[#allocation6 + $0xc0] sm:$0xff]  }
 0x43c   : > { %12984 = vmatpush3.bf16.msra.mxu1 %v14036_v52  ;;  %v11743_v52 = vrot.slane %v7340_v10, 9  ;;  %v16271_v23 = vsel %vm14944_vm14, %v7469_v27, %v7470_v18  ;;  %v11744_v10 = vrot.slane %v7341_v46, 9  ;;  %v17577_v27 = vcombine.low %v16240_v45, %v16244_v57  ;;  %v8959_v45 = vld [vmem:[#allocation2 + $0xb4] sm:$0xe] }
 0x43d   : > { %12985 = vmatprep.subr.bf16.mxu1 %v14039_v17  ;;  %v16281_v32 = vsel %vm14944_vm14, %v7476_v0, %v7477_v33 }
 0x43e   : > { %v16275_v15 = vsel %vm14944_vm14, %v11743_v52, %v7474_v53  ;;  %v16288_v53 = vsel %vm14944_vm14, %v11744_v10, %v7481_v25 }
 0x43f   : > { %12954 = vmatmul.mubr.bf16.gmra.mrb[8].mxu1 %v11710_v19  ;;  %v7483_v19 = vrot.slane %v7481_v25, 4 }
 0x440   : > { %12957 = vmatprep.mubr.bf16.mxu1 %v11711_v28  ;;  %12986 = vmatpush3.bf16.msra.mxu1 %v14039_v17  ;;  %v14048_v28 = vld [vmem:[#allocation6 + $0xb8] sm:$0xff]  }
 0x441   : > { %12987 = vmatprep.subr.bf16.mxu1 %v14042_v30  ;;  %v16292_v17 = vsel %vm14944_vm14, %v7483_v19, %v7484_v12  ;;  %v14050_v19 = vld [vmem:[#allocation6 + $0xc8] sm:$0xff]  }
 0x444   : > { %12988 = vmatpush3.bf16.msra.mxu1 %v14042_v30  ;;  %v11730_v30 = vrot.slane %v7327_v24, 9 }
 0x445   : > { %12989 = vmatprep.subr.bf16.mxu1 %v14045_v16 }
 0x446   : > { %v7384_v33 = vsel %vm14944_vm14, %v11730_v30, %v7383_v21  ;;  %v14053_v30 = vld [vmem:[#allocation6 + $0xe0] sm:$0xff]  }
 0x447   : > { %12958 = vmatmul.mubr.bf16.gmra.mrb[12].mxu1 %v11712_v54  ;;  %v7379_v54 = vrot.slane %v14171_v49, 5  ;;  %v11746_v25 = vcombine.low %v7384_v33, %v7387_v2  ;;  %v14176_v49 = vld [vmem:[#allocation2 + $0x38] sm:$0x1]  ;;  %v11734_v2 = vrot.slane %v7331_v8, 9 }
 0x448   : > { %12961 = vmatprep.mubr.bf16.mxu1 %v11713_v6  ;;  %12990 = vmatpush3.bf16.msra.mxu1 %v14045_v16  ;;  %v11729_v6 = vrot.slane %v7326_v42, 9  ;;  %v7399_v16 = vrot.slane %v7397_v29, 4  ;;  %v7330_v42 = vld [vmem:[#allocation2 + $0x30] sm:$0xe] }
 0x449   : > { %12991 = vmatprep.subr.bf16.mxu1 %v14048_v28  ;;  %v7380_v37 = vsel %vm14944_vm14, %v7378_v22, %v7379_v54  ;;  %v7407_v54 = vrot.slane %v14176_v49, 5  ;;  %v17564_v49 = vcombine.low %v16189_v61, %v16194_v38  ;;  %v16381_v38 = vld [vmem:[#allocation2 + $0x50] sm:$0x1] }
 0x44a   : > { %v7377_v4 = vsel %vm14944_vm14, %v11729_v6, %v7376_v56  ;;  %v7400_v56 = vrot.slane %v14175_v1, 5  ;;  %v14051_v6 = vld [vmem:[#allocation6 + $0xd0] sm:$0xff]   ;;  %v16363_v1 = vld [vmem:[#allocation2 + $0x38] sm:$0x1] }
 0x44b   : > { %v11745_v62 = vcombine.low %v7377_v4, %v7380_v37  ;;  %v11733_v37 = vrot.slane %v7330_v42, 9 }
 0x44c   : > { %12992 = vmatpush3.bf16.msra.mxu1 %v14048_v28  ;;  %v7329_v28 = vld [vmem:[#allocation2 + $0x24] sm:$0xe] }
 0x44d   : > { %13025 = vmatprep.subr.bf16.mxu1 %v14049_v36  ;;  %v11732_v22 = vrot.slane %v7329_v28, 9  ;;  %v7405_v9 = vsel %vm14944_vm14, %v11733_v37, %v7404_v44  ;;  %v16361_v28 = vld [vmem:[#allocation2 + $0x34] sm:$0xf] }
 0x44e   : > { %v9032_v61 = vrot.slane %v16361_v28, 5 }
 0x44f   : > { %12962 = vmatmul.mubr.bf16.gmra.mrb[16].mxu1 %v11714_v58  ;;  %v7392_v58 = vrot.slane %v7390_v31, 4 }
 0x450   : > { %12965 = vmatprep.mubr.bf16.mxu1 %v11715_v47  ;;  %v7328_v47 = vld [vmem:[#allocation2 + $0x18] sm:$0xe]  ;;  %v9034_v8 = vrot.slane %v9032_v61, 4 }
 0x451   : > { %v11731_v18 = vrot.slane %v7328_v47, 9  ;;  %v14178_v47 = vld [vmem:[#allocation2 + $0x44] sm:$0x1] }
 0x453   : > { %v7391_v10 = vsel %vm14944_vm14, %v11731_v18, %v7390_v31  ;;  %v7418_v31 = vrot.slane %v15971_v11, 5  ;;  %v7421_v11 = vrot.slane %v15973_v51, 5  ;;  %v14054_v51 = vld [vmem:[#allocation6 + $0xe8] sm:$0xff]  }
 0x455   : > { %v7420_v35 = vrot.slane %v7418_v31, 4 }
 0x457   : > { %12966 = vmatmul.mubr.bf16.gmra.mrb[20].mxu1 %v11716_v26  ;;  %v14173_v26 = vld [vmem:[#allocation2 + $0x20] sm:$0x1] }
 0x458   : > { %12969 = vmatprep.mubr.bf16.mxu1 %v17560_v60  ;;  %v7393_v46 = vrot.slane %v14173_v26, 5  ;;  %v7406_v60 = vrot.slane %v7404_v44, 4  ;;  %v7414_v26 = vrot.slane %v14178_v47, 5 }
 0x45a   : > { %v7394_v52 = vsel %vm14944_vm14, %v7392_v58, %v7393_v46  ;;  %v7408_v21 = vsel %vm14944_vm14, %v7406_v60, %v7407_v54  ;;  %v7332_v46 = vld [vmem:[#allocation2 + $0x48] sm:$0xe]  ;;  %v8947_v60 = vld [vmem:[#allocation2 + $0x24] sm:$0xe]  ;;  %v16371_v54 = vld [vmem:[#allocation2 + $0x44] sm:$0x1] }
 0x45b   : > { %v11747_v12 = vcombine.low %v7391_v10, %v7394_v52  ;;  %v11749_v24 = vcombine.low %v7405_v9, %v7408_v21  ;;  %v11735_v18 = vrot.slane %v7332_v46, 9  ;;  %v7422_v52 = vsel %vm14944_vm14, %v7420_v35, %v7421_v11  ;;  %v14055_v10 = vld [vmem:[#allocation6 + $0xf0] sm:$0xff]   ;;  %v8949_v21 = vld [vmem:[#allocation2 + $0x3c] sm:$0xe]  ;;  %v16386_v9 = vld [vmem:[#allocation2 + $0x5c] sm:$0x1] }
 0x45c   : > { %v11821_v35 = vrot.slane %v8949_v21, 9  ;;  %v16400_v46 = vld [vmem:[#allocation2 + $0x64] sm:$0xf]  ;;  %v17568_v21 = vcombine.low %v16223_v43, %v16231_v50 }
 0x45d   : > { %v7419_v33 = vsel %vm14944_vm14, %v11735_v18, %v7418_v31  ;;  %v16379_v31 = vld [vmem:[#allocation6 + $0x100] sm:$0xff]  }
 0x45f   : > { %12970 = vmatmul.mubr.bf16.gmra.mrb[24].mxu1 %v17561_v55  ;;  %v7401_v55 = vsel %vm14944_vm14, %v7399_v16, %v7400_v56  ;;  %v14056_v16 = vld [vmem:[#allocation6 + $0xf8] sm:$0xff]   ;;  %v16365_v56 = vld [vmem:[#allocation2 + $0x40] sm:$0xf] }
 0x460   : > { %12973 = vmatprep.mubr.bf16.mxu1 %v17562_v7  ;;  %v14177_v7 = vld [vmem:[#allocation2 + $0x40] sm:$0xf]  ;;  %v9039_v47 = vrot.slane %v16365_v56, 5 }
 0x461   : > { %v7411_v4 = vrot.slane %v14177_v7, 5  ;;  %v11819_v7 = vrot.slane %v8947_v60, 9 }
 0x463   : > { %v7413_v58 = vrot.slane %v7411_v4, 4  ;;  %v7412_v63 = vsel %vm14944_vm14, %v11734_v2, %v7411_v4 }
 0x467   : > { %12974 = vmatmul.mubr.bf16.gmra.mrb[28].mxu1 %v17563_v41  ;;  %v14052_v41 = vld [vmem:[#allocation6 + $0xd8] sm:$0xff]  }
 0x468   : > { %12993 = vmatprep.mubr.bf16.mxu1 %v11745_v62 }
 0x46f   : > { %12994 = vmatmul.mubr.bf16.vlgmr.msra.gmra.mrb[0].mxu1 %v11746_v25  ;;  %v11751_v25 = vcombine.low %v7419_v33, %v7422_v52  ;;  %v16415_v52 = vsel %vm14944_vm14, %v11821_v35, %v9039_v47  ;;  %v8952_v33 = vld [vmem:[#allocation2 + $0x60] sm:$0xe]  ;;  %v16451_v35 = vld [vmem:[#allocation2 + $0x80] sm:$0x1] }
 0x470   : > { %12997 = vmatprep.mubr.bf16.mxu1 %v11747_v12  ;;  %13026 = vmatpush3.bf16.msra.mxu1 %v14049_v36  ;;  %v7398_v36 = vsel %vm14944_vm14, %v11732_v22, %v7397_v29  ;;  %v7415_v29 = vsel %vm14944_vm14, %v7413_v58, %v7414_v26  ;;  %v16359_v12 = vld [vmem:[#allocation2 + $0x2c] sm:$0x1]  ;;  %v8948_v22 = vld [vmem:[#allocation2 + $0x30] sm:$0xe]  ;;  %v8951_v26 = vld [vmem:[#allocation2 + $0x54] sm:$0xe] }
 0x471   : > { %13027 = vmatprep.subr.bf16.mxu1 %v14050_v19  ;;  %v11748_v62 = vcombine.low %v7398_v36, %v7401_v55  ;;  %v11750_v44 = vcombine.low %v7412_v63, %v7415_v29  ;;  %v17565_v55 = vcombine.low %v16198_v40, %v16205_v3  ;;  %v9028_v37 = vrot.slane %v16359_v12, 5  ;;  %v8950_v36 = vld [vmem:[#allocation2 + $0x48] sm:$0xe] }
 0x472   : > { %v11822_v2 = vrot.slane %v8950_v36, 9  ;;  %v9041_v63 = vrot.slane %v9039_v47, 4 }
 0x474   : > { %13028 = vmatpush3.bf16.msra.mxu1 %v14050_v19  ;;  %v16357_v19 = vld [vmem:[#allocation2 + $0x28] sm:$0xf] }
 0x475   : > { %13029 = vmatprep.subr.bf16.mxu1 %v14051_v6  ;;  %v9025_v42 = vrot.slane %v16357_v19, 5 }
 0x477   : > { %12998 = vmatmul.mubr.bf16.gmra.mrb[4].mxu1 %v11748_v62  ;;  %v9027_v4 = vrot.slane %v9025_v42, 4  ;;  %v16384_v62 = vld [vmem:[#allocation2 + $0x58] sm:$0xf]  ;;  %v16390_v40 = vsel %vm14944_vm14, %v11819_v7, %v9025_v42  ;;  %v17566_v42 = vcombine.low %v16214_v5, %v16219_v13  ;;  %v9056_v7 = vrot.slane %v16386_v9, 5  ;;  %v16441_v5 = vld [vmem:[#allocation2 + $0x7c] sm:$0xf] }
 0x478   : > { %13001 = vmatprep.mubr.bf16.mxu1 %v11749_v24  ;;  %13030 = vmatpush3.bf16.msra.mxu1 %v14051_v6  ;;  %v16373_v6 = vld [vmem:[#allocation2 + $0x4c] sm:$0xf]  ;;  %v9035_v24 = vrot.slane %v16363_v1, 5  ;;  %v9053_v60 = vrot.slane %v16384_v62, 5  ;;  %v16487_v13 = vld [vmem:[#allocation2 + $0xa0] sm:$0xf] }
 0x479   : > { %13031 = vmatprep.subr.bf16.mxu1 %v14052_v41  ;;  %v16394_v3 = vsel %vm14944_vm14, %v9027_v4, %v9028_v37  ;;  %v9046_v29 = vrot.slane %v16373_v6, 5  ;;  %v9060_v4 = vrot.slane %v16400_v46, 5  ;;  %v8953_v37 = vld [vmem:[#allocation2 + $0x6c] sm:$0xe] }
 0x47a   : > { %v16411_v18 = vsel %vm14944_vm14, %v9034_v8, %v9035_v24  ;;  %v9055_v36 = vrot.slane %v9053_v60, 4  ;;  %v8954_v24 = vld [vmem:[#allocation2 + $0x78] sm:$0xe]  ;;  %v16449_v8 = vld [vmem:[#allocation2 + $0x74] sm:$0x1] }
 0x47b   : > { %v9062_v47 = vrot.slane %v9060_v4, 4  ;;  %v9070_v43 = vrot.slane %v16449_v8, 5 }
 0x47c   : > { %13032 = vmatpush3.bf16.msra.mxu1 %v14052_v41  ;;  %v11820_v41 = vrot.slane %v8948_v22, 9 }
 0x47d   : > { %13033 = vmatprep.subr.bf16.mxu1 %v14053_v30 }
 0x47e   : > { %v16404_v11 = vsel %vm14944_vm14, %v11820_v41, %v9032_v61  ;;  %v11824_v41 = vrot.slane %v8952_v33, 9 }
 0x47f   : > { %13002 = vmatmul.mubr.bf16.gmra.mrb[8].mxu1 %v11750_v44  ;;  %v9049_v44 = vrot.slane %v16381_v38, 5 }
 0x480   : > { %13005 = vmatprep.mubr.bf16.mxu1 %v11751_v25  ;;  %13034 = vmatpush3.bf16.msra.mxu1 %v14053_v30  ;;  %v9042_v30 = vrot.slane %v16371_v54, 5 }
 0x481   : > { %13035 = vmatprep.subr.bf16.mxu1 %v14054_v51 }
 0x482   : > { %v16430_v22 = vsel %vm14944_vm14, %v9041_v63, %v9042_v30  ;;  %v16460_v30 = vld [vmem:[#allocation2 + $0x88] sm:$0xf]  ;;  %v16468_v63 = vsel %vm14944_vm14, %v11824_v41, %v9060_v4  ;;  %v8230_v4 = vld [vmem:[#allocation2 + $0xa4] sm:$0x1] }
 0x483   : > { %17572 = vst [vmem:[#allocation16_spill] sm:$0xff] %v16468_v63  ;;  %v9081_v25 = vrot.slane %v16460_v30, 5 }
 0x484   : > { %13036 = vmatpush3.bf16.msra.mxu1 %v14054_v51  ;;  %v16418_v51 = vld [vmem:[#allocation2 + $0x68] sm:$0x1] }
 0x485   : > { %13037 = vmatprep.subr.bf16.mxu1 %v14055_v10 }
 0x487   : > { %13006 = vmatmul.mubr.bf16.gmra.mrb[12].mxu1 %v17564_v49  ;;  %v16426_v49 = vld [vmem:[#allocation2 + $0x70] sm:$0xf] }
 0x488   : > { %13009 = vmatprep.mubr.bf16.mxu1 %v17565_v55  ;;  %13038 = vmatpush3.bf16.msra.mxu1 %v14055_v10  ;;  %v9048_v10 = vrot.slane %v9046_v29, 4  ;;  %v16434_v55 = vsel %vm14944_vm14, %v11822_v2, %v9046_v29  ;;  %v8224_v2 = vld [vmem:[#allocation2 + $0x8c] sm:$0x1]  ;;  %v16464_v29 = vsel %vm14944_vm14, %v9055_v36, %v9056_v7  ;;  %v9067_v33 = vrot.slane %v16426_v49, 5  ;;  %v8227_v36 = vld [vmem:[#allocation2 + $0x98] sm:$0x1] }
 0x489   : > { %13039 = vmatprep.subr.bf16.mxu1 %v14056_v16  ;;  %17567 = vst [vmem:[#allocation17_spill] sm:$0xff] %v16434_v55  ;;  %17571 = vst [vmem:[#allocation15_spill] sm:$0xff] %v16464_v29  ;;  %v9074_v7 = vrot.slane %v16441_v5, 5  ;;  %v9084_v58 = vrot.slane %v8224_v2, 5  ;;  %v17579_v2 = vcombine.low %v16248_v20, %v16255_v14  ;;  %v16514_v29 = vld [vmem:[#allocation2 + $0xb8] sm:$0xf] }
 0x48a   : > { %v16447_v61 = vsel %vm14944_vm14, %v9048_v10, %v9049_v44  ;;  %v11825_v44 = vrot.slane %v8953_v37, 9  ;;  %v16471_v10 = vld [vmem:[#allocation2 + $0x94] sm:$0xf]  ;;  %v9069_v41 = vrot.slane %v9067_v33, 4  ;;  %v9095_v14 = vrot.slane %v16487_v13, 5 }
 0x48b   : > { %17569 = vst [vmem:[#allocation18_spill] sm:$0xff] %v16447_v61  ;;  %v9088_v0 = vrot.slane %v16471_v10, 5 }
 0x48c   : > { %13040 = vmatpush3.bf16.msra.mxu1 %v14056_v16  ;;  %v11823_v16 = vrot.slane %v8951_v26, 9  ;;  %v9063_v26 = vrot.slane %v16418_v51, 5  ;;  %v16484_v37 = vsel %vm14944_vm14, %v11825_v44, %v9067_v33  ;;  %v16497_v44 = vsel %vm14944_vm14, %v9069_v41, %v9070_v43  ;;  %v8957_v43 = vld [vmem:[#allocation2 + $0x9c] sm:$0xe]  ;;  %v8958_v41 = vld [vmem:[#allocation2 + $0xa8] sm:$0xe] }
 0x48d   : > { %13073 = vmatprep.subr.bf16.mxu1 %v16379_v31  ;;  %17574 = vst [vmem:[#allocation13_spill] sm:$0xff] %v16484_v37  ;;  %17576 = vst [vmem:[#allocation20_spill] sm:$0xff] %v16497_v44  ;;  %v9090_v57 = vrot.slane %v9088_v0, 4 }
 0x48e   : > { %v16457_v50 = vsel %vm14944_vm14, %v11823_v16, %v9053_v60  ;;  %v16477_v60 = vsel %vm14944_vm14, %v9062_v47, %v9063_v26  ;;  %v8956_v16 = vld [vmem:[#allocation2 + $0x90] sm:$0xe]  ;;  %v9076_v47 = vrot.slane %v9074_v7, 4  ;;  %v9077_v26 = vrot.slane %v16451_v35, 5 }
 0x48f   : > { %13010 = vmatmul.mubr.bf16.gmra.mrb[16].mxu1 %v17566_v42  ;;  %17570 = vst [vmem:[#allocation19_spill] sm:$0xff] %v16457_v50  ;;  %17573 = vst [vmem:[#allocation14_spill] sm:$0xff] %v16477_v60  ;;  %v11826_v42 = vrot.slane %v8954_v24, 9  ;;  %v9083_v60 = vrot.slane %v9081_v25, 4  ;;  %v11828_v63 = vrot.slane %v8956_v16, 9 }
 0x490   : > { %13013 = vmatprep.mubr.bf16.mxu1 %v17568_v21  ;;  %v8955_v21 = vld [vmem:[#allocation2 + $0x84] sm:$0xe]  ;;  %v16507_v59 = vsel %vm14944_vm14, %v9076_v47, %v9077_v26  ;;  %v8216_v50 = vld [vmem:[#allocation2 + $0x6c] sm:$0xf] }
 0x491   : > { %v16491_v24 = vsel %vm14944_vm14, %v11826_v42, %v9074_v7  ;;  %v11827_v33 = vrot.slane %v8955_v21, 9  ;;  %v8232_v42 = vld [vmem:[#allocation2 + $0xac] sm:$0xf]  ;;  %17578 = vst [vmem:[#allocation21_spill] sm:$0xff] %v16507_v59  ;;  %v8233_v21 = vld [vmem:[#allocation2 + $0xb0] sm:$0x1]  ;;  %v16522_v16 = vsel %vm14944_vm14, %v9083_v60, %v9084_v58  ;;  %v16526_v20 = vsel %vm14944_vm14, %v11828_v63, %v9088_v0 }
 0x492   : > { %17575 = vst [vmem:[#allocation12_spill] sm:$0xff] %v16491_v24  ;;  %v8236_v7 = vld [vmem:[#allocation2 + $0xbc] sm:$0x1]  ;;  %17581 = vst [vmem:[#allocation23_spill] sm:$0xff] %v16522_v16  ;;  %v8238_v26 = vld [vmem:[#allocation2 + $0xc4] sm:$0xf]  ;;  %v17588_v58 = vcombine.low %v16267_v39, %v16271_v23 }
 0x493   : > { %v16518_v47 = vsel %vm14944_vm14, %v11827_v33, %v9081_v25  ;;  %17582 = vst [vmem:[#allocation24_spill] sm:$0xff] %v16526_v20  ;;  %v11829_v25 = vrot.slane %v8957_v43, 9  ;;  %v9102_v33 = vrot.slane %v8232_v42, 5  ;;  %v8239_v59 = vld [vmem:[#allocation2 + $0xc8] sm:$0x1]  ;;  %v9097_v60 = vrot.slane %v9095_v14, 4 }
 0x494   : > { %17580 = vst [vmem:[#allocation22_spill] sm:$0xff] %v16518_v47  ;;  %v9098_v0 = vrot.slane %v8230_v4, 5  ;;  %v11830_v63 = vrot.slane %v8958_v41, 9  ;;  %v9109_v16 = vrot.slane %v16514_v29, 5  ;;  %v9116_v4 = vrot.slane %v8238_v26, 5  ;;  %v14070_v47 = vld [vmem:[#allocation2 + $0x78] sm:$0xff]  }
 0x495   : > { %v16539_v24 = vsel %vm14944_vm14, %v11829_v25, %v9095_v14  ;;  %v9104_v44 = vrot.slane %v9102_v33, 4  ;;  %v9112_v25 = vrot.slane %v8236_v7, 5  ;;  %v17589_v26 = vcombine.low %v16275_v15, %v16281_v32  ;;  %v14057_v32 = vld [vmem:[#allocation2 + $0xc] sm:$0xff]  }
 0x496   : > { %17584 = vst [vmem:[#allocation26_spill] sm:$0xff] %v16539_v24  ;;  %v16544_v42 = vsel %vm14944_vm14, %v9097_v60, %v9098_v0  ;;  %v16548_v43 = vsel %vm14944_vm14, %v11830_v63, %v9102_v33  ;;  %v9118_v0 = vrot.slane %v9116_v4, 4  ;;  %v14060_v63 = vld [vmem:[#allocation2 + $0x24] sm:$0xff]  }
 0x497   : > { %13014 = vmatmul.mubr.bf16.gmra.mrb[20].mxu1 %v17577_v27  ;;  %v9091_v27 = vrot.slane %v8227_v36, 5  ;;  %v9105_v36 = vrot.slane %v8233_v21, 5  ;;  %17585 = vst [vmem:[#allocation27_spill] sm:$0xff] %v16544_v42  ;;  %17586 = vst [vmem:[#allocation28_spill] sm:$0xff] %v16548_v43  ;;  %v9111_v21 = vrot.slane %v9109_v16, 4  ;;  %v8302_v42 = vshrl.u32 %v16357_v19, 16 }
 0x498   : > { %13017 = vmatprep.mubr.bf16.mxu1 %v17579_v2 }
 0x499   : > { %v16533_v2 = vsel %vm14944_vm14, %v9090_v57, %v9091_v27  ;;  %v8960_v57 = vld [vmem:[#allocation2 + $0xc0] sm:$0xe]  ;;  %v11831_v27 = vrot.slane %v8959_v45, 9  ;;  %v16554_v14 = vsel %vm14944_vm14, %v9104_v44, %v9105_v36  ;;  %v9119_v45 = vrot.slane %v8239_v59, 5  ;;  %v14058_v36 = vld [vmem:[#allocation2 + $0x18] sm:$0xff]  }
 0x49a   : > { %17583 = vst [vmem:[#allocation25_spill] sm:$0xff] %v16533_v2  ;;  %17587 = vst [vmem:[#allocation29_spill] sm:$0xff] %v16554_v14  ;;  %v11832_v33 = vrot.slane %v8960_v57, 9  ;;  %v16570_v7 = vsel %vm14944_vm14, %v9111_v21, %v9112_v25  ;;  %v14065_v57 = vld [vmem:[#allocation6 + $0x110] sm:$0xff]  }
 0x49b   : > { %v16566_v44 = vsel %vm14944_vm14, %v11831_v27, %v9109_v16  ;;  %17591 = vst [vmem:[#allocation31_spill] sm:$0xff] %v16570_v7  ;;  %v16580_v59 = vsel %vm14944_vm14, %v9118_v0, %v9119_v45  ;;  %v17594_v16 = vcombine.low %v16288_v53, %v16292_v17  ;;  %v8192_v27 = vld [vmem:[#allocation2 + $0xc] sm:$0xf]  ;;  %v8195_v45 = vld [vmem:[#allocation2 + $0x18] sm:$0xf]  ;;  %v14061_v53 = vld [vmem:[#allocation2 + $0x30] sm:$0xff]  }
 0x49c   : > { %17590 = vst [vmem:[#allocation30_spill] sm:$0xff] %v16566_v44  ;;  %v16576_v39 = vsel %vm14944_vm14, %v11832_v33, %v9116_v4  ;;  %17593 = vst [vmem:[#allocation33_spill] sm:$0xff] %v16580_v59  ;;  %v8193_v4 = vld [vmem:[#allocation2 + $0x10] sm:$0xf]  ;;  %v8241_v21 = vshrl.u32 %v8192_v27, 16  ;;  %v8244_v25 = vshll.u32 %v8192_v27, 16 }
 0x49d   : > { %17592 = vst [vmem:[#allocation32_spill] sm:$0xff] %v16576_v39  ;;  %v8250_v33 = vshll.u32 %v8193_v4, 16  ;;  %v8254_v0 = vshrl.u32 %v8193_v4, 16  ;;  %v14068_v17 = vld [vmem:[#allocation6 + $0x118] sm:$0xff]   ;;  %v8198_v39 = vld [vmem:[#allocation2 + $0x24] sm:$0xf] }
 0x49e   : > { %v16588_v4 = vld [vmem:[#allocation2 + $0x14] sm:$0x1]  ;;  %v14064_v44 = vld [vmem:[#allocation2 + $0x48] sm:$0xff]  }
 0x49f   : > { %13018 = vmatmul.mubr.bf16.gmra.mrb[24].mxu1 %v17588_v58  ;;  %v14062_v58 = vld [vmem:[#allocation6 + $0x108] sm:$0xff]   ;;  %v8252_v15 = vrot.slane %v8250_v33, 5  ;;  %v8256_v23 = vrot.slane %v8254_v0, 4  ;;  %v8260_v33 = vshll.u32 %v16588_v4, 16 }
 0x4a0   : > { %13021 = vmatprep.mubr.bf16.mxu1 %v17589_v26  ;;  %v14063_v26 = vld [vmem:[#allocation2 + $0x3c] sm:$0xff]  }
 0x4a1   : > { %v16593_v0 = vld [vmem:[#allocation2 + $0x20] sm:$0x1] }
 0x4a7   : > { %13022 = vmatmul.mubr.bf16.gmra.mrb[28].mxu1 %v17594_v16  ;;  %v8265_v16 = vshrl.u32 %v8195_v45, 16 }
 0x4a8   : > { %13041 = vmatprep.mubr.bf16.mxu1 %v14057_v32  ;;  %v8196_v32 = vld [vmem:[#allocation2 + $0x1c] sm:$0xf] }
 0x4a9   : > { %v8274_v27 = vshll.u32 %v8196_v32, 16  ;;  %v8278_v60 = vshrl.u32 %v8196_v32, 16  ;;  %v8267_v41 = vrot.slane %v8265_v16, 4  ;;  %v8292_v32 = vshll.u32 %v8198_v39, 16 }
 0x4ab   : > { %v8294_v43 = vrot.slane %v8292_v32, 5 }
 0x4af   : > { %13042 = vmatmul.mubr.bf16.vlgmr.msra.gmra.mrb[0].mxu1 %v14058_v36  ;;  %v8268_v36 = vshll.u32 %v8195_v45, 16  ;;  %v14074_v45 = vld [vmem:[#allocation6 + $0x128] sm:$0xff]  }
 0x4b0   : > { %13045 = vmatprep.mubr.bf16.mxu1 %v14060_v63  ;;  %13074 = vmatpush3.bf16.msra.mxu1 %v16379_v31  ;;  %v8243_v31 = vrot.slane %v8241_v21, 4  ;;  %v8246_v63 = vrot.slane %v8244_v25, 5  ;;  %v8280_v21 = vrot.slane %v8278_v60, 4  ;;  %v14066_v25 = vld [vmem:[#allocation2 + $0x54] sm:$0xff]   ;;  %v8298_v60 = vshll.u32 %v16357_v19, 16  ;;  %v14069_v19 = vld [vmem:[#allocation2 + $0x6c] sm:$0xff]  }
 0x4b1   : > { %13075 = vmatprep.subr.bf16.mxu1 %v14062_v58  ;;  %v8270_v59 = vrot.slane %v8268_v36, 5 }
 0x4b2   : > { %v8247_v7 = vor.u32 %v8246_v63, %v8243_v31  ;;  %v8284_v63 = vshll.u32 %v16593_v0, 16 }
 0x4b3   : > { %v8271_v16 = vor.u32 %v8270_v59, %v8267_v41  ;;  %v8204_v59 = vld [vmem:[#allocation2 + $0x3c] sm:$0xf] }
 0x4b4   : > { %13076 = vmatpush3.bf16.msra.mxu1 %v14062_v58  ;;  %v14071_v58 = vld [vmem:[#allocation6 + $0x120] sm:$0xff]  }
 0x4b5   : > { %13077 = vmatprep.subr.bf16.mxu1 %v14065_v57 }
 0x4b7   : > { %13046 = vmatmul.mubr.bf16.gmra.mrb[4].mxu1 %v14061_v53  ;;  %v8257_v53 = vor.u32 %v8256_v23, %v8252_v15  ;;  %v14077_v23 = vld [vmem:[#allocation6 + $0x130] sm:$0xff]  }
 0x4b8   : > { %13049 = vmatprep.mubr.bf16.mxu1 %v14063_v26  ;;  %13078 = vmatpush3.bf16.msra.mxu1 %v14065_v57  ;;  %v16590_v57 = vrot.slane %v8274_v27, 5  ;;  %v8289_v26 = vshrl.u32 %v8198_v39, 16  ;;  %v8262_v27 = vrot.slane %v8260_v33, 5  ;;  %v8272_v39 = vrot.slane %v8271_v16, 4 }
 0x4b9   : > { %13079 = vmatprep.subr.bf16.mxu1 %v14068_v17  ;;  %v8258_v36 = vrot.slane %v8257_v53, 4  ;;  %v14080_v53 = vld [vmem:[#allocation6 + $0x138] sm:$0xff]   ;;  %v16603_v33 = vrot.slane %v8298_v60, 5  ;;  %v8304_v16 = vrot.slane %v8302_v42, 4  ;;  %v8350_v42 = vshrl.u32 %v16365_v56, 16 }
 0x4ba   : > { %v8281_v31 = vor.u32 %v8280_v21, %v16590_v57  ;;  %v8291_v14 = vrot.slane %v8289_v26, 4  ;;  %v8308_v26 = vshll.u32 %v16359_v12, 16  ;;  %v8340_v12 = vshll.u32 %v8204_v59, 16 }
 0x4bb   : > { %v8352_v20 = vrot.slane %v8350_v42, 4 }
 0x4bc   : > { %13080 = vmatpush3.bf16.msra.mxu1 %v14068_v17  ;;  %v8248_v17 = vrot.slane %v8247_v7, 4  ;;  %v8263_v7 = vsel %vm14534_vm9, %v8258_v36, %v8262_v27  ;;  %v8282_v21 = vrot.slane %v8281_v31, 4  ;;  %v8295_v32 = vor.u32 %v8294_v43, %v8291_v14  ;;  %v8207_v14 = vld [vmem:[#allocation2 + $0x48] sm:$0xf]  ;;  %v16617_v27 = vld [vmem:[#allocation6 + $0x140] sm:$0xff]  }
 0x4bd   : > { %13081 = vmatprep.subr.bf16.mxu1 %v14071_v58  ;;  %v8322_v36 = vshll.u32 %v16361_v28, 16  ;;  %v8326_v31 = vshrl.u32 %v16361_v28, 16  ;;  %v8346_v43 = vshll.u32 %v16365_v56, 16  ;;  %v8374_v28 = vshrl.u32 %v16373_v6, 16  ;;  %v8210_v56 = vld [vmem:[#allocation2 + $0x54] sm:$0xf] }
 0x4be   : > { %v8253_v41 = vsel %vm14534_vm9, %v8248_v17, %v8252_v15  ;;  %v8277_v17 = vsel %vm14534_vm9, %v8272_v39, %v16590_v57  ;;  %v16619_v57 = vrot.slane %v8308_v26, 5  ;;  %v8370_v39 = vshll.u32 %v16373_v6, 16 }
 0x4bf   : > { %13050 = vmatmul.mubr.bf16.gmra.mrb[8].mxu1 %v14064_v44  ;;  %v8201_v44 = vld [vmem:[#allocation2 + $0x30] sm:$0xf]  ;;  %v16606_v15 = vcombine.low %v8253_v41, %v8263_v7  ;;  %v8342_v26 = vrot.slane %v8340_v12, 5  ;;  %v16628_v2 = vrot.slane %v8346_v43, 5  ;;  %v8332_v43 = vshll.u32 %v16363_v1, 16 }
 0x4c0   : > { %13053 = vmatprep.mubr.bf16.mxu1 %v14066_v25  ;;  %13082 = vmatpush3.bf16.msra.mxu1 %v14071_v58  ;;  %v14067_v58 = vld [vmem:[#allocation2 + $0x60] sm:$0xff]   ;;  %v8286_v25 = vrot.slane %v8284_v63, 5  ;;  %v8316_v24 = vshll.u32 %v8201_v44, 16  ;;  %v8337_v63 = vshrl.u32 %v8204_v59, 16  ;;  %v16626_v59 = vrot.slane %v8322_v36, 5 }
 0x4c1   : > { %13083 = vmatprep.subr.bf16.mxu1 %v14074_v45  ;;  %v16631_v6 = vrot.slane %v8370_v39, 5  ;;  %v8213_v39 = vld [vmem:[#allocation2 + $0x60] sm:$0xf] }
 0x4c2   : > { %v8287_v60 = vsel %vm14534_vm9, %v8282_v21, %v8286_v25  ;;  %v8318_v7 = vrot.slane %v8316_v24, 5  ;;  %v8364_v21 = vshll.u32 %v8207_v14, 16  ;;  %v8339_v25 = vrot.slane %v8337_v63, 4 }
 0x4c3   : > { %v8388_v24 = vshll.u32 %v8210_v56, 16  ;;  %v16633_v36 = vcombine.low %v8277_v17, %v8287_v60  ;;  %v8398_v63 = vshrl.u32 %v16384_v62, 16  ;;  %v8353_v60 = vor.u32 %v8352_v20, %v16628_v2 }
 0x4c4   : > { %13084 = vmatpush3.bf16.msra.mxu1 %v14074_v45  ;;  %v8313_v45 = vshrl.u32 %v8201_v44, 16  ;;  %v8305_v44 = vor.u32 %v8304_v16, %v16603_v33  ;;  %v8385_v16 = vshrl.u32 %v8210_v56, 16  ;;  %v8356_v56 = vshll.u32 %v16371_v54, 16 }
 0x4c5   : > { %13085 = vmatprep.subr.bf16.mxu1 %v14077_v23  ;;  %v8409_v1 = vshrl.u32 %v8213_v39, 16 }
 0x4c6   : > { %v8315_v41 = vrot.slane %v8313_v45, 4  ;;  %v14072_v45 = vld [vmem:[#allocation2 + $0x84] sm:$0xff]   ;;  %v8306_v12 = vrot.slane %v8305_v44, 4  ;;  %v8387_v37 = vrot.slane %v8385_v16, 4  ;;  %v8400_v44 = vrot.slane %v8398_v63, 4  ;;  %v14075_v63 = vld [vmem:[#allocation2 + $0x9c] sm:$0xff]  }
 0x4c7   : > { %13054 = vmatmul.mubr.bf16.gmra.mrb[12].mxu1 %v14067_v58  ;;  %v8328_v58 = vrot.slane %v8326_v31, 4  ;;  %v8394_v31 = vshll.u32 %v16384_v62, 16  ;;  %v8390_v62 = vrot.slane %v8388_v24, 5  ;;  %v8358_v16 = vrot.slane %v8356_v56, 5 }
 0x4c8   : > { %13057 = vmatprep.mubr.bf16.mxu1 %v14069_v19  ;;  %13086 = vmatpush3.bf16.msra.mxu1 %v14077_v23  ;;  %v16623_v23 = vrot.slane %v8295_v32, 4  ;;  %v8361_v19 = vshrl.u32 %v8207_v14, 16  ;;  %v8376_v32 = vrot.slane %v8374_v28, 4  ;;  %v8366_v14 = vrot.slane %v8364_v21, 5 }
 0x4c9   : > { %13087 = vmatprep.subr.bf16.mxu1 %v14080_v53  ;;  %v8319_v28 = vor.u32 %v8318_v7, %v8315_v41  ;;  %v8329_v17 = vor.u32 %v8328_v58, %v16626_v59  ;;  %v8418_v41 = vshll.u32 %v16400_v46, 16  ;;  %v8422_v7 = vshrl.u32 %v16400_v46, 16 }
 0x4ca   : > { %v8363_v42 = vrot.slane %v8361_v19, 4  ;;  %v8412_v19 = vshll.u32 %v8213_v39, 16  ;;  %v8311_v54 = vsel %vm14534_vm9, %v8306_v12, %v16619_v57  ;;  %v8334_v58 = vrot.slane %v8332_v43, 5 }
 0x4cb   : > { %v8330_v20 = vrot.slane %v8329_v17, 4  ;;  %v16655_v55 = vrot.slane %v8418_v41, 5  ;;  %v8424_v57 = vrot.slane %v8422_v7, 4  ;;  %v8433_v56 = vshrl.u32 %v8216_v50, 16 }
 0x4cc   : > { %13088 = vmatpush3.bf16.msra.mxu1 %v14080_v53  ;;  %v8301_v53 = vsel %vm14534_vm9, %v16623_v23, %v16603_v33  ;;  %v8343_v33 = vor.u32 %v8342_v26, %v8339_v25  ;;  %v8377_v23 = vor.u32 %v8376_v32, %v16631_v6  ;;  %v8367_v21 = vor.u32 %v8366_v14, %v8363_v42  ;;  %v14073_v26 = vld [vmem:[#allocation2 + $0x90] sm:$0xff]  }
 0x4cd   : > { %13121 = vmatprep.subr.bf16.mxu1 %v16617_v27  ;;  %v8354_v25 = vrot.slane %v8353_v60, 4  ;;  %v8320_v32 = vrot.slane %v8319_v28, 4  ;;  %v8411_v14 = vrot.slane %v8409_v1, 4  ;;  %v8414_v39 = vrot.slane %v8412_v19, 5  ;;  %v16683_v19 = vld [vmem:[#allocation2 + $0x78] sm:$0xf] }
 0x4ce   : > { %v8378_v24 = vrot.slane %v8377_v23, 4  ;;  %v8344_v42 = vrot.slane %v8343_v33, 4  ;;  %v8368_v46 = vrot.slane %v8367_v21, 4  ;;  %v16657_v12 = vcombine.low %v8301_v53, %v8311_v54  ;;  %v16694_v54 = vld [vmem:[#allocation2 + $0x20] sm:$0x1] }
 0x4cf   : > { %13058 = vmatmul.mubr.bf16.gmra.mrb[16].mxu1 %v14070_v47  ;;  %v16646_v47 = vrot.slane %v8394_v31, 5  ;;  %v8391_v31 = vor.u32 %v8390_v62, %v8387_v37  ;;  %v8335_v43 = vsel %vm14534_vm9, %v8330_v20, %v8334_v58  ;;  %v8359_v37 = vsel %vm14534_vm9, %v8354_v25, %v8358_v16  ;;  %17596 = vst [vmem:[#allocation35_spill] sm:$0xff] %v16694_v54  ;;  %v14076_v20 = vld [vmem:[#allocation2 + $0xa8] sm:$0xff]   ;;  %v14078_v16 = vld [vmem:[#allocation2 + $0xb4] sm:$0xff]  }
 0x4d0   : > { %13061 = vmatprep.mubr.bf16.mxu1 %v14072_v45  ;;  %v8380_v45 = vshll.u32 %v16381_v38, 16  ;;  %v8404_v28 = vshll.u32 %v16386_v9, 16  ;;  %v8436_v33 = vshll.u32 %v8216_v50, 16  ;;  %v8325_v53 = vsel %vm14534_vm9, %v8320_v32, %v16626_v59  ;;  %v16685_v59 = vld [vmem:[#allocation2 + $0x1c] sm:$0xf] }
 0x4d1   : > { %v8401_v38 = vor.u32 %v8400_v44, %v16646_v47  ;;  %v16666_v60 = vrot.slane %v8391_v31, 4  ;;  %v8415_v62 = vor.u32 %v8414_v39, %v8411_v14  ;;  %v8442_v44 = vshll.u32 %v16426_v49, 16  ;;  %17595 = vst [vmem:[#allocation34_spill] sm:$0xff] %v16685_v59  ;;  %v10580_v32 = vld [vmem:[#allocation2 + $0x18] sm:$0xe] }
 0x4d2   : > { %v8382_v61 = vrot.slane %v8380_v45, 5  ;;  %v16674_v1 = vcombine.low %v8325_v53, %v8335_v43  ;;  %v8349_v9 = vsel %vm14534_vm9, %v8344_v42, %v16628_v2  ;;  %v8425_v50 = vor.u32 %v8424_v57, %v16655_v55  ;;  %v16696_v2 = vld [vmem:[#allocation2 + $0x28] sm:$0xf]  ;;  %v16715_v42 = vld [vmem:[#allocation2 + $0x34] sm:$0xf] }
 0x4d3   : > { %v16671_v23 = vrot.slane %v8401_v38, 4  ;;  %v16687_v21 = vcombine.low %v8349_v9, %v8359_v37  ;;  %v16691_v41 = vrot.slane %v8404_v28, 5  ;;  %17597 = vst [vmem:[#allocation36_spill] sm:$0xff] %v16696_v2  ;;  %v16702_v58 = vrot.slane %v8433_v56, 4  ;;  %17598 = vst [vmem:[#allocation37_spill] sm:$0xff] %v16715_v42  ;;  %v14079_v9 = vld [vmem:[#allocation2 + $0xc0] sm:$0xff]  }
 0x4d4   : > { %v8383_v17 = vsel %vm14534_vm9, %v8378_v24, %v8382_v61  ;;  %v8373_v61 = vsel %vm14534_vm9, %v8368_v46, %v16631_v6  ;;  %v16704_v25 = vrot.slane %v8436_v33, 5  ;;  %v16711_v31 = vrot.slane %v8415_v62, 4  ;;  %v10581_v14 = vld [vmem:[#allocation2 + $0x24] sm:$0xe]  ;;  %v16723_v43 = vld [vmem:[#allocation2 + $0x2c] sm:$0x1] }
 0x4d5   : > { %v16689_v45 = vcombine.low %v8373_v61, %v8383_v17  ;;  %v10646_v38 = vrot.slane %v16685_v59, 5  ;;  %v16718_v39 = vrot.slane %v8425_v50, 4  ;;  %v8457_v46 = vshrl.u32 %v16683_v19, 16  ;;  %17599 = vst [vmem:[#allocation38_spill] sm:$0xff] %v16723_v43  ;;  %v16725_v37 = vld [vmem:[#allocation2 + $0x38] sm:$0x1] }
 0x4d6   : > { %17600 = vst [vmem:[#allocation39_spill] sm:$0xff] %v16725_v37  ;;  %v16727_v28 = vld [vmem:[#allocation2 + $0x40] sm:$0xf]  ;;  %v11905_v17 = vrot.slane %v10580_v32, 9  ;;  %v10649_v33 = vrot.slane %v16694_v54, 5  ;;  %v10653_v53 = vrot.slane %v16696_v2, 5 }
 0x4d7   : > { %13062 = vmatmul.mubr.bf16.gmra.mrb[20].mxu1 %v14073_v26  ;;  %v8446_v26 = vshrl.u32 %v16426_v49, 16  ;;  %17601 = vst [vmem:[#allocation40_spill] sm:$0xff] %v16727_v28  ;;  %v10648_v56 = vrot.slane %v10646_v38, 4  ;;  %v11906_v61 = vrot.slane %v10581_v14, 9  ;;  %v10582_v50 = vld [vmem:[#allocation2 + $0x30] sm:$0xe] }
 0x4d8   : > { %13065 = vmatprep.mubr.bf16.mxu1 %v14075_v63  ;;  %v16713_v63 = vrot.slane %v8442_v44, 5  ;;  %v10655_v49 = vrot.slane %v10653_v53, 4  ;;  %v10656_v7 = vrot.slane %v16723_v43, 5  ;;  %v10583_v6 = vld [vmem:[#allocation2 + $0x3c] sm:$0xe]  ;;  %v10667_v57 = vrot.slane %v16727_v28, 5 }
 0x4d9   : > { %v16733_v44 = vrot.slane %v8446_v26, 4  ;;  %v16744_v32 = vsel %vm14944_vm14, %v10648_v56, %v10649_v33  ;;  %v16747_v26 = vrot.slane %v8457_v46, 4  ;;  %v16750_v14 = vld [vmem:[#allocation2 + $0x44] sm:$0x1]  ;;  %v16757_v56 = vsel %vm14944_vm14, %v11906_v61, %v10653_v53  ;;  %v10584_v24 = vld [vmem:[#allocation2 + $0x48] sm:$0xe] }
 0x4da   : > { %17604 = vst [vmem:[#allocation43_spill] sm:$0xff] %v16744_v32  ;;  %17605 = vst [vmem:[#allocation44_spill] sm:$0xff] %v16750_v14  ;;  %v16761_v33 = vsel %vm14944_vm14, %v10655_v49, %v10656_v7  ;;  %v11907_v46 = vrot.slane %v10582_v50, 9  ;;  %v16764_v43 = vld [vmem:[#allocation2 + $0x58] sm:$0xf]  ;;  %v10669_v49 = vrot.slane %v10667_v57, 4 }
 0x4db   : > { %17606 = vst [vmem:[#allocation45_spill] sm:$0xff] %v16757_v56  ;;  %17607 = vst [vmem:[#allocation46_spill] sm:$0xff] %v16761_v33  ;;  %v16771_v61 = vld [vmem:[#allocation2 + $0x5c] sm:$0x1]  ;;  %v10670_v50 = vrot.slane %v16750_v14, 5  ;;  %v11909_v53 = vrot.slane %v10584_v24, 9 }
 0x4dc   : > { %17608 = vst [vmem:[#allocation47_spill] sm:$0xff] %v16764_v43  ;;  %17609 = vst [vmem:[#allocation48_spill] sm:$0xff] %v16771_v61  ;;  %v10585_v28 = vld [vmem:[#allocation2 + $0x54] sm:$0xe]  ;;  %v16778_v54 = vld [vmem:[#allocation2 + $0x64] sm:$0xf] }
 0x4dd   : > { %17611 = vst [vmem:[#allocation50_spill] sm:$0xff] %v16778_v54  ;;  %v16790_v56 = vld [vmem:[#allocation2 + $0x70] sm:$0xf]  ;;  %v9850_v2 = vld [vmem:[#allocation2 + $0x74] sm:$0x1] }
 0x4de   : > { %17614 = vst [vmem:[#allocation53_spill] sm:$0xff] %v16790_v56  ;;  %v9858_v59 = vld [vmem:[#allocation2 + $0x94] sm:$0xf] }
 0x4df   : > { %13066 = vmatmul.mubr.bf16.gmra.mrb[24].mxu1 %v14076_v20  ;;  %v16736_v20 = vld [vmem:[#allocation2 + $0x4c] sm:$0xf] }
 0x4e0   : > { %13069 = vmatprep.mubr.bf16.mxu1 %v14078_v16  ;;  %17602 = vst [vmem:[#allocation41_spill] sm:$0xff] %v16736_v20  ;;  %v16740_v16 = vsel %vm14944_vm14, %v11905_v17, %v10646_v38  ;;  %v10660_v38 = vrot.slane %v16715_v42, 5  ;;  %v9841_v17 = vld [vmem:[#allocation2 + $0x50] sm:$0x1]  ;;  %v11908_v42 = vrot.slane %v10583_v6, 9  ;;  %v10674_v33 = vrot.slane %v16736_v20, 5 }
 0x4e1   : > { %17603 = vst [vmem:[#allocation42_spill] sm:$0xff] %v16740_v16  ;;  %v10663_v16 = vrot.slane %v16725_v37, 5  ;;  %v11910_v20 = vrot.slane %v10585_v28, 9  ;;  %v10587_v37 = vld [vmem:[#allocation2 + $0x6c] sm:$0xe] }
 0x4e2   : > { %v10662_v32 = vrot.slane %v10660_v38, 4  ;;  %v16775_v7 = vsel %vm14944_vm14, %v11907_v46, %v10660_v38  ;;  %v16786_v6 = vsel %vm14944_vm14, %v11908_v42, %v10667_v57  ;;  %v10586_v38 = vld [vmem:[#allocation2 + $0x60] sm:$0xe]  ;;  %v9847_v46 = vld [vmem:[#allocation2 + $0x68] sm:$0x1]  ;;  %v10681_v42 = vrot.slane %v16764_v43, 5 }
 0x4e3   : > { %17610 = vst [vmem:[#allocation49_spill] sm:$0xff] %v16775_v7  ;;  %17613 = vst [vmem:[#allocation52_spill] sm:$0xff] %v16786_v6  ;;  %v9852_v57 = vld [vmem:[#allocation2 + $0x7c] sm:$0xf]  ;;  %v10676_v14 = vrot.slane %v10674_v33, 4  ;;  %v10691_v24 = vrot.slane %v9847_v46, 5 }
 0x4e4   : > { %v16782_v62 = vsel %vm14944_vm14, %v10662_v32, %v10663_v16  ;;  %v16796_v16 = vsel %vm14944_vm14, %v10669_v49, %v10670_v50  ;;  %v10677_v32 = vrot.slane %v9841_v17, 5  ;;  %v11911_v49 = vrot.slane %v10586_v38, 9  ;;  %v9853_v50 = vld [vmem:[#allocation2 + $0x80] sm:$0x1]  ;;  %v10588_v6 = vld [vmem:[#allocation2 + $0x78] sm:$0xe] }
 0x4e5   : > { %17612 = vst [vmem:[#allocation51_spill] sm:$0xff] %v16782_v62  ;;  %17615 = vst [vmem:[#allocation54_spill] sm:$0xff] %v16796_v16  ;;  %v10683_v62 = vrot.slane %v10681_v42, 4  ;;  %v10688_v17 = vrot.slane %v16778_v54, 5  ;;  %v16813_v28 = vsel %vm14944_vm14, %v11910_v20, %v10681_v42  ;;  %v10695_v16 = vrot.slane %v16790_v56, 5 }
 0x4e6   : > { %v16809_v7 = vsel %vm14944_vm14, %v10676_v14, %v10677_v32  ;;  %v11912_v14 = vrot.slane %v10587_v37, 9  ;;  %v14082_v32 = vld [vmem:[#allocation6 + $0x148] sm:$0xff]   ;;  %v10698_v56 = vrot.slane %v9850_v2, 5  ;;  %v11913_v37 = vrot.slane %v10588_v6, 9  ;;  %v9859_v20 = vld [vmem:[#allocation2 + $0x98] sm:$0x1] }
 0x4e7   : > { %13070 = vmatmul.mubr.bf16.gmra.mrb[28].mxu1 %v14079_v9  ;;  %v16804_v9 = vsel %vm14944_vm14, %v11909_v53, %v10674_v33  ;;  %17616 = vst [vmem:[#allocation55_spill] sm:$0xff] %v16809_v7  ;;  %v9856_v33 = vld [vmem:[#allocation2 + $0x8c] sm:$0x1]  ;;  %v10690_v54 = vrot.slane %v10688_v17, 4  ;;  %v16826_v46 = vsel %vm14944_vm14, %v11911_v49, %v10688_v17  ;;  %v10697_v42 = vrot.slane %v10695_v16, 4 }
 0x4e8   : > { %13089 = vmatprep.mubr.bf16.mxu1 %v16606_v15  ;;  %v10684_v15 = vrot.slane %v16771_v61, 5  ;;  %v9855_v61 = vld [vmem:[#allocation2 + $0x88] sm:$0xf]  ;;  %v10589_v43 = vld [vmem:[#allocation2 + $0x84] sm:$0xe] }
 0x4e9   : > { %v16830_v53 = vsel %vm14944_vm14, %v10690_v54, %v10691_v24  ;;  %v10590_v7 = vld [vmem:[#allocation2 + $0x90] sm:$0xe]  ;;  %v9861_v49 = vld [vmem:[#allocation2 + $0xa0] sm:$0xf]  ;;  %v16841_v17 = vsel %vm14944_vm14, %v10697_v42, %v10698_v56  ;;  %v10705_v54 = vrot.slane %v9853_v50, 5  ;;  %v10709_v24 = vrot.slane %v9855_v61, 5 }
 0x4ea   : > { %v16820_v38 = vsel %vm14944_vm14, %v10683_v62, %v10684_v15  ;;  %17618 = vst [vmem:[#allocation57_spill] sm:$0xff] %v16830_v53  ;;  %v16834_v62 = vsel %vm14944_vm14, %v11912_v14, %v10695_v16  ;;  %v10702_v15 = vrot.slane %v9852_v57, 5  ;;  %17620 = vst [vmem:[#allocation59_spill] sm:$0xff] %v16841_v17  ;;  %v10712_v57 = vrot.slane %v9856_v33, 5  ;;  %v10591_v14 = vld [vmem:[#allocation2 + $0x9c] sm:$0xe] }
 0x4eb   : > { %17617 = vst [vmem:[#allocation56_spill] sm:$0xff] %v16820_v38  ;;  %17619 = vst [vmem:[#allocation58_spill] sm:$0xff] %v16834_v62  ;;  %v14083_v38 = vld [vmem:[#allocation6 + $0x150] sm:$0xff]   ;;  %v9862_v2 = vld [vmem:[#allocation2 + $0xa4] sm:$0x1]  ;;  %v10711_v50 = vrot.slane %v10709_v24, 4 }
 0x4ec   : > { %v10704_v16 = vrot.slane %v10702_v15, 4  ;;  %v16849_v56 = vsel %vm14944_vm14, %v11913_v37, %v10702_v15  ;;  %v11915_v61 = vrot.slane %v10590_v7, 9  ;;  %v10716_v42 = vrot.slane %v9858_v59, 5  ;;  %v9865_v53 = vld [vmem:[#allocation2 + $0xb0] sm:$0x1] }
 0x4ed   : > { %17621 = vst [vmem:[#allocation60_spill] sm:$0xff] %v16849_v56  ;;  %v10719_v33 = vrot.slane %v9859_v20, 5  ;;  %v10723_v6 = vrot.slane %v9861_v49, 5  ;;  %v9867_v17 = vld [vmem:[#allocation2 + $0xb8] sm:$0xf]  ;;  %v16863_v7 = vsel %vm14944_vm14, %v10711_v50, %v10712_v57  ;;  %v11916_v15 = vrot.slane %v10591_v14, 9 }
 0x4ee   : > { %17623 = vst [vmem:[#allocation62_spill] sm:$0xff] %v16863_v7  ;;  %v10718_v59 = vrot.slane %v10716_v42, 4  ;;  %v10592_v62 = vld [vmem:[#allocation2 + $0xa8] sm:$0xe]  ;;  %v14084_v37 = vld [vmem:[#allocation6 + $0x158] sm:$0xff]   ;;  %v16873_v57 = vsel %vm14944_vm14, %v11915_v61, %v10716_v42  ;;  %v10737_v7 = vrot.slane %v9867_v17, 5 }
 0x4ef   : > { %13090 = vmatmul.mubr.bf16.vlgmr.msra.gmra.mrb[0].mxu1 %v16633_v36  ;;  %v11914_v36 = vrot.slane %v10589_v43, 9  ;;  %v10725_v49 = vrot.slane %v10723_v6, 4  ;;  %v9870_v56 = vld [vmem:[#allocation2 + $0xc4] sm:$0xf]  ;;  %v16881_v14 = vsel %vm14944_vm14, %v11916_v15, %v10723_v6  ;;  %v11917_v20 = vrot.slane %v10592_v62, 9  ;;  %v14085_v17 = vld [vmem:[#allocation6 + $0x160] sm:$0xff]  }
 0x4f0   : > { %13093 = vmatprep.mubr.bf16.mxu1 %v16657_v12  ;;  %13122 = vmatpush3.bf16.msra.mxu1 %v16617_v27  ;;  %v9864_v12 = vld [vmem:[#allocation2 + $0xac] sm:$0xf]  ;;  %v16853_v27 = vsel %vm14944_vm14, %v10704_v16, %v10705_v54  ;;  %v17624_v54 = vshll.u32 %v16441_v5, 16  ;;  %v10594_v61 = vld [vmem:[#allocation2 + $0xc0] sm:$0xe]  ;;  %v10733_v6 = vrot.slane %v9865_v53, 5 }
 0x4f1   : > { %13123 = vmatprep.subr.bf16.mxu1 %v14082_v32  ;;  %17622 = vst [vmem:[#allocation61_spill] sm:$0xff] %v16853_v27  ;;  %v16857_v43 = vsel %vm14944_vm14, %v11914_v36, %v10709_v24  ;;  %v10726_v24 = vrot.slane %v9862_v2, 5  ;;  %v10593_v36 = vld [vmem:[#allocation2 + $0xb4] sm:$0xe]  ;;  %v9868_v27 = vld [vmem:[#allocation2 + $0xbc] sm:$0x1] }
 0x4f2   : > { %v16867_v16 = vrot.slane %v17624_v54, 5  ;;  %v10730_v50 = vrot.slane %v9864_v12, 5  ;;  %v9871_v42 = vld [vmem:[#allocation2 + $0xc8] sm:$0x1]  ;;  %v11918_v15 = vrot.slane %v10593_v36, 9  ;;  %v17626_v12 = vshrl.u32 %v16441_v5, 16 }
 0x4f3   : > { %v16887_v54 = vsel %vm14944_vm14, %v10725_v49, %v10726_v24  ;;  %v10739_v49 = vrot.slane %v10737_v7, 4  ;;  %v10740_v24 = vrot.slane %v9868_v27, 5  ;;  %v10744_v62 = vrot.slane %v9870_v56, 5  ;;  %v17695_v34 = vld [vmem:[#allocation55_spill] sm:$0xff] }
 0x4f4   : > { %13124 = vmatpush3.bf16.msra.mxu1 %v14082_v32  ;;  %v16877_v32 = vsel %vm14944_vm14, %v10718_v59, %v10719_v33  ;;  %v11932_v33 = vcombine.low %v16881_v14, %v16887_v54  ;;  %v10732_v59 = vrot.slane %v10730_v50, 4  ;;  %v8472_v2 = vrot.slane %v17626_v12, 4  ;;  %v11150_v54 = vld [vmem:[%s14503_s9 + $0x10] sm:$0xff] }
 0x4f5   : > { %13125 = vmatprep.subr.bf16.mxu1 %v14083_v38  ;;  %17625 = vst [vmem:[#allocation63_spill] sm:$0xff] %v16877_v32  ;;  %v8222_v32 = vld [vmem:[#allocation2 + $0x84] sm:$0xf]  ;;  %v11919_v5 = vrot.slane %v10594_v61, 9  ;;  %v16911_v56 = vsel %vm14944_vm14, %v10739_v49, %v10740_v24  ;;  %v10746_v27 = vrot.slane %v10744_v62, 4  ;;  %v10747_v36 = vrot.slane %v9871_v42, 5 }
 0x4f6   : > { %v16901_v53 = vsel %vm14944_vm14, %v10732_v59, %v10733_v6  ;;  %v8490_v59 = vshll.u32 %v16460_v30, 16  ;;  %v8494_v6 = vshrl.u32 %v16460_v30, 16  ;;  %v8481_v61 = vshrl.u32 %v8222_v32, 16 }
 0x4f7   : > { %13094 = vmatmul.mubr.bf16.gmra.mrb[4].mxu1 %v16674_v1  ;;  %v16897_v1 = vsel %vm14944_vm14, %v11917_v20, %v10730_v50  ;;  %v17627_v20 = vshll.u32 %v16683_v19, 16  ;;  %v16921_v12 = vsel %vm14944_vm14, %v11919_v5, %v10744_v62  ;;  %v16925_v42 = vsel %vm14944_vm14, %v10746_v27, %v10747_v36 }
 0x4f8   : > { %13097 = vmatprep.mubr.bf16.mxu1 %v16687_v21  ;;  %13126 = vmatpush3.bf16.msra.mxu1 %v14083_v38  ;;  %v16905_v21 = vsel %vm14944_vm14, %v11918_v15, %v10737_v7  ;;  %v11933_v38 = vcombine.low %v16897_v1, %v16901_v53  ;;  %v8484_v15 = vshll.u32 %v8222_v32, 16  ;;  %v17628_v19 = vor.u32 %v16704_v25, %v16702_v58  ;;  %v14086_v32 = vld [vmem:[#allocation6 + $0x168] sm:$0xff]  }
 0x4f9   : > { %13127 = vmatprep.subr.bf16.mxu1 %v14084_v37  ;;  %v8462_v50 = vrot.slane %v17627_v20, 5  ;;  %v11934_v7 = vcombine.low %v16905_v21, %v16911_v56  ;;  %v17629_v30 = vor.u32 %v16733_v44, %v16713_v63  ;;  %v11935_v62 = vcombine.low %v16921_v12, %v16925_v42  ;;  %v11148_v21 = vld [vmem:[%s14503_s9] sm:$0xff]  ;;  %v11151_v12 = vld [vmem:[%s14503_s9 + $0x18] sm:$0xff] }
 0x4fa   : > { %v8440_v49 = vrot.slane %v17628_v19, 4  ;;  %v17630_v5 = vsel %vm14534_vm9, %v16671_v23, %v16691_v41  ;;  %v17631_v58 = vsel %vm14534_vm9, %v16666_v60, %v16646_v47  ;;  %v17632_v44 = vshll.u32 %v16418_v51, 16  ;;  %v8225_v23 = vld [vmem:[#allocation2 + $0x90] sm:$0xf] }
 0x4fb   : > { %v8450_v24 = vrot.slane %v17629_v30, 4  ;;  %v11799_v25 = vcombine.low %v17631_v58, %v17630_v5  ;;  %v8476_v20 = vshll.u32 %v16451_v35, 16  ;;  %v16952_v19 = vrot.slane %v8490_v59, 5 }
 0x4fc   : > { %13128 = vmatpush3.bf16.msra.mxu1 %v14084_v37  ;;  %v8473_v37 = vor.u32 %v8472_v2, %v16867_v16  ;;  %v8430_v27 = vrot.slane %v17632_v44, 5  ;;  %v17633_v2 = vshll.u32 %v16449_v8, 16  ;;  %v8496_v30 = vrot.slane %v8494_v6, 4  ;;  %v14087_v6 = vld [vmem:[#allocation6 + $0x170] sm:$0xff]  }
 0x4fd   : > { %13129 = vmatprep.subr.bf16.mxu1 %v14085_v17  ;;  %v8421_v47 = vsel %vm14534_vm9, %v16711_v31, %v16655_v55  ;;  %v8463_v51 = vor.u32 %v8462_v50, %v16747_v26  ;;  %v8483_v60 = vrot.slane %v8481_v61, 4  ;;  %v8486_v41 = vrot.slane %v8484_v15, 5  ;;  %v8228_v50 = vld [vmem:[#allocation2 + $0x9c] sm:$0xf] }
 0x4fe   : > { %v8454_v36 = vrot.slane %v17633_v2, 5  ;;  %v8431_v8 = vsel %vm14534_vm9, %v16718_v39, %v8430_v27  ;;  %v8445_v35 = vsel %vm14534_vm9, %v8440_v49, %v16713_v63  ;;  %v8474_v59 = vrot.slane %v8473_v37, 4  ;;  %v14088_v2 = vld [vmem:[#allocation6 + $0x178] sm:$0xff]  }
 0x4ff   : > { %13098 = vmatmul.mubr.bf16.gmra.mrb[8].mxu1 %v16689_v45  ;;  %v8505_v55 = vshrl.u32 %v8225_v23, 16  ;;  %v8508_v31 = vshll.u32 %v8225_v23, 16  ;;  %v8514_v26 = vshll.u32 %v16471_v10, 16  ;;  %v8478_v61 = vrot.slane %v8476_v20, 5 }
 0x500   : > { %13101 = vmatprep.mubr.bf16.mxu1 %v11799_v25  ;;  %13130 = vmatpush3.bf16.msra.mxu1 %v14085_v17  ;;  %v8455_v45 = vsel %vm14534_vm9, %v8450_v24, %v8454_v36  ;;  %v8518_v17 = vshrl.u32 %v16471_v10, 16  ;;  %v8497_v39 = vor.u32 %v8496_v30, %v16952_v19  ;;  %v8538_v15 = vshll.u32 %v16487_v13, 16  ;;  %v14179_v25 = vld [vmem:[#allocation2 + $0x8c] sm:$0x1] }
 0x501   : > { %13131 = vmatprep.subr.bf16.mxu1 %v14086_v32  ;;  %v8542_v63 = vshrl.u32 %v16487_v13, 16  ;;  %v11800_v49 = vcombine.low %v8421_v47, %v8431_v8  ;;  %v11801_v5 = vcombine.low %v8445_v35, %v8455_v45  ;;  %v8464_v24 = vrot.slane %v8463_v51, 4 }
 0x502   : > { %v8487_v37 = vor.u32 %v8486_v41, %v8483_v60  ;;  %v8479_v58 = vsel %vm14534_vm9, %v8474_v59, %v8478_v61  ;;  %v8500_v44 = vshll.u32 %v14179_v25, 16  ;;  %v8529_v27 = vshrl.u32 %v8228_v50, 16  ;;  %v8231_v59 = vld [vmem:[#allocation2 + $0xa8] sm:$0xf] }
 0x503   : > { %v8532_v10 = vshll.u32 %v8228_v50, 16  ;;  %v8507_v36 = vrot.slane %v8505_v55, 4  ;;  %v8510_v20 = vrot.slane %v8508_v31, 5  ;;  %v16974_v30 = vrot.slane %v8514_v26, 5  ;;  %v16981_v55 = vld [vmem:[#allocation6 + $0x180] sm:$0xff]  }
 0x504   : > { %13132 = vmatpush3.bf16.msra.mxu1 %v14086_v32  ;;  %v8520_v23 = vrot.slane %v8518_v17, 4  ;;  %v8498_v13 = vrot.slane %v8497_v39, 4  ;;  %v16976_v47 = vrot.slane %v8538_v15, 5  ;;  %v8544_v51 = vrot.slane %v8542_v63, 4  ;;  %v14180_v17 = vld [vmem:[#allocation2 + $0xac] sm:$0xf] }
 0x505   : > { %13133 = vmatprep.subr.bf16.mxu1 %v14087_v6  ;;  %v8469_v32 = vsel %vm14534_vm9, %v8464_v24, %v16867_v16  ;;  %v8488_v60 = vrot.slane %v8487_v37, 4  ;;  %v8502_v8 = vrot.slane %v8500_v44, 5  ;;  %v8531_v35 = vrot.slane %v8529_v27, 4  ;;  %v8234_v39 = vld [vmem:[#allocation2 + $0xb4] sm:$0xf] }
 0x506   : > { %v11802_v41 = vcombine.low %v8469_v32, %v8479_v58  ;;  %v8534_v45 = vrot.slane %v8532_v10, 5  ;;  %v8511_v31 = vor.u32 %v8510_v20, %v8507_v36  ;;  %v8521_v26 = vor.u32 %v8520_v23, %v16974_v30  ;;  %v14182_v44 = vld [vmem:[#allocation2 + $0xa4] sm:$0x1] }
 0x507   : > { %13102 = vmatmul.mubr.bf16.gmra.mrb[12].mxu1 %v11800_v49  ;;  %v8562_v50 = vshll.u32 %v14180_v17, 16  ;;  %v8566_v61 = vshrl.u32 %v14180_v17, 16  ;;  %v8503_v16 = vsel %vm14534_vm9, %v8498_v13, %v8502_v8  ;;  %v8586_v15 = vshll.u32 %v16514_v29, 16 }
 0x508   : > { %13105 = vmatprep.mubr.bf16.mxu1 %v11801_v5  ;;  %13134 = vmatpush3.bf16.msra.mxu1 %v14087_v6  ;;  %v8545_v6 = vor.u32 %v8544_v51, %v16976_v47  ;;  %v8590_v63 = vshrl.u32 %v16514_v29, 16  ;;  %v8493_v49 = vsel %vm14534_vm9, %v8488_v60, %v16952_v19  ;;  %v14181_v5 = vld [vmem:[#allocation2 + $0x98] sm:$0x1]  ;;  %v8553_v37 = vshrl.u32 %v8231_v59, 16 }
 0x509   : > { %13135 = vmatprep.subr.bf16.mxu1 %v14088_v2  ;;  %v8524_v24 = vshll.u32 %v14181_v5, 16  ;;  %v8556_v58 = vshll.u32 %v8231_v59, 16  ;;  %v8535_v25 = vor.u32 %v8534_v45, %v8531_v35  ;;  %v8548_v27 = vshll.u32 %v14182_v44, 16 }
 0x50a   : > { %v8577_v10 = vshrl.u32 %v8234_v39, 16  ;;  %v8580_v36 = vshll.u32 %v8234_v39, 16  ;;  %v11803_v20 = vcombine.low %v8493_v49, %v8503_v16  ;;  %v8522_v23 = vrot.slane %v8521_v26, 4  ;;  %v8237_v39 = vld [vmem:[#allocation2 + $0xc0] sm:$0xf] }
 0x50b   : > { %v8564_v13 = vrot.slane %v8562_v50, 5  ;;  %v8568_v29 = vrot.slane %v8566_v61, 4  ;;  %v8512_v51 = vrot.slane %v8511_v31, 4  ;;  %v8546_v32 = vrot.slane %v8545_v6, 4  ;;  %v14183_v50 = vld [vmem:[#allocation2 + $0xc4] sm:$0xf] }
 0x50c   : > { %13136 = vmatpush3.bf16.msra.mxu1 %v14088_v2  ;;  %v8588_v19 = vrot.slane %v8586_v15, 5  ;;  %v8592_v60 = vrot.slane %v8590_v63, 4  ;;  %v8526_v8 = vrot.slane %v8524_v24, 5  ;;  %v8555_v59 = vrot.slane %v8553_v37, 4  ;;  %v14184_v49 = vld [vmem:[#allocation2 + $0xb0] sm:$0x1] }
 0x50d   : > { %13169 = vmatprep.subr.bf16.mxu1 %v16981_v55  ;;  %v8558_v2 = vrot.slane %v8556_v58, 5  ;;  %v8536_v35 = vrot.slane %v8535_v25, 4  ;;  %v8550_v45 = vrot.slane %v8548_v27, 5  ;;  %v8579_v17 = vrot.slane %v8577_v10, 4  ;;  %v14185_v10 = vld [vmem:[#allocation2 + $0xbc] sm:$0x1] }
 0x50e   : > { %v8582_v5 = vrot.slane %v8580_v36, 5  ;;  %v8527_v16 = vsel %vm14534_vm9, %v8522_v23, %v8526_v8  ;;  %v8569_v26 = vor.u32 %v8568_v29, %v8564_v13  ;;  %v8610_v61 = vshll.u32 %v14183_v50, 16 }
 0x50f   : > { %13106 = vmatmul.mubr.bf16.gmra.mrb[16].mxu1 %v11802_v41  ;;  %v8614_v41 = vshrl.u32 %v14183_v50, 16  ;;  %v8517_v31 = vsel %vm14534_vm9, %v8512_v51, %v16974_v30  ;;  %v8551_v6 = vsel %vm14534_vm9, %v8546_v32, %v8550_v45  ;;  %v8593_v15 = vor.u32 %v8592_v60, %v8588_v19  ;;  %v14187_v50 = vld [vmem:[#allocation2 + $0xc8] sm:$0x1] }
 0x510   : > { %13109 = vmatprep.mubr.bf16.mxu1 %v11803_v20  ;;  %v8559_v63 = vor.u32 %v8558_v2, %v8555_v59  ;;  %v8572_v24 = vshll.u32 %v14184_v49, 16  ;;  %v8601_v37 = vshrl.u32 %v8237_v39, 16  ;;  %v8604_v58 = vshll.u32 %v8237_v39, 16 }
 0x511   : > { %v11804_v25 = vcombine.low %v8517_v31, %v8527_v16  ;;  %v8541_v44 = vsel %vm14534_vm9, %v8536_v35, %v16976_v47  ;;  %v8583_v27 = vor.u32 %v8582_v5, %v8579_v17  ;;  %v8596_v36 = vshll.u32 %v14185_v10, 16  ;;  %v14186_v17 = vld [vmem:[#allocation2 + $0x10] sm:$0xf] }
 0x512   : > { %v11805_v20 = vcombine.low %v8541_v44, %v8551_v6  ;;  %v8570_v23 = vrot.slane %v8569_v26, 4  ;;  %v8612_v30 = vrot.slane %v8610_v61, 5  ;;  %v8616_v29 = vrot.slane %v8614_v41, 4 }
 0x513   : > { %v8594_v51 = vrot.slane %v8593_v15, 4  ;;  %v8560_v32 = vrot.slane %v8559_v63, 4  ;;  %v8574_v60 = vrot.slane %v8572_v24, 5  ;;  %v8603_v8 = vrot.slane %v8601_v37, 4  ;;  %v8945_v37 = vld [vmem:[#allocation2 + $0xc] sm:$0xe] }
 0x514   : > { %v8606_v59 = vrot.slane %v8604_v58, 5  ;;  %v8584_v2 = vrot.slane %v8583_v27, 4  ;;  %v8598_v45 = vrot.slane %v8596_v36, 5  ;;  %v8617_v47 = vor.u32 %v8616_v29, %v8612_v30 }
 0x515   : > { %v8575_v39 = vsel %vm14534_vm9, %v8570_v23, %v8574_v60  ;;  %v9011_v5 = vrot.slane %v14186_v17, 5  ;;  %v8565_v16 = vsel %vm14534_vm9, %v8560_v32, %v8564_v13  ;;  %v8620_v61 = vshll.u32 %v14187_v50, 16 }
 0x516   : > { %v8599_v35 = vsel %vm14534_vm9, %v8594_v51, %v8598_v45  ;;  %v8607_v26 = vor.u32 %v8606_v59, %v8603_v8  ;;  %v11806_v41 = vcombine.low %v8565_v16, %v8575_v39  ;;  %v8589_v31 = vsel %vm14534_vm9, %v8584_v2, %v8588_v19  ;;  %v14091_v45 = vld [vmem:[#allocation6 + $0x190] sm:$0xff]   ;;  %v17641_v16 = vld [vmem:[#allocation15_spill] sm:$0xff] }
 0x517   : > { %13110 = vmatmul.mubr.bf16.gmra.mrb[20].mxu1 %v11804_v25  ;;  %v11807_v6 = vcombine.low %v8589_v31, %v8599_v35  ;;  %v8618_v15 = vrot.slane %v8617_v47, 4  ;;  %v9013_v63 = vrot.slane %v9011_v5, 4  ;;  %v8622_v24 = vrot.slane %v8620_v61, 5  ;;  %v14188_v25 = vld [vmem:[#allocation2 + $0x1c] sm:$0xf]  ;;  %v17646_v61 = vld [vmem:[#allocation13_spill] sm:$0xff] }
 0x518   : > { %13113 = vmatprep.mubr.bf16.mxu1 %v11805_v20  ;;  %v8608_v49 = vrot.slane %v8607_v26, 4  ;;  %v9014_v58 = vrot.slane %v16588_v4, 5  ;;  %v9018_v44 = vrot.slane %v14188_v25, 5  ;;  %v11817_v27 = vrot.slane %v8945_v37, 9  ;;  %v8946_v4 = vld [vmem:[#allocation2 + $0x18] sm:$0xe] }
 0x519   : > { %v8623_v13 = vsel %vm14534_vm9, %v8618_v15, %v8622_v24  ;;  %v9021_v51 = vrot.slane %v16593_v0, 5  ;;  %v11818_v32 = vrot.slane %v8946_v4, 9  ;;  %v17634_v2 = vcombine.low %v16390_v40, %v16394_v3  ;;  %v14092_v0 = vld [vmem:[#allocation6 + $0x198] sm:$0xff]   ;;  %v14093_v35 = vld [vmem:[#allocation6 + $0x1a0] sm:$0xff]   ;;  %v14094_v40 = vld [vmem:[#allocation6 + $0x1a8] sm:$0xff]  }
 0x51a   : > { %v9015_v10 = vsel %vm14944_vm14, %v9013_v63, %v9014_v58  ;;  %v8613_v19 = vsel %vm14534_vm9, %v8608_v49, %v8612_v30  ;;  %v9012_v20 = vsel %vm14944_vm14, %v11817_v27, %v9011_v5  ;;  %v9020_v29 = vrot.slane %v9018_v44, 4  ;;  %v14090_v30 = vld [vmem:[#allocation6 + $0x188] sm:$0xff]   ;;  %v17640_v5 = vld [vmem:[#allocation19_spill] sm:$0xff]  ;;  %v17649_v15 = vld [vmem:[#allocation12_spill] sm:$0xff] }
 0x51b   : > { %v11808_v36 = vcombine.low %v8613_v19, %v8623_v13  ;;  %v11833_v23 = vcombine.low %v9012_v20, %v9015_v10  ;;  %v9019_v8 = vsel %vm14944_vm14, %v11818_v32, %v9018_v44  ;;  %v17635_v39 = vcombine.low %v16404_v11, %v16411_v18  ;;  %v17637_v3 = vld [vmem:[#allocation17_spill] sm:$0xff]  ;;  %v14095_v11 = vld [vmem:[#allocation6 + $0x1b0] sm:$0xff]   ;;  %v14096_v18 = vld [vmem:[#allocation6 + $0x1b8] sm:$0xff]  }
 0x51c   : > { %v9022_v60 = vsel %vm14944_vm14, %v9020_v29, %v9021_v51  ;;  %v17636_v47 = vcombine.low %v16415_v52, %v16430_v22  ;;  %v17642_v26 = vcombine.low %v17640_v5, %v17641_v16  ;;  %v17643_v52 = vld [vmem:[#allocation16_spill] sm:$0xff]  ;;  %v17644_v22 = vld [vmem:[#allocation14_spill] sm:$0xff]  ;;  %v17650_v63 = vld [vmem:[#allocation21_spill] sm:$0xff] }
 0x51d   : > { %v11834_v59 = vcombine.low %v9019_v8, %v9022_v60  ;;  %v17645_v50 = vcombine.low %v17643_v52, %v17644_v22  ;;  %v17651_v49 = vcombine.low %v17649_v15, %v17650_v63  ;;  %v17652_v24 = vld [vmem:[#allocation22_spill] sm:$0xff]  ;;  %v17653_v37 = vld [vmem:[#allocation23_spill] sm:$0xff]  ;;  %v17655_v13 = vld [vmem:[#allocation24_spill] sm:$0xff] }
 0x51e   : > { %v17654_v58 = vcombine.low %v17652_v24, %v17653_v37  ;;  %v17656_v25 = vld [vmem:[#allocation25_spill] sm:$0xff]  ;;  %v17658_v27 = vld [vmem:[#allocation26_spill] sm:$0xff]  ;;  %v17659_v10 = vld [vmem:[#allocation27_spill] sm:$0xff] }
 0x51f   : > { %13114 = vmatmul.mubr.bf16.gmra.mrb[24].mxu1 %v11806_v41  ;;  %v17647_v41 = vld [vmem:[#allocation20_spill] sm:$0xff]  ;;  %v17657_v44 = vcombine.low %v17655_v13, %v17656_v25  ;;  %v17660_v19 = vcombine.low %v17658_v27, %v17659_v10  ;;  %v17662_v20 = vld [vmem:[#allocation29_spill] sm:$0xff]  ;;  %v17664_v29 = vld [vmem:[#allocation30_spill] sm:$0xff] }
 0x520   : > { %13117 = vmatprep.mubr.bf16.mxu1 %v11807_v6  ;;  %v17648_v31 = vcombine.low %v17646_v61, %v17647_v41  ;;  %v14099_v6 = vld [vmem:[#allocation6 + $0x1c0] sm:$0xff]   ;;  %v17665_v4 = vld [vmem:[#allocation31_spill] sm:$0xff]  ;;  %v17668_v8 = vld [vmem:[#allocation33_spill] sm:$0xff] }
 0x521   : > { %v17666_v51 = vcombine.low %v17664_v29, %v17665_v4  ;;  %v14097_v32 = vld [vmem:[#allocation2 + $0x18] sm:$0xff]   ;;  %v14117_v5 = vld [vmem:[#allocation6 + $0x1f0] sm:$0xff]   ;;  %v9830_v41 = vld [vmem:[#allocation2 + $0x24] sm:$0xf] }
 0x522   : > { %v17667_v60 = vld [vmem:[#allocation32_spill] sm:$0xff]  ;;  %v14107_v16 = vld [vmem:[#allocation2 + $0x6c] sm:$0xff]   ;;  %v9900_v37 = vshrl.u32 %v9830_v41, 16 }
 0x523   : > { %v9827_v52 = vld [vmem:[#allocation2 + $0x18] sm:$0xf]  ;;  %v17670_v22 = vld [vmem:[#allocation34_spill] sm:$0xff]  ;;  %v14112_v63 = vld [vmem:[#allocation2 + $0x90] sm:$0xff]  }
 0x524   : > { %v9889_v61 = vshrl.u32 %v17670_v22, 16  ;;  %v9879_v15 = vshll.u32 %v9827_v52, 16  ;;  %v14113_v29 = vld [vmem:[#allocation2 + $0x9c] sm:$0xff]  }
 0x526   : > { %v9891_v24 = vrot.slane %v9889_v61, 4  ;;  %v9881_v25 = vrot.slane %v9879_v15, 5  ;;  %v17675_v15 = vld [vmem:[#allocation39_spill] sm:$0xff] }
 0x527   : > { %13118 = vmatmul.mubr.bf16.gmra.mrb[28].mxu1 %v11808_v36  ;;  %v17661_v36 = vld [vmem:[#allocation28_spill] sm:$0xff] }
 0x528   : > { %13137 = vmatprep.mubr.bf16.mxu1 %v11833_v23  ;;  %v17663_v23 = vcombine.low %v17661_v36, %v17662_v20 }
 0x52f   : > { %13138 = vmatmul.mubr.bf16.vlgmr.msra.gmra.mrb[0].mxu1 %v11834_v59  ;;  %v17669_v59 = vcombine.low %v17667_v60, %v17668_v8  ;;  %v14115_v60 = vld [vmem:[#allocation2 + $0xa8] sm:$0xff]  }
 0x530   : > { %13141 = vmatprep.mubr.bf16.mxu1 %v17634_v2  ;;  %13170 = vmatpush3.bf16.msra.mxu1 %v16981_v55  ;;  %v17638_v55 = vld [vmem:[#allocation18_spill] sm:$0xff]  ;;  %v14102_v2 = vld [vmem:[#allocation6 + $0x1c8] sm:$0xff]  }
 0x531   : > { %13171 = vmatprep.subr.bf16.mxu1 %v14090_v30  ;;  %v17639_v17 = vcombine.low %v17637_v3, %v17638_v55  ;;  %v14104_v3 = vld [vmem:[#allocation2 + $0x54] sm:$0xff]   ;;  %v14114_v55 = vld [vmem:[#allocation6 + $0x1e8] sm:$0xff]  }
 0x534   : > { %13172 = vmatpush3.bf16.msra.mxu1 %v14090_v30  ;;  %v14098_v30 = vld [vmem:[#allocation2 + $0x24] sm:$0xff]  }
 0x535   : > { %13173 = vmatprep.subr.bf16.mxu1 %v14091_v45 }
 0x537   : > { %13142 = vmatmul.mubr.bf16.gmra.mrb[4].mxu1 %v17635_v39  ;;  %v14101_v39 = vld [vmem:[#allocation2 + $0x3c] sm:$0xff]  }
 0x538   : > { %13145 = vmatprep.mubr.bf16.mxu1 %v17636_v47  ;;  %13174 = vmatpush3.bf16.msra.mxu1 %v14091_v45  ;;  %v14100_v45 = vld [vmem:[#allocation2 + $0x30] sm:$0xff]  }
 0x539   : > { %13175 = vmatprep.subr.bf16.mxu1 %v14092_v0  ;;  %v14108_v47 = vld [vmem:[#allocation6 + $0x1d8] sm:$0xff]  }
 0x53c   : > { %13176 = vmatpush3.bf16.msra.mxu1 %v14092_v0  ;;  %v14105_v0 = vld [vmem:[#allocation6 + $0x1d0] sm:$0xff]  }
 0x53d   : > { %13177 = vmatprep.subr.bf16.mxu1 %v14093_v35 }
 0x53f   : > { %13146 = vmatmul.mubr.bf16.gmra.mrb[8].mxu1 %v17639_v17  ;;  %v14106_v17 = vld [vmem:[#allocation2 + $0x60] sm:$0xff]  }
 0x540   : > { %13149 = vmatprep.mubr.bf16.mxu1 %v17642_v26  ;;  %13178 = vmatpush3.bf16.msra.mxu1 %v14093_v35  ;;  %v14103_v35 = vld [vmem:[#allocation2 + $0x48] sm:$0xff]   ;;  %v14120_v26 = vld [vmem:[#allocation6 + $0x1f8] sm:$0xff]  }
 0x541   : > { %13179 = vmatprep.subr.bf16.mxu1 %v14094_v40 }
 0x544   : > { %13180 = vmatpush3.bf16.msra.mxu1 %v14094_v40  ;;  %v14111_v40 = vld [vmem:[#allocation6 + $0x1e0] sm:$0xff]  }
 0x545   : > { %13181 = vmatprep.subr.bf16.mxu1 %v14095_v11 }
 0x547   : > { %13150 = vmatmul.mubr.bf16.gmra.mrb[12].mxu1 %v17645_v50  ;;  %v9885_v50 = vshll.u32 %v17670_v22, 16 }
 0x548   : > { %13153 = vmatprep.mubr.bf16.mxu1 %v17648_v31  ;;  %13182 = vmatpush3.bf16.msra.mxu1 %v14095_v11  ;;  %v14109_v11 = vld [vmem:[#allocation2 + $0x78] sm:$0xff]   ;;  %v14110_v31 = vld [vmem:[#allocation2 + $0x84] sm:$0xff]  }
 0x549   : > { %13183 = vmatprep.subr.bf16.mxu1 %v14096_v18 }
 0x54c   : > { %13184 = vmatpush3.bf16.msra.mxu1 %v14096_v18  ;;  %v17068_v18 = vld [vmem:[#allocation6 + $0x200] sm:$0xff]  }
 0x54d   : > { %13217 = vmatprep.subr.bf16.mxu1 %v14099_v6 }
 0x54f   : > { %13154 = vmatmul.mubr.bf16.gmra.mrb[16].mxu1 %v17651_v49  ;;  %v9887_v49 = vrot.slane %v9885_v50, 5 }
 0x550   : > { %13157 = vmatprep.mubr.bf16.mxu1 %v17654_v58  ;;  %v9903_v58 = vshll.u32 %v9830_v41, 16  ;;  %v14116_v41 = vld [vmem:[#allocation2 + $0xb4] sm:$0xff]  }
 0x551   : > { %v9892_v10 = vor.u32 %v9891_v24, %v9887_v49 }
 0x552   : > { %v9905_v36 = vrot.slane %v9903_v58, 5 }
 0x557   : > { %13158 = vmatmul.mubr.bf16.gmra.mrb[20].mxu1 %v17657_v44  ;;  %v17671_v44 = vld [vmem:[#allocation36_spill] sm:$0xff] }
 0x558   : > { %13161 = vmatprep.mubr.bf16.mxu1 %v17660_v19  ;;  %v9909_v27 = vshll.u32 %v17671_v44, 16  ;;  %v9902_v19 = vrot.slane %v9900_v37, 4  ;;  %v9913_v20 = vshrl.u32 %v17671_v44, 16  ;;  %v14118_v37 = vld [vmem:[#allocation2 + $0xc0] sm:$0xff]  }
 0x55a   : > { %v17076_v8 = vrot.slane %v9909_v27, 5 }
 0x55f   : > { %13162 = vmatmul.mubr.bf16.gmra.mrb[24].mxu1 %v17663_v23  ;;  %v9833_v23 = vld [vmem:[#allocation2 + $0x30] sm:$0xf] }
 0x560   : > { %13165 = vmatprep.mubr.bf16.mxu1 %v17666_v51  ;;  %v17672_v51 = vld [vmem:[#allocation35_spill] sm:$0xff] }
 0x567   : > { %13166 = vmatmul.mubr.bf16.gmra.mrb[28].mxu1 %v17669_v59  ;;  %v9924_v59 = vshrl.u32 %v9833_v23, 16 }
 0x568   : > { %13185 = vmatprep.mubr.bf16.mxu1 %v14097_v32  ;;  %v9895_v32 = vshll.u32 %v17672_v51, 16 }
 0x56f   : > { %13186 = vmatmul.mubr.bf16.vlgmr.msra.gmra.mrb[0].mxu1 %v14098_v30  ;;  %v9893_v30 = vrot.slane %v9892_v10, 4  ;;  %v9839_v10 = vld [vmem:[#allocation2 + $0x48] sm:$0xf] }
 0x570   : > { %13189 = vmatprep.mubr.bf16.mxu1 %v14100_v45  ;;  %13218 = vmatpush3.bf16.msra.mxu1 %v14099_v6  ;;  %v9876_v6 = vshrl.u32 %v9827_v52, 16  ;;  %v9915_v45 = vrot.slane %v9913_v20, 4  ;;  %v17677_v20 = vld [vmem:[#allocation41_spill] sm:$0xff] }
 0x571   : > { %13219 = vmatprep.subr.bf16.mxu1 %v14102_v2 }
 0x572   : > { %v9878_v13 = vrot.slane %v9876_v6, 4  ;;  %v9916_v52 = vor.u32 %v9915_v45, %v17076_v8  ;;  %v17678_v45 = vld [vmem:[#allocation47_spill] sm:$0xff] }
 0x574   : > { %13220 = vmatpush3.bf16.msra.mxu1 %v14102_v2  ;;  %v9882_v4 = vor.u32 %v9881_v25, %v9878_v13  ;;  %v9906_v2 = vor.u32 %v9905_v36, %v9902_v19  ;;  %v17676_v25 = vld [vmem:[#allocation40_spill] sm:$0xff] }
 0x575   : > { %13221 = vmatprep.subr.bf16.mxu1 %v14105_v0  ;;  %v9957_v44 = vshll.u32 %v17676_v25, 16  ;;  %v9961_v27 = vshrl.u32 %v17676_v25, 16 }
 0x577   : > { %13190 = vmatmul.mubr.bf16.gmra.mrb[4].mxu1 %v14101_v39  ;;  %v17673_v39 = vld [vmem:[#allocation37_spill] sm:$0xff] }
 0x578   : > { %13193 = vmatprep.mubr.bf16.mxu1 %v14103_v35  ;;  %13222 = vmatpush3.bf16.msra.mxu1 %v14105_v0  ;;  %v9927_v0 = vshll.u32 %v9833_v23, 16  ;;  %v9937_v35 = vshrl.u32 %v17673_v39, 16  ;;  %v9981_v23 = vshll.u32 %v17677_v20, 16 }
 0x579   : > { %13223 = vmatprep.subr.bf16.mxu1 %v14108_v47 }
 0x57a   : > { %v9929_v22 = vrot.slane %v9927_v0, 5  ;;  %v9939_v61 = vrot.slane %v9937_v35, 4  ;;  %v10005_v0 = vshll.u32 %v17678_v45, 16 }
 0x57c   : > { %13224 = vmatpush3.bf16.msra.mxu1 %v14108_v47  ;;  %v9933_v47 = vshll.u32 %v17673_v39, 16  ;;  %v10009_v39 = vshrl.u32 %v17678_v45, 16 }
 0x57d   : > { %13225 = vmatprep.subr.bf16.mxu1 %v14111_v40 }
 0x57e   : > { %v17086_v50 = vrot.slane %v9933_v47, 5 }
 0x57f   : > { %13194 = vmatmul.mubr.bf16.gmra.mrb[8].mxu1 %v14104_v3  ;;  %v9897_v3 = vrot.slane %v9895_v32, 5  ;;  %v9985_v32 = vshrl.u32 %v17677_v20, 16 }
 0x580   : > { %13197 = vmatprep.mubr.bf16.mxu1 %v14106_v17  ;;  %13226 = vmatpush3.bf16.msra.mxu1 %v14111_v40  ;;  %v9883_v40 = vrot.slane %v9882_v4, 4  ;;  %v17102_v4 = vld [vmem:[#allocation2 + $0xd4] sm:$0x1]  ;;  %v9940_v51 = vor.u32 %v9939_v61, %v17086_v50 }
 0x581   : > { %13227 = vmatprep.subr.bf16.mxu1 %v14114_v55 }
 0x584   : > { %13228 = vmatpush3.bf16.msra.mxu1 %v14114_v55  ;;  %v17674_v55 = vld [vmem:[#allocation38_spill] sm:$0xff] }
 0x585   : > { %13229 = vmatprep.subr.bf16.mxu1 %v14117_v5  ;;  %v9919_v17 = vshll.u32 %v17674_v55, 16 }
 0x587   : > { %13198 = vmatmul.mubr.bf16.gmra.mrb[12].mxu1 %v14107_v16  ;;  %v9836_v16 = vld [vmem:[#allocation2 + $0x3c] sm:$0xf]  ;;  %v17090_v6 = vrot.slane %v9919_v17, 5  ;;  %v14119_v17 = vld [vmem:[#allocation2 + $0xcc] sm:$0xff]  }
 0x588   : > { %13201 = vmatprep.mubr.bf16.mxu1 %v14109_v11  ;;  %13230 = vmatpush3.bf16.msra.mxu1 %v14117_v5  ;;  %v9926_v5 = vrot.slane %v9924_v59, 4  ;;  %v17083_v11 = vrot.slane %v9906_v2, 4  ;;  %v9948_v24 = vshrl.u32 %v9836_v16, 16  ;;  %v9951_v13 = vshll.u32 %v9836_v16, 16 }
 0x589   : > { %13231 = vmatprep.subr.bf16.mxu1 %v14120_v26  ;;  %v9975_v16 = vshll.u32 %v9839_v10, 16 }
 0x58a   : > { %v9912_v19 = vsel %vm14534_vm9, %v17083_v11, %v17076_v8  ;;  %v9930_v36 = vor.u32 %v9929_v22, %v9926_v5  ;;  %v9950_v2 = vrot.slane %v9948_v24, 4  ;;  %v9842_v8 = vld [vmem:[#allocation2 + $0x54] sm:$0xf]  ;;  %v9953_v35 = vrot.slane %v9951_v13, 5 }
 0x58b   : > { %v9972_v5 = vshrl.u32 %v9839_v10, 16  ;;  %v9996_v22 = vshrl.u32 %v9842_v8, 16  ;;  %v9999_v61 = vshll.u32 %v9842_v8, 16  ;;  %v10011_v24 = vrot.slane %v10009_v39, 4  ;;  %v17679_v10 = vld [vmem:[#allocation44_spill] sm:$0xff] }
 0x58c   : > { %13232 = vmatpush3.bf16.msra.mxu1 %v14120_v26  ;;  %v9898_v26 = vsel %vm14534_vm9, %v9893_v30, %v9897_v3  ;;  %v10754_v30 = vrot.slane %v17102_v4, 5  ;;  %v9963_v3 = vrot.slane %v9961_v27, 4  ;;  %v9941_v27 = vrot.slane %v9940_v51, 4  ;;  %v14189_v39 = vld [vmem:[#allocation2 + $0x50] sm:$0x1] }
 0x58d   : > { %13265 = vmatprep.subr.bf16.mxu1 %v17068_v18  ;;  %v9967_v20 = vshll.u32 %v17679_v10, 16  ;;  %v9954_v48 = vor.u32 %v9953_v35, %v9950_v2 }
 0x58f   : > { %13202 = vmatmul.mubr.bf16.gmra.mrb[16].mxu1 %v14110_v31  ;;  %v9888_v31 = vsel %vm14534_vm9, %v9883_v40, %v9887_v49  ;;  %v9917_v49 = vrot.slane %v9916_v52, 4  ;;  %v17110_v40 = vrot.slane %v9957_v44, 5  ;;  %v9987_v52 = vrot.slane %v9985_v32, 4 }
 0x590   : > { %13205 = vmatprep.mubr.bf16.mxu1 %v14112_v63  ;;  %v9943_v63 = vshll.u32 %v17675_v15, 16  ;;  %v11881_v58 = vcombine.low %v9888_v31, %v9898_v26  ;;  %v17112_v26 = vrot.slane %v9981_v23, 5  ;;  %v17122_v15 = vrot.slane %v10005_v0, 5 }
 0x591   : > { %v9922_v25 = vsel %vm14534_vm9, %v9917_v49, %v17090_v6  ;;  %v9931_v44 = vrot.slane %v9930_v36, 4  ;;  %v9964_v23 = vor.u32 %v9963_v3, %v17110_v40  ;;  %v9977_v32 = vrot.slane %v9975_v16, 5  ;;  %v17680_v6 = vld [vmem:[#allocation50_spill] sm:$0xff] }
 0x592   : > { %v9945_v31 = vrot.slane %v9943_v63, 5  ;;  %v9974_v63 = vrot.slane %v9972_v5, 4  ;;  %v10012_v45 = vor.u32 %v10011_v24, %v17122_v15  ;;  %v10029_v49 = vshll.u32 %v17680_v6, 16  ;;  %v9848_v24 = vld [vmem:[#allocation2 + $0x6c] sm:$0xf] }
 0x593   : > { %v10033_v36 = vshrl.u32 %v17680_v6, 16  ;;  %v11882_v51 = vcombine.low %v9912_v19, %v9922_v25  ;;  %v9936_v2 = vsel %vm14534_vm9, %v9931_v44, %v17086_v50  ;;  %v9955_v35 = vrot.slane %v9954_v48, 4  ;;  %v14122_v19 = vld [vmem:[#allocation6 + $0x208] sm:$0xff]  }
 0x594   : > { %v9965_v3 = vrot.slane %v9964_v23, 4  ;;  %v9978_v16 = vor.u32 %v9977_v32, %v9974_v63  ;;  %v17141_v10 = vrot.slane %v10029_v49, 5  ;;  %v10044_v63 = vshrl.u32 %v9848_v24, 16 }
 0x595   : > { %v10035_v50 = vrot.slane %v10033_v36, 4  ;;  %v10047_v32 = vshll.u32 %v9848_v24, 16 }
 0x597   : > { %13206 = vmatmul.mubr.bf16.gmra.mrb[20].mxu1 %v14113_v29  ;;  %v17100_v29 = vld [vmem:[#allocation2 + $0xd0] sm:$0xf]  ;;  %v10036_v36 = vor.u32 %v10035_v50, %v17141_v10 }
 0x598   : > { %13209 = vmatprep.mubr.bf16.mxu1 %v14115_v60  ;;  %v10595_v60 = vld [vmem:[#allocation2 + $0xcc] sm:$0xe]  ;;  %v10751_v59 = vrot.slane %v17100_v29, 5  ;;  %v14124_v50 = vld [vmem:[#allocation6 + $0x218] sm:$0xff]  }
 0x599   : > { %v11920_v47 = vrot.slane %v10595_v60, 9  ;;  %v9988_v60 = vor.u32 %v9987_v52, %v17112_v26 }
 0x59a   : > { %v10753_v55 = vrot.slane %v10751_v59, 4 }
 0x59b   : > { %v17116_v11 = vsel %vm14944_vm14, %v11920_v47, %v10751_v59  ;;  %v9998_v59 = vrot.slane %v9996_v22, 4  ;;  %v9991_v47 = vshll.u32 %v14189_v39, 16  ;;  %v9989_v52 = vrot.slane %v9988_v60, 4  ;;  %v9851_v60 = vld [vmem:[#allocation2 + $0x78] sm:$0xf] }
 0x59c   : > { %v10068_v39 = vshrl.u32 %v9851_v60, 16 }
 0x59f   : > { %13210 = vmatmul.mubr.bf16.gmra.mrb[24].mxu1 %v14116_v41  ;;  %v17120_v41 = vsel %vm14944_vm14, %v10753_v55, %v10754_v30  ;;  %v10001_v30 = vrot.slane %v9999_v61, 5  ;;  %v9969_v55 = vrot.slane %v9967_v20, 5  ;;  %v9960_v20 = vsel %vm14534_vm9, %v9955_v35, %v17110_v40  ;;  %v14123_v40 = vld [vmem:[#allocation6 + $0x210] sm:$0xff]  }
 0x5a0   : > { %13213 = vmatprep.mubr.bf16.mxu1 %v14118_v37  ;;  %v9845_v37 = vld [vmem:[#allocation2 + $0x60] sm:$0xf]  ;;  %v11936_v13 = vcombine.low %v17116_v11, %v17120_v41  ;;  %v10046_v35 = vrot.slane %v10044_v63, 4 }
 0x5a1   : > { %v10020_v8 = vshrl.u32 %v9845_v37, 16  ;;  %v10023_v0 = vshll.u32 %v9845_v37, 16  ;;  %v10002_v22 = vor.u32 %v10001_v30, %v9998_v59  ;;  %v10013_v37 = vrot.slane %v10012_v45, 4  ;;  %v11149_v41 = vld [vmem:[%s14503_s9 + $0x8] sm:$0xff] }
 0x5a2   : > { %v9970_v59 = vsel %vm14534_vm9, %v9965_v3, %v9969_v55  ;;  %v9979_v30 = vrot.slane %v9978_v16, 4  ;;  %v10049_v3 = vrot.slane %v10047_v32, 5  ;;  %v14191_v55 = vld [vmem:[#allocation2 + $0x7c] sm:$0xf] }
 0x5a3   : > { %v10022_v61 = vrot.slane %v10020_v8, 4  ;;  %v10025_v25 = vrot.slane %v10023_v0, 5  ;;  %v10003_v45 = vrot.slane %v10002_v22, 4  ;;  %v11884_v16 = vcombine.low %v9960_v20, %v9970_v59  ;;  %v9857_v20 = vld [vmem:[#allocation2 + $0x90] sm:$0xf] }
 0x5a4   : > { %v14193_v59 = vld [vmem:[#allocation2 + $0x88] sm:$0xf] }
 0x5a5   : > { %v10026_v49 = vor.u32 %v10025_v25, %v10022_v61  ;;  %v10008_v22 = vsel %vm14534_vm9, %v10003_v45, %v17122_v15  ;;  %v14125_v45 = vld [vmem:[#allocation6 + $0x220] sm:$0xff]  }
 0x5a7   : > { %13214 = vmatmul.mubr.bf16.gmra.mrb[28].mxu1 %v14119_v17  ;;  %v17681_v17 = vld [vmem:[#allocation48_spill] sm:$0xff] }
 0x5a8   : > { %13233 = vmatprep.mubr.bf16.mxu1 %v11881_v58  ;;  %v9946_v58 = vsel %vm14534_vm9, %v9941_v27, %v9945_v31  ;;  %v10015_v5 = vshll.u32 %v17681_v17, 16  ;;  %v9993_v31 = vrot.slane %v9991_v47, 5  ;;  %v17682_v27 = vld [vmem:[#allocation53_spill] sm:$0xff]  ;;  %v10071_v47 = vshll.u32 %v9851_v60, 16 }
 0x5a9   : > { %v11883_v44 = vcombine.low %v9936_v2, %v9946_v58  ;;  %v10053_v6 = vshll.u32 %v17682_v27, 16  ;;  %v10057_v48 = vshrl.u32 %v17682_v27, 16  ;;  %v10077_v17 = vshll.u32 %v14191_v55, 16 }
 0x5aa   : > { %v10017_v23 = vrot.slane %v10015_v5, 5  ;;  %v9994_v8 = vsel %vm14534_vm9, %v9989_v52, %v9993_v31  ;;  %v10081_v5 = vshrl.u32 %v14191_v55, 16  ;;  %v9984_v52 = vsel %vm14534_vm9, %v9979_v30, %v17112_v26 }
 0x5ab   : > { %v17156_v58 = vrot.slane %v10053_v6, 5  ;;  %v11885_v61 = vcombine.low %v9984_v52, %v9994_v8  ;;  %v10037_v31 = vrot.slane %v10036_v36, 4  ;;  %v10070_v6 = vrot.slane %v10068_v39, 4  ;;  %v14194_v36 = vld [vmem:[#allocation2 + $0x94] sm:$0xf] }
 0x5ac   : > { %v10018_v0 = vsel %vm14534_vm9, %v10013_v37, %v10017_v23  ;;  %v10027_v37 = vrot.slane %v10026_v49, 4  ;;  %v10050_v26 = vor.u32 %v10049_v3, %v10046_v35  ;;  %v17165_v63 = vrot.slane %v10077_v17, 5  ;;  %v14195_v17 = vld [vmem:[#allocation2 + $0x80] sm:$0x1] }
 0x5ad   : > { %v11886_v24 = vcombine.low %v10008_v22, %v10018_v0  ;;  %v10083_v15 = vrot.slane %v10081_v5, 4  ;;  %v10101_v30 = vshll.u32 %v14193_v59, 16  ;;  %v10105_v8 = vshrl.u32 %v14193_v59, 16 }
 0x5ae   : > { %v10116_v0 = vshrl.u32 %v9857_v20, 16  ;;  %v10119_v49 = vshll.u32 %v9857_v20, 16  ;;  %v10051_v35 = vrot.slane %v10050_v26, 4  ;;  %v10087_v5 = vshll.u32 %v14195_v17, 16 }
 0x5af   : > { %13234 = vmatmul.mubr.bf16.vlgmr.msra.gmra.mrb[0].mxu1 %v11882_v51  ;;  %v14190_v51 = vld [vmem:[#allocation2 + $0x68] sm:$0x1]  ;;  %v10084_v55 = vor.u32 %v10083_v15, %v17165_v63  ;;  %v17173_v22 = vrot.slane %v10101_v30, 5 }
 0x5b0   : > { %13237 = vmatprep.mubr.bf16.mxu1 %v11883_v44  ;;  %13266 = vmatpush3.bf16.msra.mxu1 %v17068_v18  ;;  %v10039_v2 = vshll.u32 %v14190_v51, 16  ;;  %v10059_v18 = vrot.slane %v10057_v48, 4  ;;  %v9854_v44 = vld [vmem:[#allocation2 + $0x84] sm:$0xf]  ;;  %v10073_v48 = vrot.slane %v10071_v47, 5  ;;  %v10125_v51 = vshll.u32 %v14194_v36, 16 }
 0x5b1   : > { %13267 = vmatprep.subr.bf16.mxu1 %v14122_v19  ;;  %v10092_v32 = vshrl.u32 %v9854_v44, 16  ;;  %v10095_v60 = vshll.u32 %v9854_v44, 16  ;;  %v9860_v44 = vld [vmem:[#allocation2 + $0x9c] sm:$0xf]  ;;  %v10085_v26 = vrot.slane %v10084_v55, 4  ;;  %v10089_v59 = vrot.slane %v10087_v5, 5 }
 0x5b2   : > { %v10041_v25 = vrot.slane %v10039_v2, 5  ;;  %v10060_v27 = vor.u32 %v10059_v18, %v17156_v58  ;;  %v10129_v2 = vshrl.u32 %v14194_v36, 16  ;;  %v10032_v18 = vsel %vm14534_vm9, %v10027_v37, %v17141_v10  ;;  %v14197_v36 = vld [vmem:[#allocation2 + $0xa0] sm:$0xf] }
 0x5b3   : > { %v10074_v47 = vor.u32 %v10073_v48, %v10070_v6  ;;  %v10097_v52 = vrot.slane %v10095_v60, 5  ;;  %v10118_v10 = vrot.slane %v10116_v0, 4  ;;  %v10121_v37 = vrot.slane %v10119_v49, 5  ;;  %v14127_v0 = vld [vmem:[#allocation6 + $0x230] sm:$0xff]  }
 0x5b4   : > { %13268 = vmatpush3.bf16.msra.mxu1 %v14122_v19  ;;  %v14192_v19 = vld [vmem:[#allocation2 + $0x74] sm:$0x1]  ;;  %v10042_v39 = vsel %vm14534_vm9, %v10037_v31, %v10041_v25  ;;  %v17175_v20 = vrot.slane %v10125_v51, 5  ;;  %v10131_v25 = vrot.slane %v10129_v2, 4  ;;  %v14126_v31 = vld [vmem:[#allocation6 + $0x228] sm:$0xff]   ;;  %v10140_v15 = vshrl.u32 %v9860_v44, 16 }
 0x5b5   : > { %13269 = vmatprep.subr.bf16.mxu1 %v14123_v40  ;;  %v10063_v23 = vshll.u32 %v14192_v19, 16  ;;  %v10075_v48 = vrot.slane %v10074_v47, 4  ;;  %v10122_v30 = vor.u32 %v10121_v37, %v10118_v10  ;;  %v10149_v51 = vshll.u32 %v14197_v36, 16  ;;  %v14199_v47 = vld [vmem:[#allocation2 + $0xac] sm:$0xf]  ;;  %v14128_v10 = vld [vmem:[#allocation6 + $0x238] sm:$0xff]  }
 0x5b6   : > { %v10153_v2 = vshrl.u32 %v14197_v36, 16  ;;  %v10142_v5 = vrot.slane %v10140_v15, 4 }
 0x5b7   : > { %13238 = vmatmul.mubr.bf16.gmra.mrb[4].mxu1 %v11884_v16  ;;  %v10065_v3 = vrot.slane %v10063_v23, 5  ;;  %v10094_v16 = vrot.slane %v10092_v32, 4  ;;  %v10143_v32 = vshll.u32 %v9860_v44, 16 }
 0x5b8   : > { %13241 = vmatprep.mubr.bf16.mxu1 %v11885_v61  ;;  %13270 = vmatpush3.bf16.msra.mxu1 %v14123_v40  ;;  %v10061_v40 = vrot.slane %v10060_v27, 4  ;;  %v10107_v61 = vrot.slane %v10105_v8, 4  ;;  %v11887_v27 = vcombine.low %v10032_v18, %v10042_v39  ;;  %v10132_v8 = vor.u32 %v10131_v25, %v17175_v20  ;;  %v9863_v18 = vld [vmem:[#allocation2 + $0xa8] sm:$0xf]  ;;  %v14198_v39 = vld [vmem:[#allocation2 + $0x98] sm:$0x1] }
 0x5b9   : > { %13271 = vmatprep.subr.bf16.mxu1 %v14124_v50  ;;  %v10098_v19 = vor.u32 %v10097_v52, %v10094_v16  ;;  %v10145_v16 = vrot.slane %v10143_v32, 5  ;;  %v10167_v44 = vshll.u32 %v9863_v18, 16  ;;  %v14200_v32 = vld [vmem:[#allocation2 + $0xa4] sm:$0x1] }
 0x5ba   : > { %v10066_v6 = vsel %vm14534_vm9, %v10061_v40, %v10065_v3  ;;  %v10108_v23 = vor.u32 %v10107_v61, %v17173_v22  ;;  %v10135_v40 = vshll.u32 %v14198_v39, 16  ;;  %v10177_v3 = vshrl.u32 %v14199_v47, 16 }
 0x5bb   : > { %v10099_v55 = vrot.slane %v10098_v19, 4  ;;  %v10133_v52 = vrot.slane %v10132_v8, 4  ;;  %v10164_v61 = vshrl.u32 %v9863_v18, 16  ;;  %v9866_v19 = vld [vmem:[#allocation2 + $0xb4] sm:$0xf]  ;;  %v10146_v15 = vor.u32 %v10145_v16, %v10142_v5 }
 0x5bc   : > { %13272 = vmatpush3.bf16.msra.mxu1 %v14124_v50  ;;  %v10056_v50 = vsel %vm14534_vm9, %v10051_v35, %v17156_v58  ;;  %v14196_v58 = vld [vmem:[#allocation2 + $0x8c] sm:$0x1]  ;;  %v10173_v35 = vshll.u32 %v14199_v47, 16  ;;  %v10109_v17 = vrot.slane %v10108_v23, 4 }
 0x5bd   : > { %13273 = vmatprep.subr.bf16.mxu1 %v14125_v45  ;;  %v11888_v60 = vcombine.low %v10056_v50, %v10066_v6  ;;  %v10111_v49 = vshll.u32 %v14196_v58, 16  ;;  %v10155_v6 = vrot.slane %v10153_v2, 4  ;;  %v10166_v8 = vrot.slane %v10164_v61, 4  ;;  %v9869_v2 = vld [vmem:[#allocation2 + $0xc0] sm:$0xf] }
 0x5be   : > { %v17191_v50 = vrot.slane %v10173_v35, 5  ;;  %v10147_v35 = vrot.slane %v10146_v15, 4  ;;  %v10212_v16 = vshrl.u32 %v9869_v2, 16  ;;  %v10249_v15 = vshrl.u32 %v17100_v29, 16 }
 0x5bf   : > { %13242 = vmatmul.mubr.bf16.gmra.mrb[8].mxu1 %v11886_v24  ;;  %v10080_v24 = vsel %vm14534_vm9, %v10075_v48, %v17165_v63  ;;  %v10123_v63 = vrot.slane %v10122_v30, 4  ;;  %v10113_v25 = vrot.slane %v10111_v49, 5  ;;  %v10137_v48 = vrot.slane %v10135_v40, 5  ;;  %v14201_v49 = vld [vmem:[#allocation2 + $0xb8] sm:$0xf] }
 0x5c0   : > { %13245 = vmatprep.mubr.bf16.mxu1 %v11887_v27  ;;  %13274 = vmatpush3.bf16.msra.mxu1 %v14125_v45  ;;  %v10090_v45 = vsel %vm14534_vm9, %v10085_v26, %v10089_v59  ;;  %v17189_v27 = vrot.slane %v10149_v51, 5  ;;  %v10179_v26 = vrot.slane %v10177_v3, 4  ;;  %v10159_v59 = vshll.u32 %v14200_v32, 16 }
 0x5c1   : > { %13275 = vmatprep.subr.bf16.mxu1 %v14126_v31  ;;  %v11889_v37 = vcombine.low %v10080_v24, %v10090_v45  ;;  %v10114_v23 = vsel %vm14534_vm9, %v10109_v17, %v10113_v25  ;;  %v10138_v30 = vsel %vm14534_vm9, %v10133_v52, %v10137_v48  ;;  %v10169_v24 = vrot.slane %v10167_v44, 5  ;;  %v14202_v45 = vld [vmem:[#allocation2 + $0xc4] sm:$0xf]  ;;  %v14203_v17 = vld [vmem:[#allocation2 + $0xb0] sm:$0x1] }
 0x5c2   : > { %v10156_v58 = vor.u32 %v10155_v6, %v17189_v27  ;;  %v10197_v36 = vshll.u32 %v14201_v49, 16  ;;  %v10201_v51 = vshrl.u32 %v14201_v49, 16  ;;  %v10180_v18 = vor.u32 %v10179_v26, %v17191_v50  ;;  %v9872_v52 = vld [vmem:[#allocation2 + $0xcc] sm:$0xf] }
 0x5c3   : > { %v10221_v39 = vshll.u32 %v14202_v45, 16  ;;  %v10225_v40 = vshrl.u32 %v14202_v45, 16  ;;  %v10161_v3 = vrot.slane %v10159_v59, 5  ;;  %v10183_v5 = vshll.u32 %v14203_v17, 16 }
 0x5c4   : > { %13276 = vmatpush3.bf16.msra.mxu1 %v14126_v31  ;;  %v10104_v31 = vsel %vm14534_vm9, %v10099_v55, %v17173_v22  ;;  %v10188_v22 = vshrl.u32 %v9866_v19, 16  ;;  %v10170_v55 = vor.u32 %v10169_v24, %v10166_v8  ;;  %v10157_v61 = vrot.slane %v10156_v58, 4 }
 0x5c5   : > { %13277 = vmatprep.subr.bf16.mxu1 %v14127_v0  ;;  %v10203_v25 = vrot.slane %v10201_v51, 4  ;;  %v10181_v6 = vrot.slane %v10180_v18, 4  ;;  %v10223_v26 = vrot.slane %v10221_v39, 5  ;;  %v10185_v59 = vrot.slane %v10183_v5, 5 }
 0x5c6   : > { %v10190_v44 = vrot.slane %v10188_v22, 4  ;;  %v10171_v32 = vrot.slane %v10170_v55, 4  ;;  %v10152_v8 = vsel %vm14534_vm9, %v10147_v35, %v17189_v27  ;;  %v10162_v24 = vsel %vm14534_vm9, %v10157_v61, %v10161_v3 }
 0x5c7   : > { %13246 = vmatmul.mubr.bf16.gmra.mrb[12].mxu1 %v11888_v60  ;;  %v10128_v60 = vsel %vm14534_vm9, %v10123_v63, %v17175_v20  ;;  %v11890_v20 = vcombine.low %v10104_v31, %v10114_v23  ;;  %v10215_v63 = vshll.u32 %v9869_v2, 16  ;;  %v10236_v31 = vshrl.u32 %v9872_v52, 16 }
 0x5c8   : > { %13249 = vmatprep.mubr.bf16.mxu1 %v11889_v37  ;;  %13278 = vmatpush3.bf16.msra.mxu1 %v14127_v0  ;;  %v10191_v0 = vshll.u32 %v9866_v19, 16  ;;  %v11891_v47 = vcombine.low %v10128_v60, %v10138_v30  ;;  %v10199_v37 = vrot.slane %v10197_v36, 5  ;;  %v10227_v19 = vrot.slane %v10225_v40, 4  ;;  %v14204_v36 = vld [vmem:[#allocation2 + $0xbc] sm:$0x1] }
 0x5c9   : > { %13279 = vmatprep.subr.bf16.mxu1 %v14128_v10  ;;  %v10239_v23 = vshll.u32 %v9872_v52, 16  ;;  %v10214_v60 = vrot.slane %v10212_v16, 4  ;;  %v10217_v30 = vrot.slane %v10215_v63, 5  ;;  %v10186_v22 = vsel %vm14534_vm9, %v10181_v6, %v10185_v59 }
 0x5ca   : > { %v10193_v48 = vrot.slane %v10191_v0, 5  ;;  %v10204_v58 = vor.u32 %v10203_v25, %v10199_v37  ;;  %v10207_v51 = vshll.u32 %v14204_v36, 16  ;;  %v10228_v2 = vor.u32 %v10227_v19, %v10223_v26  ;;  %v17692_v36 = vld [vmem:[#allocation52_spill] sm:$0xff] }
 0x5cb   : > { %v10241_v18 = vrot.slane %v10239_v23, 5  ;;  %v10251_v45 = vrot.slane %v10249_v15, 4  ;;  %v11892_v39 = vcombine.low %v10152_v8, %v10162_v24  ;;  %v10176_v27 = vsel %vm14534_vm9, %v10171_v32, %v17191_v50  ;;  %v17686_v8 = vld [vmem:[#allocation45_spill] sm:$0xff]  ;;  %v17687_v24 = vld [vmem:[#allocation46_spill] sm:$0xff] }
 0x5cc   : > { %13280 = vmatpush3.bf16.msra.mxu1 %v14128_v10  ;;  %v10245_v10 = vshll.u32 %v17100_v29, 16  ;;  %v10194_v49 = vor.u32 %v10193_v48, %v10190_v44  ;;  %v10238_v29 = vrot.slane %v10236_v31, 4  ;;  %v10218_v40 = vor.u32 %v10217_v30, %v10214_v60  ;;  %v17683_v60 = vld [vmem:[#allocation42_spill] sm:$0xff] }
 0x5cd   : > { %v11893_v35 = vcombine.low %v10176_v27, %v10186_v22  ;;  %v10205_v3 = vrot.slane %v10204_v58, 4  ;;  %v10209_v55 = vrot.slane %v10207_v51, 5  ;;  %v10229_v17 = vrot.slane %v10228_v2, 4  ;;  %v17690_v22 = vld [vmem:[#allocation51_spill] sm:$0xff]  ;;  %v17693_v51 = vld [vmem:[#allocation54_spill] sm:$0xff] }
 0x5ce   : > { %v10247_v0 = vrot.slane %v10245_v10, 5  ;;  %v10195_v5 = vrot.slane %v10194_v49, 4  ;;  %v10242_v16 = vor.u32 %v10241_v18, %v10238_v29  ;;  %v10255_v52 = vshll.u32 %v17102_v4, 16  ;;  %v17697_v18 = vld [vmem:[#allocation56_spill] sm:$0xff]  ;;  %v17701_v27 = vld [vmem:[#allocation58_spill] sm:$0xff] }
 0x5cf   : > { %13250 = vmatmul.mubr.bf16.gmra.mrb[16].mxu1 %v11890_v20  ;;  %v14205_v20 = vld [vmem:[#allocation2 + $0xc8] sm:$0x1]  ;;  %v10219_v61 = vrot.slane %v10218_v40, 4  ;;  %v10210_v25 = vsel %vm14534_vm9, %v10205_v3, %v10209_v55  ;;  %v17688_v58 = vcombine.low %v17686_v8, %v17687_v24  ;;  %v17694_v2 = vcombine.low %v17692_v36, %v17693_v51  ;;  %v17702_v40 = vld [vmem:[#allocation59_spill] sm:$0xff] }
 0x5d0   : > { %13253 = vmatprep.mubr.bf16.mxu1 %v11891_v47  ;;  %v10231_v47 = vshll.u32 %v14205_v20, 16  ;;  %v10252_v63 = vor.u32 %v10251_v45, %v10247_v0  ;;  %v10200_v6 = vsel %vm14534_vm9, %v10195_v5, %v10199_v37  ;;  %v10243_v48 = vrot.slane %v10242_v16, 4  ;;  %v17684_v37 = vld [vmem:[#allocation43_spill] sm:$0xff]  ;;  %v17699_v45 = vld [vmem:[#allocation57_spill] sm:$0xff] }
 0x5d1   : > { %v10257_v31 = vrot.slane %v10255_v52, 5  ;;  %v11894_v23 = vcombine.low %v10200_v6, %v10210_v25  ;;  %v10224_v10 = vsel %vm14534_vm9, %v10219_v61, %v10223_v26  ;;  %v17685_v30 = vcombine.low %v17683_v60, %v17684_v37  ;;  %v17689_v26 = vld [vmem:[#allocation49_spill] sm:$0xff]  ;;  %v11154_v25 = vld [vmem:[%s14503_s9 + $0x30] sm:$0xff] }
 0x5d2   : > { %v10233_v44 = vrot.slane %v10231_v47, 5  ;;  %v10253_v19 = vrot.slane %v10252_v63, 4  ;;  %v10248_v4 = vsel %vm14534_vm9, %v10243_v48, %v10247_v0  ;;  %v17691_v49 = vcombine.low %v17689_v26, %v17690_v22  ;;  %v17704_v47 = vld [vmem:[#allocation60_spill] sm:$0xff]  ;;  %v11153_v60 = vld [vmem:[%s14503_s9 + $0x28] sm:$0xff] }
 0x5d3   : > { %v17696_v29 = vcombine.low %v16804_v9, %v17695_v34  ;;  %v17698_v0 = vcombine.low %v16813_v28, %v17697_v18  ;;  %v17703_v20 = vcombine.low %v17701_v27, %v17702_v40  ;;  %v17707_v9 = vld [vmem:[#allocation62_spill] sm:$0xff]  ;;  %v17709_v28 = vld [vmem:[#allocation63_spill] sm:$0xff]  ;;  %v11156_v34 = vld [vmem:[%s14503_s9 + $0x40] sm:$0xff] }
 0x5d4   : > { %v10234_v50 = vsel %vm14534_vm9, %v10229_v17, %v10233_v44  ;;  %v10258_v32 = vsel %vm14534_vm9, %v10253_v19, %v10257_v31  ;;  %v17708_v55 = vcombine.low %v16857_v43, %v17707_v9  ;;  %v17710_v17 = vcombine.low %v16873_v57, %v17709_v28  ;;  %v11152_v19 = vld [vmem:[%s14503_s9 + $0x20] sm:$0xff] }
 0x5d5   : > { %v11895_v15 = vcombine.low %v10224_v10, %v10234_v50  ;;  %v11896_v59 = vcombine.low %v10248_v4, %v10258_v32 }
 0x5d7   : > { %13254 = vmatmul.mubr.bf16.gmra.mrb[20].mxu1 %v11892_v39  ;;  %v17700_v39 = vcombine.low %v16826_v46, %v17699_v45  ;;  %v17281_v46 = vld [vmem:[%s17435_s2] ss:$0 sm:$0xff]  ;;  %v11159_v45 = vld [vmem:[%s14503_s9 + $0x58] sm:$0xff] }
 0x5d8   : > { %13257 = vmatprep.mubr.bf16.mxu1 %v11893_v35  ;;  %v17705_v35 = vld [vmem:[#allocation61_spill] sm:$0xff] }
 0x5d9   : > { %v17706_v3 = vcombine.low %v17704_v47, %v17705_v35 }
 0x5df   : > { %13258 = vmatmul.mubr.bf16.gmra.mrb[24].mxu1 %v11894_v23 }
 0x5e0   : > { %13261 = vmatprep.mubr.bf16.mxu1 %v11895_v15  ;;  %v11155_v15 = vld [vmem:[%s14503_s9 + $0x38] sm:$0xff] }
 0x5e7   : > { %13262 = vmatmul.mubr.bf16.gmra.mrb[28].mxu1 %v11896_v59 }
 0x5e8   : > { %13281 = vmatprep.mubr.bf16.mxu1 %v17685_v30 }
 0x5ef   : > { %13282 = vmatmul.mubr.bf16.vlgmr.msra.gmra.mrb[0].mxu1 %v17688_v58 }
 0x5f0   : > { %13285 = vmatprep.mubr.bf16.mxu1 %v17691_v49  ;;  %v11158_v49 = vld [vmem:[%s14503_s9 + $0x50] sm:$0xff] }
 0x5f7   : > { %13286 = vmatmul.mubr.bf16.gmra.mrb[4].mxu1 %v17694_v2 }
 0x5f8   : > { %13289 = vmatprep.mubr.bf16.mxu1 %v17696_v29 }
 0x5ff   : > { %13290 = vmatmul.mubr.bf16.gmra.mrb[8].mxu1 %v17698_v0 }
 0x600   : > { %13293 = vmatprep.mubr.bf16.mxu1 %v17700_v39 }
 0x607   : > { %13294 = vmatmul.mubr.bf16.gmra.mrb[12].mxu1 %v17703_v20  ;;  %v11157_v20 = vld [vmem:[%s14503_s9 + $0x48] sm:$0xff] }
 0x608   : > { %13297 = vmatprep.mubr.bf16.mxu1 %v17706_v3 }
 0x60f   : > { %13298 = vmatmul.mubr.bf16.gmra.mrb[16].mxu1 %v17708_v55 }
 0x610   : > { %13301 = vmatprep.mubr.bf16.mxu1 %v17710_v17 }
 0x617   : > { %13302 = vmatmul.mubr.bf16.gmra.mrb[20].mxu1 %v11932_v33 }
 0x618   : > { %13305 = vmatprep.mubr.bf16.mxu1 %v11933_v38 }
 0x61f   : > { %13306 = vmatmul.mubr.bf16.gmra.mrb[24].mxu1 %v11934_v7 }
 0x620   : > { %13309 = vmatprep.mubr.bf16.mxu1 %v11935_v62 }
 0x627   : > { %13310 = vmatmul.mubr.bf16.gmra.mrb[28].mxu1 %v11936_v13 }
 0x6c2   : > { %v13283_v43 = vpop.f32.mrb[0].mxu1 }
 0x6c3   : > { %v11086_v57 = vadd.f32 %v13283_v43, %v17281_v46  ;;  %v10918_v14 = vpop.f32.mrb[1].mxu1  ;;  %v11162_v43 = vld [vmem:[%s14503_s9 + $0x70] sm:$0xff] }
 0x6c4   : > { %v11084_v33 = vadd.f32 %v17281_v46, %v10918_v14  ;;  %v13284_v1 = vpop.f32.mrb[2].mxu1 }
 0x6c5   : > { %v11118_v53 = vmul.f32 0.1, %v11086_v57  ;;  %v11087_v38 = vadd.f32 %v13284_v1, %v17281_v46  ;;  %v10921_v56 = vpop.f32.mrb[3].mxu1 }
 0x6c6   : > { %v11116_v7 = vmul.f32 0.1, %v11084_v33  ;;  %v11085_v42 = vadd.f32 %v17281_v46, %v10921_v56  ;;  %v11160_v33 = vld [vmem:[%s14503_s9 + $0x60] sm:$0xff] }
 0x6c7   : > { %v11182_v62 = vadd.f32 %v11150_v54, %v11118_v53  ;;  %v11119_v11 = vmul.f32 0.1, %v11087_v38  ;;  %v11163_v38 = vld [vmem:[%s14503_s9 + $0x78] sm:$0xff] }
 0x6c8   : > { %v11180_v13 = vadd.f32 %v11148_v21, %v11116_v7  ;;  %v11117_v5 = vmul.f32 0.1, %v11085_v42  ;;  %v11161_v42 = vld [vmem:[%s14503_s9 + $0x68] sm:$0xff] }
 0x6c9   : > { %11214 = vst [vmem:[%s17293_s10 + $0x10] sm:$0xff] %v11182_v62  ;;  %v11183_v16 = vadd.f32 %v11151_v12, %v11119_v11 }
 0x6ca   : > { %11212 = vst [vmem:[%s17293_s10] sm:$0xff] %v11180_v13  ;;  %v11181_v63 = vadd.f32 %v11149_v41, %v11117_v5  ;;  %v13287_v52 = vpop.f32.mrb[4].mxu1 }
 0x6cb   : > { %11215 = vst [vmem:[%s17293_s10 + $0x18] sm:$0xff] %v11183_v16  ;;  %v11090_v61 = vadd.f32 %v13287_v52, %v17281_v46  ;;  %v10934_v44 = vpop.f32.mrb[5].mxu1  ;;  %v11166_v52 = vld [vmem:[%s14503_s9 + $0x90] sm:$0xff] }
 0x6cc   : > { %11213 = vst [vmem:[%s17293_s10 + $0x8] sm:$0xff] %v11181_v63  ;;  %v11088_v50 = vadd.f32 %v17281_v46, %v10934_v44  ;;  %v13288_v6 = vpop.f32.mrb[6].mxu1 }
 0x6cd   : > { %v11122_v48 = vmul.f32 0.1, %v11090_v61  ;;  %v11091_v31 = vadd.f32 %v13288_v6, %v17281_v46  ;;  %v10937_v23 = vpop.f32.mrb[7].mxu1 }
 0x6ce   : > { %v11120_v10 = vmul.f32 0.1, %v11088_v50  ;;  %v11089_v4 = vadd.f32 %v17281_v46, %v10937_v23  ;;  %v11164_v50 = vld [vmem:[%s14503_s9 + $0x80] sm:$0xff] }
 0x6cf   : > { %v11186_v32 = vadd.f32 %v11154_v25, %v11122_v48  ;;  %v11123_v59 = vmul.f32 0.1, %v11091_v31  ;;  %v11167_v31 = vld [vmem:[%s14503_s9 + $0x98] sm:$0xff] }
 0x6d0   : > { %v11184_v37 = vadd.f32 %v11152_v19, %v11120_v10  ;;  %v11121_v30 = vmul.f32 0.1, %v11089_v4  ;;  %v11165_v4 = vld [vmem:[%s14503_s9 + $0x88] sm:$0xff] }
 0x6d1   : > { %11218 = vst [vmem:[%s17293_s10 + $0x30] sm:$0xff] %v11186_v32  ;;  %v11187_v8 = vadd.f32 %v11155_v15, %v11123_v59 }
 0x6d2   : > { %11216 = vst [vmem:[%s17293_s10 + $0x20] sm:$0xff] %v11184_v37  ;;  %v11185_v24 = vadd.f32 %v11153_v60, %v11121_v30  ;;  %v13291_v58 = vpop.f32.mrb[8].mxu1 }
 0x6d3   : > { %11219 = vst [vmem:[%s17293_s10 + $0x38] sm:$0xff] %v11187_v8  ;;  %v11094_v26 = vadd.f32 %v13291_v58, %v17281_v46  ;;  %v10950_v22 = vpop.f32.mrb[9].mxu1  ;;  %v11170_v58 = vld [vmem:[%s14503_s9 + $0xb0] sm:$0xff] }
 0x6d4   : > { %11217 = vst [vmem:[%s17293_s10 + $0x28] sm:$0xff] %v11185_v24  ;;  %v11092_v36 = vadd.f32 %v17281_v46, %v10950_v22  ;;  %v13292_v51 = vpop.f32.mrb[10].mxu1 }
 0x6d5   : > { %v11126_v2 = vmul.f32 0.1, %v11094_v26  ;;  %v11095_v29 = vadd.f32 %v13292_v51, %v17281_v46  ;;  %v10953_v18 = vpop.f32.mrb[11].mxu1 }
 0x6d6   : > { %v11124_v0 = vmul.f32 0.1, %v11092_v36  ;;  %v11093_v39 = vadd.f32 %v17281_v46, %v10953_v18  ;;  %v11168_v36 = vld [vmem:[%s14503_s9 + $0xa0] sm:$0xff] }
 0x6d7   : > { %v11190_v27 = vadd.f32 %v11158_v49, %v11126_v2  ;;  %v11127_v40 = vmul.f32 0.1, %v11095_v29  ;;  %v11171_v29 = vld [vmem:[%s14503_s9 + $0xb8] sm:$0xff] }
 0x6d8   : > { %v11188_v47 = vadd.f32 %v11156_v34, %v11124_v0  ;;  %v11125_v35 = vmul.f32 0.1, %v11093_v39  ;;  %v11169_v39 = vld [vmem:[%s14503_s9 + $0xa8] sm:$0xff] }
 0x6d9   : > { %11222 = vst [vmem:[%s17293_s10 + $0x50] sm:$0xff] %v11190_v27  ;;  %v11191_v3 = vadd.f32 %v11159_v45, %v11127_v40 }
 0x6da   : > { %11220 = vst [vmem:[%s17293_s10 + $0x40] sm:$0xff] %v11188_v47  ;;  %v11189_v9 = vadd.f32 %v11157_v20, %v11125_v35  ;;  %v13295_v55 = vpop.f32.mrb[12].mxu1 }
 0x6db   : > { %11223 = vst [vmem:[%s17293_s10 + $0x58] sm:$0xff] %v11191_v3  ;;  %v11098_v28 = vadd.f32 %v13295_v55, %v17281_v46  ;;  %v10966_v17 = vpop.f32.mrb[13].mxu1  ;;  %v11174_v55 = vld [vmem:[%s14503_s9 + $0xd0] sm:$0xff] }
 0x6dc   : > { %11221 = vst [vmem:[%s17293_s10 + $0x48] sm:$0xff] %v11189_v9  ;;  %v11096_v57 = vadd.f32 %v17281_v46, %v10966_v17  ;;  %v13296_v14 = vpop.f32.mrb[14].mxu1 }
 0x6dd   : > { %v11130_v54 = vmul.f32 0.1, %v11098_v28  ;;  %v11099_v1 = vadd.f32 %v13296_v14, %v17281_v46  ;;  %v10969_v53 = vpop.f32.mrb[15].mxu1 }
 0x6de   : > { %v11128_v21 = vmul.f32 0.1, %v11096_v57  ;;  %v11097_v56 = vadd.f32 %v17281_v46, %v10969_v53  ;;  %v11172_v57 = vld [vmem:[%s14503_s9 + $0xc0] sm:$0xff] }
 0x6df   : > { %v11194_v7 = vadd.f32 %v11162_v43, %v11130_v54  ;;  %v11131_v12 = vmul.f32 0.1, %v11099_v1  ;;  %v11175_v1 = vld [vmem:[%s14503_s9 + $0xd8] sm:$0xff] }
 0x6e0   : > { %v11192_v62 = vadd.f32 %v11160_v33, %v11128_v21  ;;  %v11129_v11 = vmul.f32 0.1, %v11097_v56  ;;  %v11173_v56 = vld [vmem:[%s14503_s9 + $0xc8] sm:$0xff] }
 0x6e1   : > { %11226 = vst [vmem:[%s17293_s10 + $0x70] sm:$0xff] %v11194_v7  ;;  %v11195_v41 = vadd.f32 %v11163_v38, %v11131_v12 }
 0x6e2   : > { %11224 = vst [vmem:[%s17293_s10 + $0x60] sm:$0xff] %v11192_v62  ;;  %v11193_v13 = vadd.f32 %v11161_v42, %v11129_v11  ;;  %v13299_v5 = vpop.f32.mrb[16].mxu1 }
 0x6e3   : > { %11227 = vst [vmem:[%s17293_s10 + $0x78] sm:$0xff] %v11195_v41  ;;  %v11102_v16 = vadd.f32 %v13299_v5, %v17281_v46  ;;  %v10982_v63 = vpop.f32.mrb[17].mxu1  ;;  %v11178_v5 = vld [vmem:[%s14503_s9 + $0xf0] sm:$0xff] }
 0x6e4   : > { %11225 = vst [vmem:[%s17293_s10 + $0x68] sm:$0xff] %v11193_v13  ;;  %v11100_v61 = vadd.f32 %v17281_v46, %v10982_v63  ;;  %v13300_v44 = vpop.f32.mrb[18].mxu1 }
 0x6e5   : > { %v11134_v25 = vmul.f32 0.1, %v11102_v16  ;;  %v11103_v6 = vadd.f32 %v13300_v44, %v17281_v46  ;;  %v10985_v48 = vpop.f32.mrb[19].mxu1 }
 0x6e6   : > { %v11132_v19 = vmul.f32 0.1, %v11100_v61  ;;  %v11101_v23 = vadd.f32 %v17281_v46, %v10985_v48  ;;  %v11176_v61 = vld [vmem:[%s14503_s9 + $0xe0] sm:$0xff] }
 0x6e7   : > { %v11198_v10 = vadd.f32 %v11166_v52, %v11134_v25  ;;  %v11135_v15 = vmul.f32 0.1, %v11103_v6  ;;  %v11179_v6 = vld [vmem:[%s14503_s9 + $0xf8] sm:$0xff] }
 0x6e8   : > { %v11196_v32 = vadd.f32 %v11164_v50, %v11132_v19  ;;  %v11133_v59 = vmul.f32 0.1, %v11101_v23  ;;  %v11177_v23 = vld [vmem:[%s14503_s9 + $0xe8] sm:$0xff] }
 0x6e9   : > { %11230 = vst [vmem:[%s17293_s10 + $0x90] sm:$0xff] %v11198_v10  ;;  %v11199_v60 = vadd.f32 %v11167_v31, %v11135_v15 }
 0x6ea   : > { %11228 = vst [vmem:[%s17293_s10 + $0x80] sm:$0xff] %v11196_v32  ;;  %v11197_v37 = vadd.f32 %v11165_v4, %v11133_v59  ;;  %v13303_v30 = vpop.f32.mrb[20].mxu1 }
 0x6eb   : > { %11231 = vst [vmem:[%s17293_s10 + $0x98] sm:$0xff] %v11199_v60  ;;  %v11106_v8 = vadd.f32 %v13303_v30, %v17281_v46  ;;  %v10998_v24 = vpop.f32.mrb[21].mxu1 }
 0x6ec   : > { %11229 = vst [vmem:[%s17293_s10 + $0x88] sm:$0xff] %v11197_v37  ;;  %v11104_v26 = vadd.f32 %v17281_v46, %v10998_v24  ;;  %v13304_v22 = vpop.f32.mrb[22].mxu1 }
 0x6ed   : > { %v11138_v49 = vmul.f32 0.1, %v11106_v8  ;;  %v11107_v51 = vadd.f32 %v13304_v22, %v17281_v46  ;;  %v11001_v2 = vpop.f32.mrb[23].mxu1 }
 0x6ee   : > { %v11136_v34 = vmul.f32 0.1, %v11104_v26  ;;  %v11105_v18 = vadd.f32 %v17281_v46, %v11001_v2 }
 0x6ef   : > { %v11202_v0 = vadd.f32 %v11170_v58, %v11138_v49  ;;  %v11139_v45 = vmul.f32 0.1, %v11107_v51 }
 0x6f0   : > { %v11200_v27 = vadd.f32 %v11168_v36, %v11136_v34  ;;  %v11137_v40 = vmul.f32 0.1, %v11105_v18 }
 0x6f1   : > { %11234 = vst [vmem:[%s17293_s10 + $0xb0] sm:$0xff] %v11202_v0  ;;  %v11203_v20 = vadd.f32 %v11171_v29, %v11139_v45 }
 0x6f2   : > { %11232 = vst [vmem:[%s17293_s10 + $0xa0] sm:$0xff] %v11200_v27  ;;  %v11201_v47 = vadd.f32 %v11169_v39, %v11137_v40  ;;  %v13307_v35 = vpop.f32.mrb[24].mxu1 }
 0x6f3   : > { %11235 = vst [vmem:[%s17293_s10 + $0xb8] sm:$0xff] %v11203_v20  ;;  %v11110_v3 = vadd.f32 %v13307_v35, %v17281_v46  ;;  %v11014_v9 = vpop.f32.mrb[25].mxu1 }
 0x6f4   : > { %11233 = vst [vmem:[%s17293_s10 + $0xa8] sm:$0xff] %v11201_v47  ;;  %v11108_v28 = vadd.f32 %v17281_v46, %v11014_v9  ;;  %v13308_v17 = vpop.f32.mrb[26].mxu1 }
 0x6f5   : > { %v11142_v43 = vmul.f32 0.1, %v11110_v3  ;;  %v11111_v14 = vadd.f32 %v13308_v17, %v17281_v46  ;;  %v11017_v54 = vpop.f32.mrb[27].mxu1 }
 0x6f6   : > { %v11140_v33 = vmul.f32 0.1, %v11108_v28  ;;  %v11109_v53 = vadd.f32 %v17281_v46, %v11017_v54 }
 0x6f7   : > { %v11206_v21 = vadd.f32 %v11174_v55, %v11142_v43  ;;  %v11143_v38 = vmul.f32 0.1, %v11111_v14 }
 0x6f8   : > { %v11204_v7 = vadd.f32 %v11172_v57, %v11140_v33  ;;  %v11141_v12 = vmul.f32 0.1, %v11109_v53 }
 0x6f9   : > { %11238 = vst [vmem:[%s17293_s10 + $0xd0] sm:$0xff] %v11206_v21  ;;  %v11207_v42 = vadd.f32 %v11175_v1, %v11143_v38 }
 0x6fa   : > { %11236 = vst [vmem:[%s17293_s10 + $0xc0] sm:$0xff] %v11204_v7  ;;  %v11205_v62 = vadd.f32 %v11173_v56, %v11141_v12  ;;  %v13311_v11 = vpop.f32.mrb[28].mxu1 }
 0x6fb   : > { %11239 = vst [vmem:[%s17293_s10 + $0xd8] sm:$0xff] %v11207_v42  ;;  %v11114_v41 = vadd.f32 %v13311_v11, %v17281_v46  ;;  %v11030_v13 = vpop.f32.mrb[29].mxu1 }
 0x6fc   : > { %11237 = vst [vmem:[%s17293_s10 + $0xc8] sm:$0xff] %v11205_v62  ;;  %v11112_v16 = vadd.f32 %v17281_v46, %v11030_v13  ;;  %v13312_v63 = vpop.f32.mrb[30].mxu1 }
 0x6fd   : > { %v11146_v52 = vmul.f32 0.1, %v11114_v41  ;;  %v11115_v44 = vadd.f32 %v13312_v63, %v17281_v46  ;;  %v11033_v25 = vpop.f32.mrb[31].mxu1 }
 0x6fe   : > { %v11144_v50 = vmul.f32 0.1, %v11112_v16  ;;  %v11113_v48 = vadd.f32 %v17281_v46, %v11033_v25 }
 0x6ff   : > { %v11210_v19 = vadd.f32 %v11178_v5, %v11146_v52  ;;  %v11147_v31 = vmul.f32 0.1, %v11115_v44 }
 0x700   : > { %v11208_v10 = vadd.f32 %v11176_v61, %v11144_v50  ;;  %v11145_v15 = vmul.f32 0.1, %v11113_v48 }
 0x701   : > { %11242 = vst [vmem:[%s17293_s10 + $0xf0] sm:$0xff] %v11210_v19  ;;  %v11211_v4 = vadd.f32 %v11179_v6, %v11147_v31 }
 0x702   : > { %11240 = vst [vmem:[%s17293_s10 + $0xe0] sm:$0xff] %v11208_v10  ;;  %v11209_v46 = vadd.f32 %v11177_v23, %v11145_v15 }
 0x703   : > { %11243 = vst [vmem:[%s17293_s10 + $0xf8] sm:$0xff] %v11211_v4 }
 0x704   : > { %11241 = vst [vmem:[%s17293_s10 + $0xe8] sm:$0xff] %v11209_v46 }
 0x705   : > { %14277 = shalt.err (!%p14274_p7)
}
 0x706   : > { %s14278_s9 = scalar_lea.hbm %s17385_s23, 4096  ;;  %s14282_s4 = scalar_lea.hbm %s17436_s3, 16384 }
 0x707   : > { %p14279_p9 = scmp.ne.s32.totalorder %s17385_s23, %s14278_s9  ;;  %p14283_p5 = scmp.lt.u32.totalorder %s17385_s23, %s17436_s3 }
 0x708   : > { %p14284_p10 = scmp.lt.u32.totalorder %s14282_s4, %s14278_s9  ;;  %p14286_p1 = scmp.lt.u32.totalorder %s14278_s9, %s17385_s23 }
 0x709   : > { %p14280_p11 = pnand %p14279_p9, %p14449_p12 }
 0x70a   : > { %p14285_p2 = por %p14284_p10, %p14283_p5 }
 0x70b   : > { %p14281_p0 = pneg %p14280_p11 }
 0x70c   : > { %p14287_p4 = por %p14286_p1, %p14285_p2 }
 0x70e   : > { %p14288_p6 = pnand %p14287_p4, %p14281_p0 }
 0x710   : > { %14291 = shalt.err (!%p14288_p6)
}
 0x711   : > { %s14344_s5 = smov 128   ;;  %s14345_s10 = smov 8  }
 0x712   : > { %13831 = dma.vmem_to_hbm [thread:$0]  (%p14449_p12), %s17387_s27, 4096, %s17385_s23, %s11245_s16, %s14344_s5, %s14344_s5, %s14345_s10  }
 0x713 PF: > { %p13848_p8 = scmp.ge.s32.totalorder %s14334_s15, 2  ;;  %s11273_s11 = sand.u32 1, %s14322_s12  }
 0x714   : > { %p17711_p13 = scmp.ne.s32.totalorder %s17515_s19, 0  ;;  %s11274_s28 = scalar_lea.sflag [#allocation5], %s11273_s11 }
 0x716   : > { %p13842_p3 = pnand %p13848_p8, %p17711_p13 }
 0x718   : > { %14317 = dma.done.wait (!%p13842_p3), %s11274_s28, 4096  }
 0x719   : > { %14319 = vsyncadd (!%p13842_p3), %s11274_s28, 4294963200  ;;  %p17_p7 = scmp.ge.s32.totalorder %s14419_s24, 6   ;;  %s17712_s12 = smov %s14326_s13 }
 0x71a   : > { %s17713_s13 = smov %s14330_s14  ;;  %s17714_s14 = smov %s14445_s17 }
 0x71b   : > { %s17715_s15 = smov %s14419_s24  ;;  %19 = sbr.rel (!%p17_p7) target bundleno = 6 (0x6), region = 92 }
 0x722   :  { %11279 = vsyncpa [#allocation4], 1 }
 0x723   :  { %11281 = vsyncpa [#allocation4 + $0x1], 1 }
 0x724   :  { %11282 = vsyncpa [#allocation7], 1 }
 0x725   :  { %11283 = vsyncpa [#allocation5], 1 }
 0x726   :  { %11285 = vsyncpa [#allocation5 + $0x1], 1 }

</bundles_post_ra>
